<compile_context>
chip_gen: v7x
topology: tpu7x:2x2x1
jax: 0.10.0
libtpu: 0.0.40
codegen_flags: <defaults>
</compile_context>

<pallas_src>
import functools

import jax
import jax.numpy as jnp
from jax.experimental import pallas as pl
from jax.experimental.pallas import tpu as pltpu


# ---------------------------------------------------------------------------
# In-kernel helpers (operate on f32 values held in VMEM/vregs)
# ---------------------------------------------------------------------------
def _upsample2x(a):
    """Nearest-neighbour x2 upsample of an (H, W, C) value, fully in VMEM."""
    H, W, C = a.shape
    # Row direction: (H, W, C) -> (H, 2, W, C) -> (2H, W, C).  Outer-dim only.
    a = jnp.broadcast_to(a[:, None, :, :], (H, 2, W, C)).reshape(2 * H, W, C)
    # Col direction: (2H, W, C) -> (2H, W, 2, C) -> (2H, 2W, C).  The lane dim
    # (C) is preserved by every reshape, so this is a cheap sublane regroup.
    a = jnp.broadcast_to(a[:, :, None, :], (2 * H, W, 2, C)).reshape(
        2 * H, 2 * W, C)
    return a


def _deconv_block_body(a, w2, b, *, last_layer):
    """Upsample(x2 nearest) -> 3x3 SAME conv (one im2col matmul) -> activation.

    a  : (H, W, Cin)  f32 value
    w2 : (9*Cin, Cout) f32, rows ordered (dy, dx, ci) row-major (= HWIO reshape)
    b  : (1, Cout)    f32
    returns (2H, 2W, Cout) f32 value
    """
    H, W, Cin = a.shape
    Ho, Wo = 2 * H, 2 * W
    Cout = w2.shape[-1]

    up = _upsample2x(a)                                         # (Ho, Wo, Cin)

    # Zero pad by 1 in H and W (concatenate lowers cleanly; jnp.pad avoided).
    zrow = jnp.zeros((1, Wo, Cin), jnp.float32)
    up = jnp.concatenate([zrow, up, zrow], axis=0)              # (Ho+2, Wo, Cin)
    zcol = jnp.zeros((Ho + 2, 1, Cin), jnp.float32)
    up = jnp.concatenate([zcol, up, zcol], axis=1)              # (Ho+2, Wo+2, Cin)

    # im2col: build one (Ho*Wo, 9*Cin) patch matrix -> single MXU matmul.
    # Each slice keeps the lane dim (Cin); Wo is a multiple of 8 so the
    # (Ho, Wo, Cin) -> (Ho*Wo, Cin) collapse is layout-preserving.
    cols = [up[dy:dy + Ho, dx:dx + Wo, :].reshape(Ho * Wo, Cin)
            for dy in range(3) for dx in range(3)]
    patch = jnp.concatenate(cols, axis=-1)                      # (Ho*Wo, 9*Cin)

    out = jnp.dot(patch, w2, preferred_element_type=jnp.float32) + b
    if last_layer:
        out = jax.nn.sigmoid(out)                               # torch.sigmoid
    else:
        out = jnp.where(out >= 0.0, out, 0.5 * out)             # LeakyReLU(0.5)
    return out.reshape(Ho, Wo, Cout)


def _decoder_kernel(*refs, blocks):
    # refs = [x_ref, w_1, b_1, ..., w_blocks, b_blocks, o_ref]
    x_ref = refs[0]
    o_ref = refs[-1]
    a = x_ref[0]                                                # (H0, W0, C0)
    for k in range(blocks):
        w_ref = refs[1 + 2 * k]
        b_ref = refs[2 + 2 * k]
        a = _deconv_block_body(a, w_ref[...], b_ref[...],
                               last_layer=(k == blocks - 1))
    o_ref[0] = a                                                # (Hout, Wout, Clast)


# ---------------------------------------------------------------------------
# Wrapper (matches Decoder.forward semantics, 'upsample' branch)
# ---------------------------------------------------------------------------
def init_decoder_params(key, config):
    C0 = config['first_deconv_size'][0]
    channels = config['channels']
    params = []
    cin = C0
    for k in range(config['blocks']):
        cout = channels[k]
        key, kw, kb = jax.random.split(key, 3)
        w = 0.1 * jax.random.normal(kw, (3, 3, cin, cout), jnp.float32)  # HWIO
        b = 0.1 * jax.random.normal(kb, (1, cout), jnp.float32)
        params.append((w, b))
        cin = cout
    return params


def decoder_forward(x, params, config):
    """x: (B, prod(first_deconv_size)) f32 -> (B, C_last, H_out, W_out) NCHW."""
    C0, H0, W0 = config['first_deconv_size']
    blocks = config['blocks']
    B = x.shape[0]

    # PyTorch: x.view(B, C0, H0, W0) (NCHW); kernel works channels-last.
    h0 = x.reshape(B, C0, H0, W0).transpose(0, 2, 3, 1)          # (B, H0, W0, C0)

    flat_args = []
    in_specs = [pl.BlockSpec((1, H0, W0, C0), lambda n: (n, 0, 0, 0))]
    for (w, b) in params:
        cin, cout = w.shape[2], w.shape[3]
        flat_args += [w.reshape(9 * cin, cout), b]               # im2col weights
        in_specs += [
            pl.BlockSpec((9 * cin, cout), lambda n: (0, 0)),
            pl.BlockSpec((1, cout), lambda n: (0, 0)),
        ]

    H_out, W_out = H0 * 2 ** blocks, W0 * 2 ** blocks
    C_last = config['channels'][-1]

    kern = functools.partial(_decoder_kernel, blocks=blocks)
    out_nhwc = pl.pallas_call(
        kern,
        out_shape=jax.ShapeDtypeStruct((B, H_out, W_out, C_last), jnp.float32),
        grid=(B,),
        in_specs=in_specs,
        out_specs=pl.BlockSpec((1, H_out, W_out, C_last), lambda n: (n, 0, 0, 0)),
        compiler_params=pltpu.CompilerParams(
            dimension_semantics=("parallel",),        # megacore: 1 image / TC
            vmem_limit_bytes=32 * 1024 * 1024),       # raise v5e's 16 MiB default
    )(h0, *flat_args)

    return out_nhwc.transpose(0, 3, 1, 2)             # NCHW, as in PyTorch


# ---------------------------------------------------------------------------
# Pure-JAX reference (for correctness check of the Pallas path)
# ---------------------------------------------------------------------------
def decoder_reference(x, params, config):
    C0, H0, W0 = config['first_deconv_size']
    B = x.shape[0]
    h = x.reshape(B, C0, H0, W0).transpose(0, 2, 3, 1)
    blocks = config['blocks']
    for k, (w, b) in enumerate(params):
        h = jnp.repeat(jnp.repeat(h, 2, axis=1), 2, axis=2)
        h = jax.lax.conv_general_dilated(
            h, w, window_strides=(1, 1), padding='SAME',
            dimension_numbers=('NHWC', 'HWIO', 'NHWC')) + b.reshape(1, 1, 1, -1)
        if k < blocks - 1:
            h = jnp.where(h >= 0.0, h, 0.5 * h)
        else:
            h = jax.nn.sigmoid(h)
    return h.transpose(0, 3, 1, 2)


if __name__ == "__main__":
    config = {
        'first_deconv_size': (8, 4, 4),   # (C0, H0, W0)
        'channels': [8, 8, 4],
        'blocks': 3,
        'up': 'upsample',
    }
    latent_dim = 32  # fc(latent_dim -> 128) is defined but unused by forward

    key = jax.random.PRNGKey(0)
    key, kx = jax.random.split(key)
    B = 2
    flat = config['first_deconv_size'][0] * config['first_deconv_size'][1] * \
        config['first_deconv_size'][2]
    x = jax.random.normal(kx, (B, flat), jnp.float32)            # (2, 128)

    params = init_decoder_params(key, config)

    out = jax.jit(lambda xx: decoder_forward(xx, params, config))(x)
    out = jax.block_until_ready(out)

    ref = jax.block_until_ready(decoder_reference(x, params, config))

    assert out.shape == (B, config['channels'][-1], 32, 32), out.shape
    err = float(jnp.max(jnp.abs(out - ref)))
    assert jnp.allclose(out, ref, atol=1e-4, rtol=1e-4), err

    print("KERNEL_OK")
</pallas_src>

<mosaic_0001>
module attributes {stable_mosaic.version = 11 : i64} {
  func.func @_decoder_kernel(%arg0: i32, %arg1: memref<1x4x4x8xf32, #tpu.memory_space<vmem>>, %arg2: memref<72x8xf32, #tpu.memory_space<vmem>>, %arg3: memref<1x8xf32, #tpu.memory_space<vmem>>, %arg4: memref<72x8xf32, #tpu.memory_space<vmem>>, %arg5: memref<1x8xf32, #tpu.memory_space<vmem>>, %arg6: memref<72x4xf32, #tpu.memory_space<vmem>>, %arg7: memref<1x4xf32, #tpu.memory_space<vmem>>, %arg8: memref<1x32x32x4xf32, #tpu.memory_space<vmem>>) attributes {dimension_semantics = [#tpu.dimension_semantics<parallel>], iteration_bounds = array<i64: 2>, scalar_prefetch = 0 : i64, scratch_operands = 0 : i64, tpu.core_type = #tpu.core_type<tc>, window_params = [{transform_indices = @transform_0, window_bounds = array<i64: 1, 4, 4, 8>}, {pipeline_mode = #tpu.pipeline_mode<synchronous>, transform_indices = @transform_1, window_bounds = array<i64: 72, 8>}, {pipeline_mode = #tpu.pipeline_mode<synchronous>, transform_indices = @transform_2, window_bounds = array<i64: 1, 8>}, {pipeline_mode = #tpu.pipeline_mode<synchronous>, transform_indices = @transform_3, window_bounds = array<i64: 72, 8>}, {pipeline_mode = #tpu.pipeline_mode<synchronous>, transform_indices = @transform_4, window_bounds = array<i64: 1, 8>}, {pipeline_mode = #tpu.pipeline_mode<synchronous>, transform_indices = @transform_5, window_bounds = array<i64: 72, 4>}, {pipeline_mode = #tpu.pipeline_mode<synchronous>, transform_indices = @transform_6, window_bounds = array<i64: 1, 4>}, {transform_indices = @transform_7, window_bounds = array<i64: 1, 32, 32, 4>}]} {
    %c0 = arith.constant 0 : index
    %c0_0 = arith.constant 0 : index
    %c0_1 = arith.constant 0 : index
    %c0_2 = arith.constant 0 : index
    %0 = vector.load %arg1[%c0, %c0_0, %c0_1, %c0_2] : memref<1x4x4x8xf32, #tpu.memory_space<vmem>>, vector<1x4x4x8xf32>
    %1 = vector.shape_cast %0 : vector<1x4x4x8xf32> to vector<4x4x8xf32>
    %c0_3 = arith.constant 0 : index
    %c0_4 = arith.constant 0 : index
    %2 = vector.load %arg2[%c0_3, %c0_4] : memref<72x8xf32, #tpu.memory_space<vmem>>, vector<72x8xf32>
    %c0_5 = arith.constant 0 : index
    %c0_6 = arith.constant 0 : index
    %3 = vector.load %arg3[%c0_5, %c0_6] : memref<1x8xf32, #tpu.memory_space<vmem>>, vector<1x8xf32>
    %4 = vector.shape_cast %1 : vector<4x4x8xf32> to vector<4x1x4x8xf32>
    %5 = vector.shape_cast %4 : vector<4x1x4x8xf32> to vector<4x1x4x8xf32>
    %6 = vector.broadcast %5 : vector<4x1x4x8xf32> to vector<4x2x4x8xf32>
    %7 = vector.shape_cast %6 : vector<4x2x4x8xf32> to vector<8x4x8xf32>
    %8 = vector.shape_cast %7 : vector<8x4x8xf32> to vector<8x4x1x8xf32>
    %9 = vector.shape_cast %8 : vector<8x4x1x8xf32> to vector<8x4x1x8xf32>
    %10 = vector.broadcast %9 : vector<8x4x1x8xf32> to vector<8x4x2x8xf32>
    %11 = vector.shape_cast %10 : vector<8x4x2x8xf32> to vector<8x8x8xf32>
    %cst = arith.constant 0.000000e+00 : f32
    %12 = vector.broadcast %cst : f32 to vector<1x8x8xf32>
    %13 = tpu.concatenate %12, %11, %12 in 0 : vector<1x8x8xf32>, vector<8x8x8xf32>, vector<1x8x8xf32> -> vector<10x8x8xf32>
    %cst_7 = arith.constant 0.000000e+00 : f32
    %14 = vector.broadcast %cst_7 : f32 to vector<10x1x8xf32>
    %15 = tpu.concatenate %14, %13, %14 in 1 : vector<10x1x8xf32>, vector<10x8x8xf32>, vector<10x1x8xf32> -> vector<10x10x8xf32>
    %16 = vector.extract_strided_slice %15 {offsets = [0, 0, 0], sizes = [8, 8, 8], strides = [1, 1, 1]} : vector<10x10x8xf32> to vector<8x8x8xf32>
    %17 = vector.shape_cast %16 : vector<8x8x8xf32> to vector<64x8xf32>
    %18 = vector.extract_strided_slice %15 {offsets = [0, 1, 0], sizes = [8, 8, 8], strides = [1, 1, 1]} : vector<10x10x8xf32> to vector<8x8x8xf32>
    %19 = vector.shape_cast %18 : vector<8x8x8xf32> to vector<64x8xf32>
    %20 = vector.extract_strided_slice %15 {offsets = [0, 2, 0], sizes = [8, 8, 8], strides = [1, 1, 1]} : vector<10x10x8xf32> to vector<8x8x8xf32>
    %21 = vector.shape_cast %20 : vector<8x8x8xf32> to vector<64x8xf32>
    %22 = vector.extract_strided_slice %15 {offsets = [1, 0, 0], sizes = [8, 8, 8], strides = [1, 1, 1]} : vector<10x10x8xf32> to vector<8x8x8xf32>
    %23 = vector.shape_cast %22 : vector<8x8x8xf32> to vector<64x8xf32>
    %24 = vector.extract_strided_slice %15 {offsets = [1, 1, 0], sizes = [8, 8, 8], strides = [1, 1, 1]} : vector<10x10x8xf32> to vector<8x8x8xf32>
    %25 = vector.shape_cast %24 : vector<8x8x8xf32> to vector<64x8xf32>
    %26 = vector.extract_strided_slice %15 {offsets = [1, 2, 0], sizes = [8, 8, 8], strides = [1, 1, 1]} : vector<10x10x8xf32> to vector<8x8x8xf32>
    %27 = vector.shape_cast %26 : vector<8x8x8xf32> to vector<64x8xf32>
    %28 = vector.extract_strided_slice %15 {offsets = [2, 0, 0], sizes = [8, 8, 8], strides = [1, 1, 1]} : vector<10x10x8xf32> to vector<8x8x8xf32>
    %29 = vector.shape_cast %28 : vector<8x8x8xf32> to vector<64x8xf32>
    %30 = vector.extract_strided_slice %15 {offsets = [2, 1, 0], sizes = [8, 8, 8], strides = [1, 1, 1]} : vector<10x10x8xf32> to vector<8x8x8xf32>
    %31 = vector.shape_cast %30 : vector<8x8x8xf32> to vector<64x8xf32>
    %32 = vector.extract_strided_slice %15 {offsets = [2, 2, 0], sizes = [8, 8, 8], strides = [1, 1, 1]} : vector<10x10x8xf32> to vector<8x8x8xf32>
    %33 = vector.shape_cast %32 : vector<8x8x8xf32> to vector<64x8xf32>
    %34 = tpu.concatenate %17, %19, %21, %23, %25, %27, %29, %31, %33 in 1 : vector<64x8xf32>, vector<64x8xf32>, vector<64x8xf32>, vector<64x8xf32>, vector<64x8xf32>, vector<64x8xf32>, vector<64x8xf32>, vector<64x8xf32>, vector<64x8xf32> -> vector<64x72xf32>
    %cst_8 = arith.constant dense<0.000000e+00> : vector<64x8xf32>
    %35 = tpu.matmul %34, %2, %cst_8 {dimension_numbers = #tpu.dot_dimension_numbers<[1], [0], [0], [1], [0, 0, 1, 1], [], []>} : vector<64x72xf32>, vector<72x8xf32>, vector<64x8xf32> -> vector<64x8xf32>
    %36 = vector.broadcast %3 : vector<1x8xf32> to vector<64x8xf32>
    %37 = arith.addf %35, %36 : vector<64x8xf32>
    %cst_9 = arith.constant 0.000000e+00 : f32
    %38 = vector.broadcast %cst_9 : f32 to vector<64x8xf32>
    %39 = arith.cmpf oge, %37, %38 : vector<64x8xf32>
    %cst_10 = arith.constant 5.000000e-01 : f32
    %40 = vector.broadcast %cst_10 : f32 to vector<64x8xf32>
    %41 = arith.mulf %40, %37 : vector<64x8xf32>
    %42 = arith.select %39, %37, %41 : vector<64x8xi1>, vector<64x8xf32>
    %43 = vector.shape_cast %42 : vector<64x8xf32> to vector<8x8x8xf32>
    %c0_11 = arith.constant 0 : index
    %c0_12 = arith.constant 0 : index
    %44 = vector.load %arg4[%c0_11, %c0_12] : memref<72x8xf32, #tpu.memory_space<vmem>>, vector<72x8xf32>
    %c0_13 = arith.constant 0 : index
    %c0_14 = arith.constant 0 : index
    %45 = vector.load %arg5[%c0_13, %c0_14] : memref<1x8xf32, #tpu.memory_space<vmem>>, vector<1x8xf32>
    %46 = vector.shape_cast %43 : vector<8x8x8xf32> to vector<8x1x8x8xf32>
    %47 = vector.shape_cast %46 : vector<8x1x8x8xf32> to vector<8x1x8x8xf32>
    %48 = vector.broadcast %47 : vector<8x1x8x8xf32> to vector<8x2x8x8xf32>
    %49 = vector.shape_cast %48 : vector<8x2x8x8xf32> to vector<16x8x8xf32>
    %50 = vector.shape_cast %49 : vector<16x8x8xf32> to vector<16x8x1x8xf32>
    %51 = vector.shape_cast %50 : vector<16x8x1x8xf32> to vector<16x8x1x8xf32>
    %52 = vector.broadcast %51 : vector<16x8x1x8xf32> to vector<16x8x2x8xf32>
    %53 = vector.shape_cast %52 : vector<16x8x2x8xf32> to vector<16x16x8xf32>
    %cst_15 = arith.constant 0.000000e+00 : f32
    %54 = vector.broadcast %cst_15 : f32 to vector<1x16x8xf32>
    %55 = tpu.concatenate %54, %53, %54 in 0 : vector<1x16x8xf32>, vector<16x16x8xf32>, vector<1x16x8xf32> -> vector<18x16x8xf32>
    %cst_16 = arith.constant 0.000000e+00 : f32
    %56 = vector.broadcast %cst_16 : f32 to vector<18x1x8xf32>
    %57 = tpu.concatenate %56, %55, %56 in 1 : vector<18x1x8xf32>, vector<18x16x8xf32>, vector<18x1x8xf32> -> vector<18x18x8xf32>
    %58 = vector.extract_strided_slice %57 {offsets = [0, 0, 0], sizes = [16, 16, 8], strides = [1, 1, 1]} : vector<18x18x8xf32> to vector<16x16x8xf32>
    %59 = vector.shape_cast %58 : vector<16x16x8xf32> to vector<256x8xf32>
    %60 = vector.extract_strided_slice %57 {offsets = [0, 1, 0], sizes = [16, 16, 8], strides = [1, 1, 1]} : vector<18x18x8xf32> to vector<16x16x8xf32>
    %61 = vector.shape_cast %60 : vector<16x16x8xf32> to vector<256x8xf32>
    %62 = vector.extract_strided_slice %57 {offsets = [0, 2, 0], sizes = [16, 16, 8], strides = [1, 1, 1]} : vector<18x18x8xf32> to vector<16x16x8xf32>
    %63 = vector.shape_cast %62 : vector<16x16x8xf32> to vector<256x8xf32>
    %64 = vector.extract_strided_slice %57 {offsets = [1, 0, 0], sizes = [16, 16, 8], strides = [1, 1, 1]} : vector<18x18x8xf32> to vector<16x16x8xf32>
    %65 = vector.shape_cast %64 : vector<16x16x8xf32> to vector<256x8xf32>
    %66 = vector.extract_strided_slice %57 {offsets = [1, 1, 0], sizes = [16, 16, 8], strides = [1, 1, 1]} : vector<18x18x8xf32> to vector<16x16x8xf32>
    %67 = vector.shape_cast %66 : vector<16x16x8xf32> to vector<256x8xf32>
    %68 = vector.extract_strided_slice %57 {offsets = [1, 2, 0], sizes = [16, 16, 8], strides = [1, 1, 1]} : vector<18x18x8xf32> to vector<16x16x8xf32>
    %69 = vector.shape_cast %68 : vector<16x16x8xf32> to vector<256x8xf32>
    %70 = vector.extract_strided_slice %57 {offsets = [2, 0, 0], sizes = [16, 16, 8], strides = [1, 1, 1]} : vector<18x18x8xf32> to vector<16x16x8xf32>
    %71 = vector.shape_cast %70 : vector<16x16x8xf32> to vector<256x8xf32>
    %72 = vector.extract_strided_slice %57 {offsets = [2, 1, 0], sizes = [16, 16, 8], strides = [1, 1, 1]} : vector<18x18x8xf32> to vector<16x16x8xf32>
    %73 = vector.shape_cast %72 : vector<16x16x8xf32> to vector<256x8xf32>
    %74 = vector.extract_strided_slice %57 {offsets = [2, 2, 0], sizes = [16, 16, 8], strides = [1, 1, 1]} : vector<18x18x8xf32> to vector<16x16x8xf32>
    %75 = vector.shape_cast %74 : vector<16x16x8xf32> to vector<256x8xf32>
    %76 = tpu.concatenate %59, %61, %63, %65, %67, %69, %71, %73, %75 in 1 : vector<256x8xf32>, vector<256x8xf32>, vector<256x8xf32>, vector<256x8xf32>, vector<256x8xf32>, vector<256x8xf32>, vector<256x8xf32>, vector<256x8xf32>, vector<256x8xf32> -> vector<256x72xf32>
    %cst_17 = arith.constant dense<0.000000e+00> : vector<256x8xf32>
    %77 = tpu.matmul %76, %44, %cst_17 {dimension_numbers = #tpu.dot_dimension_numbers<[1], [0], [0], [1], [0, 0, 1, 1], [], []>} : vector<256x72xf32>, vector<72x8xf32>, vector<256x8xf32> -> vector<256x8xf32>
    %78 = vector.broadcast %45 : vector<1x8xf32> to vector<256x8xf32>
    %79 = arith.addf %77, %78 : vector<256x8xf32>
    %cst_18 = arith.constant 0.000000e+00 : f32
    %80 = vector.broadcast %cst_18 : f32 to vector<256x8xf32>
    %81 = arith.cmpf oge, %79, %80 : vector<256x8xf32>
    %cst_19 = arith.constant 5.000000e-01 : f32
    %82 = vector.broadcast %cst_19 : f32 to vector<256x8xf32>
    %83 = arith.mulf %82, %79 : vector<256x8xf32>
    %84 = arith.select %81, %79, %83 : vector<256x8xi1>, vector<256x8xf32>
    %85 = vector.shape_cast %84 : vector<256x8xf32> to vector<16x16x8xf32>
    %c0_20 = arith.constant 0 : index
    %c0_21 = arith.constant 0 : index
    %86 = vector.load %arg6[%c0_20, %c0_21] : memref<72x4xf32, #tpu.memory_space<vmem>>, vector<72x4xf32>
    %c0_22 = arith.constant 0 : index
    %c0_23 = arith.constant 0 : index
    %87 = vector.load %arg7[%c0_22, %c0_23] : memref<1x4xf32, #tpu.memory_space<vmem>>, vector<1x4xf32>
    %88 = vector.shape_cast %85 : vector<16x16x8xf32> to vector<16x1x16x8xf32>
    %89 = vector.shape_cast %88 : vector<16x1x16x8xf32> to vector<16x1x16x8xf32>
    %90 = vector.broadcast %89 : vector<16x1x16x8xf32> to vector<16x2x16x8xf32>
    %91 = vector.shape_cast %90 : vector<16x2x16x8xf32> to vector<32x16x8xf32>
    %92 = vector.shape_cast %91 : vector<32x16x8xf32> to vector<32x16x1x8xf32>
    %93 = vector.shape_cast %92 : vector<32x16x1x8xf32> to vector<32x16x1x8xf32>
    %94 = vector.broadcast %93 : vector<32x16x1x8xf32> to vector<32x16x2x8xf32>
    %95 = vector.shape_cast %94 : vector<32x16x2x8xf32> to vector<32x32x8xf32>
    %cst_24 = arith.constant 0.000000e+00 : f32
    %96 = vector.broadcast %cst_24 : f32 to vector<1x32x8xf32>
    %97 = tpu.concatenate %96, %95, %96 in 0 : vector<1x32x8xf32>, vector<32x32x8xf32>, vector<1x32x8xf32> -> vector<34x32x8xf32>
    %cst_25 = arith.constant 0.000000e+00 : f32
    %98 = vector.broadcast %cst_25 : f32 to vector<34x1x8xf32>
    %99 = tpu.concatenate %98, %97, %98 in 1 : vector<34x1x8xf32>, vector<34x32x8xf32>, vector<34x1x8xf32> -> vector<34x34x8xf32>
    %100 = vector.extract_strided_slice %99 {offsets = [0, 0, 0], sizes = [32, 32, 8], strides = [1, 1, 1]} : vector<34x34x8xf32> to vector<32x32x8xf32>
    %101 = vector.shape_cast %100 : vector<32x32x8xf32> to vector<1024x8xf32>
    %102 = vector.extract_strided_slice %99 {offsets = [0, 1, 0], sizes = [32, 32, 8], strides = [1, 1, 1]} : vector<34x34x8xf32> to vector<32x32x8xf32>
    %103 = vector.shape_cast %102 : vector<32x32x8xf32> to vector<1024x8xf32>
    %104 = vector.extract_strided_slice %99 {offsets = [0, 2, 0], sizes = [32, 32, 8], strides = [1, 1, 1]} : vector<34x34x8xf32> to vector<32x32x8xf32>
    %105 = vector.shape_cast %104 : vector<32x32x8xf32> to vector<1024x8xf32>
    %106 = vector.extract_strided_slice %99 {offsets = [1, 0, 0], sizes = [32, 32, 8], strides = [1, 1, 1]} : vector<34x34x8xf32> to vector<32x32x8xf32>
    %107 = vector.shape_cast %106 : vector<32x32x8xf32> to vector<1024x8xf32>
    %108 = vector.extract_strided_slice %99 {offsets = [1, 1, 0], sizes = [32, 32, 8], strides = [1, 1, 1]} : vector<34x34x8xf32> to vector<32x32x8xf32>
    %109 = vector.shape_cast %108 : vector<32x32x8xf32> to vector<1024x8xf32>
    %110 = vector.extract_strided_slice %99 {offsets = [1, 2, 0], sizes = [32, 32, 8], strides = [1, 1, 1]} : vector<34x34x8xf32> to vector<32x32x8xf32>
    %111 = vector.shape_cast %110 : vector<32x32x8xf32> to vector<1024x8xf32>
    %112 = vector.extract_strided_slice %99 {offsets = [2, 0, 0], sizes = [32, 32, 8], strides = [1, 1, 1]} : vector<34x34x8xf32> to vector<32x32x8xf32>
    %113 = vector.shape_cast %112 : vector<32x32x8xf32> to vector<1024x8xf32>
    %114 = vector.extract_strided_slice %99 {offsets = [2, 1, 0], sizes = [32, 32, 8], strides = [1, 1, 1]} : vector<34x34x8xf32> to vector<32x32x8xf32>
    %115 = vector.shape_cast %114 : vector<32x32x8xf32> to vector<1024x8xf32>
    %116 = vector.extract_strided_slice %99 {offsets = [2, 2, 0], sizes = [32, 32, 8], strides = [1, 1, 1]} : vector<34x34x8xf32> to vector<32x32x8xf32>
    %117 = vector.shape_cast %116 : vector<32x32x8xf32> to vector<1024x8xf32>
    %118 = tpu.concatenate %101, %103, %105, %107, %109, %111, %113, %115, %117 in 1 : vector<1024x8xf32>, vector<1024x8xf32>, vector<1024x8xf32>, vector<1024x8xf32>, vector<1024x8xf32>, vector<1024x8xf32>, vector<1024x8xf32>, vector<1024x8xf32>, vector<1024x8xf32> -> vector<1024x72xf32>
    %cst_26 = arith.constant dense<0.000000e+00> : vector<1024x4xf32>
    %119 = tpu.matmul %118, %86, %cst_26 {dimension_numbers = #tpu.dot_dimension_numbers<[1], [0], [0], [1], [0, 0, 1, 1], [], []>} : vector<1024x72xf32>, vector<72x4xf32>, vector<1024x4xf32> -> vector<1024x4xf32>
    %120 = vector.broadcast %87 : vector<1x4xf32> to vector<1024x4xf32>
    %121 = arith.addf %119, %120 : vector<1024x4xf32>
    %122 = arith.negf %121 : vector<1024x4xf32>
    %123 = math.exp %122 : vector<1024x4xf32>
    %cst_27 = arith.constant 1.000000e+00 : f32
    %124 = vector.broadcast %cst_27 : f32 to vector<1024x4xf32>
    %125 = arith.addf %124, %123 : vector<1024x4xf32>
    %126 = arith.divf %124, %125 : vector<1024x4xf32>
    %127 = vector.shape_cast %126 : vector<1024x4xf32> to vector<32x32x4xf32>
    %c0_28 = arith.constant 0 : index
    %c0_29 = arith.constant 0 : index
    %c0_30 = arith.constant 0 : index
    %c0_31 = arith.constant 0 : index
    %128 = vector.load %arg8[%c0_28, %c0_29, %c0_30, %c0_31] : memref<1x32x32x4xf32, #tpu.memory_space<vmem>>, vector<1x32x32x4xf32>
    %129 = vector.shape_cast %128 : vector<1x32x32x4xf32> to vector<32x32x4xf32>
    %130 = vector.shape_cast %127 : vector<32x32x4xf32> to vector<1x32x32x4xf32>
    tpu.vector_store %arg8[%c0_28, %c0_29, %c0_30, %c0_31], %130 {strides = array<i32>} : memref<1x32x32x4xf32, #tpu.memory_space<vmem>>, vector<1x32x32x4xf32>,
    return
  }
  func.func @transform_0(%arg0: i32) -> (i32, i32, i32, i32) {
    %c0_i32 = arith.constant 0 : i32
    %c0_i32_0 = arith.constant 0 : i32
    %c0_i32_1 = arith.constant 0 : i32
    %c0_i32_2 = arith.constant 0 : i32
    return %arg0, %c0_i32, %c0_i32_0, %c0_i32_1 : i32, i32, i32, i32
  }
  func.func @transform_1(%arg0: i32) -> (i32, i32) {
    %c0_i32 = arith.constant 0 : i32
    %c0_i32_0 = arith.constant 0 : i32
    %c0_i32_1 = arith.constant 0 : i32
    return %c0_i32, %c0_i32_0 : i32, i32
  }
  func.func @transform_2(%arg0: i32) -> (i32, i32) {
    %c0_i32 = arith.constant 0 : i32
    %c0_i32_0 = arith.constant 0 : i32
    %c0_i32_1 = arith.constant 0 : i32
    return %c0_i32, %c0_i32_0 : i32, i32
  }
  func.func @transform_3(%arg0: i32) -> (i32, i32) {
    %c0_i32 = arith.constant 0 : i32
    %c0_i32_0 = arith.constant 0 : i32
    %c0_i32_1 = arith.constant 0 : i32
    return %c0_i32, %c0_i32_0 : i32, i32
  }
  func.func @transform_4(%arg0: i32) -> (i32, i32) {
    %c0_i32 = arith.constant 0 : i32
    %c0_i32_0 = arith.constant 0 : i32
    %c0_i32_1 = arith.constant 0 : i32
    return %c0_i32, %c0_i32_0 : i32, i32
  }
  func.func @transform_5(%arg0: i32) -> (i32, i32) {
    %c0_i32 = arith.constant 0 : i32
    %c0_i32_0 = arith.constant 0 : i32
    %c0_i32_1 = arith.constant 0 : i32
    return %c0_i32, %c0_i32_0 : i32, i32
  }
  func.func @transform_6(%arg0: i32) -> (i32, i32) {
    %c0_i32 = arith.constant 0 : i32
    %c0_i32_0 = arith.constant 0 : i32
    %c0_i32_1 = arith.constant 0 : i32
    return %c0_i32, %c0_i32_0 : i32, i32
  }
  func.func @transform_7(%arg0: i32) -> (i32, i32, i32, i32) {
    %c0_i32 = arith.constant 0 : i32
    %c0_i32_0 = arith.constant 0 : i32
    %c0_i32_1 = arith.constant 0 : i32
    %c0_i32_2 = arith.constant 0 : i32
    return %arg0, %c0_i32, %c0_i32_0, %c0_i32_1 : i32, i32, i32, i32
  }
}

</mosaic_0001>

<bundles_post_ra>
// kernel: _lambda_.1
= control target key start
LH: loop header
LB: loop body
LE: loop exit
PB: predicated region body
PF: predicated region fallthrough
CT: control target
= control target key end

     0   :  { %12 = vsyncpa [#allocation3], 0  ;;  %s13437_s24 = smov 0   ;;  %s21686_s0 = inlined_call_operand.vmem [shape: f32[2,4,4,8], index: 0, kind: input, shape index: {}]   ;;  %s21687_s1 = inlined_call_operand.vmem [shape: f32[72,8], index: 1, kind: input, shape index: {}]   ;;  %s21688_s2 = inlined_call_operand.vmem [shape: f32[1,8], index: 2, kind: input, shape index: {}]   ;;  %s21689_s3 = inlined_call_operand.vmem [shape: f32[72,8], index: 3, kind: input, shape index: {}]   ;;  %s21690_s4 = inlined_call_operand.vmem [shape: f32[1,8], index: 4, kind: input, shape index: {}]   ;;  %s21691_s5 = inlined_call_operand.hbm [shape: f32[72,4], index: 5, kind: input, shape index: {}]   ;;  %s21692_s6 = inlined_call_operand.vmem [shape: f32[1,4], index: 6, kind: input, shape index: {}]   ;;  %s21693_s7 = inlined_call_operand.vmem [shape: f32[2,32,32,4], index: 7, kind: output, shape index: {}]  }
   0x1 LB: > { %s13443_s25 = sadd.s32 4294967295, %s13381_s24   ;;  %p11884_p0 = scmp.ge.s32.totalorder %s13381_s24, 1  ;;  %s13381_s24 = sphi %s13437_s24, %s18_s24  }
   0x2   : > { %p201_p1 = scmp.lt.s32.totalorder %s13381_s24, 3  ;;  %s13383_s26 = smov [#allocation2]  }
   0x3   : > { %s225_s27 = sshll.u32 %s13383_s26, 4  ;;  %p21694_p3 = scmp.eq.s32.totalorder %s13443_s25, 0  ;;  %s226_s27 = int_to_ptr.vmem [resolvable:$true] %s225_s27 }
   0x4   : > { %p13447_p2 = pnand %p11884_p0, %p201_p1  ;;  %s13343_s9 = scalar_lea.hbm %s21691_s5, 1152 }
   0x5   : > { %p13344_p6 = scmp.ne.s32.totalorder %s21691_s5, %s13343_s9  ;;  %p13350_p10 = scmp.lt.u32.totalorder %s13343_s9, %s21691_s5 }
   0x6   : > { %s22207_s28 = scalar_select %p13447_p2, 1, 0 }
   0x7   : > { %p12763_p4 = pneg %p13447_p2 }
   0x9   : > { %p13456_p5 = pnand %p21694_p3, %p12763_p4 }
   0xb   : > { %p13345_p7 = pneg %p13456_p5 }
   0xd   : > { %p13346_p8 = pnand %p13345_p7, %p13344_p6 }
   0xf   : > { %p13347_p9 = pneg %p13346_p8 }
  0x11   : > { %p13352_p11 = pnand %p13350_p10, %p13347_p9 }
  0x13   : > { %13355 = shalt.err (!%p13352_p11)
}
  0x14   : > { %s13356_s14 = scalar_lea.vmem %s226_s27, 1152  ;;  %p13364_p1 = scmp.lt.s32.totalorder %s226_s27, %s226_s27 }
  0x15   : > { %p13357_p12 = scmp.ne.s32.totalorder %s226_s27, %s13356_s14  ;;  %p13365_p4 = scmp.lt.s32.totalorder %s13356_s14, %s13356_s14 }
  0x17   : > { %p13359_p13 = pnand %p13357_p12, %p13345_p7  ;;  %p13366_p3 = por %p13365_p4, %p13364_p1 }
  0x19   : > { %p13360_p0 = pneg %p13359_p13 }
  0x1b   : > { %p13367_p2 = pnand %p13366_p3, %p13360_p0 }
  0x1d   : > { %13370 = shalt.err (!%p13367_p2)
}
  0x1e   : > { %s13384_s15 = smov 128   ;;  %s13385_s16 = smov 8  }
  0x1f   : > { %12766 = dma.hbm_to_vmem [thread:$0]  (!%p13456_p5), %s21691_s5, 1152, %s226_s27, [#allocation3], %s13384_s15, %s13384_s15, %s13385_s16  }
  0x20   : > { %p22209_p6 = scmp.ne.s32.totalorder %s22207_s28, 0 }
  0x22   : > { %252 = sbr.rel (%p22209_p6) target bundleno = 2378 (0x94a), region = 48 }
  0x29   : > { %p22210_p8 = scmp.eq.s32.totalorder %s13443_s25, 0 }
  0x2b   : > { %13376 = dma.done.wait (%p22210_p8), [#allocation3], 1152   ;;  %p22211_p7 = pmov %p22210_p8 }
  0x2c   : > { %vm551_vm0 = vcmask 1040384   ;;  %v323_v0 = vlaneseq  ;;  %v13386_v1 = vmov 0.0   ;;  %vm588_vm1 = vcmask 1045504   ;;  %p284_p2 = scmp.lt.s32.totalorder %s13443_s25, 1  ;;  %s13389_s23 = smov 16  }
  0x2d   : > { %13378 = vsyncadd (%p22211_p7), [#allocation3], 4294966144  ;;  %v13482_v2 = vrot.slane %v13386_v1, 7  ;;  %vm572_vm2 = vcmask 1046528   ;;  %v13387_v3 = vmov 1966171168  }
  0x2e   : > { %v321_v4 = vunpack.c.l.s4 %v13387_v3  ;;  %v324_v5 = vshrl.u32 %v323_v0, 7  ;;  %s23328_s25 = smov (!%p284_p2, %s13443_s25), 1  ;;  %v13388_v15 = vmov 1983009808   ;;  %s13390_s26 = smov 8   ;;  %vm715_vm3 = vcmask 64512  }
  0x2f   : > { %22212 = vst [vmem:[#allocation5_spill] sm:$0xff] %v13482_v2  ;;  %v13487_v6 = vsel %vm551_vm0, 0.0, %v13482_v2  ;;  %v13491_v7 = vsel %vm551_vm0, %v13482_v2, 0.0  ;;  %v13494_v8 = vrot.slane %v13482_v2, 2  ;;  %v13497_v9 = vrot.slane %v13482_v2, 1  ;;  %s12198_s19 = sshll.u32 %s23328_s25, 4 }
  0x30   : > { %v589_v10 = vrot.slane %v13487_v6, 2  ;;  %v590_v11 = vrot.slane %v13491_v7, 2  ;;  %v573_v12 = vrot.slane %v13487_v6, 1  ;;  %v574_v13 = vrot.slane %v13491_v7, 1  ;;  %s288_s22 = scalar_lea.vmem %s21686_s0, %s12198_s19  ;;  %s13391_s27 = smov 24  }
  0x31   : > { %22213 = vst [vmem:[#allocation6_spill] sm:$0xff] %v13494_v8  ;;  %22214 = vst [vmem:[#allocation7_spill] sm:$0xff] %v13497_v9  ;;  %v322_v14 = vunpack.c.0.s8 %v321_v4  ;;  %v475_v16 = vunpack.c.l.s4 %v13388_v15  ;;  %v11894_v23 = vld.sshfl [vmem:[%s288_s22 + $0x4] sm:$0x33 pattern:$0x75316420] }
  0x32   : > { %v591_v17 = vsel %vm588_vm1, %v589_v10, %v590_v11  ;;  %v2005_v18 = vsel %vm588_vm1, %v589_v10, %v13494_v8  ;;  %v575_v19 = vsel %vm572_vm2, %v573_v12, %v574_v13  ;;  %v1962_v20 = vsel %vm572_vm2, %v573_v12, %v13497_v9  ;;  %v11893_v28 = vld.sshfl [vmem:[%s288_s22] sm:$0x33 pattern:$0x75316420]  ;;  %s13392_s28 = smov 32   ;;  %s13393_s29 = smov 40  }
  0x33   : > { %v13520_v21 = vpack.i.bf16 %v2005_v18, %v591_v17  ;;  %v13522_v22 = vpack.i.bf16 %v1962_v20, %v575_v19  ;;  %v13524_v24 = vsub.s32 %v322_v14, %v324_v5  ;;  %v343_v25 = vcombine.high %v11894_v23, %v11894_v23  ;;  %v11896_v30 = vld.sshfl [vmem:[%s288_s22 + $0xc] sm:$0x33 pattern:$0x75316420]  ;;  %s13394_s15 = smov 48   ;;  %s13395_s8 = smov 56  }
  0x34   : > { %v13526_v26 = vsub.s32 0, %v324_v5  ;;  %v476_v27 = vunpack.c.0.s8 %v475_v16  ;;  %v319_v29 = vcombine.high %v11893_v28, %v11893_v28  ;;  %v11895_v35 = vld.sshfl [vmem:[%s288_s22 + $0x8] sm:$0x33 pattern:$0x75316420]  ;;  %v391_v37 = vcombine.high %v11896_v30, %v11896_v30  ;;  %s13396_s11 = smov 64  }
  0x35   : > { %22215 = vst [vmem:[#allocation8_spill] sm:$0xff] %v13524_v24  ;;  %12797 = vrot.lane.b32.xlu1 %v13520_v21, %s13389_s23  ;;  %12792 = vrot.lane.b32.xlu0 %v13522_v22, %s13390_s26  ;;  %v350_v31 = vrot.slane %v11894_v23, %v13524_v24  ;;  %v357_v32 = vrot.slane %v343_v25, %v13524_v24  ;;  %vm721_vm4 = vcmask 130048   ;;  %vm727_vm5 = vcmask 195584  }
  0x36   : > { %v13534_v33 = vsub.s32 %v476_v27, %v324_v5  ;;  %v326_v34 = vrot.slane %v11893_v28, %v13524_v24  ;;  %v333_v36 = vrot.slane %v319_v29, %v13524_v24  ;;  %v398_v38 = vrot.slane %v11896_v30, %v13524_v24 }
  0x37   : > { %v367_v39 = vcombine.high %v11895_v35, %v11895_v35  ;;  %v358_v40 = vcombine.high %v350_v31, %v350_v31  ;;  %v359_v41 = vcombine.high %v357_v32, %v357_v32  ;;  %v427_v42 = vrot.slane %v350_v31, %v13526_v26 }
  0x38   : > { %v431_v43 = vrot.slane %v357_v32, %v13526_v26  ;;  %v334_v44 = vcombine.high %v326_v34, %v326_v34  ;;  %v335_v45 = vcombine.high %v333_v36, %v333_v36  ;;  %v411_v46 = vrot.slane %v326_v34, %v13526_v26 }
  0x39   : > { %v415_v47 = vrot.slane %v333_v36, %v13526_v26  ;;  %v435_v48 = vrot.slane %v358_v40, %v13526_v26  ;;  %v439_v49 = vrot.slane %v359_v41, %v13526_v26  ;;  %v405_v51 = vrot.slane %v391_v37, %v13524_v24 }
  0x3a   : > { %v489_v50 = vcombine.low %v427_v42, %v431_v43  ;;  %v419_v52 = vrot.slane %v334_v44, %v13526_v26  ;;  %v423_v53 = vrot.slane %v335_v45, %v13526_v26  ;;  %v406_v55 = vcombine.high %v398_v38, %v398_v38 }
  0x3b   : > { %v472_v54 = vcombine.low %v411_v46, %v415_v47  ;;  %v490_v56 = vcombine.low %v435_v48, %v439_v49  ;;  %v407_v58 = vcombine.high %v405_v51, %v405_v51  ;;  %v459_v59 = vrot.slane %v398_v38, %v13526_v26 }
  0x3c   : > { %v497_v57 = vrot.slane %v489_v50, %v13534_v33  ;;  %v473_v60 = vcombine.low %v419_v52, %v423_v53  ;;  %v463_v62 = vrot.slane %v405_v51, %v13526_v26  ;;  %v467_v63 = vrot.slane %v406_v55, %v13526_v26 }
  0x3d   : > { %v480_v61 = vrot.slane %v472_v54, %v13534_v33  ;;  %v504_v0 = vrot.slane %v490_v56, %v13534_v33  ;;  %v471_v1 = vrot.slane %v407_v58, %v13526_v26  ;;  %v374_v3 = vrot.slane %v11895_v35, %v13524_v24 }
  0x3e   : > { %v381_v4 = vrot.slane %v367_v39, %v13524_v24  ;;  %v487_v5 = vrot.slane %v473_v60, %v13534_v33  ;;  %v523_v10 = vcombine.low %v459_v59, %v463_v62  ;;  %vm736_vm6 = vcmask 261120  }
  0x3f   : > { %v505_v12 = vcombine.low %v497_v57, %v504_v0  ;;  %v524_v14 = vcombine.low %v467_v63, %v471_v1  ;;  %v382_v15 = vcombine.high %v374_v3, %v374_v3  ;;  %v443_v19 = vrot.slane %v374_v3, %v13526_v26 }
  0x40   : > { %v383_v16 = vcombine.high %v381_v4, %v381_v4  ;;  %v488_v17 = vcombine.low %v480_v61, %v487_v5  ;;  %v531_v18 = vrot.slane %v523_v10, %v13534_v33  ;;  %v447_v20 = vrot.slane %v381_v4, %v13526_v26 }
  0x41   : > { %v543_v23 = vrot.slane %v505_v12, 7  ;;  %v538_v25 = vrot.slane %v524_v14, %v13534_v33  ;;  %v451_v27 = vrot.slane %v382_v15, %v13526_v26  ;;  %v298_v14 = vld [vmem:[%s21687_s1] sm:$0xff]  ;;  %v299_v15 = vld [vmem:[%s21687_s1 + $0x8] sm:$0xff]  ;;  %vm745_vm7 = vcmask 326656  }
  0x42   : > { %v455_v28 = vrot.slane %v383_v16, %v13526_v26  ;;  %v542_v29 = vrot.slane %v488_v17, 7  ;;  %v506_v30 = vcombine.low %v443_v19, %v447_v20  ;;  %v12701_v16 = vpack.c.bf16 %v299_v15, %v298_v14  ;;  %v300_v17 = vld [vmem:[%s21687_s1 + $0x10] sm:$0xff]  ;;  %v302_v20 = vld [vmem:[%s21687_s1 + $0x20] sm:$0xff] }
  0x43   : > { %v13565_v31 = vsel %vm551_vm0, 0.0, %v543_v23  ;;  %v539_v32 = vcombine.low %v531_v18, %v538_v25  ;;  %v559_v35 = vsel %vm551_vm0, %v543_v23, 0.0  ;;  %v301_v18 = vld [vmem:[%s21687_s1 + $0x18] sm:$0xff]  ;;  %v303_v23 = vld [vmem:[%s21687_s1 + $0x28] sm:$0xff]  ;;  %vm754_vm8 = vcmask 392192  }
  0x44   : > { %v507_v34 = vcombine.low %v451_v27, %v455_v28  ;;  %636 = vrot.lane.b32.xlu1 %v13565_v31, %s13391_s27  ;;  %v13571_v36 = vsel %vm551_vm0, 0.0, %v542_v29  ;;  %v514_v37 = vrot.slane %v506_v30, %v13534_v33  ;;  %v579_v40 = vrot.slane %v13565_v31, 1  ;;  %12702 = vmatprep.subr.bf16.mxu0 %v12701_v16  ;;  %v304_v27 = vld [vmem:[%s21687_s1 + $0x30] sm:$0xff]  ;;  %v305_v28 = vld [vmem:[%s21687_s1 + $0x38] sm:$0xff] }
  0x45   : > { %634 = vrot.lane.b32.xlu0 %v13571_v36, %s13391_s27  ;;  %v545_v38 = vrot.slane %v539_v32, 7  ;;  %v580_v41 = vrot.slane %v559_v35, 1  ;;  %v558_v42 = vsel %vm551_vm0, %v542_v29, 0.0  ;;  %v576_v47 = vrot.slane %v13571_v36, 1  ;;  %12704 = vmatpush3.bf16.msra.mxu0 %v12701_v16  ;;  %v306_v32 = vld [vmem:[%s21687_s1 + $0x40] sm:$0xff] }
  0x46   : > { %v521_v39 = vrot.slane %v507_v34, %v13534_v33  ;;  %v577_v48 = vrot.slane %v558_v42, 1  ;;  %v595_v54 = vrot.slane %v13565_v31, 2  ;;  %v596_v55 = vrot.slane %v559_v35, 2 }
  0x47   : > { %v13580_v43 = vsel %vm551_vm0, 0.0, %v545_v38  ;;  %v13585_v46 = vsel %vm572_vm2, %v579_v40, %v580_v41  ;;  %v561_v49 = vsel %vm551_vm0, %v545_v38, 0.0  ;;  %v592_v61 = vrot.slane %v13571_v36, 2 }
  0x48   : > { %v522_v44 = vcombine.low %v514_v37, %v521_v39  ;;  %640 = vrot.lane.b32.xlu1 %v13580_v43, %s13391_s27  ;;  %v578_v56 = vsel %vm572_vm2, %v576_v47, %v577_v48  ;;  %v585_v57 = vrot.slane %v13580_v43, 1  ;;  %v586_v58 = vrot.slane %v561_v49, 1 }
  0x49   : > { %v597_v60 = vsel %vm588_vm1, %v595_v54, %v596_v55  ;;  %v593_v63 = vrot.slane %v558_v42, 2  ;;  %v601_v0 = vrot.slane %v13580_v43, 2  ;;  %v602_v1 = vrot.slane %v561_v49, 2 }
  0x4a   : > { %v544_v45 = vrot.slane %v522_v44, 7  ;;  %v587_v62 = vsel %vm572_vm2, %v585_v57, %v586_v58  ;;  %v12705_v19 = vpack.c.bf16 %v301_v18, %v300_v17  ;;  %v12709_v25 = vpack.c.bf16 %v303_v23, %v302_v20 }
  0x4b   : > { %v594_v3 = vsel %vm588_vm1, %v592_v61, %v593_v63  ;;  %v603_v4 = vsel %vm588_vm1, %v601_v0, %v602_v1  ;;  %v12713_v29 = vpack.c.bf16 %v305_v28, %v304_v27  ;;  %v12801_v30 = vpack.i.bf16 %v13482_v2, %v13487_v6 }
  0x4c   : > { %v13590_v50 = vsel %vm551_vm0, 0.0, %v544_v45  ;;  %v560_v51 = vsel %vm551_vm0, %v544_v45, 0.0  ;;  %608 = vrot.lane.b32.xlu1 %v13585_v46, %s13390_s26  ;;  %12706 = vmatprep.subr.bf16.mxu0 %v12705_v19  ;;  %vm763_vm9 = vcmask 457728   ;;  %vm772_vm10 = vcmask 523264  }
  0x4d   : > { %638 = vrot.lane.b32.xlu0 %v13590_v50, %s13391_s27  ;;  %v582_v52 = vrot.slane %v13590_v50, 1  ;;  %v583_v53 = vrot.slane %v560_v51, 1  ;;  %v598_v5 = vrot.slane %v13590_v50, 2  ;;  %v599_v10 = vrot.slane %v560_v51, 2  ;;  %12708 = vmatpush3.bf16.msra.mxu0 %v12705_v19 }
  0x4e   : > { %12710 = vmatprep.subr.bf16.mxu0 %v12709_v25  ;;  %vm787_vm11 = vcmask 588800  }
  0x4f   : > { %v584_v59 = vsel %vm572_vm2, %v582_v52, %v583_v53  ;;  %v600_v12 = vsel %vm588_vm1, %v598_v5, %v599_v10 }
  0x50   : > { %610 = vrot.lane.b32.xlu1 %v584_v59, %s13390_s26 }
  0x51   : > { %606 = vrot.lane.b32.xlu0 %v578_v56, %s13390_s26  ;;  %12712 = vmatpush3.bf16.msra.mxu0 %v12709_v25 }
  0x52   : > { %12714 = vmatprep.subr.bf16.mxu0 %v12713_v29 }
  0x54   : > { %623 = vrot.lane.b32.xlu1 %v597_v60, %s13389_s23 }
  0x55   : > { %612 = vrot.lane.b32.xlu0 %v587_v62, %s13390_s26  ;;  %12716 = vmatpush3.bf16.msra.mxu0 %v12713_v29 }
  0x56   : > { %12411 = vmatprep.subr.mxu0 %v306_v32 }
  0x58   : > { %627 = vrot.lane.b32.xlu1 %v603_v4, %s13389_s23 }
  0x59   : > { %621 = vrot.lane.b32.xlu0 %v594_v3, %s13389_s23  ;;  %12412 = vmatpush3.msra.mxu0 %v306_v32 }
  0x5c   : > { %648 = vrot.lane.b32.xlu1 %v13585_v46, %s13392_s28 }
  0x5d   : > { %625 = vrot.lane.b32.xlu0 %v600_v12, %s13389_s23 }
  0x60   : > { %652 = vrot.lane.b32.xlu1 %v587_v62, %s13392_s28 }
  0x61   : > { %646 = vrot.lane.b32.xlu0 %v578_v56, %s13392_s28 }
  0x64   : > { %660 = vrot.lane.b32.xlu1 %v597_v60, %s13393_s29 }
  0x65   : > { %650 = vrot.lane.b32.xlu0 %v584_v59, %s13392_s28 }
  0x68   : > { %664 = vrot.lane.b32.xlu1 %v603_v4, %s13393_s29 }
  0x69   : > { %658 = vrot.lane.b32.xlu0 %v594_v3, %s13393_s29 }
  0x6c   : > { %672 = vrot.lane.b32.xlu1 %v13565_v31, %s13394_s15 }
  0x6d   : > { %662 = vrot.lane.b32.xlu0 %v600_v12, %s13393_s29 }
  0x70   : > { %676 = vrot.lane.b32.xlu1 %v13580_v43, %s13394_s15 }
  0x71   : > { %670 = vrot.lane.b32.xlu0 %v13571_v36, %s13394_s15 }
  0x74   : > { %685 = vrot.lane.b32.xlu1 %v578_v56, %s13395_s8 }
  0x75   : > { %674 = vrot.lane.b32.xlu0 %v13590_v50, %s13394_s15 }
  0x78   : > { %689 = vrot.lane.b32.xlu1 %v584_v59, %s13395_s8 }
  0x79   : > { %12802 = vrot.lane.b32.xlu0 %v12801_v30, %s13394_s15 }
  0x7c   : > { %12807 = vrot.lane.b32.xlu1 %v13522_v22, %s13395_s8 }
  0x7d   : > { %687 = vrot.lane.b32.xlu0 %v13585_v46, %s13395_s8 }
  0x80   : > { %702 = vrot.lane.b32.xlu1 %v597_v60, %s13396_s11 }
  0x81   : > { %691 = vrot.lane.b32.xlu0 %v587_v62, %s13395_s8 }
  0x84   : > { %706 = vrot.lane.b32.xlu1 %v603_v4, %s13396_s11 }
  0x85   : > { %700 = vrot.lane.b32.xlu0 %v594_v3, %s13396_s11 }
  0x89   : > { %704 = vrot.lane.b32.xlu0 %v600_v12, %s13396_s11 }
  0x8d   : > { %12812 = vrot.lane.b32.xlu0 %v13520_v21, %s13396_s11 }
  0xa7   : > { %v13677_v34 = vpop.permute.xlu1 %12797  ;;  %v13679_v35 = vpop.permute.xlu0 %12792 }
  0xa8   : > { %v12794_v62 = vunpack.i.l.bf16 %v13679_v35  ;;  %v12799_v1 = vunpack.i.l.bf16 %v13677_v34 }
  0xaa   : > { %v716_v3 = vsel %vm715_vm3, %v13487_v6, %v12794_v62 }
  0xab   : > { %v722_v14 = vsel %vm721_vm4, %v716_v3, %v12799_v1 }
  0xb6   : > { %v637_v37 = vpop.permute.xlu1 %636 }
  0xb7   : > { %v635_v22 = vpop.permute.xlu0 %634 }
  0xb8   : > { %v728_v16 = vsel %vm727_vm5, %v722_v14, %v635_v22 }
  0xba   : > { %v13681_v38 = vpop.permute.xlu1 %640 }
  0xbe   : > { %v609_v40 = vpop.permute.xlu1 %608 }
  0xbf   : > { %v13683_v39 = vpop.permute.xlu0 %638  ;;  %v718_v17 = vsel %vm715_vm3, %v13565_v31, %v609_v40 }
  0xc2   : > { %v611_v42 = vpop.permute.xlu1 %610 }
  0xc3   : > { %v607_v41 = vpop.permute.xlu0 %606 }
  0xc4   : > { %v717_v4 = vsel %vm715_vm3, %v13571_v36, %v607_v41 }
  0xc6   : > { %v624_v45 = vpop.permute.xlu1 %623 }
  0xc7   : > { %v13685_v44 = vpop.permute.xlu0 %612  ;;  %v724_v19 = vsel %vm721_vm4, %v718_v17, %v624_v45 }
  0xc8   : > { %v732_v1 = vsel %vm727_vm5, %v724_v19, %v13683_v39 }
  0xca   : > { %v13687_v47 = vpop.permute.xlu1 %627 }
  0xcb   : > { %v622_v46 = vpop.permute.xlu0 %621 }
  0xcc   : > { %v723_v5 = vsel %vm721_vm4, %v717_v4, %v622_v46  ;;  %v720_v4 = vsel %vm715_vm3, %v13580_v43, %v13685_v44 }
  0xcd   : > { %v729_v15 = vsel %vm727_vm5, %v723_v5, %v635_v22  ;;  %v730_v27 = vsel %vm727_vm5, %v723_v5, %v637_v37  ;;  %v731_v22 = vsel %vm727_vm5, %v724_v19, %v637_v37 }
  0xce   : > { %v649_v48 = vpop.permute.xlu1 %648 }
  0xcf   : > { %v626_v21 = vpop.permute.xlu0 %625  ;;  %v739_v31 = vsel %vm736_vm6, %v730_v27, %v649_v48 }
  0xd2   : > { %v13689_v51 = vpop.permute.xlu1 %652 }
  0xd3   : > { %v647_v49 = vpop.permute.xlu0 %646 }
  0xd4   : > { %v738_v36 = vsel %vm736_vm6, %v729_v15, %v647_v49  ;;  %v737_v20 = vsel %vm736_vm6, %v728_v16, %v647_v49  ;;  %v719_v49 = vsel %vm715_vm3, %v13590_v50, %v611_v42  ;;  %v726_v15 = vsel %vm721_vm4, %v720_v4, %v13687_v47 }
  0xd5   : > { %v725_v37 = vsel %vm721_vm4, %v719_v49, %v626_v21 }
  0xd6   : > { %v661_v53 = vpop.permute.xlu1 %660  ;;  %v733_v5 = vsel %vm727_vm5, %v725_v37, %v13683_v39  ;;  %v734_v16 = vsel %vm727_vm5, %v725_v37, %v13681_v38 }
  0xd7   : > { %v13691_v52 = vpop.permute.xlu0 %650  ;;  %v748_v40 = vsel %vm745_vm7, %v739_v31, %v661_v53  ;;  %v743_v43 = vsel %vm736_vm6, %v734_v16, %v13689_v51 }
  0xd8   : > { %v741_v50 = vsel %vm736_vm6, %v732_v1, %v13691_v52  ;;  %v742_v17 = vsel %vm736_vm6, %v733_v5, %v13691_v52 }
  0xda   : > { %v13693_v55 = vpop.permute.xlu1 %664 }
  0xdb   : > { %v659_v54 = vpop.permute.xlu0 %658  ;;  %v752_v47 = vsel %vm745_vm7, %v743_v43, %v13693_v55 }
  0xdc   : > { %v747_v23 = vsel %vm745_vm7, %v738_v36, %v659_v54  ;;  %v746_v28 = vsel %vm745_vm7, %v737_v20, %v659_v54  ;;  %v740_v54 = vsel %vm736_vm6, %v731_v22, %v649_v48  ;;  %v2006_v22 = vsel %vm588_vm1, %v13494_v8, %v590_v11  ;;  %v11897_v11 = vld [vmem:[%s21688_s2] ss:$0 sm:$0xff] }
  0xdd   : > { %v749_v3 = vsel %vm745_vm7, %v740_v54, %v661_v53 }
  0xde   : > { %v673_v57 = vpop.permute.xlu1 %672 }
  0xdf   : > { %v13695_v56 = vpop.permute.xlu0 %662  ;;  %v756_v29 = vsel %vm754_vm8, %v747_v23, %v673_v57  ;;  %v757_v62 = vsel %vm754_vm8, %v748_v40, %v673_v57  ;;  %v12821_v40 = vpack.i.bf16 %v13494_v8, %v2006_v22 }
  0xe0   : > { %v750_v57 = vsel %vm745_vm7, %v741_v50, %v13695_v56  ;;  %v751_v39 = vsel %vm745_vm7, %v742_v17, %v13695_v56  ;;  %v735_v56 = vsel %vm727_vm5, %v726_v15, %v13681_v38 }
  0xe1   : > { %v744_v27 = vsel %vm736_vm6, %v735_v56, %v13689_v51  ;;  %12822 = vrot.lane.b32.xlu0 %v12821_v40, %s13389_s23 }
  0xe2   : > { %v13697_v59 = vpop.permute.xlu1 %676 }
  0xe3   : > { %v671_v58 = vpop.permute.xlu0 %670  ;;  %v760_v19 = vsel %vm754_vm8, %v751_v39, %v13697_v59  ;;  %v761_v20 = vsel %vm754_vm8, %v752_v47, %v13697_v59 }
  0xe4   : > { %v755_v30 = vsel %vm754_vm8, %v746_v28, %v671_v58 }
  0xe5   : > { %2438 = vrot.lane.b32.xlu0 %v2006_v22, %s13396_s11 }
  0xe6   : > { %v686_v61 = vpop.permute.xlu1 %685 }
  0xe7   : > { %v675_v60 = vpop.permute.xlu0 %674  ;;  %v764_v41 = vsel %vm763_vm9, %v755_v30, %v686_v61  ;;  %v753_v30 = vsel %vm745_vm7, %v744_v27, %v13693_v55  ;;  %v1963_v55 = vsel %vm572_vm2, %v13497_v9, %v574_v13 }
  0xe8   : > { %v758_v42 = vsel %vm754_vm8, %v749_v3, %v675_v60 }
  0xea   : > { %v690_v0 = vpop.permute.xlu1 %689 }
  0xeb   : > { %v13700_v63 = vpop.permute.xlu0 %12802  ;;  %v767_v21 = vsel %vm763_vm9, %v758_v42, %v690_v0 }
  0xec   : > { %22216 = vst [vmem:[#allocation9_spill] sm:$0xff] %v13700_v63  ;;  %v13774_v52 = vunpack.i.l.bf16 %v13700_v63 }
  0xee   : > { %v13708_v12 = vpop.permute.xlu1 %12807  ;;  %22218 = vst [vmem:[#allocation11_spill] sm:$0xff] %v13774_v52  ;;  %v762_v59 = vsel %vm754_vm8, %v753_v30, %v13774_v52 }
  0xef   : > { %v688_v10 = vpop.permute.xlu0 %687  ;;  %22217 = vst [vmem:[#allocation10_spill] sm:$0xff] %v13708_v12  ;;  %v12809_v23 = vunpack.i.l.bf16 %v13708_v12 }
  0xf0   : > { %v765_v32 = vsel %vm763_vm9, %v756_v29, %v688_v10  ;;  %v766_v61 = vsel %vm763_vm9, %v757_v62, %v688_v10  ;;  %v759_v10 = vsel %vm754_vm8, %v750_v57, %v675_v60 }
  0xf1   : > { %v768_v36 = vsel %vm763_vm9, %v759_v10, %v690_v0  ;;  %v771_v51 = vsel %vm763_vm9, %v762_v59, %v12809_v23 }
  0xf2   : > { %v703_v25 = vpop.permute.xlu1 %702 }
  0xf3   : > { %v692_v18 = vpop.permute.xlu0 %691  ;;  %v774_v46 = vsel %vm772_vm10, %v765_v32, %v703_v25  ;;  %v775_v48 = vsel %vm772_vm10, %v766_v61, %v703_v25  ;;  %v12816_v32 = vpack.i.bf16 %v13497_v9, %v1963_v55 }
  0xf4   : > { %v769_v25 = vsel %vm763_vm9, %v760_v19, %v692_v18  ;;  %v770_v28 = vsel %vm763_vm9, %v761_v20, %v692_v18 }
  0xf5   : > { %12817 = vrot.lane.b32.xlu1 %v12816_v32, %s13390_s26 }
  0xf6   : > { %v707_v44 = vpop.permute.xlu1 %706 }
  0xf7   : > { %v701_v45 = vpop.permute.xlu0 %700  ;;  %v778_v31 = vsel %vm772_vm10, %v769_v25, %v707_v44  ;;  %v779_v38 = vsel %vm772_vm10, %v770_v28, %v707_v44 }
  0xf8   : > { %v773_v58 = vsel %vm772_vm10, %v764_v41, %v701_v45 }
  0xf9   : > { %12413 = vmatprep.mubr.msk.f32.mxu0 %vm787_vm11, %v773_v58  ;;  %2384 = vrot.lane.b32.xlu1 %v1963_v55, %s13395_s8 }
  0xfa   : > { %12414 = vmatmul.mubr.msk.f32.vlgmr.msra.gmra.mrb[0].mxu0 %vm787_vm11, %v774_v46 }
  0xfb   : > { %12416 = vmatprep.mubr.msk.f32.mxu0 %vm787_vm11, %v775_v48  ;;  %v705_v53 = vpop.permute.xlu0 %704 }
  0xfc   : > { %v776_v14 = vsel %vm772_vm10, %v767_v21, %v705_v53  ;;  %v777_v60 = vsel %vm772_vm10, %v768_v36, %v705_v53 }
  0xfe   : > { %12417 = vmatmul.mubr.msk.f32.gmra.mrb[2].mxu0 %vm787_vm11, %v776_v14 }
  0xff   : > { %12419 = vmatprep.mubr.msk.f32.mxu0 %vm787_vm11, %v777_v60  ;;  %v13777_v0 = vpop.permute.xlu0 %12812 }
 0x100   : > { %22219 = vst [vmem:[#allocation12_spill] sm:$0xff] %v13777_v0  ;;  %v12814_v29 = vunpack.i.l.bf16 %v13777_v0 }
 0x102   : > { %12420 = vmatmul.mubr.msk.f32.gmra.mrb[4].mxu0 %vm787_vm11, %v778_v31  ;;  %v780_v18 = vsel %vm772_vm10, %v771_v51, %v12814_v29 }
 0x103   : > { %12422 = vmatprep.mubr.msk.f32.mxu0 %vm787_vm11, %v779_v38 }
 0x106   : > { %12423 = vmatmul.mubr.msk.f32.gmra.mrb[6].mxu0 %vm787_vm11, %v780_v18 }
 0x1cd   : > { %v12415_v41 = vpop.f32.mrb[0].mxu0 }
 0x1ce   : > { %v878_v45 = vpop.f32.mrb[1].mxu0  ;;  %v884_v58 = vadd.f32 %v12415_v41, %v11897_v11 }
 0x1cf   : > { %v879_v42 = vadd.f32 %v11897_v11, %v878_v45 }
 0x1d0   : > { %v926_v50 = vmul.f32 0.5, %v884_v58  ;;  %vm918_vm12 = vcmp.ge.f32.partialorder %v884_v58, 0.0 }
 0x1d1   : > { %v12418_v13 = vpop.f32.mrb[2].mxu0  ;;  %v925_v57 = vmul.f32 0.5, %v879_v42  ;;  %vm917_vm13 = vcmp.ge.f32.partialorder %v879_v42, 0.0 }
 0x1d2   : > { %v888_v46 = vpop.f32.mrb[3].mxu0  ;;  %v934_v48 = vsel %vm918_vm12, %v884_v58, %v926_v50  ;;  %v894_v53 = vadd.f32 %v12418_v13, %v11897_v11 }
 0x1d3   : > { %v1015_v21 = vrot.slane %v934_v48, %v13524_v24  ;;  %v933_v4 = vsel %vm917_vm13, %v879_v42, %v925_v57  ;;  %v1008_v5 = vcombine.high %v934_v48, %v934_v48  ;;  %v889_v29 = vadd.f32 %v11897_v11, %v888_v46 }
 0x1d4   : > { %v928_v14 = vmul.f32 0.5, %v894_v53  ;;  %v959_v15 = vcombine.high %v933_v4, %v933_v4  ;;  %vm920_vm14 = vcmp.ge.f32.partialorder %v894_v53, 0.0  ;;  %v966_v36 = vrot.slane %v933_v4, %v13524_v24 }
 0x1d5   : > { %v12421_v49 = vpop.f32.mrb[4].mxu0  ;;  %v1023_v10 = vcombine.high %v1015_v21, %v1015_v21  ;;  %v1022_v16 = vrot.slane %v1008_v5, %v13524_v24  ;;  %v1031_v39 = vrot.slane %v1015_v21, %v13524_v24  ;;  %v927_v41 = vmul.f32 0.5, %v889_v29 }
 0x1d6   : > { %v898_v54 = vpop.f32.mrb[5].mxu0  ;;  %v13817_v1 = vadd.f32 %v12421_v49, %v11897_v11  ;;  %v13829_v43 = vsel %vm920_vm14, %v894_v53, %v928_v14  ;;  %v973_v44 = vrot.slane %v959_v15, %v13524_v24  ;;  %v974_v56 = vcombine.high %v966_v36, %v966_v36 }
 0x1d7   : > { %v13819_v37 = vadd.f32 %v11897_v11, %v898_v54  ;;  %v1045_v17 = vrot.slane %v1023_v10, %v13524_v24  ;;  %v1024_v60 = vcombine.high %v1022_v16, %v1022_v16  ;;  %v1113_v19 = vrot.slane %v13829_v43, %v13524_v24 }
 0x1d8   : > { %v1053_v20 = vcombine.high %v1031_v39, %v1031_v39  ;;  %v975_v23 = vcombine.high %v973_v44, %v973_v44  ;;  %v996_v31 = vrot.slane %v974_v56, %v13524_v24  ;;  %v1038_v30 = vrot.slane %v1022_v16, %v13524_v24 }
 0x1d9   : > { %v12424_v7 = vpop.f32.mrb[6].mxu0  ;;  %v1055_v47 = vcombine.high %v1045_v17, %v1045_v17  ;;  %v1052_v25 = vrot.slane %v1024_v60, %v13524_v24  ;;  %v1121_v28 = vcombine.high %v1113_v19, %v1113_v19  ;;  %v1390_v38 = vrot.slane %v1045_v17, %v13526_v26 }
 0x1da   : > { %v908_v62 = vpop.f32.mrb[7].mxu0  ;;  %v13821_v3 = vadd.f32 %v12424_v7, %v11897_v11  ;;  %v1394_v59 = vrot.slane %v1053_v20, %v13526_v26  ;;  %v1003_v51 = vrot.slane %v975_v23, %v13524_v24  ;;  %v1386_v18 = vrot.slane %v1031_v39, %v13526_v26 }
 0x1db   : > { %v13823_v61 = vadd.f32 %v11897_v11, %v908_v62  ;;  %v1398_v27 = vrot.slane %v1055_v47, %v13526_v26  ;;  %v982_v55 = vrot.slane %v966_v36, %v13524_v24  ;;  %v989_v32 = vrot.slane %v973_v44, %v13524_v24 }
 0x1dc   : > { %v1056_v22 = vcombine.high %v1052_v25, %v1052_v25  ;;  %v1143_v40 = vrot.slane %v1121_v28, %v13524_v24  ;;  %v1006_v13 = vcombine.high %v996_v31, %v996_v31  ;;  %v1129_v46 = vrot.slane %v1113_v19, %v13524_v24 }
 0x1dd   : > { %v1642_v45 = vcombine.low %v1394_v59, %v1398_v27  ;;  %vm919_vm15 = vcmp.ge.f32.partialorder %v889_v29, 0.0  ;;  %v1054_v49 = vcombine.high %v1038_v30, %v1038_v30  ;;  %v1406_v54 = vrot.slane %v1052_v25, %v13526_v26 }
 0x1de   : > { %v1641_v7 = vcombine.low %v1386_v18, %v1390_v38  ;;  %v1007_v62 = vcombine.high %v1003_v51, %v1003_v51  ;;  %v1402_v11 = vrot.slane %v1038_v30, %v13526_v26  ;;  %v1004_v58 = vcombine.high %v982_v55, %v982_v55 }
 0x1df   : > { %v1005_v50 = vcombine.high %v989_v32, %v989_v32  ;;  %v1358_v42 = vrot.slane %v996_v31, %v13526_v26  ;;  %v1414_v48 = vrot.slane %v1056_v22, %v13526_v26  ;;  %v1153_v57 = vcombine.high %v1143_v40, %v1143_v40 }
 0x1e0   : > { %v13851_v21 = vsel %vm919_vm15, %v889_v29, %v927_v41  ;;  %v1656_v53 = vrot.slane %v1642_v45, %v13534_v33  ;;  %v1354_v4 = vrot.slane %v982_v55, %v13526_v26  ;;  %v1366_v5 = vrot.slane %v1006_v13, %v13526_v26 }
 0x1e1   : > { %v1374_v10 = vrot.slane %v1003_v51, %v13526_v26  ;;  %v1151_v14 = vcombine.high %v1129_v46, %v1129_v46  ;;  %v1410_v15 = vrot.slane %v1054_v49, %v13526_v26  ;;  %v1658_v16 = vcombine.low %v1402_v11, %v1406_v54 }
 0x1e2   : > { %v1382_v17 = vrot.slane %v1007_v62, %v13526_v26  ;;  %v1649_v36 = vrot.slane %v1641_v7, %v13534_v33  ;;  %v1362_v39 = vrot.slane %v1004_v58, %v13526_v26  ;;  %v1370_v44 = vrot.slane %v989_v32, %v13526_v26 }
 0x1e3   : > { %v1607_v60 = vcombine.low %v1354_v4, %v1358_v42  ;;  %v1064_v47 = vrot.slane %v13851_v21, %v13524_v24  ;;  %v1378_v19 = vrot.slane %v1005_v50, %v13526_v26  ;;  %v1462_v56 = vrot.slane %v1153_v57, %v13526_v26 }
 0x1e4   : > { %v1657_v20 = vcombine.low %v1649_v36, %v1656_v53  ;;  %v1659_v23 = vcombine.low %v1410_v15, %v1414_v48  ;;  %v1624_v25 = vcombine.low %v1370_v44, %v1374_v10  ;;  %v1454_v27 = vrot.slane %v1143_v40, %v13526_v26 }
 0x1e5   : > { %v1458_v28 = vrot.slane %v1151_v14, %v13526_v26  ;;  %v1608_v29 = vcombine.low %v1362_v39, %v1366_v5  ;;  %v1666_v30 = vrot.slane %v1658_v16, %v13534_v33  ;;  %v1625_v59 = vcombine.low %v1378_v19, %v1382_v17 }
 0x1e6   : > { %v1883_v31 = vrot.slane %v1657_v20, 7  ;;  %v1673_v38 = vrot.slane %v1659_v23, %v13534_v33  ;;  %v1450_v51 = vrot.slane %v1129_v46, %v13526_v26  ;;  %v1072_v18 = vcombine.high %v1064_v47, %v1064_v47 }
 0x1e7   : > { %v1615_v55 = vrot.slane %v1607_v60, %v13534_v33  ;;  %v1622_v32 = vrot.slane %v1608_v29, %v13534_v33  ;;  %v1639_v41 = vrot.slane %v1625_v59, %v13534_v33  ;;  %v1710_v45 = vcombine.low %v1458_v28, %v1462_v56 }
 0x1e8   : > { %v13874_v22 = vsel %vm551_vm0, 0.0, %v1883_v31  ;;  %v1674_v40 = vcombine.low %v1666_v30, %v1673_v38  ;;  %v1709_v49 = vcombine.low %v1450_v51, %v1454_v27  ;;  %v1632_v46 = vrot.slane %v1624_v25, %v13534_v33 }
 0x1e9   : > { %2159 = vrot.lane.b32.xlu1 %v13874_v22, %s13391_s27  ;;  %v1623_v13 = vcombine.low %v1615_v55, %v1622_v32  ;;  %v1094_v7 = vrot.slane %v1072_v18, %v13524_v24  ;;  %v1724_v50 = vrot.slane %v1710_v45, %v13534_v33  ;;  %v1080_v42 = vrot.slane %v1064_v47, %v13524_v24 }
 0x1ea   : > { %v1884_v54 = vrot.slane %v1674_v40, 7  ;;  %v13884_v58 = vcombine.low %v1632_v46, %v1639_v41  ;;  %v1717_v48 = vrot.slane %v1709_v49, %v13534_v33  ;;  %v1106_v14 = vcombine.high %v13829_v43, %v13829_v43 }
 0x1eb   : > { %v1880_v11 = vrot.slane %v1623_v13, 7  ;;  %v1104_v57 = vcombine.high %v1094_v7, %v1094_v7  ;;  %v1102_v10 = vcombine.high %v1080_v42, %v1080_v42  ;;  %v1422_v39 = vrot.slane %v1094_v7, %v13526_v26 }
 0x1ec   : > { %v13882_v62 = vsel %vm551_vm0, %v1883_v31, %v1884_v54  ;;  %v1881_v4 = vrot.slane %v13884_v58, 7  ;;  %v13897_v5 = vcombine.low %v1717_v48, %v1724_v50  ;;  %v1120_v43 = vrot.slane %v1106_v14, %v13524_v24 }
 0x1ed   : > { %2161 = vrot.lane.b32.xlu0 %v13882_v62, %s13391_s27  ;;  %2303 = vrot.lane.b32.xlu1 %v13874_v22, %s13394_s15  ;;  %v13894_v53 = vsel %vm551_vm0, 0.0, %v1880_v11  ;;  %v1430_v15 = vrot.slane %v1104_v57, %v13526_v26  ;;  %v1426_v36 = vrot.slane %v1102_v10, %v13526_v26  ;;  %v1418_v60 = vrot.slane %v1080_v42, %v13526_v26 }
 0x1ee   : > { %v13909_v16 = vsel %vm551_vm0, %v1880_v11, %v1881_v4  ;;  %v1889_v17 = vrot.slane %v13897_v5, 7  ;;  %v1970_v19 = vrot.slane %v13882_v62, 1  ;;  %v1938_v56 = vsel %vm551_vm0, %v1884_v54, 0.0 }
 0x1ef   : > { %v1676_v44 = vcombine.low %v1426_v36, %v1430_v15  ;;  %v1675_v20 = vcombine.low %v1418_v60, %v1422_v39  ;;  %v1969_v23 = vrot.slane %v13874_v22, 1  ;;  %v1122_v25 = vcombine.high %v1120_v43, %v1120_v43 }
 0x1f0   : > { %v13923_v47 = vsel %vm551_vm0, 0.0, %v1889_v17  ;;  %v2013_v29 = vrot.slane %v13882_v62, 2  ;;  %v2015_v31 = vrot.slane %v1938_v56, 2  ;;  %v1972_v30 = vrot.slane %v1938_v56, 1 }
 0x1f1   : > { %2305 = vrot.lane.b32.xlu0 %v13882_v62, %s13394_s15  ;;  %2155 = vrot.lane.b32.xlu1 %v13894_v53, %s13391_s27  ;;  %22220 = vst [vmem:[#allocation13_spill] sm:$0xff] %v13923_v47  ;;  %v1690_v27 = vrot.slane %v1676_v44, %v13534_v33  ;;  %v1971_v28 = vsel %vm572_vm2, %v1969_v23, %v1970_v19  ;;  %v2012_v40 = vrot.slane %v13874_v22, 2  ;;  %v930_v48 = vmul.f32 0.5, %v13817_v1 }
 0x1f2   : > { %v1683_v38 = vrot.slane %v1675_v20, %v13534_v33  ;;  %v1150_v59 = vrot.slane %v1122_v25, %v13524_v24  ;;  %v13941_v51 = vsel %vm588_vm1, %v2013_v29, %v2015_v31  ;;  %v1973_v18 = vsel %vm572_vm2, %v1970_v19, %v1972_v30  ;;  %v942_v31 = vld [vmem:[%s21689_s3 + $0x8] sm:$0xff] }
 0x1f3   : > { %v1136_v32 = vrot.slane %v1120_v43, %v13524_v24  ;;  %v2014_v45 = vsel %vm588_vm1, %v2012_v40, %v2013_v29  ;;  %v1057_v50 = vcombine.high %v13851_v21, %v13851_v21  ;;  %vm922_vm12 = vcmp.ge.f32.partialorder %v13817_v1, 0.0  ;;  %v941_v29 = vld [vmem:[%s21689_s3] sm:$0xff] }
 0x1f4   : > { %v13944_v55 = vcombine.low %v1683_v38, %v1690_v27  ;;  %v1154_v41 = vcombine.high %v1150_v59, %v1150_v59  ;;  %v1470_v7 = vrot.slane %v1150_v59, %v13526_v26  ;;  %v13976_v15 = vsel %vm922_vm12, %v13817_v1, %v930_v48 }
 0x1f5   : > { %2157 = vrot.lane.b32.xlu0 %v13909_v16, %s13391_s27  ;;  %2299 = vrot.lane.b32.xlu1 %v13894_v53, %s13394_s15  ;;  %v1152_v49 = vcombine.high %v1136_v32, %v1136_v32  ;;  %v1466_v42 = vrot.slane %v1136_v32, %v13526_v26  ;;  %v1071_v14 = vrot.slane %v1057_v50, %v13524_v24  ;;  %v1965_v36 = vrot.slane %v13909_v16, 1  ;;  %v943_v32 = vld [vmem:[%s21689_s3 + $0x10] sm:$0xff] }
 0x1f6   : > { %v1886_v13 = vrot.slane %v13944_v55, 7  ;;  %v1478_v54 = vrot.slane %v1154_v41, %v13526_v26  ;;  %v1937_v39 = vsel %vm551_vm0, %v1881_v4, 0.0  ;;  %v1964_v43 = vrot.slane %v13894_v53, 1 }
 0x1f7   : > { %v1474_v11 = vrot.slane %v1152_v49, %v13526_v26  ;;  %v1726_v10 = vcombine.low %v1466_v42, %v1470_v7  ;;  %v1073_v60 = vcombine.high %v1071_v14, %v1071_v14  ;;  %v1211_v1 = vrot.slane %v13976_v15, %v13524_v24  ;;  %v945_v42 = vld [vmem:[%s21689_s3 + $0x20] sm:$0xff] }
 0x1f8   : > { %v13959_v46 = vsel %vm551_vm0, 0.0, %v1886_v13  ;;  %v13990_v19 = vsel %vm572_vm2, %v1964_v43, %v1965_v36  ;;  %v2008_v56 = vrot.slane %v13909_v16, 2  ;;  %v2010_v20 = vrot.slane %v1937_v39, 2  ;;  %v948_v43 = vld [vmem:[%s21689_s3 + $0x38] sm:$0xff] }
 0x1f9   : > { %2301 = vrot.lane.b32.xlu0 %v13909_v16, %s13394_s15  ;;  %2167 = vrot.lane.b32.xlu1 %v13923_v47, %s13391_s27  ;;  %v1727_v57 = vcombine.low %v1474_v11, %v1478_v54  ;;  %v1734_v44 = vrot.slane %v1726_v10, %v13534_v33  ;;  %v1101_v58 = vrot.slane %v1073_v60, %v13524_v24  ;;  %vm921_vm13 = vcmp.ge.f32.partialorder %v13819_v37, 0.0 }
 0x1fa   : > { %v1219_v4 = vcombine.high %v1211_v1, %v1211_v1  ;;  %v14001_v25 = vsel %vm588_vm1, %v2008_v56, %v2010_v20  ;;  %v1087_v30 = vrot.slane %v1071_v14, %v13524_v24  ;;  %v12717_v38 = vpack.c.bf16 %v942_v31, %v941_v29 }
 0x1fb   : > { %v1741_v21 = vrot.slane %v1727_v57, %v13534_v33  ;;  %v1105_v59 = vcombine.high %v1101_v58, %v1101_v58  ;;  %v1227_v7 = vrot.slane %v1211_v1, %v13524_v24  ;;  %v1438_v57 = vrot.slane %v1101_v58, %v13526_v26 }
 0x1fc   : > { %v1241_v40 = vrot.slane %v1219_v4, %v13524_v24  ;;  %12718 = vmatprep.subr.bf16.mxu1 %v12717_v38  ;;  %v1103_v54 = vcombine.high %v1087_v30, %v1087_v30  ;;  %v2007_v14 = vrot.slane %v13894_v53, 2  ;;  %vm924_vm14 = vcmp.ge.f32.partialorder %v13821_v3, 0.0 }
 0x1fd   : > { %2055 = vrot.lane.b32.xlu0 %v1971_v28, %s13390_s26  ;;  %2311 = vrot.lane.b32.xlu1 %v13923_v47, %s13394_s15  ;;  %v13993_v23 = vcombine.low %v1734_v44, %v1741_v21  ;;  %v1446_v5 = vrot.slane %v1105_v59, %v13526_v26  ;;  %v1249_v10 = vcombine.high %v1227_v7, %v1227_v7  ;;  %v949_v59 = vld [vmem:[%s21689_s3 + $0x40] sm:$0xff]  ;;  %vm923_vm15 = vcmp.ge.f32.partialorder %v13823_v61, 0.0 }
 0x1fe   : > { %12720 = vmatpush3.bf16.msra.mxu1 %v12717_v38  ;;  %v2009_v60 = vsel %vm588_vm1, %v2007_v14, %v2008_v56  ;;  %v1518_v4 = vrot.slane %v1241_v40, %v13526_v26  ;;  %v1514_v31 = vrot.slane %v1227_v7, %v13526_v26 }
 0x1ff   : > { %v1890_v27 = vrot.slane %v13993_v23, 7  ;;  %v1522_v29 = vrot.slane %v1249_v10, %v13526_v26 }
 0x201   : > { %2111 = vrot.lane.b32.xlu0 %v13941_v51, %s13389_s23  ;;  %2057 = vrot.lane.b32.xlu1 %v1973_v18, %s13390_s26  ;;  %v14027_v41 = vsel %vm551_vm0, %v1889_v17, %v1890_v27  ;;  %v1251_v17 = vcombine.high %v1241_v40, %v1241_v40 }
 0x202   : > { %22221 = vst [vmem:[#allocation14_spill] sm:$0xff] %v14027_v41 }
 0x203   : > { %v1526_v44 = vrot.slane %v1251_v17, %v13526_v26 }
 0x205   : > { %2209 = vrot.lane.b32.xlu0 %v1973_v18, %s13392_s28  ;;  %2109 = vrot.lane.b32.xlu1 %v2014_v45, %s13389_s23  ;;  %v1778_v56 = vcombine.low %v1522_v29, %v1526_v44 }
 0x209   : > { %2257 = vrot.lane.b32.xlu0 %v13941_v51, %s13393_s29  ;;  %2163 = vrot.lane.b32.xlu1 %v13959_v46, %s13391_s27 }
 0x20d   : > { %2356 = vrot.lane.b32.xlu0 %v1973_v18, %s13395_s8  ;;  %2207 = vrot.lane.b32.xlu1 %v1971_v28, %s13392_s28  ;;  %v929_v18 = vmul.f32 0.5, %v13819_v37 }
 0x20f   : > { %v14037_v11 = vsel %vm921_vm13, %v13819_v37, %v929_v18  ;;  %v1442_v37 = vrot.slane %v1103_v54, %v13526_v26  ;;  %v1777_v18 = vcombine.low %v1514_v31, %v1518_v4 }
 0x210   : > { %v1162_v21 = vrot.slane %v14037_v11, %v13524_v24 }
 0x211   : > { %2408 = vrot.lane.b32.xlu0 %v2014_v45, %s13396_s11  ;;  %2255 = vrot.lane.b32.xlu1 %v2014_v45, %s13393_s29  ;;  %v1967_v45 = vrot.slane %v1937_v39, 1  ;;  %v947_v39 = vld [vmem:[%s21689_s3 + $0x30] sm:$0xff]  ;;  %v1693_v1 = vcombine.low %v1442_v37, %v1446_v5  ;;  %v1785_v54 = vrot.slane %v1777_v18, %v13534_v33 }
 0x212   : > { %v12729_v20 = vpack.c.bf16 %v948_v43, %v947_v39  ;;  %v2023_v43 = vrot.slane %v14027_v41, 2 }
 0x213   : > { %v1968_v50 = vsel %vm572_vm2, %v1965_v36, %v1967_v45  ;;  %v1434_v36 = vrot.slane %v1087_v30, %v13526_v26  ;;  %v1170_v30 = vcombine.high %v1162_v21, %v1162_v21  ;;  %v1707_v38 = vrot.slane %v1693_v1, %v13534_v33 }
 0x214   : > { %v1792_v45 = vrot.slane %v1778_v56, %v13534_v33 }
 0x215   : > { %2051 = vrot.lane.b32.xlu0 %v13990_v19, %s13390_s26  ;;  %2307 = vrot.lane.b32.xlu1 %v13959_v46, %s13394_s15  ;;  %v1692_v58 = vcombine.low %v1434_v36, %v1438_v57 }
 0x216   : > { %v14086_v17 = vcombine.low %v1785_v54, %v1792_v45  ;;  %v1155_v54 = vcombine.high %v14037_v11, %v14037_v11 }
 0x218   : > { %v1895_v57 = vrot.slane %v14086_v17, 7 }
 0x219   : > { %2107 = vrot.lane.b32.xlu0 %v14001_v25, %s13389_s23  ;;  %2354 = vrot.lane.b32.xlu1 %v1971_v28, %s13395_s8  ;;  %v944_v28 = vld [vmem:[%s21689_s3 + $0x18] sm:$0xff] }
 0x21a   : > { %v12721_v49 = vpack.c.bf16 %v944_v28, %v943_v32  ;;  %v1700_v32 = vrot.slane %v1692_v58, %v13534_v33  ;;  %v1192_v28 = vrot.slane %v1170_v30, %v13524_v24  ;;  %v14113_v55 = vsel %vm551_vm0, 0.0, %v1895_v57 }
 0x21b   : > { %22222 = vst [vmem:[#allocation15_spill] sm:$0xff] %v14113_v55  ;;  %v2022_v30 = vrot.slane %v13923_v47, 2 }
 0x21c   : > { %12722 = vmatprep.subr.bf16.mxu1 %v12721_v49  ;;  %v14078_v40 = vcombine.low %v1700_v32, %v1707_v38  ;;  %v1202_v7 = vcombine.high %v1192_v28, %v1192_v28 }
 0x21d   : > { %2169 = vrot.lane.b32.xlu0 %v14027_v41, %s13391_s27  ;;  %2410 = vrot.lane.b32.xlu1 %v13941_v51, %s13396_s11  ;;  %v946_v51 = vld [vmem:[%s21689_s3 + $0x28] sm:$0xff]  ;;  %v2024_v56 = vsel %vm588_vm1, %v2022_v30, %v2023_v43  ;;  %v931_v30 = vmul.f32 0.5, %v13823_v61 }
 0x21e   : > { %v12725_v48 = vpack.c.bf16 %v946_v51, %v945_v42  ;;  %12724 = vmatpush3.bf16.msra.mxu1 %v12721_v49  ;;  %v1178_v49 = vrot.slane %v1162_v21, %v13524_v24  ;;  %v1887_v5 = vrot.slane %v14078_v40, 7  ;;  %v1494_v51 = vrot.slane %v1202_v7, %v13526_v26 }
 0x21f   : > { %v1979_v21 = vrot.slane %v13923_v47, 1 }
 0x220   : > { %12726 = vmatprep.subr.bf16.mxu1 %v12725_v48  ;;  %v1200_v42 = vcombine.high %v1178_v49, %v1178_v49  ;;  %v1482_v10 = vrot.slane %v1178_v49, %v13526_v26 }
 0x221   : > { %2205 = vrot.lane.b32.xlu0 %v1968_v50, %s13392_s28  ;;  %2053 = vrot.lane.b32.xlu1 %v1968_v50, %s13390_s26 }
 0x222   : > { %12728 = vmatpush3.bf16.msra.mxu1 %v12725_v48  ;;  %v14099_v48 = vsel %vm551_vm0, %v1886_v13, %v1887_v5  ;;  %v1980_v13 = vrot.slane %v14027_v41, 1 }
 0x223   : > { %12730 = vmatprep.subr.bf16.mxu1 %v12729_v20  ;;  %v1975_v11 = vrot.slane %v14099_v48, 1 }
 0x224   : > { %v1981_v44 = vsel %vm572_vm2, %v1979_v21, %v1980_v13  ;;  %v14179_v21 = vpop.permute.xlu0 %12822 }
 0x225   : > { %2253 = vrot.lane.b32.xlu0 %v14001_v25, %s13393_s29  ;;  %2105 = vrot.lane.b32.xlu1 %v2009_v60, %s13389_s23  ;;  %22224 = vst [vmem:[#allocation17_spill] sm:$0xff] %v14179_v21 }
 0x226   : > { %12732 = vmatpush3.bf16.msra.mxu1 %v12729_v20 }
 0x227   : > { %12441 = vmatprep.subr.mxu1 %v949_v59 }
 0x229   : > { %2313 = vrot.lane.b32.xlu0 %v14027_v41, %s13394_s15  ;;  %2203 = vrot.lane.b32.xlu1 %v13990_v19, %s13392_s28 }
 0x22a   : > { %12442 = vmatpush3.msra.mxu1 %v949_v59 }
 0x22d   : > { %2352 = vrot.lane.b32.xlu0 %v1968_v50, %s13395_s8  ;;  %2251 = vrot.lane.b32.xlu1 %v2009_v60, %s13393_s29  ;;  %v1204_v50 = vcombine.high %v13976_v15, %v13976_v15  ;;  %v1490_v15 = vrot.slane %v1200_v42, %v13526_v26  ;;  %v932_v42 = vmul.f32 0.5, %v13821_v3 }
 0x22f   : > { %v1218_v37 = vrot.slane %v1204_v50, %v13524_v24  ;;  %v1744_v14 = vcombine.low %v1490_v15, %v1494_v51  ;;  %v14163_v15 = vpop.permute.xlu1 %12817 }
 0x230   : > { %22223 = vst [vmem:[#allocation16_spill] sm:$0xff] %v14163_v15 }
 0x231   : > { %2404 = vrot.lane.b32.xlu0 %v2009_v60, %s13396_s11  ;;  %2350 = vrot.lane.b32.xlu1 %v13990_v19, %s13395_s8  ;;  %v1486_v19 = vrot.slane %v1192_v28, %v13526_v26  ;;  %v1220_v39 = vcombine.high %v1218_v37, %v1218_v37  ;;  %v1758_v20 = vrot.slane %v1744_v14, %v13534_v33  ;;  %v1974_v14 = vrot.slane %v13959_v46, 1 }
 0x232   : > { %v1234_v31 = vrot.slane %v1218_v37, %v13524_v24  ;;  %v14166_v37 = vsel %vm924_vm14, %v13821_v3, %v932_v42 }
 0x233   : > { %v1743_v36 = vcombine.low %v1482_v10, %v1486_v19  ;;  %v1169_v19 = vrot.slane %v1155_v54, %v13524_v24  ;;  %v1309_v3 = vrot.slane %v14166_v37, %v13524_v24  ;;  %v14191_v40 = vpop.permute.xlu1 %2384 }
 0x234   : > { %v1250_v18 = vcombine.high %v1234_v31, %v1234_v31  ;;  %v1530_v7 = vrot.slane %v1234_v31, %v13526_v26  ;;  %22225 = vst [vmem:[#allocation18_spill] sm:$0xff] %v14191_v40 }
 0x235   : > { %2165 = vrot.lane.b32.xlu0 %v14099_v48, %s13391_s27  ;;  %2406 = vrot.lane.b32.xlu1 %v14001_v25, %s13396_s11  ;;  %v1940_v25 = vsel %vm551_vm0, %v1890_v27, 0.0  ;;  %v1751_v23 = vrot.slane %v1743_v36, %v13534_v33  ;;  %v1248_v27 = vrot.slane %v1220_v39, %v13524_v24  ;;  %v1171_v36 = vcombine.high %v1169_v19, %v1169_v19 }
 0x236   : > { %v2025_v60 = vrot.slane %v1940_v25, 2  ;;  %v1982_v1 = vrot.slane %v1940_v25, 1  ;;  %v1538_v49 = vrot.slane %v1250_v18, %v13526_v26  ;;  %v14182_v39 = vsel %vm572_vm2, %v1974_v14, %v1975_v11 }
 0x237   : > { %v14134_v29 = vcombine.low %v1751_v23, %v1758_v20  ;;  %v1252_v38 = vcombine.high %v1248_v27, %v1248_v27  ;;  %v1534_v45 = vrot.slane %v1248_v27, %v13526_v26  ;;  %v1317_v20 = vcombine.high %v1309_v3, %v1309_v3 }
 0x238   : > { %v2026_v58 = vsel %vm588_vm1, %v2023_v43, %v2025_v60  ;;  %v1983_v4 = vsel %vm572_vm2, %v1980_v13, %v1982_v1  ;;  %v1939_v13 = vsel %vm551_vm0, %v1887_v5, 0.0  ;;  %v2018_v43 = vrot.slane %v14099_v48, 2 }
 0x239   : > { %2309 = vrot.lane.b32.xlu0 %v14099_v48, %s13394_s15  ;;  %2175 = vrot.lane.b32.xlu1 %v14113_v55, %s13391_s27  ;;  %v1892_v59 = vrot.slane %v14134_v29, 7  ;;  %v1542_v32 = vrot.slane %v1252_v38, %v13526_v26  ;;  %v1794_v51 = vcombine.low %v1530_v7, %v1534_v45  ;;  %v2020_v60 = vrot.slane %v1939_v13, 2 }
 0x23a   : > { %v1199_v5 = vrot.slane %v1171_v36, %v13524_v24  ;;  %v1185_v31 = vrot.slane %v1169_v19, %v13524_v24  ;;  %v1339_v18 = vrot.slane %v1317_v20, %v13524_v24  ;;  %v1977_v45 = vrot.slane %v1939_v13, 1 }
 0x23b   : > { %v14148_v28 = vsel %vm551_vm0, 0.0, %v1892_v59  ;;  %v1795_v50 = vcombine.low %v1538_v49, %v1542_v32  ;;  %v1802_v25 = vrot.slane %v1794_v51, %v13534_v33  ;;  %v14195_v23 = vsel %vm588_vm1, %v2018_v43, %v2020_v60 }
 0x23c   : > { %v1325_v49 = vrot.slane %v1309_v3, %v13524_v24  ;;  %v1349_v42 = vcombine.high %v1339_v18, %v1339_v18 }
 0x23d   : > { %2063 = vrot.lane.b32.xlu0 %v1981_v44, %s13390_s26  ;;  %2319 = vrot.lane.b32.xlu1 %v14113_v55, %s13394_s15  ;;  %v1809_v10 = vrot.slane %v1795_v50, %v13534_v33  ;;  %v1978_v50 = vsel %vm572_vm2, %v1975_v11, %v1977_v45  ;;  %v1498_v11 = vrot.slane %v1185_v31, %v13526_v26 }
 0x23e   : > { %v1347_v19 = vcombine.high %v1325_v49, %v1325_v49 }
 0x23f   : > { %v14185_v1 = vcombine.low %v1802_v25, %v1809_v10  ;;  %v2017_v10 = vrot.slane %v13959_v46, 2  ;;  %v1590_v25 = vrot.slane %v1349_v42, %v13526_v26 }
 0x240   : > { %v1586_v20 = vrot.slane %v1347_v19, %v13526_v26 }
 0x241   : > { %2119 = vrot.lane.b32.xlu0 %v2026_v58, %s13389_s23  ;;  %2065 = vrot.lane.b32.xlu1 %v1983_v4, %s13390_s26  ;;  %v1896_v27 = vrot.slane %v14185_v1, 7  ;;  %v2019_v36 = vsel %vm588_vm1, %v2017_v10, %v2018_v43 }
 0x243   : > { %v14213_v32 = vsel %vm551_vm0, %v1895_v57, %v1896_v27  ;;  %v14226_v57 = vsel %vm923_vm15, %v13823_v61, %v931_v30 }
 0x244   : > { %22227 = vst [vmem:[#allocation20_spill] sm:$0xff] %v14213_v32  ;;  %v1260_v13 = vrot.slane %v14226_v57, %v13524_v24  ;;  %v1253_v63 = vcombine.high %v14226_v57, %v14226_v57 }
 0x245   : > { %2217 = vrot.lane.b32.xlu0 %v1983_v4, %s13392_s28  ;;  %2117 = vrot.lane.b32.xlu1 %v2024_v56, %s13389_s23 }
 0x246   : > { %v1268_v30 = vcombine.high %v1260_v13, %v1260_v13  ;;  %v1276_v10 = vrot.slane %v1260_v13, %v13524_v24  ;;  %v1267_v47 = vrot.slane %v1253_v63, %v13524_v24 }
 0x248   : > { %v1290_v42 = vrot.slane %v1268_v30, %v13524_v24  ;;  %v1298_v30 = vcombine.high %v1276_v10, %v1276_v10 }
 0x249   : > { %2265 = vrot.lane.b32.xlu0 %v2026_v58, %s13393_s29  ;;  %2171 = vrot.lane.b32.xlu1 %v14148_v28, %s13391_s27 }
 0x24d   : > { %2364 = vrot.lane.b32.xlu0 %v1983_v4, %s13395_s8  ;;  %2215 = vrot.lane.b32.xlu1 %v1981_v44, %s13392_s28  ;;  %v14201_v4 = vpop.permute.xlu0 %2438 }
 0x24e   : > { %22226 = vst [vmem:[#allocation19_spill] sm:$0xff] %v14201_v4  ;;  %v2032_v4 = vrot.slane %v14113_v55, 2 }
 0x251   : > { %2416 = vrot.lane.b32.xlu0 %v2024_v56, %s13396_s11  ;;  %2263 = vrot.lane.b32.xlu1 %v2024_v56, %s13393_s29  ;;  %v1203_v56 = vcombine.high %v1199_v5, %v1199_v5 }
 0x253   : > { %v1510_v17 = vrot.slane %v1203_v56, %v13526_v26 }
 0x255   : > { %2059 = vrot.lane.b32.xlu0 %v14182_v39, %s13390_s26  ;;  %2315 = vrot.lane.b32.xlu1 %v14148_v28, %s13394_s15 }
 0x259   : > { %2115 = vrot.lane.b32.xlu0 %v14195_v23, %s13389_s23  ;;  %2362 = vrot.lane.b32.xlu1 %v1981_v44, %s13395_s8  ;;  %v1201_v44 = vcombine.high %v1185_v31, %v1185_v31  ;;  %v1578_v31 = vrot.slane %v1325_v49, %v13526_v26 }
 0x25b   : > { %v14205_v38 = vpop.permute.xlu1 %2159  ;;  %v1506_v51 = vrot.slane %v1201_v44, %v13526_v26  ;;  %v1846_v44 = vcombine.low %v1586_v20, %v1590_v25  ;;  %v1300_v25 = vcombine.high %v1290_v42, %v1290_v42 }
 0x25d   : > { %2177 = vrot.lane.b32.xlu0 %v14213_v32, %s13391_s27  ;;  %2418 = vrot.lane.b32.xlu1 %v2026_v58, %s13396_s11  ;;  %v1502_v58 = vrot.slane %v1199_v5, %v13526_v26  ;;  %v1761_v3 = vcombine.low %v1506_v51, %v1510_v17  ;;  %v1582_v5 = vrot.slane %v1339_v18, %v13526_v26 }
 0x25e   : > { %v1860_v49 = vrot.slane %v1846_v44, %v13534_v33  ;;  %v1558_v13 = vrot.slane %v1300_v25, %v13526_v26  ;;  %v1990_v25 = vrot.slane %v14213_v32, 1 }
 0x25f   : > { %v14220_v54 = vpop.permute.xlu0 %2161  ;;  %v14222_v7 = vpop.permute.xlu1 %2303  ;;  %v1760_v60 = vcombine.low %v1498_v11, %v1502_v58  ;;  %v1775_v43 = vrot.slane %v1761_v3, %v13534_v33  ;;  %v1845_v17 = vcombine.low %v1578_v31, %v1582_v5 }
 0x261   : > { %2213 = vrot.lane.b32.xlu0 %v1978_v50, %s13392_s28  ;;  %2061 = vrot.lane.b32.xlu1 %v1978_v50, %s13390_s26  ;;  %v1768_v18 = vrot.slane %v1760_v60, %v13534_v33  ;;  %v1853_v11 = vrot.slane %v1845_v17, %v13534_v33 }
 0x263   : > { %v14236_v14 = vpop.permute.xlu0 %2305  ;;  %v14238_v61 = vpop.permute.xlu1 %2155  ;;  %v14264_v19 = vcombine.low %v1768_v18, %v1775_v43  ;;  %v14276_v20 = vcombine.low %v1853_v11, %v1860_v49  ;;  %v1546_v49 = vrot.slane %v1276_v10, %v13526_v26  ;;  %v1989_v10 = vrot.slane %v14113_v55, 1 }
 0x265   : > { %2261 = vrot.lane.b32.xlu0 %v14195_v23, %s13393_s29  ;;  %2113 = vrot.lane.b32.xlu1 %v2019_v36, %s13389_s23  ;;  %v21697_v5 = vrot.slane %v14264_v19, 7 }
 0x267   : > { %v14248_v56 = vpop.permute.xlu0 %2157  ;;  %v14250_v45 = vpop.permute.xlu1 %2299  ;;  %v14293_v44 = vsel %vm551_vm0, %v1892_v59, %v21697_v5  ;;  %v2033_v5 = vrot.slane %v14213_v32, 2 }
 0x268   : > { %v1985_v57 = vrot.slane %v14293_v44, 1 }
 0x269   : > { %2321 = vrot.lane.b32.xlu0 %v14213_v32, %s13394_s15  ;;  %2211 = vrot.lane.b32.xlu1 %v14182_v39, %s13392_s28 }
 0x26b   : > { %v14260_v58 = vpop.permute.xlu0 %2301  ;;  %v14262_v51 = vpop.permute.xlu1 %2167 }
 0x26c   : > { %22228 = vst [vmem:[#allocation21_spill] sm:$0xff] %v14262_v51 }
 0x26d   : > { %2360 = vrot.lane.b32.xlu0 %v1978_v50, %s13395_s8  ;;  %2259 = vrot.lane.b32.xlu1 %v2019_v36, %s13393_s29  ;;  %v1302_v50 = vcombine.high %v14166_v37, %v14166_v37  ;;  %v1550_v37 = vrot.slane %v1290_v42, %v13526_v26 }
 0x26f   : > { %v14271_v3 = vpop.permute.xlu0 %2055  ;;  %v14273_v60 = vpop.permute.xlu1 %2311  ;;  %v1316_v17 = vrot.slane %v1302_v50, %v13524_v24  ;;  %v1811_v42 = vcombine.low %v1546_v49, %v1550_v37 }
 0x270   : > { %22229 = vst [vmem:[#allocation22_spill] sm:$0xff] %v14273_v60 }
 0x271   : > { %2412 = vrot.lane.b32.xlu0 %v2019_v36, %s13396_s11  ;;  %2358 = vrot.lane.b32.xlu1 %v14182_v39, %s13395_s8  ;;  %v21696_v36 = vrot.slane %v14276_v20, 7  ;;  %v1554_v39 = vrot.slane %v1298_v30, %v13526_v26  ;;  %v1318_v30 = vcombine.high %v1316_v17, %v1316_v17  ;;  %v1819_v1 = vrot.slane %v1811_v42, %v13534_v33 }
 0x272   : > { %v1332_v42 = vrot.slane %v1316_v17, %v13524_v24 }
 0x273   : > { %v14284_v31 = vpop.permute.xlu0 %2111  ;;  %v14286_v43 = vpop.permute.xlu1 %2057  ;;  %v1812_v59 = vcombine.low %v1554_v39, %v1558_v13  ;;  %v14311_v11 = vsel %vm551_vm0, 0.0, %v21696_v36  ;;  %v14328_v36 = vsel %vm572_vm2, %v1989_v10, %v1990_v25 }
 0x274   : > { %v1594_v55 = vrot.slane %v1332_v42, %v13526_v26 }
 0x275   : > { %2173 = vrot.lane.b32.xlu0 %v14293_v44, %s13391_s27  ;;  %2414 = vrot.lane.b32.xlu1 %v14195_v23, %s13396_s11  ;;  %v1942_v23 = vsel %vm551_vm0, %v1896_v27, 0.0  ;;  %v1826_v39 = vrot.slane %v1812_v59, %v13534_v33  ;;  %v1346_v59 = vrot.slane %v1318_v30, %v13524_v24 }
 0x276   : > { %v2035_v8 = vrot.slane %v1942_v23, 2  ;;  %v1992_v9 = vrot.slane %v1942_v23, 1 }
 0x277   : > { %v14303_v18 = vpop.permute.xlu0 %2209  ;;  %v14305_v29 = vpop.permute.xlu1 %2109  ;;  %v14345_v23 = vcombine.low %v1819_v1, %v1826_v39  ;;  %v1350_v30 = vcombine.high %v1346_v59, %v1346_v59 }
 0x278   : > { %v14342_v49 = vsel %vm588_vm1, %v2033_v5, %v2035_v8  ;;  %v1993_v10 = vsel %vm572_vm2, %v1990_v25, %v1992_v9  ;;  %v2034_v8 = vsel %vm588_vm1, %v2032_v4, %v2033_v5  ;;  %v1348_v25 = vcombine.high %v1332_v42, %v1332_v42 }
 0x279   : > { %2317 = vrot.lane.b32.xlu0 %v14293_v44, %s13394_s15  ;;  %2183 = vrot.lane.b32.xlu1 %v14311_v11, %s13391_s27  ;;  %v21710_v9 = vrot.slane %v14345_v23, 7  ;;  %v1606_v17 = vrot.slane %v1350_v30, %v13526_v26  ;;  %v1598_v4 = vrot.slane %v1346_v59, %v13526_v26 }
 0x27a   : > { %v1602_v5 = vrot.slane %v1348_v25, %v13526_v26 }
 0x27b   : > { %v14322_v50 = vpop.permute.xlu0 %2257  ;;  %v14324_v13 = vpop.permute.xlu1 %2163  ;;  %v14366_v12 = vsel %vm551_vm0, 0.0, %v21710_v9  ;;  %v1862_v32 = vcombine.low %v1594_v55, %v1598_v4  ;;  %v1984_v55 = vrot.slane %v14148_v28, 1 }
 0x27c   : > { %v1863_v9 = vcombine.low %v1602_v5, %v1606_v17  ;;  %v1269_v17 = vcombine.high %v1267_v47, %v1267_v47 }
 0x27d   : > { %2071 = vrot.lane.b32.xlu0 %v14328_v36, %s13390_s26  ;;  %2327 = vrot.lane.b32.xlu1 %v14311_v11, %s13394_s15  ;;  %v1870_v63 = vrot.slane %v1862_v32, %v13534_v33  ;;  %v14397_v60 = vsel %vm572_vm2, %v1984_v55, %v1985_v57 }
 0x27e   : > { %v1877_v41 = vrot.slane %v1863_v9, %v13534_v33  ;;  %v21718_v9 = vrot.slane %v14293_v44, 2  ;;  %v14408_v32 = vrot.slane %v1269_v17, %v13524_v24  ;;  %v12800_v17 = vunpack.i.h.bf16 %v13677_v34 }
 0x27f   : > { %v14336_v27 = vpop.permute.xlu0 %2356  ;;  %v14338_v37 = vpop.permute.xlu1 %2207 }
 0x281   : > { %2127 = vrot.lane.b32.xlu0 %v14342_v49, %s13389_s23  ;;  %2073 = vrot.lane.b32.xlu1 %v1993_v10, %s13390_s26 }
 0x283   : > { %v14352_v40 = vpop.permute.xlu0 %2408  ;;  %v14354_v0 = vpop.permute.xlu1 %2255 }
 0x285   : > { %2225 = vrot.lane.b32.xlu0 %v1993_v10, %s13392_s28  ;;  %2125 = vrot.lane.b32.xlu1 %v2034_v8, %s13389_s23 }
 0x287   : > { %v2052_v39 = vpop.permute.xlu0 %2051  ;;  %v14360_v1 = vpop.permute.xlu1 %2307 }
 0x288   : > { %22230 = vst [vmem:[#allocation23_spill] sm:$0xff] %v14360_v1  ;;  %v14400_v1 = vcombine.low %v1870_v63, %v1877_v41  ;;  %v12819_v63 = vunpack.i.l.bf16 %v14163_v15 }
 0x289   : > { %2273 = vrot.lane.b32.xlu0 %v14342_v49, %s13393_s29  ;;  %2179 = vrot.lane.b32.xlu1 %v14366_v12, %s13391_s27 }
 0x28b   : > { %v2108_v52 = vpop.permute.xlu0 %2107  ;;  %v14376_v30 = vpop.permute.xlu1 %2354 }
 0x28d   : > { %2372 = vrot.lane.b32.xlu0 %v1993_v10, %s13395_s8  ;;  %2223 = vrot.lane.b32.xlu1 %v14328_v36, %s13392_s28  ;;  %v22232_v10 = vrot.slane %v14264_v19, 7  ;;  %v12795_v19 = vunpack.i.h.bf16 %v13679_v35 }
 0x28f   : > { %v14383_v59 = vpop.permute.xlu0 %2169  ;;  %v14385_v25 = vpop.permute.xlu1 %2410  ;;  %v1941_v42 = vsel %vm551_vm0, %v22232_v10, 0.0 }
 0x290   : > { %22231 = vst [vmem:[#allocation24_spill] sm:$0xff] %v14383_v59  ;;  %v2030_v59 = vrot.slane %v1941_v42, 2 }
 0x291   : > { %2424 = vrot.lane.b32.xlu0 %v2034_v8, %s13396_s11  ;;  %2271 = vrot.lane.b32.xlu1 %v2034_v8, %s13393_s29  ;;  %v14411_v8 = vrot.slane %v1267_v47, %v13524_v24  ;;  %v2458_v47 = vsel %vm715_vm3, %v13487_v6, %v12795_v19  ;;  %v2459_v24 = vsel %vm715_vm3, %v13482_v2, %v12819_v63  ;;  %v22233_v6 = vrot.slane %v14400_v1, 7 }
 0x292   : > { %v14419_v51 = vsel %vm588_vm1, %v21718_v9, %v2030_v59  ;;  %v2460_v59 = vsel %vm715_vm3, %v13894_v53, %v2052_v39  ;;  %v12824_v9 = vunpack.i.l.bf16 %v14179_v21  ;;  %v22234_v19 = vrot.slane %v14276_v20, 7 }
 0x293   : > { %v2206_v4 = vpop.permute.xlu0 %2205  ;;  %v2054_v5 = vpop.permute.xlu1 %2053  ;;  %v1299_v34 = vcombine.high %v14411_v8, %v14411_v8  ;;  %v1562_v39 = vrot.slane %v14411_v8, %v13526_v26 }
 0x294   : > { %v2461_v10 = vsel %vm715_vm3, %v13909_v16, %v2054_v5  ;;  %v1301_v16 = vcombine.high %v14408_v32, %v14408_v32  ;;  %v14447_v53 = vsel %vm551_vm0, %v22234_v19, %v22233_v6 }
 0x295   : > { %2067 = vrot.lane.b32.xlu0 %v14397_v60, %s13390_s26  ;;  %2323 = vrot.lane.b32.xlu1 %v14366_v12, %s13394_s15  ;;  %v2479_v5 = vsel %vm721_vm4, %v2461_v10, %v2108_v52  ;;  %v1987_v52 = vrot.slane %v1941_v42, 1  ;;  %v14452_v10 = vsel %vm721_vm4, %v2458_v47, %v12800_v17  ;;  %v1570_v17 = vrot.slane %v1299_v34, %v13526_v26 }
 0x296   : > { %22235 = vst [vmem:[#allocation25_spill] sm:$0xff] %v14452_v10  ;;  %v1574_v20 = vrot.slane %v1301_v16, %v13526_v26  ;;  %v2494_v42 = vsel %vm727_vm5, %v14452_v10, %v14238_v61  ;;  %v14470_v47 = vsel %vm721_vm4, %v2459_v24, %v12824_v9  ;;  %v2499_v24 = vsel %vm727_vm5, %v2479_v5, %v14220_v54 }
 0x297   : > { %v2254_v55 = vpop.permute.xlu0 %2253  ;;  %v2106_v41 = vpop.permute.xlu1 %2105  ;;  %22236 = vst [vmem:[#allocation26_spill] sm:$0xff] %v14470_v47  ;;  %v1988_v10 = vsel %vm572_vm2, %v1985_v57, %v1987_v52  ;;  %v1566_v34 = vrot.slane %v14408_v32, %v13526_v26  ;;  %v2027_v57 = vrot.slane %v14148_v28, 2  ;;  %v2531_v32 = vsel %vm736_vm6, %v2499_v24, %v14303_v18 }
 0x298   : > { %v2478_v35 = vsel %vm721_vm4, %v2460_v59, %v2106_v41  ;;  %v2497_v41 = vsel %vm727_vm5, %v2479_v5, %v14248_v56  ;;  %v1829_v52 = vcombine.low %v1570_v17, %v1574_v20  ;;  %v22237_v17 = vrot.slane %v14293_v44, 2 }
 0x299   : > { %2123 = vrot.lane.b32.xlu0 %v14419_v51, %s13389_s23  ;;  %2370 = vrot.lane.b32.xlu1 %v14328_v36, %s13395_s8  ;;  %v2496_v8 = vsel %vm727_vm5, %v2478_v35, %v14238_v61  ;;  %v2498_v63 = vsel %vm727_vm5, %v2478_v35, %v14205_v38  ;;  %v2529_v19 = vsel %vm736_vm6, %v2497_v41, %v2206_v4 }
 0x29a   : > { %v2495_v35 = vsel %vm727_vm5, %v14470_v47, %v14248_v56  ;;  %v2530_v9 = vsel %vm736_vm6, %v2498_v63, %v14338_v37  ;;  %v2561_v41 = vsel %vm745_vm7, %v2529_v19, %v2254_v55 }
 0x29b   : > { %v14438_v15 = vpop.permute.xlu0 %2313  ;;  %v2204_v36 = vpop.permute.xlu1 %2203 }
 0x29c   : > { %v2526_v59 = vsel %vm736_vm6, %v2494_v42, %v2204_v36 }
 0x29d   : > { %2185 = vrot.lane.b32.xlu0 %v14447_v53, %s13391_s27  ;;  %2426 = vrot.lane.b32.xlu1 %v14342_v49, %s13396_s11  ;;  %v2528_v49 = vsel %vm736_vm6, %v2496_v8, %v2204_v36  ;;  %v2527_v36 = vsel %vm736_vm6, %v2495_v35, %v2206_v4  ;;  %v2562_v4 = vsel %vm745_vm7, %v2530_v9, %v14354_v0 }
 0x29e   : > { %v2559_v56 = vsel %vm745_vm7, %v2527_v36, %v2254_v55  ;;  %v2029_v55 = vsel %vm588_vm1, %v2027_v57, %v22237_v17  ;;  %v2594_v24 = vsel %vm754_vm8, %v2562_v4, %v14222_v7  ;;  %v2000_v17 = vrot.slane %v14447_v53, 1 }
 0x29f   : > { %v2353_v16 = vpop.permute.xlu0 %2352  ;;  %v2252_v6 = vpop.permute.xlu1 %2251 }
 0x2a0   : > { %v2558_v2 = vsel %vm745_vm7, %v2526_v59, %v2252_v6  ;;  %v2560_v61 = vsel %vm745_vm7, %v2528_v49, %v2252_v6  ;;  %v2593_v59 = vsel %vm754_vm8, %v2561_v41, %v14236_v14  ;;  %v2591_v49 = vsel %vm754_vm8, %v2559_v56, %v14260_v58 }
 0x2a1   : > { %2221 = vrot.lane.b32.xlu0 %v1988_v10, %s13392_s28  ;;  %2069 = vrot.lane.b32.xlu1 %v1988_v10, %s13390_s26  ;;  %v2592_v5 = vsel %vm754_vm8, %v2560_v61, %v14222_v7  ;;  %v2590_v8 = vsel %vm754_vm8, %v2558_v2, %v14250_v45  ;;  %v1828_v45 = vcombine.low %v1562_v39, %v1566_v34 }
 0x2a2   : > { %v2624_v6 = vsel %vm763_vm9, %v2592_v5, %v14376_v30  ;;  %v2623_v19 = vsel %vm763_vm9, %v2591_v49, %v2353_v16  ;;  %v2563_v39 = vsel %vm745_vm7, %v2531_v32, %v14322_v50  ;;  %v1843_v58 = vrot.slane %v1829_v52, %v13534_v33 }
 0x2a3   : > { %v2405_v42 = vpop.permute.xlu0 %2404  ;;  %v2351_v63 = vpop.permute.xlu1 %2350  ;;  %v2656_v16 = vsel %vm772_vm10, %v2624_v6, %v14352_v40  ;;  %v2625_v34 = vsel %vm763_vm9, %v2593_v59, %v14336_v27  ;;  %v2626_v7 = vsel %vm763_vm9, %v2594_v24, %v14376_v30  ;;  %v2595_v36 = vsel %vm754_vm8, %v2563_v39, %v14236_v14 }
 0x2a4   : > { %v2622_v20 = vsel %vm763_vm9, %v2590_v8, %v2351_v63  ;;  %v1836_v57 = vrot.slane %v1828_v45, %v13534_v33  ;;  %v2657_v41 = vsel %vm772_vm10, %v2625_v34, %v14385_v25  ;;  %v2658_v30 = vsel %vm772_vm10, %v2626_v7, %v14352_v40 }
 0x2a5   : > { %2269 = vrot.lane.b32.xlu0 %v14419_v51, %s13393_s29  ;;  %2121 = vrot.lane.b32.xlu1 %v2029_v55, %s13389_s23  ;;  %v2654_v2 = vsel %vm772_vm10, %v2622_v20, %v2405_v42  ;;  %v2627_v14 = vsel %vm763_vm9, %v2595_v36, %v14336_v27  ;;  %v22238_v40 = vrot.slane %v14400_v1, 7  ;;  %v22239_v20 = vrot.slane %v14345_v23, 7 }
 0x2a6   : > { %12443 = vmatprep.mubr.msk.f32.mxu1 %vm787_vm11, %v2654_v2  ;;  %v1844_v5 = vcombine.low %v1836_v57, %v1843_v58  ;;  %v2659_v63 = vsel %vm772_vm10, %v2627_v14, %v14385_v25  ;;  %v2043_v2 = vrot.slane %v14447_v53, 2  ;;  %v1999_v45 = vrot.slane %v14311_v11, 1 }
 0x2a7   : > { %v14517_v61 = vpop.permute.xlu0 %2165  ;;  %v2407_v35 = vpop.permute.xlu1 %2406  ;;  %v1944_v27 = vsel %vm551_vm0, %v22238_v40, 0.0 }
 0x2a8   : > { %v2655_v9 = vsel %vm772_vm10, %v2623_v19, %v2407_v35  ;;  %v2001_v6 = vsel %vm572_vm2, %v1999_v45, %v2000_v17  ;;  %v2045_v19 = vrot.slane %v1944_v27, 2 }
 0x2a9   : > { %2329 = vrot.lane.b32.xlu0 %v14447_v53, %s13394_s15  ;;  %12444 = vmatmul.mubr.msk.f32.vlgmr.msra.gmra.mrb[0].mxu1 %vm787_vm11, %v2655_v9 }
 0x2aa   : > { %2219 = vrot.lane.b32.xlu1 %v14397_v60, %s13392_s28  ;;  %12446 = vmatprep.mubr.msk.f32.mxu1 %vm787_vm11, %v2656_v16  ;;  %v2046_v9 = vsel %vm588_vm1, %v2043_v2, %v2045_v19  ;;  %v2463_v19 = vsel %vm715_vm3, %v13882_v62, %v14286_v43 }
 0x2ab   : > { %v14540_v52 = vpop.permute.xlu0 %2309  ;;  %v14542_v56 = vpop.permute.xlu1 %2175 }
 0x2ad   : > { %2368 = vrot.lane.b32.xlu0 %v1988_v10, %s13395_s8  ;;  %12447 = vmatmul.mubr.msk.f32.gmra.mrb[2].mxu1 %vm787_vm11, %v2657_v41  ;;  %v1899_v10 = vrot.slane %v1844_v5, 7 }
 0x2ae   : > { %2267 = vrot.lane.b32.xlu1 %v2029_v55, %s13393_s29  ;;  %12449 = vmatprep.mubr.msk.f32.mxu1 %vm787_vm11, %v2658_v30 }
 0x2af   : > { %v14554_v42 = vpop.permute.xlu0 %2063  ;;  %v14556_v8 = vpop.permute.xlu1 %2319  ;;  %v14574_v25 = vsel %vm551_vm0, %v22239_v20, %v1899_v10  ;;  %v1943_v36 = vsel %vm551_vm0, %v1899_v10, 0.0 }
 0x2b0   : > { %v1995_v5 = vrot.slane %v14574_v25, 1  ;;  %v1997_v30 = vrot.slane %v1943_v36, 1  ;;  %v2038_v10 = vrot.slane %v14574_v25, 2 }
 0x2b1   : > { %2420 = vrot.lane.b32.xlu0 %v2029_v55, %s13396_s11  ;;  %12450 = vmatmul.mubr.msk.f32.gmra.mrb[4].mxu1 %vm787_vm11, %v2659_v63  ;;  %v2002_v55 = vrot.slane %v1944_v27, 1  ;;  %v1994_v27 = vrot.slane %v14366_v12, 1 }
 0x2b2   : > { %2366 = vrot.lane.b32.xlu1 %v14397_v60, %s13395_s8  ;;  %v1998_v40 = vsel %vm572_vm2, %v1995_v5, %v1997_v30 }
 0x2b3   : > { %v14567_v32 = vpop.permute.xlu0 %2119  ;;  %v14569_v4 = vpop.permute.xlu1 %2065  ;;  %v2003_v23 = vsel %vm572_vm2, %v2000_v17, %v2002_v55  ;;  %v2037_v55 = vrot.slane %v14366_v12, 2 }
 0x2b5   : > { %2181 = vrot.lane.b32.xlu0 %v14574_v25, %s13391_s27  ;;  %v14636_v45 = vsel %vm588_vm1, %v2037_v55, %v2038_v10 }
 0x2b6   : > { %2422 = vrot.lane.b32.xlu1 %v14419_v51, %s13396_s11  ;;  %v2042_v51 = vrot.slane %v14311_v11, 2 }
 0x2b7   : > { %v14581_v60 = vpop.permute.xlu0 %2217  ;;  %v14583_v1 = vpop.permute.xlu1 %2117 }
 0x2b8   : > { %v2044_v35 = vsel %vm588_vm1, %v2042_v51, %v2043_v2  ;;  %v2040_v2 = vrot.slane %v1943_v36, 2 }
 0x2b9   : > { %2325 = vrot.lane.b32.xlu0 %v14574_v25, %s13394_s15 }
 0x2ba   : > { %2081 = vrot.lane.b32.xlu1 %v2003_v23, %s13390_s26 }
 0x2bb   : > { %v14591_v59 = vpop.permute.xlu0 %2265  ;;  %v14593_v49 = vpop.permute.xlu1 %2171 }
 0x2bd   : > { %2079 = vrot.lane.b32.xlu0 %v2001_v6, %s13390_s26 }
 0x2be   : > { %2133 = vrot.lane.b32.xlu1 %v2044_v35, %s13389_s23 }
 0x2bf   : > { %v14600_v24 = vpop.permute.xlu0 %2364  ;;  %v14602_v39 = vpop.permute.xlu1 %2215 }
 0x2c1   : > { %2135 = vrot.lane.b32.xlu0 %v2046_v9, %s13389_s23 }
 0x2c2   : > { %2231 = vrot.lane.b32.xlu1 %v2001_v6, %s13392_s28 }
 0x2c3   : > { %v14607_v58 = vpop.permute.xlu0 %2416  ;;  %v14609_v16 = vpop.permute.xlu1 %2263 }
 0x2c5   : > { %2233 = vrot.lane.b32.xlu0 %v2003_v23, %s13392_s28 }
 0x2c6   : > { %2279 = vrot.lane.b32.xlu1 %v2044_v35, %s13393_s29 }
 0x2c7   : > { %v2060_v34 = vpop.permute.xlu0 %2059  ;;  %v14613_v7 = vpop.permute.xlu1 %2315 }
 0x2c9   : > { %2281 = vrot.lane.b32.xlu0 %v2046_v9, %s13393_s29 }
 0x2ca   : > { %2378 = vrot.lane.b32.xlu1 %v2001_v6, %s13395_s8 }
 0x2cb   : > { %v2116_v57 = vpop.permute.xlu0 %2115  ;;  %v14618_v41 = vpop.permute.xlu1 %2362 }
 0x2cd   : > { %2380 = vrot.lane.b32.xlu0 %v2003_v23, %s13395_s8  ;;  %v1996_v23 = vsel %vm572_vm2, %v1994_v27, %v1995_v5  ;;  %v2462_v27 = vsel %vm715_vm3, %v13874_v22, %v14271_v3 }
 0x2ce   : > { %2434 = vrot.lane.b32.xlu1 %v2046_v9, %s13396_s11  ;;  %v2481_v9 = vsel %vm721_vm4, %v2463_v19, %v14284_v31  ;;  %v2480_v62 = vsel %vm721_vm4, %v2462_v27, %v14305_v29  ;;  %v2464_v31 = vsel %vm715_vm3, %v13959_v46, %v2060_v34  ;;  %v22241_v19 = vld [vmem:[#allocation23_spill] sm:$0xff] }
 0x2cf   : > { %v14623_v14 = vpop.permute.xlu0 %2177  ;;  %v14625_v63 = vpop.permute.xlu1 %2418  ;;  %v2501_v43 = vsel %vm727_vm5, %v2481_v9, %v14220_v54  ;;  %v2500_v3 = vsel %vm727_vm5, %v2480_v62, %v14205_v38  ;;  %v2502_v29 = vsel %vm727_vm5, %v2480_v62, %v14324_v13 }
 0x2d0   : > { %v2533_v54 = vsel %vm736_vm6, %v2501_v43, %v14303_v18  ;;  %v2532_v46 = vsel %vm736_vm6, %v2500_v3, %v14338_v37 }
 0x2d1   : > { %2432 = vrot.lane.b32.xlu0 %v2044_v35, %s13396_s11  ;;  %v2041_v35 = vsel %vm588_vm1, %v2038_v10, %v2040_v2  ;;  %v2564_v55 = vsel %vm745_vm7, %v2532_v46, %v14354_v0  ;;  %v22240_v2 = vld [vmem:[#allocation21_spill] sm:$0xff]  ;;  %v2565_v37 = vsel %vm745_vm7, %v2533_v54, %v14322_v50 }
 0x2d2   : > { %2077 = vrot.lane.b32.xlu1 %v1998_v40, %s13390_s26 }
 0x2d3   : > { %v2214_v20 = vpop.permute.xlu0 %2213  ;;  %v2062_v17 = vpop.permute.xlu1 %2061 }
 0x2d4   : > { %v2465_v36 = vsel %vm715_vm3, %v14099_v48, %v2062_v17 }
 0x2d5   : > { %2075 = vrot.lane.b32.xlu0 %v1996_v23, %s13390_s26  ;;  %v2483_v48 = vsel %vm721_vm4, %v2465_v36, %v2116_v57  ;;  %v2596_v36 = vsel %vm754_vm8, %v2564_v55, %v22241_v19 }
 0x2d6   : > { %2129 = vrot.lane.b32.xlu1 %v14636_v45, %s13389_s23  ;;  %v2505_v34 = vsel %vm727_vm5, %v2483_v48, %v14517_v61 }
 0x2d7   : > { %v2262_v51 = vpop.permute.xlu0 %2261  ;;  %v2114_v6 = vpop.permute.xlu1 %2113  ;;  %v2537_v43 = vsel %vm736_vm6, %v2505_v34, %v2214_v20 }
 0x2d8   : > { %v2482_v10 = vsel %vm721_vm4, %v2464_v31, %v2114_v6  ;;  %v2569_v54 = vsel %vm745_vm7, %v2537_v43, %v2262_v51 }
 0x2d9   : > { %2131 = vrot.lane.b32.xlu0 %v2041_v35, %s13389_s23  ;;  %v2504_v38 = vsel %vm727_vm5, %v2482_v10, %v14324_v13  ;;  %v2506_v6 = vsel %vm727_vm5, %v2482_v10, %v22240_v2  ;;  %v2503_v13 = vsel %vm727_vm5, %v2481_v9, %v14517_v61  ;;  %v2597_v61 = vsel %vm754_vm8, %v2565_v37, %v14540_v52 }
 0x2da   : > { %2227 = vrot.lane.b32.xlu1 %v1996_v23, %s13392_s28  ;;  %v2538_v50 = vsel %vm736_vm6, %v2506_v6, %v14602_v39  ;;  %v2535_v9 = vsel %vm736_vm6, %v2503_v13, %v2214_v20  ;;  %v2601_v6 = vsel %vm754_vm8, %v2569_v54, %v14438_v15 }
 0x2db   : > { %v14650_v5 = vpop.permute.xlu0 %2321  ;;  %v2212_v30 = vpop.permute.xlu1 %2211 }
 0x2dc   : > { %v2534_v57 = vsel %vm736_vm6, %v2502_v29, %v2212_v30  ;;  %v2536_v27 = vsel %vm736_vm6, %v2504_v38, %v2212_v30 }
 0x2dd   : > { %2229 = vrot.lane.b32.xlu0 %v1998_v40, %s13392_s28 }
 0x2de   : > { %2275 = vrot.lane.b32.xlu1 %v14636_v45, %s13393_s29 }
 0x2df   : > { %v2361_v17 = vpop.permute.xlu0 %2360  ;;  %v2260_v22 = vpop.permute.xlu1 %2259 }
 0x2e0   : > { %v2566_v18 = vsel %vm745_vm7, %v2534_v57, %v2260_v22  ;;  %v2568_v31 = vsel %vm745_vm7, %v2536_v27, %v2260_v22  ;;  %v2629_v46 = vsel %vm763_vm9, %v2597_v61, %v2361_v17 }
 0x2e1   : > { %2277 = vrot.lane.b32.xlu0 %v2041_v35, %s13393_s29  ;;  %v2598_v30 = vsel %vm754_vm8, %v2566_v18, %v22241_v19 }
 0x2e2   : > { %2374 = vrot.lane.b32.xlu1 %v1996_v23, %s13395_s8  ;;  %v22242_v23 = vld [vmem:[#allocation24_spill] sm:$0xff] }
 0x2e3   : > { %v2413_v62 = vpop.permute.xlu0 %2412  ;;  %v2359_v0 = vpop.permute.xlu1 %2358  ;;  %v2507_v3 = vsel %vm727_vm5, %v2483_v48, %v22242_v23  ;;  %v2567_v48 = vsel %vm745_vm7, %v2535_v9, %v2262_v51 }
 0x2e4   : > { %v2628_v10 = vsel %vm763_vm9, %v2596_v36, %v2359_v0  ;;  %v2630_v22 = vsel %vm763_vm9, %v2598_v30, %v2359_v0  ;;  %v2539_v20 = vsel %vm736_vm6, %v2507_v3, %v14581_v60  ;;  %v2599_v18 = vsel %vm754_vm8, %v2567_v48, %v14540_v52 }
 0x2e5   : > { %2376 = vrot.lane.b32.xlu0 %v1998_v40, %s13395_s8  ;;  %v2660_v29 = vsel %vm772_vm10, %v2628_v10, %v2413_v62  ;;  %v22243_v40 = vld [vmem:[#allocation22_spill] sm:$0xff]  ;;  %v2662_v51 = vsel %vm772_vm10, %v2630_v22, %v2413_v62  ;;  %v2631_v19 = vsel %vm763_vm9, %v2599_v18, %v2361_v17  ;;  %v2571_v62 = vsel %vm745_vm7, %v2539_v20, %v14591_v59 }
 0x2e6   : > { %2430 = vrot.lane.b32.xlu1 %v2041_v35, %s13396_s11  ;;  %12452 = vmatprep.mubr.msk.f32.mxu1 %vm787_vm11, %v2660_v29  ;;  %v2600_v34 = vsel %vm754_vm8, %v2568_v31, %v22243_v40  ;;  %v2570_v35 = vsel %vm745_vm7, %v2538_v50, %v14609_v16  ;;  %v2633_v17 = vsel %vm763_vm9, %v2601_v6, %v14600_v24 }
 0x2e7   : > { %v14715_v57 = vpop.permute.xlu0 %2173  ;;  %v2415_v55 = vpop.permute.xlu1 %2414  ;;  %v2632_v37 = vsel %vm763_vm9, %v2600_v34, %v14618_v41  ;;  %v2602_v27 = vsel %vm754_vm8, %v2570_v35, %v22243_v40  ;;  %v2603_v43 = vsel %vm754_vm8, %v2571_v62, %v14438_v15  ;;  %v2665_v3 = vsel %vm772_vm10, %v2633_v17, %v14625_v63  ;;  %v22245_v17 = vld [vmem:[#allocation13_spill] sm:$0xff] }
 0x2e8   : > { %v2661_v38 = vsel %vm772_vm10, %v2629_v46, %v2415_v55  ;;  %v2663_v0 = vsel %vm772_vm10, %v2631_v19, %v2415_v55  ;;  %v2664_v52 = vsel %vm772_vm10, %v2632_v37, %v14607_v58  ;;  %v2634_v13 = vsel %vm763_vm9, %v2602_v27, %v14618_v41  ;;  %v22244_v37 = vld [vmem:[#allocation14_spill] sm:$0xff] }
 0x2e9   : > { %2428 = vrot.lane.b32.xlu0 %v14636_v45, %s13396_s11  ;;  %12453 = vmatmul.mubr.msk.f32.gmra.mrb[6].mxu1 %vm787_vm11, %v2661_v38  ;;  %v2666_v50 = vsel %vm772_vm10, %v2634_v13, %v14607_v58  ;;  %v2635_v30 = vsel %vm763_vm9, %v2603_v43, %v14600_v24  ;;  %v2467_v19 = vsel %vm715_vm3, %v22244_v37, %v14569_v4 }
 0x2ea   : > { %12455 = vmatprep.mubr.msk.f32.mxu1 %vm787_vm11, %v2662_v51  ;;  %v2667_v29 = vsel %vm772_vm10, %v2635_v30, %v14625_v63  ;;  %v2485_v62 = vsel %vm721_vm4, %v2467_v19, %v14567_v32  ;;  %v2466_v13 = vsel %vm715_vm3, %v22245_v17, %v14554_v42 }
 0x2eb   : > { %v14734_v36 = vpop.permute.xlu0 %2317  ;;  %v14736_v45 = vpop.permute.xlu1 %2183  ;;  %v2484_v43 = vsel %vm721_vm4, %v2466_v13, %v14583_v1 }
 0x2ec   : > { %v2510_v42 = vsel %vm727_vm5, %v2484_v43, %v14593_v49 }
 0x2ed   : > { %12456 = vmatmul.mubr.msk.f32.gmra.mrb[8].mxu1 %vm787_vm11, %v2663_v0 }
 0x2ee   : > { %12458 = vmatprep.mubr.msk.f32.mxu1 %vm787_vm11, %v2664_v52 }
 0x2ef   : > { %v14753_v31 = vpop.permute.xlu0 %2071  ;;  %v14755_v10 = vpop.permute.xlu1 %2327 }
 0x2f1   : > { %12459 = vmatmul.mubr.msk.f32.gmra.mrb[10].mxu1 %vm787_vm11, %v2665_v3  ;;  %v2509_v3 = vsel %vm727_vm5, %v2485_v62, %v22242_v23 }
 0x2f2   : > { %12461 = vmatprep.mubr.msk.f32.mxu1 %vm787_vm11, %v2666_v50  ;;  %v2541_v1 = vsel %vm736_vm6, %v2509_v3, %v14581_v60 }
 0x2f3   : > { %v14765_v41 = vpop.permute.xlu0 %2127  ;;  %v14767_v15 = vpop.permute.xlu1 %2073 }
 0x2f5   : > { %12462 = vmatmul.mubr.msk.f32.gmra.mrb[12].mxu1 %vm787_vm11, %v2667_v29  ;;  %v2508_v29 = vsel %vm727_vm5, %v2484_v43, %v22240_v2 }
 0x2f6   : > { %v2540_v23 = vsel %vm736_vm6, %v2508_v29, %v14602_v39  ;;  %v2573_v39 = vsel %vm745_vm7, %v2541_v1, %v14591_v59 }
 0x2f7   : > { %v14772_v61 = vpop.permute.xlu0 %2225  ;;  %v14774_v9 = vpop.permute.xlu1 %2125 }
 0x2fb   : > { %v14776_v22 = vpop.permute.xlu0 %2273  ;;  %v14778_v58 = vpop.permute.xlu1 %2179 }
 0x2ff   : > { %v14780_v24 = vpop.permute.xlu0 %2372  ;;  %v14782_v48 = vpop.permute.xlu1 %2223 }
 0x303   : > { %v14784_v54 = vpop.permute.xlu0 %2424  ;;  %v14786_v46 = vpop.permute.xlu1 %2271 }
 0x307   : > { %v2068_v40 = vpop.permute.xlu0 %2067  ;;  %v14788_v63 = vpop.permute.xlu1 %2323 }
 0x308   : > { %v2468_v4 = vsel %vm715_vm3, %v14148_v28, %v2068_v40 }
 0x30b   : > { %v2124_v34 = vpop.permute.xlu0 %2123  ;;  %v14790_v55 = vpop.permute.xlu1 %2370 }
 0x30f   : > { %v14792_v20 = vpop.permute.xlu0 %2185  ;;  %v14794_v35 = vpop.permute.xlu1 %2426 }
 0x313   : > { %v2222_v38 = vpop.permute.xlu0 %2221  ;;  %v2070_v51 = vpop.permute.xlu1 %2069 }
 0x314   : > { %v2469_v0 = vsel %vm715_vm3, %v14293_v44, %v2070_v51 }
 0x315   : > { %v2487_v50 = vsel %vm721_vm4, %v2469_v0, %v2124_v34  ;;  %v2572_v34 = vsel %vm745_vm7, %v2540_v23, %v14609_v16  ;;  %v2511_v16 = vsel %vm727_vm5, %v2485_v62, %v14715_v57 }
 0x316   : > { %v2513_v28 = vsel %vm727_vm5, %v2487_v50, %v14715_v57  ;;  %v2604_v37 = vsel %vm754_vm8, %v2572_v34, %v14613_v7  ;;  %v2515_v43 = vsel %vm727_vm5, %v2487_v50, %v14623_v14  ;;  %v2605_v57 = vsel %vm754_vm8, %v2573_v39, %v14734_v36 }
 0x317   : > { %v2270_v6 = vpop.permute.xlu0 %2269  ;;  %v2122_v18 = vpop.permute.xlu1 %2121  ;;  %v2543_v62 = vsel %vm736_vm6, %v2511_v16, %v2222_v38  ;;  %v2547_v1 = vsel %vm736_vm6, %v2515_v43, %v14772_v61 }
 0x318   : > { %v2486_v30 = vsel %vm721_vm4, %v2468_v4, %v2122_v18  ;;  %v2575_v50 = vsel %vm745_vm7, %v2543_v62, %v2270_v6  ;;  %v2579_v39 = vsel %vm745_vm7, %v2547_v1, %v14776_v22 }
 0x319   : > { %v2512_v2 = vsel %vm727_vm5, %v2486_v30, %v14593_v49  ;;  %v2514_v51 = vsel %vm727_vm5, %v2486_v30, %v14542_v56  ;;  %v2545_v49 = vsel %vm736_vm6, %v2513_v28, %v2222_v38 }
 0x31a   : > { %v2546_v59 = vsel %vm736_vm6, %v2514_v51, %v14782_v48 }
 0x31b   : > { %v14799_v27 = vpop.permute.xlu0 %2329  ;;  %v2578_v38 = vsel %vm745_vm7, %v2546_v59, %v14786_v46 }
 0x31c   : > { %v2220_v52 = vpop.permute.xlu1 %2219 }
 0x31d   : > { %v2542_v40 = vsel %vm736_vm6, %v2510_v42, %v2220_v52  ;;  %v2544_v19 = vsel %vm736_vm6, %v2512_v2, %v2220_v52 }
 0x31f   : > { %v2369_v32 = vpop.permute.xlu0 %2368 }
 0x320   : > { %v2268_v44 = vpop.permute.xlu1 %2267  ;;  %v2637_v29 = vsel %vm763_vm9, %v2605_v57, %v2369_v32 }
 0x321   : > { %v2574_v18 = vsel %vm745_vm7, %v2542_v40, %v2268_v44  ;;  %v2576_v17 = vsel %vm745_vm7, %v2544_v19, %v2268_v44  ;;  %v2577_v44 = vsel %vm745_vm7, %v2545_v49, %v2270_v6  ;;  %v2607_v40 = vsel %vm754_vm8, %v2575_v50, %v14734_v36 }
 0x322   : > { %v2606_v3 = vsel %vm754_vm8, %v2574_v18, %v14613_v7  ;;  %v2608_v7 = vsel %vm754_vm8, %v2576_v17, %v14556_v8  ;;  %v2609_v6 = vsel %vm754_vm8, %v2577_v44, %v14650_v5  ;;  %v2639_v51 = vsel %vm763_vm9, %v2607_v40, %v2369_v32 }
 0x323   : > { %v2421_v60 = vpop.permute.xlu0 %2420  ;;  %v2640_v2 = vsel %vm763_vm9, %v2608_v7, %v14790_v55  ;;  %v2641_v19 = vsel %vm763_vm9, %v2609_v6, %v14780_v24 }
 0x324   : > { %v2367_v0 = vpop.permute.xlu1 %2366  ;;  %v2672_v36 = vsel %vm772_vm10, %v2640_v2, %v14784_v54  ;;  %v2673_v49 = vsel %vm772_vm10, %v2641_v19, %v14794_v35 }
 0x325   : > { %v2636_v13 = vsel %vm763_vm9, %v2604_v37, %v2367_v0  ;;  %v2638_v4 = vsel %vm763_vm9, %v2606_v3, %v2367_v0 }
 0x326   : > { %v2668_v52 = vsel %vm772_vm10, %v2636_v13, %v2421_v60  ;;  %v2670_v28 = vsel %vm772_vm10, %v2638_v4, %v2421_v60  ;;  %v2610_v60 = vsel %vm754_vm8, %v2578_v38, %v14556_v8  ;;  %v2611_v8 = vsel %vm754_vm8, %v2579_v39, %v14650_v5 }
 0x327   : > { %v14855_v30 = vpop.permute.xlu0 %2181  ;;  %12464 = vmatprep.mubr.msk.f32.mxu1 %vm787_vm11, %v2668_v52  ;;  %v2642_v32 = vsel %vm763_vm9, %v2610_v60, %v14790_v55  ;;  %v2643_v13 = vsel %vm763_vm9, %v2611_v8, %v14780_v24 }
 0x328   : > { %v2423_v42 = vpop.permute.xlu1 %2422  ;;  %v2674_v17 = vsel %vm772_vm10, %v2642_v32, %v14784_v54  ;;  %v2675_v5 = vsel %vm772_vm10, %v2643_v13, %v14794_v35 }
 0x329   : > { %v2669_v23 = vsel %vm772_vm10, %v2637_v29, %v2423_v42  ;;  %v2671_v37 = vsel %vm772_vm10, %v2639_v51, %v2423_v42  ;;  %v22246_v29 = vld [vmem:[#allocation20_spill] sm:$0xff] }
 0x32a   : > { %12465 = vmatmul.mubr.msk.f32.gmra.mrb[14].mxu1 %vm787_vm11, %v2669_v23  ;;  %v2471_v7 = vsel %vm715_vm3, %v22246_v29, %v14767_v15 }
 0x32b   : > { %v14874_v34 = vpop.permute.xlu0 %2325  ;;  %12467 = vmatprep.mubr.msk.f32.mxu1 %vm787_vm11, %v2670_v28  ;;  %v2489_v1 = vsel %vm721_vm4, %v2471_v7, %v14765_v41  ;;  %v22247_v28 = vld [vmem:[#allocation15_spill] sm:$0xff] }
 0x32c   : > { %v14880_v18 = vpop.permute.xlu1 %2081  ;;  %v2470_v6 = vsel %vm715_vm3, %v22247_v28, %v14753_v31  ;;  %v2517_v51 = vsel %vm727_vm5, %v2489_v1, %v14623_v14 }
 0x32d   : > { %v2488_v2 = vsel %vm721_vm4, %v2470_v6, %v14774_v9 }
 0x32e   : > { %12468 = vmatmul.mubr.msk.f32.gmra.mrb[16].mxu1 %vm787_vm11, %v2671_v37  ;;  %v2516_v41 = vsel %vm727_vm5, %v2488_v2, %v14542_v56  ;;  %v2518_v14 = vsel %vm727_vm5, %v2488_v2, %v14778_v58 }
 0x32f   : > { %v2080_v0 = vpop.permute.xlu0 %2079  ;;  %12470 = vmatprep.mubr.msk.f32.mxu1 %vm787_vm11, %v2672_v36  ;;  %v2548_v31 = vsel %vm736_vm6, %v2516_v41, %v14782_v48  ;;  %v2519_v48 = vsel %vm727_vm5, %v2489_v1, %v14855_v30 }
 0x330   : > { %v2134_v16 = vpop.permute.xlu1 %2133  ;;  %v2580_v36 = vsel %vm745_vm7, %v2548_v31, %v14786_v46  ;;  %v2474_v8 = vsel %vm715_vm3, %v14311_v11, %v2080_v0 }
 0x332   : > { %12471 = vmatmul.mubr.msk.f32.gmra.mrb[18].mxu1 %vm787_vm11, %v2673_v49 }
 0x333   : > { %v14904_v43 = vpop.permute.xlu0 %2135  ;;  %12473 = vmatprep.mubr.msk.f32.mxu1 %vm787_vm11, %v2674_v17 }
 0x334   : > { %v14907_v55 = vpop.permute.xlu1 %2231 }
 0x336   : > { %12474 = vmatmul.mubr.msk.f32.gmra.mrb[20].mxu1 %vm787_vm11, %v2675_v5 }
 0x337   : > { %v14912_v59 = vpop.permute.xlu0 %2233 }
 0x338   : > { %v14914_v3 = vpop.permute.xlu1 %2279 }
 0x33b   : > { %v14916_v52 = vpop.permute.xlu0 %2281 }
 0x33c   : > { %v14918_v54 = vpop.permute.xlu1 %2378 }
 0x33f   : > { %v14920_v24 = vpop.permute.xlu0 %2380 }
 0x340   : > { %v14922_v57 = vpop.permute.xlu1 %2434 }
 0x343   : > { %v14924_v62 = vpop.permute.xlu0 %2432 }
 0x344   : > { %v2078_v4 = vpop.permute.xlu1 %2077 }
 0x345   : > { %v2473_v56 = vsel %vm715_vm3, %v14574_v25, %v2078_v4 }
 0x347   : > { %v2076_v50 = vpop.permute.xlu0 %2075 }
 0x348   : > { %v2130_v44 = vpop.permute.xlu1 %2129  ;;  %v2472_v38 = vsel %vm715_vm3, %v14366_v12, %v2076_v50  ;;  %v2549_v12 = vsel %vm736_vm6, %v2517_v51, %v14772_v61  ;;  %v2612_v61 = vsel %vm754_vm8, %v2580_v36, %v14788_v63  ;;  %v2475_v51 = vsel %vm715_vm3, %v14447_v53, %v14880_v18 }
 0x349   : > { %v2490_v15 = vsel %vm721_vm4, %v2472_v38, %v2130_v44  ;;  %v2581_v9 = vsel %vm745_vm7, %v2549_v12, %v14776_v22 }
 0x34a   : > { %v2522_v37 = vsel %vm727_vm5, %v2490_v15, %v14736_v45  ;;  %v2520_v19 = vsel %vm727_vm5, %v2490_v15, %v14778_v58  ;;  %v2613_v17 = vsel %vm754_vm8, %v2581_v9, %v14874_v34 }
 0x34b   : > { %v2132_v35 = vpop.permute.xlu0 %2131  ;;  %v2554_v46 = vsel %vm736_vm6, %v2522_v37, %v14907_v55 }
 0x34c   : > { %v2228_v42 = vpop.permute.xlu1 %2227  ;;  %v2491_v22 = vsel %vm721_vm4, %v2473_v56, %v2132_v35  ;;  %v2492_v35 = vsel %vm721_vm4, %v2474_v8, %v2134_v16  ;;  %v2586_v29 = vsel %vm745_vm7, %v2554_v46, %v14914_v3  ;;  %v22249_v56 = vld [vmem:[#allocation9_spill] sm:$0xff] }
 0x34d   : > { %v2550_v25 = vsel %vm736_vm6, %v2518_v14, %v2228_v42  ;;  %v2552_v49 = vsel %vm736_vm6, %v2520_v19, %v2228_v42  ;;  %v2521_v4 = vsel %vm727_vm5, %v2491_v22, %v14855_v30  ;;  %v2523_v11 = vsel %vm727_vm5, %v2491_v22, %v14792_v20 }
 0x34e   : > { %v2555_v16 = vsel %vm736_vm6, %v2523_v11, %v14912_v59 }
 0x34f   : > { %v2230_v23 = vpop.permute.xlu0 %2229 }
 0x350   : > { %v2276_v40 = vpop.permute.xlu1 %2275  ;;  %v2551_v13 = vsel %vm736_vm6, %v2519_v48, %v2230_v23  ;;  %v2553_v7 = vsel %vm736_vm6, %v2521_v4, %v2230_v23  ;;  %v22251_v48 = vld [vmem:[#allocation10_spill] sm:$0xff] }
 0x351   : > { %v2582_v58 = vsel %vm745_vm7, %v2550_v25, %v2276_v40  ;;  %v2584_v5 = vsel %vm745_vm7, %v2552_v49, %v2276_v40  ;;  %v21725_v19 = vunpack.i.h.bf16 %v22251_v48  ;;  %v22254_v49 = vld [vmem:[#allocation19_spill] sm:$0xff] }
 0x352   : > { %v2616_v30 = vsel %vm754_vm8, %v2584_v5, %v14755_v10  ;;  %v2614_v28 = vsel %vm754_vm8, %v2582_v58, %v14788_v63 }
 0x353   : > { %v2278_v60 = vpop.permute.xlu0 %2277  ;;  %v2648_v53 = vsel %vm763_vm9, %v2616_v30, %v14918_v54 }
 0x354   : > { %v2375_v39 = vpop.permute.xlu1 %2374  ;;  %v2583_v0 = vsel %vm745_vm7, %v2551_v13, %v2278_v60  ;;  %v2585_v38 = vsel %vm745_vm7, %v2553_v7, %v2278_v60  ;;  %v2524_v60 = vsel %vm727_vm5, %v2492_v35, %v14736_v45  ;;  %v2618_v45 = vsel %vm754_vm8, %v2586_v29, %v14755_v10 }
 0x355   : > { %v2644_v42 = vsel %vm763_vm9, %v2612_v61, %v2375_v39  ;;  %v2646_v40 = vsel %vm763_vm9, %v2614_v28, %v2375_v39  ;;  %v2615_v23 = vsel %vm754_vm8, %v2583_v0, %v14874_v34  ;;  %v2493_v34 = vsel %vm721_vm4, %v2475_v51, %v14904_v43 }
 0x356   : > { %v2617_v41 = vsel %vm754_vm8, %v2585_v38, %v14799_v27  ;;  %v2556_v18 = vsel %vm736_vm6, %v2524_v60, %v14907_v55  ;;  %v2587_v39 = vsel %vm745_vm7, %v2555_v16, %v14916_v52  ;;  %v2525_v31 = vsel %vm727_vm5, %v2493_v34, %v14792_v20  ;;  %v22248_v20 = vld [vmem:[#allocation11_spill] sm:$0xff] }
 0x357   : > { %v2377_v32 = vpop.permute.xlu0 %2376  ;;  %v2588_v43 = vsel %vm745_vm7, %v2556_v18, %v14914_v3  ;;  %v2680_v37 = vsel %vm772_vm10, %v2648_v53, %v14924_v62  ;;  %v2649_v55 = vsel %vm763_vm9, %v2617_v41, %v14920_v24  ;;  %v2557_v9 = vsel %vm736_vm6, %v2525_v31, %v14912_v59 }
 0x358   : > { %v2645_v50 = vsel %vm763_vm9, %v2613_v17, %v2377_v32  ;;  %v2431_v44 = vpop.permute.xlu1 %2430  ;;  %v2647_v63 = vsel %vm763_vm9, %v2615_v23, %v2377_v32  ;;  %v2650_v10 = vsel %vm763_vm9, %v2618_v45, %v14918_v54  ;;  %v2619_v3 = vsel %vm754_vm8, %v2587_v39, %v14799_v27  ;;  %v22252_v32 = vld [vmem:[#allocation12_spill] sm:$0xff] }
 0x359   : > { %v2677_v2 = vsel %vm772_vm10, %v2645_v50, %v2431_v44  ;;  %v2679_v12 = vsel %vm772_vm10, %v2647_v63, %v2431_v44  ;;  %v2620_v14 = vsel %vm754_vm8, %v2588_v43, %v22248_v20  ;;  %v2589_v36 = vsel %vm745_vm7, %v2557_v9, %v14916_v52 }
 0x35a   : > { %v15042_v61 = vunpack.i.h.bf16 %v22249_v56  ;;  %v2681_v59 = vsel %vm772_vm10, %v2649_v55, %v14922_v57  ;;  %v2682_v54 = vsel %vm772_vm10, %v2650_v10, %v14924_v62  ;;  %v2651_v27 = vsel %vm763_vm9, %v2619_v3, %v14920_v24  ;;  %v22253_v62 = vld [vmem:[#allocation18_spill] sm:$0xff] }
 0x35b   : > { %v2429_v1 = vpop.permute.xlu0 %2428  ;;  %v2652_v52 = vsel %vm763_vm9, %v2620_v14, %v21725_v19  ;;  %v21724_v8 = vunpack.i.h.bf16 %v22252_v32  ;;  %v2683_v46 = vsel %vm772_vm10, %v2651_v27, %v14922_v57  ;;  %v15074_v57 = vld [vmem:[%s21690_s4] ss:$0 sm:$0xff] }
 0x35c   : > { %v2676_v6 = vsel %vm772_vm10, %v2644_v42, %v2429_v1  ;;  %v2678_v15 = vsel %vm772_vm10, %v2646_v40, %v2429_v1  ;;  %22250 = vst [vmem:[#allocation21_spill] sm:$0xff] %v15042_v61  ;;  %v2621_v22 = vsel %vm754_vm8, %v2589_v36, %v15042_v61  ;;  %v22255_v42 = vld [vmem:[#allocation8_spill] sm:$0xff] }
 0x35d   : > { %12476 = vmatprep.mubr.msk.f32.mxu1 %vm787_vm11, %v2676_v6  ;;  %v2684_v24 = vsel %vm772_vm10, %v2652_v52, %v21724_v8  ;;  %v2653_v25 = vsel %vm763_vm9, %v2621_v22, %v22253_v62 }
 0x35e   : > { %12477 = vmatmul.mubr.msk.f32.gmra.mrb[22].mxu1 %vm787_vm11, %v2677_v2  ;;  %v2685_v17 = vsel %vm772_vm10, %v2653_v25, %v22254_v49 }
 0x35f   : > { %12479 = vmatprep.mubr.msk.f32.mxu1 %vm787_vm11, %v2678_v15 }
 0x362   : > { %12480 = vmatmul.mubr.msk.f32.gmra.mrb[24].mxu1 %vm787_vm11, %v2679_v12 }
 0x363   : > { %12482 = vmatprep.mubr.msk.f32.mxu1 %vm787_vm11, %v2680_v37 }
 0x366   : > { %12483 = vmatmul.mubr.msk.f32.gmra.mrb[26].mxu1 %vm787_vm11, %v2681_v59 }
 0x367   : > { %12485 = vmatprep.mubr.msk.f32.mxu1 %vm787_vm11, %v2682_v54 }
 0x36a   : > { %12486 = vmatmul.mubr.msk.f32.gmra.mrb[28].mxu1 %vm787_vm11, %v2683_v46 }
 0x36b   : > { %12488 = vmatprep.mubr.msk.f32.mxu1 %vm787_vm11, %v2684_v24 }
 0x36e   : > { %12489 = vmatmul.mubr.msk.f32.gmra.mrb[30].mxu1 %vm787_vm11, %v2685_v17 }
 0x37c   : > { %v12445_v13 = vpop.f32.mrb[0].mxu1 }
 0x37d   : > { %v2854_v58 = vpop.f32.mrb[1].mxu1  ;;  %v2860_v0 = vadd.f32 %v12445_v13, %v15074_v57 }
 0x37e   : > { %v2855_v5 = vadd.f32 %v15074_v57, %v2854_v58 }
 0x37f   : > { %v3046_v29 = vmul.f32 0.5, %v2860_v0  ;;  %vm3014_vm13 = vcmp.ge.f32.partialorder %v2860_v0, 0.0 }
 0x380   : > { %v12448_v4 = vpop.f32.mrb[2].mxu1  ;;  %v3045_v50 = vmul.f32 0.5, %v2855_v5  ;;  %vm3013_vm12 = vcmp.ge.f32.partialorder %v2855_v5, 0.0 }
 0x381   : > { %v2864_v11 = vpop.f32.mrb[3].mxu1  ;;  %v3078_v30 = vsel %vm3014_vm13, %v2860_v0, %v3046_v29  ;;  %v2870_v38 = vadd.f32 %v12448_v4, %v15074_v57 }
 0x382   : > { %v3077_v7 = vsel %vm3013_vm12, %v2855_v5, %v3045_v50  ;;  %v2865_v28 = vadd.f32 %v15074_v57, %v2864_v11  ;;  %v3200_v6 = vcombine.high %v3078_v30, %v3078_v30  ;;  %v3207_v40 = vrot.slane %v3078_v30, %v22255_v42 }
 0x383   : > { %v3158_v1 = vrot.slane %v3077_v7, %v22255_v42  ;;  %v3048_v23 = vmul.f32 0.5, %v2870_v38  ;;  %vm3016_vm14 = vcmp.ge.f32.partialorder %v2870_v38, 0.0  ;;  %v3151_v2 = vcombine.high %v3077_v7, %v3077_v7 }
 0x384   : > { %v15078_v44 = vpop.f32.mrb[4].mxu1  ;;  %v3047_v51 = vmul.f32 0.5, %v2865_v28  ;;  %v3214_v63 = vrot.slane %v3200_v6, %v22255_v42  ;;  %vm3015_vm15 = vcmp.ge.f32.partialorder %v2865_v28, 0.0  ;;  %v3215_v60 = vcombine.high %v3207_v40, %v3207_v40 }
 0x385   : > { %v15080_v35 = vpop.f32.mrb[5].mxu1  ;;  %v3166_v16 = vcombine.high %v3158_v1, %v3158_v1  ;;  %v3080_v34 = vsel %vm3016_vm14, %v2870_v38, %v3048_v23  ;;  %v3174_v41 = vrot.slane %v3158_v1, %v22255_v42  ;;  %v3165_v53 = vrot.slane %v3151_v2, %v22255_v42 }
 0x386   : > { %v3079_v18 = vsel %vm3015_vm15, %v2865_v28, %v3047_v51  ;;  %v3216_v39 = vcombine.high %v3214_v63, %v3214_v63  ;;  %v3305_v43 = vrot.slane %v3080_v34, %v22255_v42  ;;  %v3223_v12 = vrot.slane %v3207_v40, %v22255_v42 }
 0x387   : > { %v3188_v15 = vrot.slane %v3166_v16, %v22255_v42  ;;  %v3237_v31 = vrot.slane %v3215_v60, %v22255_v42  ;;  %v3230_v37 = vrot.slane %v3214_v63, %v22255_v42  ;;  %v3196_v55 = vcombine.high %v3174_v41, %v3174_v41 }
 0x388   : > { %v3249_v9 = vcombine.high %v3079_v18, %v3079_v18  ;;  %v3167_v10 = vcombine.high %v3165_v53, %v3165_v53  ;;  %v3256_v3 = vrot.slane %v3079_v18, %v22255_v42  ;;  %v3244_v14 = vrot.slane %v3216_v39, %v22255_v42 }
 0x389   : > { %v3198_v45 = vcombine.high %v3188_v15, %v3188_v15  ;;  %v3313_v56 = vcombine.high %v3305_v43, %v3305_v43  ;;  %v3245_v59 = vcombine.high %v3223_v12, %v3223_v12  ;;  %v3247_v54 = vcombine.high %v3237_v31, %v3237_v31 }
 0x38a   : > { %v4754_v27 = vrot.slane %v3223_v12, %v13526_v26  ;;  %v3246_v22 = vcombine.high %v3230_v37, %v3230_v37  ;;  %v4726_v52 = vrot.slane %v3188_v15, %v13526_v26  ;;  %v4730_v46 = vrot.slane %v3196_v55, %v13526_v26 }
 0x38b   : > { %v4734_v36 = vrot.slane %v3198_v45, %v13526_v26  ;;  %v3263_v24 = vrot.slane %v3249_v9, %v22255_v42  ;;  %v4758_v25 = vrot.slane %v3237_v31, %v13526_v26  ;;  %v3181_v17 = vrot.slane %v3165_v53, %v22255_v42 }
 0x38c   : > { %v3195_v13 = vrot.slane %v3167_v10, %v22255_v42  ;;  %v3264_v58 = vcombine.high %v3256_v3, %v3256_v3  ;;  %v3248_v5 = vcombine.high %v3244_v14, %v3244_v14  ;;  %v4722_v4 = vrot.slane %v3174_v41, %v13526_v26 }
 0x38d   : > { %v3335_v11 = vrot.slane %v3313_v56, %v22255_v42  ;;  %v5744_v0 = vcombine.low %v4730_v46, %v4734_v36  ;;  %v4762_v50 = vrot.slane %v3245_v59, %v13526_v26  ;;  %v4766_v29 = vrot.slane %v3247_v54, %v13526_v26 }
 0x38e   : > { %v4770_v7 = vrot.slane %v3230_v37, %v13526_v26  ;;  %v4774_v1 = vrot.slane %v3244_v14, %v13526_v26  ;;  %v4778_v30 = vrot.slane %v3246_v22, %v13526_v26  ;;  %v5743_v38 = vcombine.low %v4722_v4, %v4726_v52 }
 0x38f   : > { %v3321_v28 = vrot.slane %v3305_v43, %v22255_v42  ;;  %v3265_v6 = vcombine.high %v3263_v24, %v3263_v24  ;;  %v5777_v16 = vcombine.low %v4754_v27, %v4758_v25  ;;  %v3197_v40 = vcombine.high %v3181_v17, %v3181_v17 }
 0x390   : > { %v3298_v23 = vcombine.high %v3080_v34, %v3080_v34  ;;  %v3286_v2 = vrot.slane %v3264_v58, %v22255_v42  ;;  %v4782_v51 = vrot.slane %v3248_v5, %v13526_v26  ;;  %v3199_v63 = vcombine.high %v3195_v13, %v3195_v13 }
 0x391   : > { %v3345_v15 = vcombine.high %v3335_v11, %v3335_v11  ;;  %v5758_v60 = vrot.slane %v5744_v0, %v13534_v33  ;;  %v5778_v41 = vcombine.low %v4762_v50, %v4766_v29  ;;  %v5794_v53 = vcombine.low %v4770_v7, %v4774_v1 }
 0x392   : > { %v4742_v18 = vrot.slane %v3195_v13, %v13526_v26  ;;  %v3272_v39 = vrot.slane %v3256_v3, %v22255_v42  ;;  %v3343_v45 = vcombine.high %v3321_v28, %v3321_v28  ;;  %v3279_v43 = vrot.slane %v3263_v24, %v22255_v42 }
 0x393   : > { %v3293_v12 = vrot.slane %v3265_v6, %v22255_v42  ;;  %v5751_v34 = vrot.slane %v5743_v38, %v13534_v33  ;;  %v4738_v31 = vrot.slane %v3181_v17, %v13526_v26  ;;  %v4746_v37 = vrot.slane %v3197_v40, %v13526_v26 }
 0x394   : > { %v15123_v55 = vrot.slane %v3298_v23, %v22255_v42  ;;  %v3296_v9 = vcombine.high %v3286_v2, %v3286_v2  ;;  %v4750_v10 = vrot.slane %v3199_v63, %v13526_v26  ;;  %v4822_v14 = vrot.slane %v3335_v11, %v13526_v26 }
 0x395   : > { %v4830_v3 = vrot.slane %v3345_v15, %v13526_v26  ;;  %v15128_v36 = vcombine.low %v5751_v34, %v5758_v60  ;;  %v5760_v56 = vcombine.low %v4738_v31, %v4742_v18  ;;  %v3294_v59 = vcombine.high %v3272_v39, %v3272_v39 }
 0x396   : > { %v4790_v54 = vrot.slane %v3286_v2, %v13526_v26  ;;  %v2875_v27 = vadd.f32 %v15074_v57, %v15080_v35  ;;  %v4818_v22 = vrot.slane %v3321_v28, %v13526_v26  ;;  %v4826_v52 = vrot.slane %v3343_v45, %v13526_v26 }
 0x397   : > { %v3295_v46 = vcombine.high %v3279_v43, %v3279_v43  ;;  %v3297_v24 = vcombine.high %v3293_v12, %v3293_v12  ;;  %v3314_v25 = vcombine.high %v15123_v55, %v15123_v55  ;;  %v4786_v17 = vrot.slane %v3272_v39, %v13526_v26 }
 0x398   : > { %v4798_v13 = vrot.slane %v3296_v9, %v13526_v26  ;;  %v5792_v58 = vrot.slane %v5778_v41, %v13534_v33  ;;  %v5845_v5 = vcombine.low %v4818_v22, %v4822_v14  ;;  %v5846_v4 = vcombine.low %v4826_v52, %v4830_v3 }
 0x399   : > { %v4806_v11 = vrot.slane %v3293_v12, %v13526_v26  ;;  %v6831_v35 = vrot.slane %v15128_v36, 7  ;;  %v4794_v0 = vrot.slane %v3294_v59, %v13526_v26  ;;  %v4802_v50 = vrot.slane %v3279_v43, %v13526_v26 }
 0x39a   : > { %v5811_v29 = vcombine.low %v4786_v17, %v4790_v54  ;;  %v5785_v7 = vrot.slane %v5777_v16, %v13534_v33  ;;  %v4810_v1 = vrot.slane %v3295_v46, %v13526_v26  ;;  %v4814_v38 = vrot.slane %v3297_v24, %v13526_v26 }
 0x39b   : > { %v15148_v28 = vsel %vm551_vm0, 0.0, %v6831_v35  ;;  %v5795_v6 = vcombine.low %v4778_v30, %v4782_v51  ;;  %v3049_v40 = vmul.f32 0.5, %v2875_v27  ;;  %v5761_v2 = vcombine.low %v4746_v37, %v4750_v10 }
 0x39c   : > { %22256 = vst [vmem:[#allocation23_spill] sm:$0xff] %v15148_v28  ;;  %7767 = vrot.lane.b32.xlu1 %v15148_v28, %s13391_s27  ;;  %v5793_v23 = vcombine.low %v5785_v7, %v5792_v58  ;;  %v5812_v63 = vcombine.low %v4794_v0, %v4798_v13  ;;  %v5828_v15 = vcombine.low %v4802_v50, %v4806_v11  ;;  %vm3017_vm12 = vcmp.ge.f32.partialorder %v2875_v27, 0.0 }
 0x39d   : > { %v5802_v60 = vrot.slane %v5794_v53, %v13534_v33  ;;  %v5809_v16 = vrot.slane %v5795_v6, %v13534_v33  ;;  %v5768_v41 = vrot.slane %v5760_v56, %v13534_v33  ;;  %v5775_v18 = vrot.slane %v5761_v2, %v13534_v33 }
 0x39e   : > { %v5819_v39 = vrot.slane %v5811_v29, %v13534_v33  ;;  %v5826_v30 = vrot.slane %v5812_v63, %v13534_v33  ;;  %v5860_v45 = vrot.slane %v5846_v4, %v13534_v33  ;;  %v5829_v43 = vcombine.low %v4810_v1, %v4814_v38 }
 0x39f   : > { %v5810_v51 = vcombine.low %v5802_v60, %v5809_v16  ;;  %v15159_v12 = vsel %vm3017_vm12, %v2875_v27, %v3049_v40  ;;  %v6834_v34 = vrot.slane %v5793_v23, 7  ;;  %v5776_v31 = vcombine.low %v5768_v41, %v5775_v18 }
 0x3a0   : > { %v15161_v37 = vcombine.low %v5819_v39, %v5826_v30  ;;  %v5853_v9 = vrot.slane %v5845_v5, %v13534_v33  ;;  %v5836_v10 = vrot.slane %v5828_v15, %v13534_v33  ;;  %v5843_v14 = vrot.slane %v5829_v43, %v13534_v33 }
 0x3a1   : > { %v6836_v53 = vrot.slane %v5810_v51, 7  ;;  %v3342_v3 = vrot.slane %v3314_v25, %v22255_v42  ;;  %v6832_v36 = vrot.slane %v5776_v31, 7  ;;  %v3354_v27 = vrot.slane %v15159_v12, %v22255_v42 }
 0x3a2   : > { %v15170_v59 = vcombine.low %v5853_v9, %v5860_v45  ;;  %v15172_v54 = vcombine.low %v5836_v10, %v5843_v14  ;;  %v6838_v52 = vrot.slane %v15161_v37, 7  ;;  %v3328_v24 = vrot.slane %v15123_v55, %v22255_v42 }
 0x3a3   : > { %v15168_v56 = vsel %vm551_vm0, %v6834_v34, %v6836_v53  ;;  %v15179_v22 = vsel %vm551_vm0, %v6832_v36, %v6834_v34  ;;  %v7039_v46 = vsel %vm551_vm0, %v6836_v53, 0.0  ;;  %v15188_v25 = vsel %vm551_vm0, %v6831_v35, %v6832_v36 }
 0x3a4   : > { %22257 = vst [vmem:[#allocation24_spill] sm:$0xff] %v15168_v56  ;;  %7773 = vrot.lane.b32.xlu0 %v15168_v56, %s13391_s27  ;;  %22258 = vst [vmem:[#allocation22_spill] sm:$0xff] %v15179_v22  ;;  %7771 = vrot.lane.b32.xlu1 %v15179_v22, %s13391_s27  ;;  %v3346_v17 = vcombine.high %v3342_v3, %v3342_v3  ;;  %v7093_v13 = vrot.slane %v15168_v56, 1  ;;  %v7095_v58 = vrot.slane %v7039_v46, 1  ;;  %v6841_v5 = vrot.slane %v15170_v59, 7 }
 0x3a5   : > { %22259 = vst [vmem:[#allocation14_spill] sm:$0xff] %v15188_v25  ;;  %v6839_v4 = vrot.slane %v15172_v54, 7  ;;  %v3362_v11 = vcombine.high %v3354_v27, %v3354_v27  ;;  %v15198_v55 = vsel %vm551_vm0, 0.0, %v6838_v52  ;;  %v7089_v35 = vrot.slane %v15188_v25, 1 }
 0x3a6   : > { %22260 = vst [vmem:[#allocation13_spill] sm:$0xff] %v15198_v55  ;;  %v3344_v0 = vcombine.high %v3328_v24, %v3328_v24  ;;  %v7088_v29 = vrot.slane %v15148_v28, 1  ;;  %v4846_v7 = vrot.slane %v3346_v17, %v13526_v26  ;;  %v15213_v1 = vsel %vm572_vm2, %v7093_v13, %v7095_v58 }
 0x3a7   : > { %v15208_v50 = vsel %vm551_vm0, %v6839_v4, %v6841_v5  ;;  %22262 = vst [vmem:[#allocation15_spill] sm:$0xff] %v15213_v1  ;;  %v7238_v38 = vrot.slane %v15168_v56, 2  ;;  %v7240_v6 = vrot.slane %v7039_v46, 2  ;;  %v3384_v40 = vrot.slane %v3362_v11, %v22255_v42 }
 0x3a8   : > { %7769 = vrot.lane.b32.xlu0 %v15188_v25, %s13391_s27  ;;  %7775 = vrot.lane.b32.xlu1 %v15198_v55, %s13391_s27  ;;  %22261 = vst [vmem:[#allocation20_spill] sm:$0xff] %v15208_v50  ;;  %v15220_v23 = vsel %vm572_vm2, %v7088_v29, %v7089_v35  ;;  %v7091_v2 = vrot.slane %v15179_v22, 1  ;;  %v4838_v15 = vrot.slane %v3342_v3, %v13526_v26  ;;  %v7234_v43 = vrot.slane %v15188_v25, 2 }
 0x3a9   : > { %22263 = vst [vmem:[#allocation9_spill] sm:$0xff] %v15220_v23  ;;  %v4842_v60 = vrot.slane %v3344_v0, %v13526_v26  ;;  %v3370_v41 = vrot.slane %v3354_v27, %v22255_v42  ;;  %v4834_v18 = vrot.slane %v3328_v24, %v13526_v26  ;;  %v15232_v39 = vsel %vm588_vm1, %v7238_v38, %v7240_v6 }
 0x3aa   : > { %22264 = vst [vmem:[#allocation8_spill] sm:$0xff] %v15232_v39  ;;  %v3394_v51 = vcombine.high %v3384_v40, %v3384_v40  ;;  %v15237_v45 = vsel %vm572_vm2, %v7091_v2, %v7093_v13  ;;  %v7233_v10 = vrot.slane %v15148_v28, 2  ;;  %v7236_v27 = vrot.slane %v15179_v22, 2 }
 0x3ab   : > { %v5863_v30 = vcombine.low %v4842_v60, %v4846_v7  ;;  %22265 = vst [vmem:[#allocation27_spill] sm:$0xff] %v15237_v45  ;;  %v5862_v31 = vcombine.low %v4834_v18, %v4838_v15  ;;  %v3392_v9 = vcombine.high %v3370_v41, %v3370_v41  ;;  %v4854_v13 = vrot.slane %v3384_v40, %v13526_v26 }
 0x3ac   : > { %7385 = vrot.lane.b32.xlu0 %v15213_v1, %s13390_s26  ;;  %7379 = vrot.lane.b32.xlu1 %v15220_v23, %s13390_s26  ;;  %v4862_v3 = vrot.slane %v3394_v51, %v13526_v26  ;;  %v15252_v36 = vsel %vm588_vm1, %v7233_v10, %v7234_v43  ;;  %v15265_v11 = vsel %vm572_vm2, %v7089_v35, %v7091_v2 }
 0x3ad   : > { %v5877_v14 = vrot.slane %v5863_v30, %v13534_v33  ;;  %22266 = vst [vmem:[#allocation28_spill] sm:$0xff] %v15252_v36  ;;  %v5870_v24 = vrot.slane %v5862_v31, %v13534_v33  ;;  %v4858_v58 = vrot.slane %v3392_v9, %v13526_v26  ;;  %22267 = vst [vmem:[#allocation29_spill] sm:$0xff] %v15265_v11 }
 0x3ae   : > { %v4850_v29 = vrot.slane %v3370_v41, %v13526_v26  ;;  %v15271_v7 = vsel %vm588_vm1, %v7236_v27, %v7238_v38  ;;  %v15280_v35 = vsel %vm588_vm1, %v7234_v43, %v7236_v27  ;;  %v2880_v18 = vadd.f32 %v15078_v44, %v15074_v57 }
 0x3af   : > { %v5878_v0 = vcombine.low %v5870_v24, %v5877_v14  ;;  %22268 = vst [vmem:[#allocation30_spill] sm:$0xff] %v15271_v7  ;;  %v5880_v6 = vcombine.low %v4858_v58, %v4862_v3  ;;  %22269 = vst [vmem:[#allocation31_spill] sm:$0xff] %v15280_v35  ;;  %v7097_v27 = vrot.slane %v15198_v55, 1 }
 0x3b0   : > { %7580 = vrot.lane.b32.xlu0 %v15232_v39, %s13389_s23  ;;  %7383 = vrot.lane.b32.xlu1 %v15237_v45, %s13390_s26  ;;  %v5879_v60 = vcombine.low %v4850_v29, %v4854_v13  ;;  %v3050_v43 = vmul.f32 0.5, %v2880_v18  ;;  %vm3018_vm13 = vcmp.ge.f32.partialorder %v2880_v18, 0.0 }
 0x3b1   : > { %v6843_v2 = vrot.slane %v5878_v0, 7  ;;  %v5894_v41 = vrot.slane %v5880_v6, %v13534_v33  ;;  %v3347_v0 = vcombine.high %v15159_v12, %v15159_v12 }
 0x3b2   : > { %v5887_v38 = vrot.slane %v5879_v60, %v13534_v33  ;;  %v3082_v31 = vsel %vm3018_vm13, %v2880_v18, %v3050_v43 }
 0x3b3   : > { %v15293_v30 = vsel %vm551_vm0, %v6841_v5, %v6843_v2  ;;  %v7040_v59 = vsel %vm551_vm0, %v6843_v2, 0.0  ;;  %v15312_v5 = vsel %vm551_vm0, %v6838_v52, %v6839_v4  ;;  %v3396_v52 = vcombine.high %v3082_v31, %v3082_v31 }
 0x3b4   : > { %7965 = vrot.lane.b32.xlu0 %v15213_v1, %s13392_s28  ;;  %7574 = vrot.lane.b32.xlu1 %v15252_v36, %s13389_s23  ;;  %22270 = vst [vmem:[#allocation32_spill] sm:$0xff] %v15293_v30  ;;  %v15297_v51 = vcombine.low %v5887_v38, %v5894_v41  ;;  %22271 = vst [vmem:[#allocation33_spill] sm:$0xff] %v15312_v5  ;;  %v7102_v9 = vrot.slane %v15293_v30, 1  ;;  %v7104_v10 = vrot.slane %v7040_v59, 1  ;;  %v7098_v3 = vrot.slane %v15312_v5, 1 }
 0x3b5   : > { %v3403_v4 = vrot.slane %v3082_v31, %v22255_v42  ;;  %v7247_v13 = vrot.slane %v15293_v30, 2  ;;  %v7249_v58 = vrot.slane %v7040_v59, 2  ;;  %v3410_v60 = vrot.slane %v3396_v52, %v22255_v42 }
 0x3b6   : > { %v21726_v44 = vrot.slane %v15297_v51, 7  ;;  %v15331_v24 = vsel %vm572_vm2, %v7102_v9, %v7104_v10  ;;  %v7243_v12 = vrot.slane %v15312_v5, 2  ;;  %v3361_v18 = vrot.slane %v3347_v0, %v22255_v42 }
 0x3b7   : > { %22273 = vst [vmem:[#allocation35_spill] sm:$0xff] %v15331_v24  ;;  %v3411_v2 = vcombine.high %v3403_v4, %v3403_v4  ;;  %v15346_v41 = vsel %vm588_vm1, %v7247_v13, %v7249_v58  ;;  %v3412_v31 = vcombine.high %v3410_v60, %v3410_v60  ;;  %v7242_v52 = vrot.slane %v15198_v55, 2 }
 0x3b8   : > { %7381 = vrot.lane.b32.xlu0 %v15265_v11, %s13390_s26  ;;  %7578 = vrot.lane.b32.xlu1 %v15271_v7, %s13389_s23  ;;  %v15320_v14 = vsel %vm551_vm0, 0.0, %v21726_v44  ;;  %22275 = vst [vmem:[#allocation37_spill] sm:$0xff] %v15346_v41  ;;  %v3377_v49 = vrot.slane %v3361_v18, %v22255_v42 }
 0x3b9   : > { %22272 = vst [vmem:[#allocation34_spill] sm:$0xff] %v15320_v14  ;;  %v3433_v10 = vrot.slane %v3411_v2, %v22255_v42  ;;  %v15364_v0 = vsel %vm588_vm1, %v7242_v52, %v7243_v12 }
 0x3ba   : > { %22277 = vst [vmem:[#allocation39_spill] sm:$0xff] %v15364_v0 }
 0x3bb   : > { %v3443_v2 = vcombine.high %v3433_v10, %v3433_v10  ;;  %v4886_v61 = vrot.slane %v3433_v10, %v13526_v26 }
 0x3bc   : > { %v15223_v63 = vpop.f32.mrb[6].mxu1  ;;  %7576 = vrot.lane.b32.xlu0 %v15280_v35, %s13389_s23  ;;  %7959 = vrot.lane.b32.xlu1 %v15220_v23, %s13392_s28 }
 0x3bd   : > { %v2884_v16 = vpop.f32.mrb[7].mxu1  ;;  %v2890_v37 = vadd.f32 %v15223_v63, %v15074_v57  ;;  %v15337_v63 = vsel %vm572_vm2, %v7097_v27, %v7098_v3  ;;  %v3419_v27 = vrot.slane %v3403_v4, %v22255_v42  ;;  %v3440_v4 = vrot.slane %v3412_v31, %v22255_v42 }
 0x3be   : > { %v2885_v54 = vadd.f32 %v15074_v57, %v2884_v16  ;;  %22274 = vst [vmem:[#allocation36_spill] sm:$0xff] %v15337_v63  ;;  %v7100_v16 = vrot.slane %v15208_v50, 1 }
 0x3bf   : > { %v3052_v29 = vmul.f32 0.5, %v2890_v37  ;;  %vm3020_vm14 = vcmp.ge.f32.partialorder %v2890_v37, 0.0  ;;  %v3441_v19 = vcombine.high %v3419_v27, %v3419_v27 }
 0x3c0   : > { %v15240_v34 = vpop.f32.mrb[8].mxu1  ;;  %7781 = vrot.lane.b32.xlu0 %v15293_v30, %s13391_s27  ;;  %7963 = vrot.lane.b32.xlu1 %v15237_v45, %s13392_s28  ;;  %v3051_v6 = vmul.f32 0.5, %v2885_v54  ;;  %vm3019_vm15 = vcmp.ge.f32.partialorder %v2885_v54, 0.0  ;;  %v15351_v38 = vsel %vm572_vm2, %v7100_v16, %v7102_v9  ;;  %v15373_v8 = vsel %vm572_vm2, %v7098_v3, %v7100_v16 }
 0x3c1   : > { %v15244_v53 = vpop.f32.mrb[9].mxu1  ;;  %22276 = vst [vmem:[#allocation38_spill] sm:$0xff] %v15351_v38  ;;  %v3084_v43 = vsel %vm3020_vm14, %v2890_v37, %v3052_v29  ;;  %v7245_v37 = vrot.slane %v15208_v50, 2  ;;  %v3363_v29 = vcombine.high %v3361_v18, %v3361_v18  ;;  %22278 = vst [vmem:[#allocation40_spill] sm:$0xff] %v15373_v8  ;;  %v3444_v3 = vcombine.high %v3440_v4, %v3440_v4 }
 0x3c2   : > { %v3083_v59 = vsel %vm3019_vm15, %v2885_v54, %v3051_v6  ;;  %v3501_v58 = vrot.slane %v3084_v43, %v22255_v42  ;;  %v3426_v54 = vrot.slane %v3410_v60, %v22255_v42  ;;  %v4882_v16 = vrot.slane %v3419_v27, %v13526_v26 }
 0x3c3   : > { %v3445_v9 = vcombine.high %v3083_v59, %v3083_v59  ;;  %v3452_v6 = vrot.slane %v3083_v59, %v22255_v42  ;;  %v15379_v60 = vsel %vm588_vm1, %v7245_v37, %v7247_v13  ;;  %v3391_v62 = vrot.slane %v3363_v29, %v22255_v42 }
 0x3c4   : > { %v15255_v46 = vpop.f32.mrb[10].mxu1  ;;  %7961 = vrot.lane.b32.xlu0 %v15265_v11, %s13392_s28  ;;  %7779 = vrot.lane.b32.xlu1 %v15208_v50, %s13391_s27  ;;  %v3509_v44 = vcombine.high %v3501_v58, %v3501_v58  ;;  %22279 = vst [vmem:[#allocation41_spill] sm:$0xff] %v15379_v60  ;;  %v3442_v59 = vcombine.high %v3426_v54, %v3426_v54 }
 0x3c5   : > { %v15260_v17 = vpop.f32.mrb[11].mxu1  ;;  %v3459_v52 = vrot.slane %v3445_v9, %v22255_v42  ;;  %v3460_v31 = vcombine.high %v3452_v6, %v3452_v6  ;;  %v4894_v9 = vrot.slane %v3443_v2, %v13526_v26  ;;  %v4898_v32 = vrot.slane %v3426_v54, %v13526_v26 }
 0x3c6   : > { %v4902_v13 = vrot.slane %v3440_v4, %v13526_v26  ;;  %v15391_v48 = vsel %vm588_vm1, %v7243_v12, %v7245_v37  ;;  %v4890_v18 = vrot.slane %v3441_v19, %v13526_v26  ;;  %v3494_v29 = vcombine.high %v3084_v43, %v3084_v43 }
 0x3c7   : > { %22280 = vst [vmem:[#allocation42_spill] sm:$0xff] %v15391_v48  ;;  %v3531_v20 = vrot.slane %v3509_v44, %v22255_v42  ;;  %v3461_v47 = vcombine.high %v3459_v52, %v3459_v52  ;;  %v4906_v27 = vrot.slane %v3442_v59, %v13526_v26  ;;  %v3393_v2 = vcombine.high %v3377_v49, %v3377_v49 }
 0x3c8   : > { %v15273_v15 = vpop.f32.mrb[12].mxu1  ;;  %7777 = vrot.lane.b32.xlu0 %v15312_v5, %s13391_s27  ;;  %7783 = vrot.lane.b32.xlu1 %v15320_v14, %s13391_s27  ;;  %v3395_v10 = vcombine.high %v3391_v62, %v3391_v62  ;;  %v3482_v54 = vrot.slane %v3460_v31, %v22255_v42  ;;  %v4910_v12 = vrot.slane %v3444_v3, %v13526_v26 }
 0x3c9   : > { %v15277_v40 = vpop.f32.mrb[13].mxu1  ;;  %v5914_v37 = vcombine.low %v4890_v18, %v4894_v9  ;;  %v4870_v19 = vrot.slane %v3391_v62, %v13526_v26  ;;  %v3517_v44 = vrot.slane %v3501_v58, %v22255_v42  ;;  %v5913_v43 = vcombine.low %v4882_v16, %v4886_v61 }
 0x3ca   : > { %v5930_v4 = vcombine.low %v4898_v32, %v4902_v13  ;;  %v3468_v21 = vrot.slane %v3452_v6, %v22255_v42  ;;  %v2895_v59 = vadd.f32 %v15074_v57, %v15244_v53  ;;  %v15409_v31 = vrot.slane %v3494_v29, %v22255_v42 }
 0x3cb   : > { %v3541_v30 = vcombine.high %v3531_v20, %v3531_v20  ;;  %v3489_v3 = vrot.slane %v3461_v47, %v22255_v42  ;;  %v4874_v9 = vrot.slane %v3393_v2, %v13526_v26  ;;  %v4878_v62 = vrot.slane %v3395_v10, %v13526_v26 }
 0x3cc   : > { %7393 = vrot.lane.b32.xlu0 %v15331_v24, %s13390_s26  ;;  %7387 = vrot.lane.b32.xlu1 %v15337_v63, %s13390_s26  ;;  %v3475_v61 = vrot.slane %v3459_v52, %v22255_v42  ;;  %v3492_v32 = vcombine.high %v3482_v54, %v3482_v54  ;;  %v3539_v53 = vcombine.high %v3517_v44, %v3517_v44  ;;  %vm3021_vm12 = vcmp.ge.f32.partialorder %v2895_v59, 0.0 }
 0x3cd   : > { %v5931_v6 = vcombine.low %v4906_v27, %v4910_v12  ;;  %v3490_v16 = vcombine.high %v3468_v21, %v3468_v21  ;;  %v4918_v13 = vrot.slane %v3482_v54, %v13526_v26  ;;  %v5921_v47 = vrot.slane %v5913_v43, %v13534_v33 }
 0x3ce   : > { %v3510_v18 = vcombine.high %v15409_v31, %v15409_v31  ;;  %v4946_v52 = vrot.slane %v3517_v44, %v13526_v26  ;;  %v4958_v29 = vrot.slane %v3541_v30, %v13526_v26  ;;  %v3493_v2 = vcombine.high %v3489_v3, %v3489_v3 }
 0x3cf   : > { %v3491_v10 = vcombine.high %v3475_v61, %v3475_v61  ;;  %v4926_v27 = vrot.slane %v3492_v32, %v13526_v26  ;;  %v4954_v54 = vrot.slane %v3539_v53, %v13526_v26  ;;  %v5945_v43 = vrot.slane %v5931_v6, %v13534_v33 }
 0x3d0   : > { %7588 = vrot.lane.b32.xlu0 %v15346_v41, %s13389_s23  ;;  %7391 = vrot.lane.b32.xlu1 %v15351_v38, %s13390_s26  ;;  %v4934_v44 = vrot.slane %v3489_v3, %v13526_v26  ;;  %v3053_v50 = vmul.f32 0.5, %v2895_v59  ;;  %v4930_v32 = vrot.slane %v3475_v61, %v13526_v26 }
 0x3d1   : > { %v4938_v53 = vrot.slane %v3491_v10, %v13526_v26 }
 0x3d2   : > { %v5964_v3 = vcombine.low %v4930_v32, %v4934_v44  ;;  %v3524_v44 = vrot.slane %v15409_v31, %v22255_v42 }
 0x3d4   : > { %7973 = vrot.lane.b32.xlu0 %v15331_v24, %s13392_s28  ;;  %7582 = vrot.lane.b32.xlu1 %v15364_v0, %s13389_s23  ;;  %v4866_v24 = vrot.slane %v3377_v49, %v13526_v26  ;;  %v5928_v49 = vrot.slane %v5914_v37, %v13534_v33  ;;  %v4914_v37 = vrot.slane %v3468_v21, %v13526_v26 }
 0x3d5   : > { %v5897_v21 = vcombine.low %v4874_v9, %v4878_v62 }
 0x3d6   : > { %v5896_v58 = vcombine.low %v4866_v24, %v4870_v19  ;;  %v4950_v24 = vrot.slane %v3531_v20, %v13526_v26  ;;  %v5929_v12 = vcombine.low %v5921_v47, %v5928_v49  ;;  %v5938_v19 = vrot.slane %v5930_v4, %v13534_v33 }
 0x3d7   : > { %v5947_v30 = vcombine.low %v4914_v37, %v4918_v13  ;;  %v4942_v20 = vrot.slane %v3493_v2, %v13526_v26  ;;  %v15438_v13 = vsel %vm3021_vm12, %v2895_v59, %v3053_v50 }
 0x3d8   : > { %7389 = vrot.lane.b32.xlu0 %v15373_v8, %s13390_s26  ;;  %7586 = vrot.lane.b32.xlu1 %v15379_v60, %s13389_s23  ;;  %v5946_v5 = vcombine.low %v5938_v19, %v5945_v43  ;;  %v5981_v55 = vcombine.low %v4946_v52, %v4950_v24  ;;  %v6848_v4 = vrot.slane %v5929_v12, 7  ;;  %v5904_v6 = vrot.slane %v5896_v58, %v13534_v33 }
 0x3d9   : > { %v5965_v52 = vcombine.low %v4938_v53, %v4942_v20  ;;  %v3538_v24 = vrot.slane %v3510_v18, %v22255_v42  ;;  %v3550_v10 = vrot.slane %v15438_v13, %v22255_v42  ;;  %v22283_v18 = vrot.slane %v15297_v51, 7 }
 0x3da   : > { %v6850_v47 = vrot.slane %v5946_v5, 7  ;;  %v5989_v59 = vrot.slane %v5981_v55, %v13534_v33  ;;  %v5972_v55 = vrot.slane %v5964_v3, %v13534_v33  ;;  %v7106_v3 = vrot.slane %v15320_v14, 1 }
 0x3db   : > { %v5979_v37 = vrot.slane %v5965_v52, %v13534_v33  ;;  %v3558_v32 = vcombine.high %v3550_v10, %v3550_v10 }
 0x3dc   : > { %7584 = vrot.lane.b32.xlu0 %v15391_v48, %s13389_s23  ;;  %7967 = vrot.lane.b32.xlu1 %v15337_v63, %s13392_s28  ;;  %v5982_v63 = vcombine.low %v4954_v54, %v4958_v29  ;;  %v5955_v29 = vrot.slane %v5947_v30, %v13534_v33  ;;  %v15443_v62 = vsel %vm551_vm0, %v6848_v4, %v6850_v47 }
 0x3dd   : > { %22281 = vst [vmem:[#allocation43_spill] sm:$0xff] %v15443_v62  ;;  %v15480_v30 = vcombine.low %v5972_v55, %v5979_v37  ;;  %v7111_v53 = vrot.slane %v15443_v62, 1  ;;  %v7256_v52 = vrot.slane %v15443_v62, 2 }
 0x3df   : > { %v21745_v31 = vrot.slane %v15480_v30, 7 }
 0x3e0   : > { %7971 = vrot.lane.b32.xlu1 %v15351_v38, %s13392_s28  ;;  %v4922_v38 = vrot.slane %v3490_v16, %v13526_v26  ;;  %v5911_v16 = vrot.slane %v5897_v21, %v13534_v33  ;;  %7789 = vrot.lane.b32.xlu0 %v15443_v62, %s13391_s27  ;;  %v3542_v21 = vcombine.high %v3538_v24, %v3538_v24 }
 0x3e2   : > { %v5948_v49 = vcombine.low %v4922_v38, %v4926_v27  ;;  %v5912_v61 = vcombine.low %v5904_v6, %v5911_v16  ;;  %v5996_v38 = vrot.slane %v5982_v63, %v13534_v33  ;;  %v7041_v63 = vsel %vm551_vm0, %v6850_v47, 0.0 }
 0x3e3   : > { %v3540_v16 = vcombine.high %v3524_v44, %v3524_v44  ;;  %v7258_v37 = vrot.slane %v7041_v63, 2 }
 0x3e4   : > { %v5962_v9 = vrot.slane %v5948_v49, %v13534_v33  ;;  %v6846_v50 = vrot.slane %v5912_v61, 7  ;;  %v15464_v12 = vcombine.low %v5989_v59, %v5996_v38  ;;  %7969 = vrot.lane.b32.xlu0 %v15373_v8, %s13392_s28  ;;  %v7113_v49 = vrot.slane %v7041_v63, 1 }
 0x3e5   : > { %v4974_v61 = vrot.slane %v3542_v21, %v13526_v26  ;;  %v3580_v38 = vrot.slane %v3558_v32, %v22255_v42  ;;  %v4970_v21 = vrot.slane %v3540_v16, %v13526_v26  ;;  %v3566_v32 = vrot.slane %v3550_v10, %v22255_v42 }
 0x3e6   : > { %v15448_v5 = vcombine.low %v5955_v29, %v5962_v9  ;;  %v15461_v27 = vsel %vm551_vm0, %v6846_v50, %v6848_v4  ;;  %v15474_v19 = vsel %vm551_vm0, %v22283_v18, %v6846_v50  ;;  %v6855_v47 = vrot.slane %v15464_v12, 7 }
 0x3e7   : > { %22282 = vst [vmem:[#allocation44_spill] sm:$0xff] %v15461_v27  ;;  %7787 = vrot.lane.b32.xlu1 %v15461_v27, %s13391_s27  ;;  %22284 = vst [vmem:[#allocation45_spill] sm:$0xff] %v15474_v19  ;;  %v7107_v4 = vrot.slane %v15474_v19, 1  ;;  %v15511_v50 = vsel %vm572_vm2, %v7111_v53, %v7113_v49  ;;  %v7109_v12 = vrot.slane %v15461_v27, 1  ;;  %v4966_v18 = vrot.slane %v3538_v24, %v13526_v26 }
 0x3e8   : > { %v21744_v54 = vrot.slane %v15448_v5, 7  ;;  %7785 = vrot.lane.b32.xlu0 %v15474_v19, %s13391_s27  ;;  %v15503_v29 = vsel %vm551_vm0, %v21745_v31, %v6855_v47  ;;  %22287 = vst [vmem:[#allocation48_spill] sm:$0xff] %v15511_v50  ;;  %v4962_v63 = vrot.slane %v3524_v44, %v13526_v26  ;;  %v7252_v62 = vrot.slane %v15474_v19, 2 }
 0x3e9   : > { %22286 = vst [vmem:[#allocation47_spill] sm:$0xff] %v15503_v29  ;;  %v15514_v59 = vsel %vm572_vm2, %v7106_v3, %v7107_v4  ;;  %v3590_v3 = vcombine.high %v3580_v38, %v3580_v38  ;;  %v15533_v31 = vsel %vm572_vm2, %v7109_v12, %v7111_v53  ;;  %v5999_v8 = vcombine.low %v4970_v21, %v4974_v61 }
 0x3ea   : > { %v15488_v51 = vsel %vm551_vm0, 0.0, %v21744_v54  ;;  %22288 = vst [vmem:[#allocation49_spill] sm:$0xff] %v15514_v59  ;;  %v15530_v54 = vsel %vm588_vm1, %v7256_v52, %v7258_v37  ;;  %22290 = vst [vmem:[#allocation51_spill] sm:$0xff] %v15533_v31  ;;  %v5998_v24 = vcombine.low %v4962_v63, %v4966_v18  ;;  %v3588_v10 = vcombine.high %v3566_v32, %v3566_v32 }
 0x3eb   : > { %22285 = vst [vmem:[#allocation46_spill] sm:$0xff] %v15488_v51  ;;  %7791 = vrot.lane.b32.xlu1 %v15488_v51, %s13391_s27  ;;  %22289 = vst [vmem:[#allocation50_spill] sm:$0xff] %v15530_v54  ;;  %v7251_v44 = vrot.slane %v15320_v14, 2  ;;  %v4990_v16 = vrot.slane %v3590_v3, %v13526_v26  ;;  %v7254_v53 = vrot.slane %v15461_v27, 2  ;;  %v6013_v19 = vrot.slane %v5999_v8, %v13534_v33 }
 0x3ec   : > { %7401 = vrot.lane.b32.xlu0 %v15511_v50, %s13390_s26  ;;  %v4982_v61 = vrot.slane %v3580_v38, %v13526_v26  ;;  %v4986_v18 = vrot.slane %v3588_v10, %v13526_v26  ;;  %v6006_v21 = vrot.slane %v5998_v24, %v13534_v33  ;;  %v4978_v63 = vrot.slane %v3566_v32, %v13526_v26 }
 0x3ed   : > { %v15543_v37 = vsel %vm588_vm1, %v7251_v44, %v7252_v62  ;;  %v15556_v3 = vsel %vm572_vm2, %v7107_v4, %v7109_v12  ;;  %v15559_v44 = vsel %vm588_vm1, %v7254_v53, %v7256_v52  ;;  %v15566_v10 = vsel %vm588_vm1, %v7252_v62, %v7254_v53 }
 0x3ee   : > { %22291 = vst [vmem:[#allocation52_spill] sm:$0xff] %v15543_v37  ;;  %22292 = vst [vmem:[#allocation53_spill] sm:$0xff] %v15556_v3  ;;  %v6014_v8 = vcombine.low %v6006_v21, %v6013_v19  ;;  %v6016_v27 = vcombine.low %v4986_v18, %v4990_v16  ;;  %v6015_v38 = vcombine.low %v4978_v63, %v4982_v61  ;;  %v22297_v12 = vrot.slane %v15448_v5, 7 }
 0x3ef   : > { %7395 = vrot.lane.b32.xlu1 %v15514_v59, %s13390_s26  ;;  %22293 = vst [vmem:[#allocation54_spill] sm:$0xff] %v15559_v44  ;;  %22294 = vst [vmem:[#allocation55_spill] sm:$0xff] %v15566_v10  ;;  %v7115_v5 = vrot.slane %v15488_v51, 1 }
 0x3f0   : > { %7596 = vrot.lane.b32.xlu0 %v15530_v54, %s13389_s23  ;;  %v6857_v24 = vrot.slane %v6014_v8, 7  ;;  %v6030_v32 = vrot.slane %v6016_v27, %v13534_v33  ;;  %v6023_v19 = vrot.slane %v6015_v38, %v13534_v33  ;;  %v2900_v27 = vadd.f32 %v15240_v34, %v15074_v57 }
 0x3f2   : > { %v15575_v4 = vsel %vm551_vm0, %v6855_v47, %v6857_v24  ;;  %v15577_v52 = vcombine.low %v6023_v19, %v6030_v32  ;;  %v22296_v47 = vrot.slane %v15480_v30, 7  ;;  %v7042_v53 = vsel %vm551_vm0, %v6857_v24, 0.0 }
 0x3f3   : > { %7399 = vrot.lane.b32.xlu1 %v15533_v31, %s13390_s26  ;;  %22295 = vst [vmem:[#allocation56_spill] sm:$0xff] %v15575_v4  ;;  %v7120_v18 = vrot.slane %v15575_v4, 1  ;;  %v7122_v21 = vrot.slane %v7042_v53, 1  ;;  %v3054_v30 = vmul.f32 0.5, %v2900_v27  ;;  %vm3022_vm13 = vcmp.ge.f32.partialorder %v2900_v27, 0.0 }
 0x3f4   : > { %7981 = vrot.lane.b32.xlu0 %v15511_v50, %s13392_s28  ;;  %v21753_v62 = vrot.slane %v15577_v52, 7  ;;  %v15595_v16 = vsel %vm551_vm0, %v22297_v12, %v22296_v47  ;;  %v7265_v19 = vrot.slane %v15575_v4, 2  ;;  %v7267_v47 = vrot.slane %v7042_v53, 2 }
 0x3f5   : > { %22298 = vst [vmem:[#allocation57_spill] sm:$0xff] %v15595_v16  ;;  %v7116_v63 = vrot.slane %v15595_v16, 1  ;;  %v15617_v24 = vsel %vm572_vm2, %v7120_v18, %v7122_v21  ;;  %v3086_v12 = vsel %vm3022_vm13, %v2900_v27, %v3054_v30  ;;  %v3543_v30 = vcombine.high %v15438_v13, %v15438_v13 }
 0x3f6   : > { %v15603_v34 = vsel %vm551_vm0, 0.0, %v21753_v62  ;;  %22303 = vst [vmem:[#allocation62_spill] sm:$0xff] %v15617_v24  ;;  %v7118_v62 = vrot.slane %v15503_v29, 1  ;;  %v15636_v27 = vsel %vm588_vm1, %v7265_v19, %v7267_v47 }
 0x3f7   : > { %7590 = vrot.lane.b32.xlu1 %v15543_v37, %s13389_s23  ;;  %22300 = vst [vmem:[#allocation59_spill] sm:$0xff] %v15603_v34  ;;  %v15620_v32 = vsel %vm572_vm2, %v7115_v5, %v7116_v63  ;;  %v3592_v5 = vcombine.high %v3086_v12, %v3086_v12  ;;  %22307 = vst [vmem:[#allocation66_spill] sm:$0xff] %v15636_v27  ;;  %v3557_v13 = vrot.slane %v3543_v30, %v22255_v42 }
 0x3f8   : > { %7397 = vrot.lane.b32.xlu0 %v15556_v3, %s13390_s26  ;;  %22304 = vst [vmem:[#allocation63_spill] sm:$0xff] %v15620_v32  ;;  %v15641_v53 = vsel %vm572_vm2, %v7118_v62, %v7120_v18  ;;  %v7261_v18 = vrot.slane %v15595_v16, 2 }
 0x3f9   : > { %22308 = vst [vmem:[#allocation67_spill] sm:$0xff] %v15641_v53  ;;  %v3606_v47 = vrot.slane %v3592_v5, %v22255_v42  ;;  %v3573_v22 = vrot.slane %v3557_v13, %v22255_v42 }
 0x3fb   : > { %7594 = vrot.lane.b32.xlu1 %v15559_v44, %s13389_s23  ;;  %v3608_v5 = vcombine.high %v3606_v47, %v3606_v47 }
 0x3fc   : > { %7592 = vrot.lane.b32.xlu0 %v15566_v10, %s13389_s23 }
 0x3fd   : > { %v15450_v58 = vpop.f32.mrb[14].mxu1 }
 0x3fe   : > { %v15453_v2 = vpop.f32.mrb[15].mxu1 }
 0x3ff   : > { %7975 = vrot.lane.b32.xlu1 %v15514_v59, %s13392_s28 }
 0x400   : > { %7797 = vrot.lane.b32.xlu0 %v15575_v4, %s13391_s27 }
 0x401   : > { %v15476_v43 = vpop.f32.mrb[16].mxu1 }
 0x402   : > { %v15482_v20 = vpop.f32.mrb[17].mxu1 }
 0x403   : > { %7979 = vrot.lane.b32.xlu1 %v15533_v31, %s13392_s28 }
 0x404   : > { %7977 = vrot.lane.b32.xlu0 %v15556_v3, %s13392_s28 }
 0x405   : > { %v15497_v6 = vpop.f32.mrb[18].mxu1 }
 0x406   : > { %v15505_v9 = vpop.f32.mrb[19].mxu1 }
 0x407   : > { %7795 = vrot.lane.b32.xlu1 %v15503_v29, %s13391_s27 }
 0x408   : > { %7793 = vrot.lane.b32.xlu0 %v15595_v16, %s13391_s27 }
 0x409   : > { %v15521_v55 = vpop.f32.mrb[20].mxu1 }
 0x40a   : > { %v15526_v49 = vpop.f32.mrb[21].mxu1 }
 0x40b   : > { %7799 = vrot.lane.b32.xlu1 %v15603_v34, %s13391_s27 }
 0x40c   : > { %7409 = vrot.lane.b32.xlu0 %v15617_v24, %s13390_s26 }
 0x40e   : > { %v15598_v61 = vpop.permute.xlu1 %7767 }
 0x40f   : > { %22299 = vst [vmem:[#allocation58_spill] sm:$0xff] %v15598_v61  ;;  %7403 = vrot.lane.b32.xlu1 %v15620_v32, %s13390_s26  ;;  %v3599_v61 = vrot.slane %v3086_v12, %v22255_v42 }
 0x410   : > { %7604 = vrot.lane.b32.xlu0 %v15636_v27, %s13389_s23 }
 0x413   : > { %7407 = vrot.lane.b32.xlu1 %v15641_v53, %s13390_s26 }
 0x414   : > { %7989 = vrot.lane.b32.xlu0 %v15617_v24, %s13392_s28 }
 0x416   : > { %v15612_v8 = vpop.permute.xlu0 %7773  ;;  %v15614_v38 = vpop.permute.xlu1 %7771 }
 0x417   : > { %22301 = vst [vmem:[#allocation60_spill] sm:$0xff] %v15612_v8  ;;  %22302 = vst [vmem:[#allocation61_spill] sm:$0xff] %v15614_v38  ;;  %v2905_v8 = vadd.f32 %v15074_v57, %v15260_v17 }
 0x419   : > { %v3055_v57 = vmul.f32 0.5, %v2905_v8  ;;  %vm3023_vm14 = vcmp.ge.f32.partialorder %v2905_v8, 0.0 }
 0x41a   : > { %v15630_v21 = vpop.permute.xlu0 %7769  ;;  %v15632_v38 = vpop.permute.xlu1 %7775 }
 0x41b   : > { %22305 = vst [vmem:[#allocation64_spill] sm:$0xff] %v15630_v21  ;;  %22306 = vst [vmem:[#allocation65_spill] sm:$0xff] %v15632_v38  ;;  %v3607_v38 = vcombine.high %v3599_v61, %v3599_v61  ;;  %v15658_v4 = vsel %vm3023_vm14, %v2905_v8, %v3055_v57  ;;  %v15674_v8 = vsel %vm572_vm2, %v7116_v63, %v7118_v62 }
 0x41c   : > { %v3648_v24 = vrot.slane %v15658_v4, %v22255_v42  ;;  %22314 = vst [vmem:[#allocation73_spill] sm:$0xff] %v15674_v8  ;;  %v3615_v57 = vrot.slane %v3599_v61, %v22255_v42  ;;  %7405 = vrot.lane.b32.xlu0 %v15674_v8, %s13390_s26  ;;  %v3636_v62 = vrot.slane %v3608_v5, %v22255_v42  ;;  %v15694_v61 = vld [vmem:[%s21690_s4] ss:$0 sm:$0xff] }
 0x41d   : > { %v3629_v3 = vrot.slane %v3607_v38, %v22255_v42  ;;  %v2910_v59 = vadd.f32 %v15694_v61, %v15255_v46 }
 0x41e   : > { %v15647_v17 = vpop.permute.xlu0 %7385  ;;  %v15649_v12 = vpop.permute.xlu1 %7379  ;;  %v3656_v14 = vcombine.high %v3648_v24, %v3648_v24 }
 0x41f   : > { %22309 = vst [vmem:[#allocation68_spill] sm:$0xff] %v15647_v17  ;;  %22310 = vst [vmem:[#allocation69_spill] sm:$0xff] %v15649_v12  ;;  %v7260_v12 = vrot.slane %v15488_v51, 2  ;;  %v3639_v63 = vcombine.high %v3629_v3, %v3629_v3  ;;  %v3056_v23 = vmul.f32 0.5, %v2910_v59  ;;  %vm3024_vm15 = vcmp.ge.f32.partialorder %v2910_v59, 0.0 }
 0x421   : > { %v15671_v16 = vsel %vm588_vm1, %v7260_v12, %v7261_v18  ;;  %v7263_v12 = vrot.slane %v15503_v29, 2  ;;  %v3622_v29 = vrot.slane %v3606_v47, %v22255_v42  ;;  %v5022_v11 = vrot.slane %v3639_v63, %v13526_v26 }
 0x422   : > { %v15660_v50 = vpop.permute.xlu0 %7580  ;;  %v15665_v31 = vpop.permute.xlu1 %7383  ;;  %22313 = vst [vmem:[#allocation72_spill] sm:$0xff] %v15671_v16  ;;  %7598 = vrot.lane.b32.xlu1 %v15671_v16, %s13389_s23  ;;  %v3088_v54 = vsel %vm3024_vm15, %v2910_v59, %v3056_v23 }
 0x423   : > { %22311 = vst [vmem:[#allocation70_spill] sm:$0xff] %v15660_v50  ;;  %22312 = vst [vmem:[#allocation71_spill] sm:$0xff] %v15665_v31  ;;  %v3559_v50 = vcombine.high %v3557_v13, %v3557_v13  ;;  %v15708_v45 = vsel %vm588_vm1, %v7261_v18, %v7263_v12  ;;  %v5010_v18 = vrot.slane %v3615_v57, %v13526_v26 }
 0x424   : > { %22320 = vst [vmem:[#allocation79_spill] sm:$0xff] %v15708_v45  ;;  %7600 = vrot.lane.b32.xlu0 %v15708_v45, %s13389_s23  ;;  %v3638_v25 = vcombine.high %v3622_v29, %v3622_v29  ;;  %v5030_v13 = vrot.slane %v3636_v62, %v13526_v26  ;;  %v3690_v23 = vcombine.high %v3088_v54, %v3088_v54 }
 0x425   : > { %v3587_v5 = vrot.slane %v3559_v50, %v22255_v42  ;;  %v3640_v50 = vcombine.high %v3636_v62, %v3636_v62 }
 0x426   : > { %v15683_v38 = vpop.permute.xlu0 %7965  ;;  %v15688_v51 = vpop.permute.xlu1 %7574 }
 0x427   : > { %22315 = vst [vmem:[#allocation74_spill] sm:$0xff] %v15683_v38  ;;  %22317 = vst [vmem:[#allocation76_spill] sm:$0xff] %v15688_v51  ;;  %v15699_v38 = vsel %vm588_vm1, %v7263_v12, %v7265_v19  ;;  %v3637_v51 = vcombine.high %v3615_v57, %v3615_v57  ;;  %v5014_v19 = vrot.slane %v3629_v3, %v13526_v26 }
 0x428   : > { %22318 = vst [vmem:[#allocation77_spill] sm:$0xff] %v15699_v38  ;;  %7602 = vrot.lane.b32.xlu1 %v15699_v38, %s13389_s23  ;;  %v3678_v12 = vrot.slane %v3656_v14, %v22255_v42  ;;  %v3591_v28 = vcombine.high %v3587_v5, %v3587_v5  ;;  %v5026_v57 = vrot.slane %v3622_v29, %v13526_v26 }
 0x429   : > { %v5018_v3 = vrot.slane %v3637_v51, %v13526_v26  ;;  %v6049_v27 = vcombine.low %v5010_v18, %v5014_v19  ;;  %v3589_v38 = vcombine.high %v3573_v22, %v3573_v22  ;;  %v3664_v14 = vrot.slane %v3648_v24, %v22255_v42 }
 0x42a   : > { %v15710_v56 = vpop.permute.xlu0 %7381  ;;  %v15718_v47 = vpop.permute.xlu1 %7578  ;;  %v5038_v51 = vrot.slane %v3640_v50, %v13526_v26  ;;  %v4998_v62 = vrot.slane %v3587_v5, %v13526_v26  ;;  %v6066_v10 = vcombine.low %v5026_v57, %v5030_v13  ;;  %v4994_v29 = vrot.slane %v3573_v22, %v13526_v26 }
 0x42b   : > { %22321 = vst [vmem:[#allocation80_spill] sm:$0xff] %v15710_v56  ;;  %22323 = vst [vmem:[#allocation82_spill] sm:$0xff] %v15718_v47  ;;  %v6050_v16 = vcombine.low %v5018_v3, %v5022_v11  ;;  %v5006_v19 = vrot.slane %v3591_v28, %v13526_v26  ;;  %v5002_v5 = vrot.slane %v3589_v38, %v13526_v26 }
 0x42c   : > { %7983 = vrot.lane.b32.xlu1 %v15620_v32, %s13392_s28  ;;  %v3688_v32 = vcombine.high %v3678_v12, %v3678_v12  ;;  %v3686_v59 = vcombine.high %v3664_v14, %v3664_v14  ;;  %v5046_v50 = vrot.slane %v3678_v12, %v13526_v26  ;;  %v6057_v22 = vrot.slane %v6049_v27, %v13534_v33 }
 0x42d   : > { %v6064_v28 = vrot.slane %v6050_v16, %v13534_v33  ;;  %v5042_v13 = vrot.slane %v3664_v14, %v13526_v26  ;;  %v3704_v16 = vrot.slane %v3690_v23, %v22255_v42 }
 0x42e   : > { %v15729_v47 = vpop.permute.xlu0 %7576  ;;  %v15735_v45 = vpop.permute.xlu1 %7959  ;;  %v5054_v57 = vrot.slane %v3688_v32, %v13526_v26  ;;  %v5050_v12 = vrot.slane %v3686_v59, %v13526_v26 }
 0x42f   : > { %22325 = vst [vmem:[#allocation84_spill] sm:$0xff] %v15729_v47  ;;  %22327 = vst [vmem:[#allocation86_spill] sm:$0xff] %v15735_v45  ;;  %v5034_v47 = vrot.slane %v3638_v25, %v13526_v26  ;;  %v6032_v25 = vcombine.low %v4994_v29, %v4998_v62  ;;  %v6074_v45 = vrot.slane %v6066_v10, %v13534_v33 }
 0x430   : > { %7987 = vrot.lane.b32.xlu1 %v15641_v53, %s13392_s28  ;;  %v6033_v53 = vcombine.low %v5002_v5, %v5006_v19  ;;  %v6083_v62 = vcombine.low %v5042_v13, %v5046_v50  ;;  %v6084_v14 = vcombine.low %v5050_v12, %v5054_v57  ;;  %v3697_v10 = vrot.slane %v3088_v54, %v22255_v42 }
 0x431   : > { %v15655_v21 = vpop.f32.mrb[22].mxu1  ;;  %v6067_v3 = vcombine.low %v5034_v47, %v5038_v51  ;;  %v6040_v47 = vrot.slane %v6032_v25, %v13534_v33 }
 0x432   : > { %v15662_v17 = vpop.f32.mrb[23].mxu1  ;;  %v15747_v24 = vpop.permute.xlu0 %7781  ;;  %v6047_v32 = vrot.slane %v6033_v53, %v13534_v33  ;;  %v6091_v5 = vrot.slane %v6083_v62, %v13534_v33  ;;  %v6098_v59 = vrot.slane %v6084_v14, %v13534_v33  ;;  %v3705_v53 = vcombine.high %v3697_v10, %v3697_v10 }
 0x433   : > { %22329 = vst [vmem:[#allocation88_spill] sm:$0xff] %v15747_v24  ;;  %v15753_v18 = vpop.permute.xlu1 %7963  ;;  %v6065_v24 = vcombine.low %v6057_v22, %v6064_v28  ;;  %v6081_v38 = vrot.slane %v6067_v3, %v13534_v33  ;;  %v3706_v28 = vcombine.high %v3704_v16, %v3704_v16  ;;  %v22338_v3 = vrot.slane %v15577_v52, 7 }
 0x434   : > { %22331 = vst [vmem:[#allocation90_spill] sm:$0xff] %v15753_v18  ;;  %v6048_v19 = vcombine.low %v6040_v47, %v6047_v32  ;;  %v15781_v54 = vcombine.low %v6091_v5, %v6098_v59  ;;  %v3727_v47 = vrot.slane %v3705_v53, %v22255_v42  ;;  %v7124_v5 = vrot.slane %v15603_v34, 1 }
 0x435   : > { %v15676_v30 = vpop.f32.mrb[24].mxu1  ;;  %v6082_v27 = vcombine.low %v6074_v45, %v6081_v38  ;;  %v6862_v51 = vrot.slane %v6065_v24, 7  ;;  %v3734_v38 = vrot.slane %v3706_v28, %v22255_v42 }
 0x436   : > { %v15685_v31 = vpop.f32.mrb[25].mxu1  ;;  %v15761_v37 = vpop.permute.xlu0 %7961  ;;  %v6860_v45 = vrot.slane %v6048_v19, 7  ;;  %v21807_v57 = vrot.slane %v15781_v54, 7  ;;  %v3737_v28 = vcombine.high %v3727_v47, %v3727_v47 }
 0x437   : > { %22316 = vst [vmem:[#allocation75_spill] sm:$0xff] %v15685_v31  ;;  %22332 = vst [vmem:[#allocation91_spill] sm:$0xff] %v15761_v37  ;;  %v15764_v29 = vpop.permute.xlu1 %7779  ;;  %v6864_v22 = vrot.slane %v6082_v27, 7  ;;  %v3720_v27 = vrot.slane %v3704_v16, %v22255_v42 }
 0x438   : > { %22333 = vst [vmem:[#allocation92_spill] sm:$0xff] %v15764_v29  ;;  %v15784_v24 = vsel %vm551_vm0, %v6860_v45, %v6862_v51  ;;  %v15791_v13 = vsel %vm551_vm0, %v22338_v3, %v6860_v45  ;;  %v15805_v52 = vsel %vm551_vm0, 0.0, %v21807_v57  ;;  %v5086_v29 = vrot.slane %v3737_v28, %v13526_v26 }
 0x439   : > { %v15701_v1 = vpop.f32.mrb[26].mxu1  ;;  %v15775_v23 = vsel %vm551_vm0, %v6862_v51, %v6864_v22  ;;  %22337 = vst [vmem:[#allocation96_spill] sm:$0xff] %v15784_v24  ;;  %7803 = vrot.lane.b32.xlu1 %v15784_v24, %s13391_s27  ;;  %22339 = vst [vmem:[#allocation97_spill] sm:$0xff] %v15791_v13  ;;  %v7043_v12 = vsel %vm551_vm0, %v6864_v22, 0.0  ;;  %v7125_v32 = vrot.slane %v15791_v13, 1  ;;  %v3713_v51 = vrot.slane %v3697_v10, %v22255_v42 }
 0x43a   : > { %22319 = vst [vmem:[#allocation78_spill] sm:$0xff] %v15701_v1  ;;  %v15712_v46 = vpop.f32.mrb[27].mxu1  ;;  %v15772_v50 = vpop.permute.xlu0 %7777  ;;  %22335 = vst [vmem:[#allocation94_spill] sm:$0xff] %v15775_v23  ;;  %7805 = vrot.lane.b32.xlu0 %v15775_v23, %s13391_s27  ;;  %v3738_v22 = vcombine.high %v3734_v38, %v3734_v38  ;;  %v7129_v19 = vrot.slane %v15775_v23, 1  ;;  %v7131_v16 = vrot.slane %v7043_v12, 1  ;;  %v3736_v59 = vcombine.high %v3720_v27, %v3720_v27 }
 0x43b   : > { %22322 = vst [vmem:[#allocation81_spill] sm:$0xff] %v15712_v46  ;;  %22334 = vst [vmem:[#allocation93_spill] sm:$0xff] %v15772_v50  ;;  %v15777_v25 = vpop.permute.xlu1 %7783  ;;  %v15818_v45 = vsel %vm572_vm2, %v7124_v5, %v7125_v32  ;;  %v7127_v53 = vrot.slane %v15784_v24, 1  ;;  %v3735_v10 = vcombine.high %v3713_v51, %v3713_v51  ;;  %v5094_v5 = vrot.slane %v3734_v38, %v13526_v26 }
 0x43c   : > { %22336 = vst [vmem:[#allocation95_spill] sm:$0xff] %v15777_v25  ;;  %22341 = vst [vmem:[#allocation99_spill] sm:$0xff] %v15805_v52  ;;  %v5102_v57 = vrot.slane %v3738_v22, %v13526_v26  ;;  %v15827_v25 = vsel %vm572_vm2, %v7129_v19, %v7131_v16  ;;  %v5098_v18 = vrot.slane %v3736_v59, %v13526_v26  ;;  %v7270_v22 = vrot.slane %v15791_v13, 2 }
 0x43d   : > { %v15723_v56 = vpop.f32.mrb[28].mxu1  ;;  %7807 = vrot.lane.b32.xlu1 %v15805_v52, %s13391_s27  ;;  %22343 = vst [vmem:[#allocation101_spill] sm:$0xff] %v15818_v45  ;;  %22345 = vst [vmem:[#allocation103_spill] sm:$0xff] %v15827_v25  ;;  %v5078_v16 = vrot.slane %v3727_v47, %v13526_v26  ;;  %v5082_v38 = vrot.slane %v3735_v10, %v13526_v26  ;;  %v7269_v28 = vrot.slane %v15603_v34, 2 }
 0x43e   : > { %22324 = vst [vmem:[#allocation83_spill] sm:$0xff] %v15723_v56  ;;  %v15731_v63 = vpop.f32.mrb[29].mxu1  ;;  %7985 = vrot.lane.b32.xlu0 %v15674_v8, %s13392_s28  ;;  %v15798_v62 = vpop.permute.xlu0 %7393  ;;  %v6135_v59 = vcombine.low %v5098_v18, %v5102_v57 }
 0x43f   : > { %22326 = vst [vmem:[#allocation85_spill] sm:$0xff] %v15731_v63  ;;  %22340 = vst [vmem:[#allocation98_spill] sm:$0xff] %v15798_v62  ;;  %v15808_v14 = vpop.permute.xlu1 %7387  ;;  %v7274_v62 = vrot.slane %v15775_v23, 2  ;;  %v2920_v23 = vadd.f32 %v15694_v61, %v15273_v15  ;;  %v6118_v47 = vcombine.low %v5082_v38, %v5086_v29  ;;  %v15858_v10 = vsel %vm588_vm1, %v7269_v28, %v7270_v22 }
 0x440   : > { %22342 = vst [vmem:[#allocation100_spill] sm:$0xff] %v15808_v14  ;;  %v7276_v14 = vrot.slane %v7043_v12, 2  ;;  %v5090_v12 = vrot.slane %v3720_v27, %v13526_v26  ;;  %22350 = vst [vmem:[#allocation108_spill] sm:$0xff] %v15858_v10  ;;  %v6149_v15 = vrot.slane %v6135_v59, %v13534_v33  ;;  %v3641_v29 = vcombine.high %v15658_v4, %v15658_v4 }
 0x441   : > { %v15740_v44 = vpop.f32.mrb[30].mxu1  ;;  %7411 = vrot.lane.b32.xlu1 %v15818_v45, %s13390_s26  ;;  %vm3026_vm12 = vcmp.ge.f32.partialorder %v2920_v23, 0.0  ;;  %v3058_v57 = vmul.f32 0.5, %v2920_v23  ;;  %v2915_v38 = vadd.f32 %v15694_v61, %v15277_v40  ;;  %v15882_v28 = vsel %vm572_vm2, %v7125_v32, %v7127_v53 }
 0x442   : > { %22328 = vst [vmem:[#allocation87_spill] sm:$0xff] %v15740_v44  ;;  %v15749_v11 = vpop.f32.mrb[31].mxu1  ;;  %7801 = vrot.lane.b32.xlu0 %v15791_v13, %s13391_s27  ;;  %v15823_v3 = vpop.permute.xlu0 %7588  ;;  %v6134_v13 = vcombine.low %v5090_v12, %v5094_v5  ;;  %v6132_v5 = vrot.slane %v6118_v47, %v13534_v33  ;;  %22354 = vst [vmem:[#allocation112_spill] sm:$0xff] %v15882_v28 }
 0x443   : > { %22330 = vst [vmem:[#allocation89_spill] sm:$0xff] %v15749_v11  ;;  %22344 = vst [vmem:[#allocation102_spill] sm:$0xff] %v15823_v3  ;;  %v15830_v50 = vpop.permute.xlu1 %7391  ;;  %v15838_v3 = vsel %vm572_vm2, %v7127_v53, %v7129_v19  ;;  %v5074_v19 = vrot.slane %v3713_v51, %v13526_v26  ;;  %v3057_v32 = vmul.f32 0.5, %v2915_v38  ;;  %vm3025_vm13 = vcmp.ge.f32.partialorder %v2915_v38, 0.0 }
 0x444   : > { %22346 = vst [vmem:[#allocation104_spill] sm:$0xff] %v15830_v50  ;;  %22347 = vst [vmem:[#allocation105_spill] sm:$0xff] %v15838_v3  ;;  %v15847_v50 = vsel %vm588_vm1, %v7274_v62, %v7276_v14  ;;  %v7272_v14 = vrot.slane %v15784_v24, 2  ;;  %v6142_v12 = vrot.slane %v6134_v13, %v13534_v33  ;;  %v3655_v13 = vrot.slane %v3641_v29, %v22255_v42 }
 0x445   : > { %7415 = vrot.lane.b32.xlu1 %v15838_v3, %s13390_s26  ;;  %22348 = vst [vmem:[#allocation106_spill] sm:$0xff] %v15847_v50  ;;  %v6117_v18 = vcombine.low %v5074_v19, %v5078_v16  ;;  %v3090_v19 = vsel %vm3026_vm12, %v2920_v23, %v3058_v57 }
 0x446   : > { %7417 = vrot.lane.b32.xlu0 %v15827_v25, %s13390_s26  ;;  %v15855_v27 = vpop.permute.xlu0 %7973  ;;  %v15871_v51 = vsel %vm588_vm1, %v7272_v14, %v7274_v62  ;;  %v15885_v59 = vcombine.low %v6142_v12, %v6149_v15  ;;  %v3788_v40 = vcombine.high %v3090_v19, %v3090_v19  ;;  %v15897_v53 = vsel %vm588_vm1, %v7270_v22, %v7272_v14 }
 0x447   : > { %22349 = vst [vmem:[#allocation107_spill] sm:$0xff] %v15855_v27  ;;  %v15861_v37 = vpop.permute.xlu1 %7582  ;;  %22352 = vst [vmem:[#allocation110_spill] sm:$0xff] %v15871_v51  ;;  %v6125_v4 = vrot.slane %v6117_v18, %v13534_v33  ;;  %v3795_v15 = vrot.slane %v3090_v19, %v22255_v42  ;;  %v3657_v57 = vcombine.high %v3655_v13, %v3655_v13 }
 0x448   : > { %22351 = vst [vmem:[#allocation109_spill] sm:$0xff] %v15861_v37  ;;  %22356 = vst [vmem:[#allocation114_spill] sm:$0xff] %v15897_v53  ;;  %v21818_v18 = vrot.slane %v15885_v59, 7  ;;  %v3802_v22 = vrot.slane %v3788_v40, %v22255_v42  ;;  %v3089_v14 = vsel %vm3025_vm13, %v2915_v38, %v3057_v32 }
 0x449   : > { %7606 = vrot.lane.b32.xlu1 %v15858_v10, %s13389_s23  ;;  %v15892_v47 = vcombine.low %v6125_v4, %v6132_v5  ;;  %v3671_v4 = vrot.slane %v3655_v13, %v22255_v42  ;;  %v3803_v19 = vcombine.high %v3795_v15, %v3795_v15  ;;  %v3739_v40 = vcombine.high %v3089_v14, %v3089_v14 }
 0x44a   : > { %7612 = vrot.lane.b32.xlu0 %v15847_v50, %s13389_s23  ;;  %v15877_v16 = vpop.permute.xlu0 %7389  ;;  %v3804_v32 = vcombine.high %v3802_v22, %v3802_v22  ;;  %v3746_v13 = vrot.slane %v3089_v14, %v22255_v42  ;;  %v3811_v37 = vrot.slane %v3795_v15, %v22255_v42 }
 0x44b   : > { %22353 = vst [vmem:[#allocation111_spill] sm:$0xff] %v15877_v16  ;;  %v15887_v62 = vpop.permute.xlu1 %7586  ;;  %v21819_v29 = vrot.slane %v15892_v47, 7  ;;  %v3687_v27 = vcombine.high %v3671_v4, %v3671_v4 }
 0x44c   : > { %22355 = vst [vmem:[#allocation113_spill] sm:$0xff] %v15887_v62  ;;  %v3685_v62 = vrot.slane %v3657_v57, %v22255_v42  ;;  %v3832_v14 = vrot.slane %v3804_v32, %v22255_v42  ;;  %v3754_v24 = vcombine.high %v3746_v13, %v3746_v13  ;;  %v3762_v32 = vrot.slane %v3746_v13, %v22255_v42 }
 0x44d   : > { %7610 = vrot.lane.b32.xlu1 %v15871_v51, %s13389_s23  ;;  %v15916_v12 = vsel %vm551_vm0, %v21819_v29, %v21818_v18  ;;  %v3825_v18 = vrot.slane %v3803_v19, %v22255_v42  ;;  %v5058_v19 = vrot.slane %v3671_v4, %v13526_v26 }
 0x44e   : > { %7997 = vrot.lane.b32.xlu0 %v15827_v25, %s13392_s28  ;;  %v15903_v23 = vpop.permute.xlu0 %7584  ;;  %22359 = vst [vmem:[#allocation117_spill] sm:$0xff] %v15916_v12  ;;  %v3689_v29 = vcombine.high %v3685_v62, %v3685_v62  ;;  %v5062_v57 = vrot.slane %v3685_v62, %v13526_v26  ;;  %v2925_v25 = vadd.f32 %v15694_v61, %v15453_v2  ;;  %v22382_v44 = vrot.slane %v15916_v12, 1 }
 0x44f   : > { %22357 = vst [vmem:[#allocation115_spill] sm:$0xff] %v15903_v23  ;;  %v15906_v5 = vpop.permute.xlu1 %7967  ;;  %v2930_v23 = vadd.f32 %v15694_v61, %v15450_v58  ;;  %v3835_v62 = vcombine.high %v3825_v18, %v3825_v18  ;;  %v3836_v2 = vcombine.high %v3832_v14, %v3832_v14  ;;  %v5158_v50 = vrot.slane %v3832_v14, %v13526_v26 }
 0x450   : > { %22358 = vst [vmem:[#allocation116_spill] sm:$0xff] %v15906_v5  ;;  %v3818_v5 = vrot.slane %v3802_v22, %v22255_v42  ;;  %v5070_v15 = vrot.slane %v3689_v29, %v13526_v26  ;;  %v3833_v22 = vcombine.high %v3811_v37, %v3811_v37  ;;  %v3059_v51 = vmul.f32 0.5, %v2925_v25 }
 0x451   : > { %7991 = vrot.lane.b32.xlu1 %v15818_v45, %s13392_s28  ;;  %v3060_v58 = vmul.f32 0.5, %v2930_v23  ;;  %vm3028_vm14 = vcmp.ge.f32.partialorder %v2930_v23, 0.0  ;;  %v15953_v29 = vrot.slane %v3835_v62, %v13526_v26  ;;  %vm3027_vm15 = vcmp.ge.f32.partialorder %v2925_v25, 0.0 }
 0x452   : > { %7413 = vrot.lane.b32.xlu0 %v15882_v28, %s13390_s26  ;;  %v15924_v38 = vpop.permute.xlu0 %7789  ;;  %v3834_v34 = vcombine.high %v3818_v5, %v3818_v5  ;;  %v5154_v13 = vrot.slane %v3818_v5, %v13526_v26  ;;  %v3091_v5 = vsel %vm3027_vm15, %v2925_v25, %v3059_v51 }
 0x453   : > { %22360 = vst [vmem:[#allocation118_spill] sm:$0xff] %v15924_v38  ;;  %v15926_v16 = vpop.permute.xlu1 %7971  ;;  %v3753_v38 = vrot.slane %v3739_v40, %v22255_v42  ;;  %v3092_v45 = vsel %vm3028_vm14, %v2930_v23, %v3060_v58  ;;  %v3776_v23 = vrot.slane %v3754_v24, %v22255_v42  ;;  %v3837_v51 = vcombine.high %v3091_v5, %v3091_v5 }
 0x454   : > { %22361 = vst [vmem:[#allocation119_spill] sm:$0xff] %v15926_v16 }
 0x455   : > { %7995 = vrot.lane.b32.xlu1 %v15838_v3, %s13392_s28  ;;  %v5066_v3 = vrot.slane %v3687_v27, %v13526_v26  ;;  %v3755_v4 = vcombine.high %v3753_v38, %v3753_v38  ;;  %v5138_v27 = vrot.slane %v3811_v37, %v13526_v26  ;;  %v3769_v58 = vrot.slane %v3753_v38, %v22255_v42 }
 0x456   : > { %7608 = vrot.lane.b32.xlu0 %v15897_v53, %s13389_s23  ;;  %v15936_v16 = vpop.permute.xlu0 %7969  ;;  %v15963_v37 = vrot.slane %v3834_v34, %v13526_v26 }
 0x457   : > { %22362 = vst [vmem:[#allocation120_spill] sm:$0xff] %v15936_v16  ;;  %v5142_v16 = vrot.slane %v3825_v18, %v13526_v26  ;;  %v15957_v18 = vrot.slane %v3833_v22, %v13526_v26  ;;  %v3783_v62 = vrot.slane %v3755_v4, %v22255_v42  ;;  %v15973_v22 = vcombine.low %v5154_v13, %v5158_v50 }
 0x458   : > { %v6101_v53 = vcombine.low %v5066_v3, %v5070_v15  ;;  %v2940_v4 = vadd.f32 %v15694_v61, %v15476_v43  ;;  %v5122_v3 = vrot.slane %v3769_v58, %v13526_v26 }
 0x459   : > { %v15944_v40 = vpop.permute.xlu1 %7787  ;;  %v15965_v14 = vcombine.low %v5138_v27, %v5142_v16  ;;  %v3785_v27 = vcombine.high %v3769_v58, %v3769_v58  ;;  %v3787_v13 = vcombine.high %v3783_v62, %v3783_v62  ;;  %v5126_v34 = vrot.slane %v3783_v62, %v13526_v26 }
 0x45a   : > { %7813 = vrot.lane.b32.xlu0 %v15916_v12, %s13391_s27  ;;  %22363 = vst [vmem:[#allocation121_spill] sm:$0xff] %v15944_v40  ;;  %v15948_v8 = vpop.permute.xlu0 %7785  ;;  %v15971_v40 = vrot.slane %v3836_v2, %v13526_v26  ;;  %v5110_v2 = vrot.slane %v3776_v23, %v13526_v26  ;;  %v3062_v41 = vmul.f32 0.5, %v2940_v4  ;;  %vm3030_vm12 = vcmp.ge.f32.partialorder %v2940_v4, 0.0 }
 0x45b   : > { %22364 = vst [vmem:[#allocation122_spill] sm:$0xff] %v15948_v8  ;;  %v3784_v8 = vcombine.high %v3762_v32, %v3762_v32 }
 0x45d   : > { %v15975_v38 = vpop.permute.xlu1 %7791  ;;  %v5114_v25 = vrot.slane %v3784_v8, %v13526_v26  ;;  %v15995_v8 = vrot.slane %v3785_v27, %v13526_v26 }
 0x45e   : > { %7993 = vrot.lane.b32.xlu0 %v15882_v28, %s13392_s28  ;;  %v6100_v28 = vcombine.low %v5058_v19, %v5062_v57  ;;  %v3886_v57 = vcombine.high %v3092_v45, %v3092_v45  ;;  %v3893_v19 = vrot.slane %v3092_v45, %v22255_v42  ;;  %v15968_v24 = vpop.permute.xlu0 %7401  ;;  %22366 = vst [vmem:[#allocation124_spill] sm:$0xff] %v15975_v38 }
 0x45f   : > { %22365 = vst [vmem:[#allocation123_spill] sm:$0xff] %v15968_v24  ;;  %v3786_v45 = vcombine.high %v3776_v23, %v3776_v23  ;;  %v5106_v24 = vrot.slane %v3762_v32, %v13526_v26  ;;  %v6115_v38 = vrot.slane %v6101_v53, %v13534_v33  ;;  %v3851_v53 = vrot.slane %v3837_v51, %v22255_v42 }
 0x460   : > { %v3900_v16 = vrot.slane %v3886_v57, %v22255_v42  ;;  %v3901_v50 = vcombine.high %v3893_v19, %v3893_v19  ;;  %v3844_v57 = vrot.slane %v3091_v5, %v22255_v42  ;;  %v6108_v43 = vrot.slane %v6100_v28, %v13534_v33 }
 0x461   : > { %v5118_v32 = vrot.slane %v3786_v45, %v13526_v26  ;;  %v3909_v10 = vrot.slane %v3893_v19, %v22255_v42  ;;  %v15998_v62 = vpop.permute.xlu1 %7395  ;;  %v16001_v5 = vrot.slane %v3787_v13, %v13526_v26  ;;  %v6151_v28 = vcombine.low %v5106_v24, %v5110_v2 }
 0x462   : > { %v15986_v15 = vpop.permute.xlu0 %7596  ;;  %v3902_v23 = vcombine.high %v3900_v16, %v3900_v16  ;;  %v3923_v58 = vrot.slane %v3901_v50, %v22255_v42  ;;  %22368 = vst [vmem:[#allocation126_spill] sm:$0xff] %v15998_v62  ;;  %v2935_v45 = vadd.f32 %v15694_v61, %v15482_v20  ;;  %v16006_v19 = vcombine.low %v5122_v3, %v5126_v34 }
 0x463   : > { %22367 = vst [vmem:[#allocation125_spill] sm:$0xff] %v15986_v15  ;;  %v6116_v15 = vcombine.low %v6108_v43, %v6115_v38  ;;  %v3916_v27 = vrot.slane %v3900_v16, %v22255_v42  ;;  %v3852_v60 = vcombine.high %v3844_v57, %v3844_v57  ;;  %v3931_v43 = vcombine.high %v3909_v10, %v3909_v10 }
 0x464   : > { %v3930_v38 = vrot.slane %v3902_v23, %v22255_v42  ;;  %v16013_v13 = vrot.slane %v3844_v57, %v22255_v42  ;;  %v3094_v24 = vsel %vm3030_vm12, %v2940_v4, %v3062_v41  ;;  %v3933_v2 = vcombine.high %v3923_v58, %v3923_v58 }
 0x465   : > { %v6867_v48 = vrot.slane %v6116_v15, 7  ;;  %v22370_v51 = vrot.slane %v15892_v47, 7  ;;  %v22372_v34 = vrot.slane %v15781_v54, 7  ;;  %v6152_v3 = vcombine.low %v5114_v25, %v5118_v32  ;;  %v16035_v47 = vpop.permute.xlu1 %7399 }
 0x466   : > { %v16009_v50 = vpop.permute.xlu0 %7981  ;;  %v5202_v15 = vrot.slane %v3909_v10, %v13526_v26  ;;  %v3853_v23 = vcombine.high %v3851_v53, %v3851_v53  ;;  %v3061_v57 = vmul.f32 0.5, %v2935_v45  ;;  %v3932_v41 = vcombine.high %v3916_v27, %v3916_v27  ;;  %22374 = vst [vmem:[#allocation130_spill] sm:$0xff] %v16035_v47 }
 0x467   : > { %22369 = vst [vmem:[#allocation127_spill] sm:$0xff] %v16009_v50  ;;  %v16018_v20 = vsel %vm551_vm0, %v6867_v48, %v22370_v51  ;;  %v16023_v16 = vsel %vm551_vm0, %v22372_v34, %v6867_v48  ;;  %v16027_v50 = vrot.slane %v3851_v53, %v22255_v42  ;;  %v5206_v54 = vrot.slane %v3923_v58, %v13526_v26 }
 0x468   : > { %22371 = vst [vmem:[#allocation128_spill] sm:$0xff] %v16018_v20  ;;  %22373 = vst [vmem:[#allocation129_spill] sm:$0xff] %v16023_v16  ;;  %7811 = vrot.lane.b32.xlu1 %v16018_v20, %s13391_s27  ;;  %7809 = vrot.lane.b32.xlu0 %v16023_v16, %s13391_s27  ;;  %v3874_v48 = vrot.slane %v3852_v60, %v22255_v42  ;;  %vm3029_vm13 = vcmp.ge.f32.partialorder %v2935_v45, 0.0  ;;  %v3934_v10 = vcombine.high %v3930_v38, %v3930_v38 }
 0x469   : > { %v3984_v4 = vcombine.high %v3094_v24, %v3094_v24  ;;  %v3991_v25 = vrot.slane %v3094_v24, %v22255_v42  ;;  %v6166_v32 = vrot.slane %v6152_v3, %v13534_v33  ;;  %v16040_v53 = vrot.slane %v3931_v43, %v13526_v26 }
 0x46a   : > { %v16043_v51 = vrot.slane %v3933_v2, %v13526_v26  ;;  %v5218_v34 = vrot.slane %v3916_v27, %v13526_v26  ;;  %v5222_v58 = vrot.slane %v3930_v38, %v13526_v26  ;;  %v16047_v60 = vpop.permute.xlu0 %7397  ;;  %v16050_v47 = vrot.slane %v3853_v23, %v22255_v42 }
 0x46b   : > { %22375 = vst [vmem:[#allocation131_spill] sm:$0xff] %v16047_v60  ;;  %v3882_v24 = vcombine.high %v16013_v13, %v16013_v13  ;;  %v3093_v62 = vsel %vm3029_vm13, %v2935_v45, %v3061_v57  ;;  %v6159_v3 = vrot.slane %v6151_v28, %v13534_v33  ;;  %v16056_v43 = vrot.slane %v3932_v41, %v13526_v26  ;;  %v16074_v41 = vpop.permute.xlu1 %7590 }
 0x46c   : > { %v16058_v2 = vcombine.low %v5202_v15, %v5206_v54  ;;  %v3883_v27 = vcombine.high %v16027_v50, %v16027_v50  ;;  %v3884_v38 = vcombine.high %v3874_v48, %v3874_v48  ;;  %v16063_v60 = vrot.slane %v3934_v10, %v13526_v26  ;;  %22377 = vst [vmem:[#allocation133_spill] sm:$0xff] %v16074_v41 }
 0x46d   : > { %v3998_v23 = vrot.slane %v3984_v4, %v22255_v42  ;;  %v3999_v0 = vcombine.high %v3991_v25, %v3991_v25  ;;  %v16066_v39 = vcombine.low %v6159_v3, %v6166_v32  ;;  %v16070_v45 = vcombine.low %v5218_v34, %v5222_v58 }
 0x46e   : > { %v3935_v57 = vcombine.high %v3093_v62, %v3093_v62  ;;  %v2950_v15 = vadd.f32 %v15694_v61, %v15497_v6  ;;  %v3885_v54 = vcombine.high %v16050_v47, %v16050_v47  ;;  %v5170_v10 = vrot.slane %v16013_v13, %v13526_v26  ;;  %v16093_v41 = vpop.permute.xlu0 %7592 }
 0x46f   : > { %22376 = vst [vmem:[#allocation132_spill] sm:$0xff] %v16070_v45  ;;  %v5174_v4 = vrot.slane %v3874_v48, %v13526_v26  ;;  %v16082_v32 = vrot.slane %v3882_v24, %v13526_v26  ;;  %v16085_v34 = vrot.slane %v3884_v38, %v13526_v26  ;;  %v5186_v58 = vrot.slane %v16027_v50, %v13526_v26 }
 0x470   : > { %v4007_v6 = vrot.slane %v3991_v25, %v22255_v42  ;;  %v22378_v3 = vrot.slane %v15885_v59, 7  ;;  %22379 = vst [vmem:[#allocation134_spill] sm:$0xff] %v16093_v41  ;;  %v4000_v13 = vcombine.high %v3998_v23, %v3998_v23  ;;  %v4021_v48 = vrot.slane %v3999_v0, %v22255_v42 }
 0x471   : > { %v21859_v24 = vrot.slane %v16066_v39, 7  ;;  %v3942_v38 = vrot.slane %v3093_v62, %v22255_v42  ;;  %v3949_v35 = vrot.slane %v3935_v57, %v22255_v42  ;;  %v3064_v50 = vmul.f32 0.5, %v2950_v15 }
 0x472   : > { %v7044_v28 = vsel %vm551_vm0, %v22378_v3, 0.0  ;;  %v2945_v25 = vadd.f32 %v15694_v61, %v15505_v9  ;;  %v5190_v59 = vrot.slane %v16050_v47, %v13526_v26  ;;  %vm3032_vm14 = vcmp.ge.f32.partialorder %v2950_v15, 0.0  ;;  %v16120_v47 = vpop.permute.xlu1 %7594 }
 0x473   : > { %v16107_v0 = vsel %vm551_vm0, 0.0, %v21859_v24  ;;  %v7140_v3 = vrot.slane %v7044_v28, 1  ;;  %v16110_v7 = vrot.slane %v3883_v27, %v13526_v26  ;;  %v16113_v62 = vrot.slane %v3885_v54, %v13526_v26  ;;  %22381 = vst [vmem:[#allocation136_spill] sm:$0xff] %v16120_v47 }
 0x474   : > { %22380 = vst [vmem:[#allocation135_spill] sm:$0xff] %v16107_v0  ;;  %v16115_v57 = vcombine.low %v5170_v10, %v5174_v4  ;;  %v4014_v9 = vrot.slane %v3998_v23, %v22255_v42  ;;  %7815 = vrot.lane.b32.xlu1 %v16107_v0, %s13391_s27  ;;  %v4028_v41 = vrot.slane %v4000_v13, %v22255_v42  ;;  %v3063_v4 = vmul.f32 0.5, %v2945_v25  ;;  %v16130_v23 = vpop.permute.xlu0 %7797 }
 0x475   : > { %v4029_v24 = vcombine.high %v4007_v6, %v4007_v6  ;;  %v4031_v36 = vcombine.high %v4021_v48, %v4021_v48  ;;  %v16126_v27 = vsel %vm572_vm2, %v22382_v44, %v7140_v3  ;;  %v3950_v54 = vcombine.high %v3942_v38, %v3942_v38  ;;  %22384 = vst [vmem:[#allocation138_spill] sm:$0xff] %v16130_v23 }
 0x476   : > { %22383 = vst [vmem:[#allocation137_spill] sm:$0xff] %v16126_v27  ;;  %v3951_v11 = vcombine.high %v3949_v35, %v3949_v35  ;;  %v3096_v10 = vsel %vm3032_vm14, %v2950_v15, %v3064_v50  ;;  %7425 = vrot.lane.b32.xlu0 %v16126_v27, %s13390_s26  ;;  %vm3031_vm15 = vcmp.ge.f32.partialorder %v2945_v25, 0.0  ;;  %v7133_v47 = vrot.slane %v15805_v52, 1 }
 0x477   : > { %v21863_v13 = vrot.slane %v16023_v16, 1  ;;  %v4030_v56 = vcombine.high %v4014_v9, %v4014_v9  ;;  %v5266_v44 = vrot.slane %v4007_v6, %v13526_v26  ;;  %v5270_v3 = vrot.slane %v4021_v48, %v13526_v26 }
 0x478   : > { %v7285_v46 = vrot.slane %v7044_v28, 2  ;;  %v4032_v15 = vcombine.high %v4028_v41, %v4028_v41  ;;  %v16138_v50 = vrot.slane %v4031_v36, %v13526_v26  ;;  %v3958_v1 = vrot.slane %v3942_v38, %v22255_v42  ;;  %v16154_v36 = vpop.permute.xlu1 %7975 }
 0x479   : > { %v16144_v23 = vsel %vm572_vm2, %v7133_v47, %v21863_v13  ;;  %v5286_v31 = vrot.slane %v4028_v41, %v13526_v26  ;;  %v4082_v63 = vcombine.high %v3096_v10, %v3096_v10  ;;  %v3095_v45 = vsel %vm3031_vm15, %v2945_v25, %v3063_v4  ;;  %22388 = vst [vmem:[#allocation141_spill] sm:$0xff] %v16154_v36 }
 0x47a   : > { %22385 = vst [vmem:[#allocation139_spill] sm:$0xff] %v16144_v23  ;;  %7419 = vrot.lane.b32.xlu1 %v16144_v23, %s13390_s26  ;;  %v22386_v28 = vrot.slane %v15916_v12, 2  ;;  %v3965_v48 = vrot.slane %v3949_v35, %v22255_v42  ;;  %v3972_v38 = vrot.slane %v3950_v54, %v22255_v42  ;;  %v3979_v47 = vrot.slane %v3951_v11, %v22255_v42  ;;  %v16171_v35 = vpop.permute.xlu0 %7977 }
 0x47b   : > { %v4089_v41 = vrot.slane %v3096_v10, %v22255_v42  ;;  %v16162_v25 = vcombine.low %v5186_v58, %v5190_v59  ;;  %v16165_v4 = vrot.slane %v4029_v24, %v13526_v26  ;;  %22390 = vst [vmem:[#allocation143_spill] sm:$0xff] %v16171_v35  ;;  %v16174_v54 = vrot.slane %v4032_v15, %v13526_v26 }
 0x47c   : > { %v16152_v6 = vsel %vm588_vm1, %v22386_v28, %v7285_v46  ;;  %v5282_v46 = vrot.slane %v4014_v9, %v13526_v26  ;;  %v16169_v28 = vrot.slane %v4030_v56, %v13526_v26  ;;  %v16176_v11 = vcombine.low %v5266_v44, %v5270_v3 }
 0x47d   : > { %22387 = vst [vmem:[#allocation140_spill] sm:$0xff] %v16152_v6  ;;  %7620 = vrot.lane.b32.xlu0 %v16152_v6, %s13389_s23  ;;  %22391 = vst [vmem:[#allocation144_spill] sm:$0xff] %v16174_v54  ;;  %v3980_v10 = vcombine.high %v3958_v1, %v3958_v1  ;;  %v4033_v13 = vcombine.high %v3095_v45, %v3095_v45  ;;  %v4096_v24 = vrot.slane %v4082_v63, %v22255_v42 }
 0x47e   : > { %22389 = vst [vmem:[#allocation142_spill] sm:$0xff] %v16169_v28  ;;  %v16180_v59 = vcombine.low %v5282_v46, %v5286_v31  ;;  %v4040_v9 = vrot.slane %v3095_v45, %v22255_v42  ;;  %v3981_v56 = vcombine.high %v3965_v48, %v3965_v48  ;;  %v3982_v36 = vcombine.high %v3972_v38, %v3972_v38  ;;  %v16190_v46 = vpop.permute.xlu1 %7979 }
 0x47f   : > { %v3983_v6 = vcombine.high %v3979_v47, %v3979_v47  ;;  %v4097_v35 = vcombine.high %v4089_v41, %v4089_v41  ;;  %v5234_v44 = vrot.slane %v3958_v1, %v13526_v26  ;;  %v5238_v3 = vrot.slane %v3972_v38, %v13526_v26  ;;  %22393 = vst [vmem:[#allocation146_spill] sm:$0xff] %v16190_v46 }
 0x480   : > { %22392 = vst [vmem:[#allocation145_spill] sm:$0xff] %v16180_v59  ;;  %v5254_v15 = vrot.slane %v3979_v47, %v13526_v26  ;;  %v4105_v31 = vrot.slane %v4089_v41, %v22255_v42  ;;  %v16193_v63 = vrot.slane %v3980_v10, %v13526_v26  ;;  %v4047_v45 = vrot.slane %v4033_v13, %v22255_v42  ;;  %v16203_v41 = vpop.permute.xlu0 %7793 }
 0x481   : > { %8005 = vrot.lane.b32.xlu0 %v16126_v27, %s13392_s28  ;;  %v2960_v58 = vadd.f32 %v15694_v61, %v15521_v55  ;;  %v7136_v27 = vrot.slane %v16018_v20, 1  ;;  %v5250_v1 = vrot.slane %v3965_v48, %v13526_v26  ;;  %v4098_v59 = vcombine.high %v4096_v24, %v4096_v24  ;;  %22395 = vst [vmem:[#allocation148_spill] sm:$0xff] %v16203_v41 }
 0x482   : > { %22394 = vst [vmem:[#allocation147_spill] sm:$0xff] %v16193_v63  ;;  %v16201_v38 = vrot.slane %v4096_v24, %v22255_v42  ;;  %v4048_v47 = vcombine.high %v4040_v9, %v4040_v9  ;;  %v16206_v46 = vrot.slane %v3982_v36, %v13526_v26  ;;  %v16209_v10 = vrot.slane %v3981_v56, %v13526_v26 }
 0x483   : > { %v16212_v13 = vrot.slane %v3983_v6, %v13526_v26  ;;  %v4119_v55 = vrot.slane %v4097_v35, %v22255_v42  ;;  %v16215_v28 = vcombine.low %v5234_v44, %v5238_v3  ;;  %v16217_v48 = vcombine.low %v5250_v1, %v5254_v15  ;;  %v16239_v3 = vpop.permute.xlu1 %7795 }
 0x484   : > { %v4127_v24 = vcombine.high %v4105_v31, %v4105_v31  ;;  %v16220_v54 = vrot.slane %v4040_v9, %v22255_v42  ;;  %v5330_v41 = vrot.slane %v4105_v31, %v13526_v26  ;;  %v4049_v36 = vcombine.high %v4047_v45, %v4047_v45  ;;  %22400 = vst [vmem:[#allocation152_spill] sm:$0xff] %v16239_v3 }
 0x485   : > { %22396 = vst [vmem:[#allocation149_spill] sm:$0xff] %v16215_v28  ;;  %22397 = vst [vmem:[#allocation150_spill] sm:$0xff] %v16217_v48  ;;  %vm3034_vm12 = vcmp.ge.f32.partialorder %v2960_v58, 0.0  ;;  %v22398_v56 = vrot.slane %v15916_v12, 1  ;;  %v4126_v6 = vrot.slane %v4098_v59, %v22255_v42  ;;  %v4128_v35 = vcombine.high %v16201_v38, %v16201_v38 }
 0x486   : > { %v16232_v44 = vrot.slane %v4047_v45, %v22255_v42  ;;  %v16235_v9 = vrot.slane %v4048_v47, %v22255_v42  ;;  %v4129_v15 = vcombine.high %v4119_v55, %v4119_v55  ;;  %v7278_v31 = vrot.slane %v15805_v52, 2  ;;  %v16257_v52 = vpop.permute.xlu0 %7409 }
 0x487   : > { %v16226_v63 = vsel %vm572_vm2, %v7136_v27, %v22398_v56  ;;  %v7279_v1 = vrot.slane %v16023_v16, 2  ;;  %v22401_v59 = vrot.slane %v16023_v16, 1  ;;  %v5334_v45 = vrot.slane %v4119_v55, %v13526_v26  ;;  %22403 = vst [vmem:[#allocation154_spill] sm:$0xff] %v16257_v52 }
 0x488   : > { %22399 = vst [vmem:[#allocation151_spill] sm:$0xff] %v16226_v63  ;;  %7423 = vrot.lane.b32.xlu1 %v16226_v63, %s13390_s26  ;;  %v16250_v47 = vrot.slane %v4127_v24, %v13526_v26  ;;  %v5346_v28 = vrot.slane %v16201_v38, %v13526_v26  ;;  %v7281_v3 = vrot.slane %v16018_v20, 2  ;;  %v22405_v55 = vcombine.low %v15957_v18, %v15953_v29 }
 0x489   : > { %v16246_v56 = vsel %vm572_vm2, %v22401_v59, %v7136_v27  ;;  %v16260_v16 = vsel %vm588_vm1, %v7278_v31, %v7279_v1  ;;  %v6193_v27 = vrot.slane %v15965_v14, %v13534_v33  ;;  %v6203_v38 = vcombine.low %v15963_v37, %v15971_v40 }
 0x48a   : > { %22402 = vst [vmem:[#allocation153_spill] sm:$0xff] %v16246_v56  ;;  %7421 = vrot.lane.b32.xlu0 %v16246_v56, %s13390_s26  ;;  %22404 = vst [vmem:[#allocation155_spill] sm:$0xff] %v16260_v16  ;;  %v6200_v24 = vrot.slane %v22405_v55, %v13534_v33  ;;  %v4130_v59 = vcombine.high %v4126_v6, %v4126_v6  ;;  %v16271_v48 = vrot.slane %v4049_v36, %v22255_v42 }
 0x48b   : > { %v4078_v52 = vcombine.high %v16220_v54, %v16220_v54  ;;  %v3066_v31 = vmul.f32 0.5, %v2960_v58  ;;  %v16278_v14 = vsel %vm588_vm1, %v7279_v1, %v7281_v3  ;;  %v6210_v29 = vrot.slane %v15973_v22, %v13534_v33 }
 0x48c   : > { %7614 = vrot.lane.b32.xlu1 %v16260_v16, %s13389_s23  ;;  %22406 = vst [vmem:[#allocation156_spill] sm:$0xff] %v16278_v14  ;;  %v6201_v20 = vcombine.low %v6193_v27, %v6200_v24  ;;  %v6217_v40 = vrot.slane %v6203_v38, %v13534_v33  ;;  %v16284_v18 = vrot.slane %v4129_v15, %v13526_v26  ;;  %v16294_v27 = vpop.permute.xlu1 %7799  ;;  %v22408_v15 = vrot.slane %v15916_v12, 2  ;;  %v22472_v16 = vld [vmem:[#allocation142_spill] sm:$0xff] }
 0x48d   : > { %v5350_v37 = vrot.slane %v4126_v6, %v13526_v26  ;;  %v16288_v36 = vrot.slane %v4128_v35, %v13526_v26  ;;  %v6169_v1 = vcombine.low %v15995_v8, %v16001_v5  ;;  %22407 = vst [vmem:[#allocation157_spill] sm:$0xff] %v16294_v27  ;;  %v16296_v55 = vcombine.low %v5330_v41, %v5334_v45  ;;  %v16313_v41 = vpop.permute.xlu0 %7604 }
 0x48e   : > { %7616 = vrot.lane.b32.xlu0 %v16278_v14, %s13389_s23  ;;  %v4079_v22 = vcombine.high %v16232_v44, %v16232_v44  ;;  %v16303_v6 = vsel %vm588_vm1, %v7281_v3, %v22408_v15  ;;  %v6218_v35 = vcombine.low %v6210_v29, %v6217_v40  ;;  %v3098_v24 = vsel %vm3034_vm12, %v2960_v58, %v3066_v31 }
 0x48f   : > { %22409 = vst [vmem:[#allocation158_spill] sm:$0xff] %v16303_v6  ;;  %v2955_v38 = vadd.f32 %v15694_v61, %v15526_v49  ;;  %v6176_v8 = vrot.slane %v16006_v19, %v13534_v33  ;;  %v6183_v5 = vrot.slane %v6169_v1, %v13534_v33  ;;  %22410 = vst [vmem:[#allocation159_spill] sm:$0xff] %v16313_v41  ;;  %v6876_v45 = vrot.slane %v6201_v20, 7 }
 0x490   : > { %7618 = vrot.lane.b32.xlu1 %v16303_v6, %s13389_s23  ;;  %v4080_v3 = vcombine.high %v16235_v9, %v16235_v9  ;;  %v6878_v29 = vrot.slane %v6218_v35, 7  ;;  %v6220_v58 = vcombine.low %v16082_v32, %v16085_v34  ;;  %v16320_v49 = vrot.slane %v4130_v59, %v13526_v26 }
 0x491   : > { %v4081_v19 = vcombine.high %v16271_v48, %v16271_v48  ;;  %v6184_v40 = vcombine.low %v6176_v8, %v6183_v5  ;;  %v16326_v1 = vcombine.low %v5346_v28, %v5350_v37  ;;  %v4180_v15 = vcombine.high %v3098_v24, %v3098_v24  ;;  %v16339_v37 = vpop.permute.xlu1 %7403 }
 0x492   : > { %v16329_v27 = vsel %vm551_vm0, %v6876_v45, %v6878_v29  ;;  %v6234_v20 = vrot.slane %v6220_v58, %v13534_v33  ;;  %v5298_v32 = vrot.slane %v16220_v54, %v13526_v26  ;;  %v4187_v34 = vrot.slane %v3098_v24, %v22255_v42  ;;  %22412 = vst [vmem:[#allocation161_spill] sm:$0xff] %v16339_v37 }
 0x493   : > { %22411 = vst [vmem:[#allocation160_spill] sm:$0xff] %v16329_v27  ;;  %v3065_v59 = vmul.f32 0.5, %v2955_v38  ;;  %7821 = vrot.lane.b32.xlu0 %v16329_v27, %s13391_s27  ;;  %v6874_v28 = vrot.slane %v6184_v40, 7  ;;  %v5302_v35 = vrot.slane %v16235_v9, %v13526_v26  ;;  %vm3033_vm13 = vcmp.ge.f32.partialorder %v2955_v38, 0.0  ;;  %v16358_v9 = vpop.permute.xlu0 %7989 }
 0x494   : > { %7999 = vrot.lane.b32.xlu1 %v16144_v23, %s13392_s28  ;;  %v2970_v8 = vadd.f32 %v15694_v61, %v15655_v21  ;;  %v6227_v54 = vrot.slane %v16115_v57, %v13534_v33  ;;  %v16348_v24 = vrot.slane %v4078_v52, %v13526_v26  ;;  %v16351_v5 = vrot.slane %v4080_v3, %v13526_v26 }
 0x495   : > { %v5314_v58 = vrot.slane %v16232_v44, %v13526_v26  ;;  %v16356_v40 = vsel %vm551_vm0, %v6874_v28, %v6876_v45  ;;  %22414 = vst [vmem:[#allocation163_spill] sm:$0xff] %v16358_v9  ;;  %v5318_v21 = vrot.slane %v16271_v48, %v13526_v26  ;;  %v16363_v31 = vrot.slane %v4180_v15, %v22255_v42 }
 0x496   : > { %22413 = vst [vmem:[#allocation162_spill] sm:$0xff] %v16356_v40  ;;  %v16365_v57 = vcombine.low %v6227_v54, %v6234_v20  ;;  %v7045_v52 = vsel %vm551_vm0, %v6878_v29, 0.0  ;;  %v4195_v3 = vcombine.high %v4187_v34, %v4187_v34  ;;  %v3097_v41 = vsel %vm3033_vm13, %v2955_v38, %v3065_v59  ;;  %v16384_v38 = vpop.permute.xlu1 %7407 }
 0x497   : > { %v2965_v44 = vadd.f32 %v15694_v61, %v15662_v17  ;;  %8001 = vrot.lane.b32.xlu0 %v16246_v56, %s13392_s28  ;;  %v16375_v48 = vrot.slane %v4079_v22, %v13526_v26  ;;  %v16378_v45 = vrot.slane %v4081_v19, %v13526_v26  ;;  %v4203_v15 = vrot.slane %v4187_v34, %v22255_v42 }
 0x498   : > { %8003 = vrot.lane.b32.xlu1 %v16226_v63, %s13392_s28  ;;  %v3068_v29 = vmul.f32 0.5, %v2970_v8  ;;  %v16381_v20 = vcombine.low %v5298_v32, %v5302_v35  ;;  %vm3036_vm14 = vcmp.ge.f32.partialorder %v2970_v8, 0.0  ;;  %v7147_v17 = vrot.slane %v16329_v27, 1  ;;  %22415 = vst [vmem:[#allocation164_spill] sm:$0xff] %v16384_v38 }
 0x499   : > { %v7149_v61 = vrot.slane %v7045_v52, 1  ;;  %v16386_v59 = vcombine.low %v5314_v58, %v5318_v21  ;;  %v4131_v54 = vcombine.high %v3097_v41, %v3097_v41  ;;  %v22416_v22 = vrot.slane %v16066_v39, 7  ;;  %v16402_v39 = vpop.permute.xlu0 %7405 }
 0x49a   : > { %v4217_v34 = vrot.slane %v4195_v3, %v22255_v42  ;;  %v4138_v35 = vrot.slane %v3097_v41, %v22255_v42  ;;  %v3067_v9 = vmul.f32 0.5, %v2965_v44  ;;  %22418 = vst [vmem:[#allocation166_spill] sm:$0xff] %v16402_v39  ;;  %v16405_v58 = vsel %vm3036_vm14, %v2970_v8, %v3068_v29 }
 0x49b   : > { %v16391_v37 = vsel %vm551_vm0, %v22416_v22, %v6874_v28  ;;  %v4225_v28 = vcombine.high %v4203_v15, %v4203_v15  ;;  %vm3035_vm15 = vcmp.ge.f32.partialorder %v2965_v44, 0.0  ;;  %v22419_v21 = vcombine.low %v16040_v53, %v16043_v51 }
 0x49c   : > { %22417 = vst [vmem:[#allocation165_spill] sm:$0xff] %v16391_v37  ;;  %7819 = vrot.lane.b32.xlu1 %v16356_v40, %s13391_s27  ;;  %7817 = vrot.lane.b32.xlu0 %v16391_v37, %s13391_s27  ;;  %v5394_v41 = vrot.slane %v4203_v15, %v13526_v26  ;;  %v16413_v22 = vsel %vm572_vm2, %v7147_v17, %v7149_v61  ;;  %v21881_v32 = vrot.slane %v16329_v27, 2  ;;  %v7294_v19 = vrot.slane %v7045_v52, 2  ;;  %v16435_v52 = vpop.permute.xlu1 %7598 }
 0x49d   : > { %v6268_v3 = vrot.slane %v22419_v21, %v13534_v33  ;;  %22420 = vst [vmem:[#allocation167_spill] sm:$0xff] %v16413_v22  ;;  %v22421_v38 = vrot.slane %v16365_v57, 7  ;;  %v7143_v8 = vrot.slane %v16391_v37, 1  ;;  %v6261_v29 = vrot.slane %v16058_v2, %v13534_v33  ;;  %22423 = vst [vmem:[#allocation169_spill] sm:$0xff] %v16435_v52  ;;  %v16449_v63 = vpop.permute.xlu0 %7600 }
 0x49e   : > { %v6237_v53 = vcombine.low %v16110_v7, %v16113_v62  ;;  %v4145_v51 = vrot.slane %v4131_v54, %v22255_v42  ;;  %v4285_v15 = vrot.slane %v16405_v58, %v22255_v42  ;;  %v16429_v61 = vsel %vm3035_vm15, %v2965_v44, %v3067_v9  ;;  %22425 = vst [vmem:[#allocation171_spill] sm:$0xff] %v16449_v63 }
 0x49f   : > { %v16419_v39 = vsel %vm551_vm0, 0.0, %v22421_v38  ;;  %v7142_v2 = vrot.slane %v16107_v0, 1  ;;  %v16438_v38 = vcombine.low %v6261_v29, %v6268_v3  ;;  %v6244_v7 = vrot.slane %v16162_v25, %v13534_v33 }
 0x4a0   : > { %22422 = vst [vmem:[#allocation168_spill] sm:$0xff] %v16419_v39  ;;  %7823 = vrot.lane.b32.xlu1 %v16419_v39, %s13391_s27  ;;  %7433 = vrot.lane.b32.xlu0 %v16413_v22, %s13390_s26  ;;  %v6251_v62 = vrot.slane %v6237_v53, %v13534_v33  ;;  %v4227_v54 = vcombine.high %v4217_v34, %v4217_v34  ;;  %v7145_v3 = vrot.slane %v16356_v40, 1  ;;  %v16488_v56 = vpop.permute.xlu1 %7602 }
 0x4a1   : > { %v5398_v9 = vrot.slane %v4217_v34, %v13526_v26  ;;  %v4146_v44 = vcombine.high %v4138_v35, %v4138_v35  ;;  %v16447_v21 = vsel %vm588_vm1, %v21881_v32, %v7294_v19  ;;  %v16452_v52 = vsel %vm572_vm2, %v7142_v2, %v7143_v8  ;;  %22427 = vst [vmem:[#allocation173_spill] sm:$0xff] %v16488_v56 }
 0x4a2   : > { %22424 = vst [vmem:[#allocation170_spill] sm:$0xff] %v16447_v21  ;;  %22426 = vst [vmem:[#allocation172_spill] sm:$0xff] %v16452_v52  ;;  %v6271_v25 = vcombine.low %v16056_v43, %v16063_v60  ;;  %v16457_v29 = vcombine.low %v6244_v7, %v6251_v62  ;;  %v4147_v53 = vcombine.high %v4145_v51, %v4145_v51  ;;  %v16471_v60 = vld [vmem:[%s21690_s4] ss:$0 sm:$0xff] }
 0x4a3   : > { %v16460_v34 = vrot.slane %v4138_v35, %v22255_v42  ;;  %v4229_v19 = vcombine.high %v16429_v61, %v16429_v61  ;;  %v4293_v2 = vcombine.high %v4285_v15, %v4285_v15  ;;  %v2980_v43 = vadd.f32 %v16471_v60, %v15676_v30 }
 0x4a4   : > { %7427 = vrot.lane.b32.xlu1 %v16452_v52, %s13390_s26  ;;  %7628 = vrot.lane.b32.xlu0 %v16447_v21, %s13389_s23  ;;  %v21886_v35 = vrot.slane %v16438_v38, 7  ;;  %v16478_v62 = vrot.slane %v4225_v28, %v13526_v26  ;;  %v16481_v32 = vrot.slane %v4227_v54, %v13526_v26  ;;  %v16483_v63 = vcombine.low %v5394_v41, %v5398_v9 }
 0x4a5   : > { %v16486_v12 = vrot.slane %v4145_v51, %v22255_v42  ;;  %v16491_v23 = vsel %vm572_vm2, %v7145_v3, %v7147_v17  ;;  %v7288_v30 = vrot.slane %v16391_v37, 2  ;;  %v6285_v7 = vrot.slane %v6271_v25, %v13534_v33  ;;  %v22433_v37 = vld [vmem:[#allocation75_spill] sm:$0xff] }
 0x4a6   : > { %22428 = vst [vmem:[#allocation174_spill] sm:$0xff] %v16491_v23  ;;  %v22429_v28 = vrot.slane %v16457_v29, 7  ;;  %v16503_v41 = vrot.slane %v4146_v44, %v22255_v42  ;;  %v16506_v51 = vrot.slane %v4147_v53, %v22255_v42  ;;  %v4243_v17 = vrot.slane %v4229_v19, %v22255_v42 }
 0x4a7   : > { %v16516_v25 = vrot.slane %v4293_v2, %v22255_v42  ;;  %v7287_v44 = vrot.slane %v16107_v0, 2  ;;  %vm3038_vm12 = vcmp.ge.f32.partialorder %v2980_v43, 0.0  ;;  %v16531_v2 = vsel %vm572_vm2, %v7143_v8, %v7145_v3 }
 0x4a8   : > { %v16500_v54 = vsel %vm551_vm0, %v22429_v28, %v21886_v35  ;;  %7431 = vrot.lane.b32.xlu1 %v16491_v23, %s13390_s26  ;;  %8013 = vrot.lane.b32.xlu0 %v16413_v22, %s13392_s28  ;;  %v3070_v28 = vmul.f32 0.5, %v2980_v43  ;;  %v22432_v35 = vld [vmem:[#allocation132_spill] sm:$0xff]  ;;  %v2975_v22 = vadd.f32 %v16471_v60, %v22433_v37  ;;  %22435 = vst [vmem:[#allocation75_spill] sm:$0xff] %v16531_v2  ;;  %v7290_v0 = vrot.slane %v16356_v40, 2  ;;  %v16544_v37 = vpop.permute.xlu1 %7983 }
 0x4a9   : > { %22430 = vst [vmem:[#allocation175_spill] sm:$0xff] %v16500_v54  ;;  %v6278_v53 = vrot.slane %v22432_v35, %v13534_v33  ;;  %v4177_v35 = vcombine.high %v16486_v12, %v16486_v12  ;;  %22436 = vst [vmem:[#allocation177_spill] sm:$0xff] %v16544_v37  ;;  %v22437_v8 = vcombine.low %v16165_v4, %v16138_v50  ;;  %v22440_v50 = vrot.slane %v16329_v27, 2 }
 0x4aa   : > { %v16553_v56 = vsel %vm3038_vm12, %v2980_v43, %v3070_v28  ;;  %vm3037_vm13 = vcmp.ge.f32.partialorder %v2975_v22, 0.0  ;;  %v3069_v19 = vmul.f32 0.5, %v2975_v22  ;;  %v6329_v37 = vrot.slane %v16176_v11, %v13534_v33  ;;  %v22443_v28 = vld [vmem:[#allocation147_spill] sm:$0xff] }
 0x4ab   : > { %v16534_v21 = vcombine.low %v6278_v53, %v6285_v7  ;;  %v6336_v3 = vrot.slane %v22437_v8, %v13534_v33  ;;  %v4301_v7 = vrot.slane %v4285_v15, %v22255_v42  ;;  %v4245_v53 = vcombine.high %v4243_v17, %v4243_v17  ;;  %22438 = vst [vmem:[#allocation178_spill] sm:$0xff] %v16553_v56 }
 0x4ac   : > { %v16513_v9 = vpop.permute.xlu0 %7805  ;;  %7429 = vrot.lane.b32.xlu0 %v16531_v2, %s13390_s26  ;;  %v16564_v4 = vsel %vm588_vm1, %v7290_v0, %v22440_v50  ;;  %v16567_v15 = vsel %vm588_vm1, %v7288_v30, %v7290_v0  ;;  %v6288_v8 = vcombine.low %v22443_v28, %v16206_v46  ;;  %v4179_v0 = vcombine.high %v16506_v51, %v16506_v51 }
 0x4ad   : > { %22431 = vst [vmem:[#allocation176_spill] sm:$0xff] %v16513_v9  ;;  %v16528_v9 = vsel %vm588_vm1, %v7287_v44, %v7288_v30  ;;  %v4325_v44 = vcombine.high %v16516_v25, %v16516_v25  ;;  %22441 = vst [vmem:[#allocation180_spill] sm:$0xff] %v16564_v4  ;;  %v6885_v43 = vrot.slane %v16534_v21, 7  ;;  %v16576_v11 = vcombine.low %v6329_v37, %v6336_v3 }
 0x4ae   : > { %22434 = vst [vmem:[#allocation132_spill] sm:$0xff] %v16528_v9  ;;  %7622 = vrot.lane.b32.xlu1 %v16528_v9, %s13389_s23  ;;  %v6305_v9 = vcombine.low %v16209_v10, %v16212_v13  ;;  %22442 = vst [vmem:[#allocation181_spill] sm:$0xff] %v16567_v15  ;;  %v22444_v10 = vld [vmem:[#allocation150_spill] sm:$0xff]  ;;  %v5378_v46 = vrot.slane %v16486_v12, %v13526_v26  ;;  %v4383_v30 = vrot.slane %v16553_v56, %v22255_v42 }
 0x4af   : > { %v6312_v13 = vrot.slane %v22444_v10, %v13534_v33  ;;  %v4323_v28 = vcombine.high %v4301_v7, %v4301_v7  ;;  %v16590_v37 = vrot.slane %v4243_v17, %v22255_v42  ;;  %v16593_v3 = vsel %vm3037_vm13, %v2975_v22, %v3069_v19 }
 0x4b0   : > { %v16555_v40 = vpop.permute.xlu0 %7985  ;;  %7624 = vrot.lane.b32.xlu0 %v16567_v15, %s13389_s23  ;;  %v6319_v50 = vrot.slane %v6305_v9, %v13534_v33  ;;  %22445 = vst [vmem:[#allocation147_spill] sm:$0xff] %v16593_v3  ;;  %v16595_v9 = vpop.permute.xlu1 %7987  ;;  %v5382_v21 = vrot.slane %v16506_v51, %v13526_v26  ;;  %v5462_v12 = vrot.slane %v16516_v25, %v13526_v26  ;;  %v22447_v27 = vrot.slane %v16438_v38, 7 }
 0x4b1   : > { %22439 = vst [vmem:[#allocation179_spill] sm:$0xff] %v16555_v40  ;;  %22446 = vst [vmem:[#allocation150_spill] sm:$0xff] %v16595_v9  ;;  %v6302_v17 = vrot.slane %v6288_v8, %v13534_v33  ;;  %v16610_v22 = vrot.slane %v4325_v44, %v13526_v26  ;;  %v16613_v19 = vrot.slane %v4245_v53, %v22255_v42  ;;  %v22450_v53 = vld [vmem:[#allocation149_spill] sm:$0xff] }
 0x4b2   : > { %7626 = vrot.lane.b32.xlu1 %v16564_v4, %s13389_s23  ;;  %v16597_v10 = vcombine.low %v6312_v13, %v6319_v50  ;;  %v16606_v40 = vsel %vm551_vm0, %v22447_v27, %v6885_v43  ;;  %v5458_v25 = vrot.slane %v4301_v7, %v13526_v26  ;;  %v4391_v8 = vcombine.high %v4383_v30, %v4383_v30 }
 0x4b3   : > { %22448 = vst [vmem:[#allocation182_spill] sm:$0xff] %v16606_v40  ;;  %v4327_v44 = vcombine.high %v16593_v3, %v16593_v3  ;;  %v6295_v13 = vrot.slane %v22450_v53, %v13534_v33  ;;  %v16629_v50 = vrot.slane %v4323_v28, %v13526_v26  ;;  %v22452_v27 = vrot.slane %v16576_v11, 7 }
 0x4b4   : > { %7829 = vrot.lane.b32.xlu0 %v16606_v40, %s13391_s27  ;;  %v16619_v51 = vpop.permute.xlu0 %7801  ;;  %v22453_v7 = vrot.slane %v16597_v10, 7  ;;  %v16643_v4 = vrot.slane %v4177_v35, %v13526_v26  ;;  %v16646_v53 = vrot.slane %v4179_v0, %v13526_v26  ;;  %v16648_v28 = vcombine.low %v5378_v46, %v5382_v21  ;;  %v16663_v0 = vpop.permute.xlu1 %7803 }
 0x4b5   : > { %22449 = vst [vmem:[#allocation183_spill] sm:$0xff] %v16619_v51  ;;  %v22451_v51 = vld [vmem:[#allocation78_spill] sm:$0xff]  ;;  %v16650_v15 = vcombine.low %v6295_v13, %v6302_v17  ;;  %v16652_v6 = vcombine.low %v5458_v25, %v5462_v12  ;;  %v4277_v14 = vcombine.high %v16613_v19, %v16613_v19  ;;  %v7046_v35 = vsel %vm551_vm0, %v6885_v43, 0.0 }
 0x4b6   : > { %8007 = vrot.lane.b32.xlu1 %v16452_v52, %s13392_s28  ;;  %v4275_v52 = vcombine.high %v16590_v37, %v16590_v37  ;;  %v2990_v38 = vadd.f32 %v16471_v60, %v22451_v51  ;;  %v16640_v9 = vsel %vm551_vm0, %v22453_v7, %v22452_v27  ;;  %22455 = vst [vmem:[#allocation78_spill] sm:$0xff] %v16663_v0  ;;  %v7158_v7 = vrot.slane %v7046_v35, 1  ;;  %v22461_v0 = vld [vmem:[#allocation81_spill] sm:$0xff] }
 0x4b7   : > { %22454 = vst [vmem:[#allocation149_spill] sm:$0xff] %v16640_v9  ;;  %v5442_v21 = vrot.slane %v16590_v37, %v13526_v26  ;;  %v4399_v46 = vrot.slane %v4383_v30, %v22255_v42  ;;  %v4413_v12 = vrot.slane %v4391_v8, %v22255_v42  ;;  %v4341_v17 = vrot.slane %v4327_v44, %v22255_v42 }
 0x4b8   : > { %8009 = vrot.lane.b32.xlu0 %v16531_v2, %s13392_s28  ;;  %v5446_v27 = vrot.slane %v16613_v19, %v13526_v26  ;;  %v16673_v25 = vrot.slane %v4275_v52, %v13526_v26  ;;  %vm3040_vm14 = vcmp.ge.f32.partialorder %v2990_v38, 0.0  ;;  %v16675_v13 = vpop.permute.xlu0 %7417  ;;  %v22457_v43 = vcombine.low %v16250_v47, %v16284_v18 }
 0x4b9   : > { %22456 = vst [vmem:[#allocation184_spill] sm:$0xff] %v16675_v13  ;;  %v22458_v30 = vrot.slane %v16457_v29, 7  ;;  %v22459_v8 = vrot.slane %v16365_v57, 7  ;;  %v7156_v52 = vrot.slane %v16606_v40, 1  ;;  %v3072_v51 = vmul.f32 0.5, %v2990_v38 }
 0x4ba   : > { %8011 = vrot.lane.b32.xlu1 %v16491_v23, %s13392_s28  ;;  %v6404_v37 = vrot.slane %v22457_v43, %v13534_v33  ;;  %v2985_v13 = vadd.f32 %v16471_v60, %v22461_v0  ;;  %v6397_v47 = vrot.slane %v16296_v55, %v13534_v33  ;;  %v6373_v18 = vcombine.low %v16375_v48, %v16378_v45  ;;  %v16702_v0 = vpop.permute.xlu1 %7807 }
 0x4bb   : > { %v16686_v44 = vsel %vm551_vm0, %v22459_v8, %v22458_v30  ;;  %v4421_v57 = vcombine.high %v4399_v46, %v4399_v46  ;;  %v4423_v29 = vcombine.high %v4413_v12, %v4413_v12  ;;  %v5522_v43 = vrot.slane %v4399_v46, %v13526_v26  ;;  %22462 = vst [vmem:[#allocation81_spill] sm:$0xff] %v16702_v0 }
 0x4bc   : > { %22460 = vst [vmem:[#allocation185_spill] sm:$0xff] %v16686_v44  ;;  %7825 = vrot.lane.b32.xlu0 %v16686_v44, %s13391_s27  ;;  %v4343_v30 = vcombine.high %v4341_v17, %v4341_v17  ;;  %v16704_v19 = vcombine.low %v6397_v47, %v6404_v37  ;;  %v6380_v23 = vrot.slane %v16386_v59, %v13534_v33  ;;  %v22463_v55 = vrot.slane %v16650_v15, 7  ;;  %v16726_v59 = vpop.permute.xlu0 %7612 }
 0x4bd   : > { %v6387_v2 = vrot.slane %v6373_v18, %v13534_v33  ;;  %v16715_v45 = vsel %vm572_vm2, %v7156_v52, %v7158_v7  ;;  %v7152_v46 = vrot.slane %v16686_v44, 1  ;;  %v7303_v8 = vrot.slane %v7046_v35, 2  ;;  %22467 = vst [vmem:[#allocation189_spill] sm:$0xff] %v16726_v59  ;;  %v22471_v59 = vld [vmem:[#allocation144_spill] sm:$0xff] }
 0x4be   : > { %7827 = vrot.lane.b32.xlu1 %v16500_v54, %s13391_s27  ;;  %v16712_v48 = vsel %vm551_vm0, 0.0, %v22463_v55  ;;  %22465 = vst [vmem:[#allocation187_spill] sm:$0xff] %v16715_v45  ;;  %v5526_v0 = vrot.slane %v4413_v12, %v13526_v26  ;;  %v16720_v37 = vsel %vm3040_vm14, %v2990_v38, %v3072_v51  ;;  %v16731_v7 = vrot.slane %v4423_v29, %v13526_v26 }
 0x4bf   : > { %22464 = vst [vmem:[#allocation186_spill] sm:$0xff] %v16712_v48  ;;  %22466 = vst [vmem:[#allocation188_spill] sm:$0xff] %v16720_v37  ;;  %v16728_v47 = vcombine.low %v6380_v23, %v6387_v2  ;;  %v16734_v35 = vrot.slane %v4341_v17, %v22255_v42  ;;  %v3071_v12 = vmul.f32 0.5, %v2985_v13  ;;  %v7151_v38 = vrot.slane %v16419_v39, 1 }
 0x4c0   : > { %7441 = vrot.lane.b32.xlu0 %v16715_v45, %s13390_s26  ;;  %v16738_v51 = vrot.slane %v4343_v30, %v22255_v42  ;;  %vm3039_vm15 = vcmp.ge.f32.partialorder %v2985_v13, 0.0  ;;  %v22469_v2 = vrot.slane %v16606_v40, 2  ;;  %v7154_v17 = vrot.slane %v16500_v54, 1 }
 0x4c1   : > { %v21925_v55 = vrot.slane %v16728_v47, 7  ;;  %v16743_v23 = vsel %vm572_vm2, %v7151_v38, %v7152_v46  ;;  %v6339_v56 = vcombine.low %v22472_v16, %v22471_v59  ;;  %v16754_v30 = vrot.slane %v4421_v57, %v13526_v26  ;;  %v16762_v38 = vpop.permute.xlu1 %7411 }
 0x4c2   : > { %7831 = vrot.lane.b32.xlu1 %v16712_v48, %s13391_s27  ;;  %22468 = vst [vmem:[#allocation190_spill] sm:$0xff] %v16743_v23  ;;  %v16748_v29 = vsel %vm588_vm1, %v22469_v2, %v7303_v8  ;;  %v4481_v18 = vrot.slane %v16720_v37, %v22255_v42  ;;  %22473 = vst [vmem:[#allocation144_spill] sm:$0xff] %v16762_v38  ;;  %v22474_v8 = vrot.slane %v16704_v19, 7 }
 0x4c3   : > { %22470 = vst [vmem:[#allocation191_spill] sm:$0xff] %v16748_v29  ;;  %v5454_v57 = vrot.slane %v4277_v14, %v13526_v26  ;;  %v16772_v59 = vcombine.low %v5442_v21, %v5446_v27  ;;  %v16774_v2 = vcombine.low %v5522_v43, %v5526_v0  ;;  %v16777_v37 = vsel %vm3039_vm15, %v2985_v13, %v3071_v12 }
 0x4c4   : > { %7636 = vrot.lane.b32.xlu0 %v16748_v29, %s13389_s23  ;;  %v16769_v16 = vsel %vm551_vm0, %v21925_v55, %v22474_v8  ;;  %v4373_v38 = vcombine.high %v16734_v35, %v16734_v35  ;;  %v7297_v8 = vrot.slane %v16686_v44, 2  ;;  %v16786_v55 = vpop.permute.xlu0 %7997  ;;  %v16791_v21 = vsel %vm572_vm2, %v7154_v17, %v7156_v52  ;;  %v22479_v52 = vld [vmem:[#allocation83_spill] sm:$0xff] }
 0x4c5   : > { %22475 = vst [vmem:[#allocation142_spill] sm:$0xff] %v16769_v16  ;;  %22476 = vst [vmem:[#allocation192_spill] sm:$0xff] %v16786_v55  ;;  %v6353_v27 = vrot.slane %v6339_v56, %v13534_v33  ;;  %v22478_v13 = vcombine.low %v16478_v62, %v16481_v32  ;;  %v4489_v0 = vcombine.high %v4481_v18, %v4481_v18  ;;  %v7296_v56 = vrot.slane %v16419_v39, 2  ;;  %v22480_v32 = vld [vmem:[#allocation145_spill] sm:$0xff]  ;;  %v16825_v39 = vpop.permute.xlu1 %7415 }
 0x4c6   : > { %7435 = vrot.lane.b32.xlu1 %v16743_v23, %s13390_s26  ;;  %22477 = vst [vmem:[#allocation193_spill] sm:$0xff] %v16791_v21  ;;  %v16799_v12 = vrot.slane %v4481_v18, %v22255_v42  ;;  %v4425_v29 = vcombine.high %v16777_v37, %v16777_v37  ;;  %v3000_v3 = vadd.f32 %v16471_v60, %v22479_v52  ;;  %v7299_v52 = vrot.slane %v16500_v54, 2 }
 0x4c7   : > { %v6472_v43 = vrot.slane %v22478_v13, %v13534_v33  ;;  %v6346_v62 = vrot.slane %v22480_v32, %v13534_v33  ;;  %v6465_v18 = vrot.slane %v16483_v63, %v13534_v33  ;;  %v6441_v13 = vcombine.low %v16643_v4, %v16646_v53  ;;  %22483 = vst [vmem:[#allocation194_spill] sm:$0xff] %v16825_v39 }
 0x4c8   : > { %8021 = vrot.lane.b32.xlu0 %v16715_v45, %s13392_s28  ;;  %v5510_v14 = vrot.slane %v16738_v51, %v13526_v26  ;;  %v16819_v44 = vsel %vm588_vm1, %v7296_v56, %v7297_v8  ;;  %v16822_v45 = vsel %vm572_vm2, %v7152_v46, %v7154_v17  ;;  %v6448_v63 = vrot.slane %v16648_v28, %v13534_v33  ;;  %v16840_v46 = vpop.permute.xlu0 %7413 }
 0x4c9   : > { %22481 = vst [vmem:[#allocation83_spill] sm:$0xff] %v16819_v44  ;;  %22482 = vst [vmem:[#allocation145_spill] sm:$0xff] %v16822_v45  ;;  %v16827_v32 = vcombine.low %v6346_v62, %v6353_v27  ;;  %v16829_v55 = vcombine.low %v6465_v18, %v6472_v43  ;;  %v6455_v4 = vrot.slane %v6441_v13, %v13534_v33  ;;  %vm3042_vm12 = vcmp.ge.f32.partialorder %v3000_v3, 0.0 }
 0x4ca   : > { %7439 = vrot.lane.b32.xlu1 %v16791_v21, %s13390_s26  ;;  %v4511_v53 = vrot.slane %v4489_v0, %v22255_v42  ;;  %v4439_v56 = vrot.slane %v4425_v29, %v22255_v42  ;;  %22484 = vst [vmem:[#allocation195_spill] sm:$0xff] %v16840_v46  ;;  %v6509_v17 = vcombine.low %v16673_v25, %v5454_v57  ;;  %v3074_v28 = vmul.f32 0.5, %v3000_v3 }
 0x4cb   : > { %v4519_v27 = vcombine.high %v16799_v12, %v16799_v12  ;;  %v16845_v43 = vcombine.low %v6448_v63, %v6455_v4  ;;  %v22485_v0 = vrot.slane %v16606_v40, 2  ;;  %v16853_v62 = vsel %vm588_vm1, %v7297_v8, %v7299_v52 }
 0x4cc   : > { %7437 = vrot.lane.b32.xlu0 %v16822_v45, %s13390_s26  ;;  %22487 = vst [vmem:[#allocation197_spill] sm:$0xff] %v16853_v62  ;;  %v6356_v18 = vcombine.low %v16348_v24, %v16351_v5  ;;  %v22488_v25 = vcombine.low %v16629_v50, %v16610_v22  ;;  %v6892_v13 = vrot.slane %v16827_v32, 7  ;;  %v21937_v63 = vrot.slane %v16829_v55, 7  ;;  %v16869_v24 = vpop.permute.xlu1 %7606  ;;  %v22490_v50 = vld [vmem:[#allocation85_spill] sm:$0xff] }
 0x4cd   : > { %v16850_v29 = vsel %vm588_vm1, %v7299_v52, %v22485_v0  ;;  %v21936_v4 = vrot.slane %v16845_v43, 7  ;;  %v6523_v0 = vrot.slane %v6509_v17, %v13534_v33  ;;  %v4521_v40 = vcombine.high %v4511_v53, %v4511_v53  ;;  %22489 = vst [vmem:[#allocation198_spill] sm:$0xff] %v16869_v24 }
 0x4ce   : > { %7630 = vrot.lane.b32.xlu1 %v16819_v44, %s13389_s23  ;;  %22486 = vst [vmem:[#allocation196_spill] sm:$0xff] %v16850_v29  ;;  %v6540_v57 = vrot.slane %v22488_v25, %v13534_v33  ;;  %v4441_v39 = vcombine.high %v4439_v56, %v4439_v56  ;;  %v6533_v5 = vrot.slane %v16652_v6, %v13534_v33  ;;  %v16894_v25 = vpop.permute.xlu0 %7608 }
 0x4cf   : > { %v16874_v22 = vrot.slane %v4439_v56, %v22255_v42  ;;  %v2995_v8 = vadd.f32 %v16471_v60, %v22490_v50  ;;  %v16883_v52 = vsel %vm551_vm0, %v21936_v4, %v21937_v63  ;;  %v6516_v32 = vrot.slane %v16772_v59, %v13534_v33  ;;  %22492 = vst [vmem:[#allocation199_spill] sm:$0xff] %v16894_v25 }
 0x4d0   : > { %7632 = vrot.lane.b32.xlu0 %v16853_v62, %s13389_s23  ;;  %22491 = vst [vmem:[#allocation85_spill] sm:$0xff] %v16883_v52  ;;  %v16888_v17 = vrot.slane %v4373_v38, %v13526_v26  ;;  %v16891_v6 = vsel %vm3042_vm12, %v3000_v3, %v3074_v28  ;;  %v6370_v56 = vrot.slane %v6356_v18, %v13534_v33  ;;  %v22493_v63 = vrot.slane %v16576_v11, 7 }
 0x4d1   : > { %v16896_v50 = vcombine.low %v6533_v5, %v6540_v57  ;;  %v5586_v54 = vrot.slane %v16799_v12, %v13526_v26  ;;  %v5590_v4 = vrot.slane %v4511_v53, %v13526_v26  ;;  %v16906_v38 = vcombine.low %v6516_v32, %v6523_v0  ;;  %v16929_v0 = vpop.permute.xlu1 %7610 }
 0x4d2   : > { %7634 = vrot.lane.b32.xlu1 %v16850_v29, %s13389_s23  ;;  %v16904_v59 = vsel %vm551_vm0, %v22493_v63, %v6892_v13  ;;  %v16909_v3 = vrot.slane %v4521_v40, %v13526_v26  ;;  %v4469_v28 = vrot.slane %v4441_v39, %v22255_v42  ;;  %v6363_v12 = vrot.slane %v16381_v20, %v13534_v33  ;;  %v22495_v39 = vld [vmem:[#allocation89_spill] sm:$0xff] }
 0x4d3   : > { %22494 = vst [vmem:[#allocation200_spill] sm:$0xff] %v16904_v59  ;;  %v16919_v11 = vrot.slane %v4519_v27, %v13526_v26  ;;  %v4471_v53 = vcombine.high %v16874_v22, %v16874_v22  ;;  %v4579_v40 = vrot.slane %v16891_v6, %v22255_v42  ;;  %v3073_v18 = vmul.f32 0.5, %v2995_v8  ;;  %22496 = vst [vmem:[#allocation89_spill] sm:$0xff] %v16929_v0 }
 0x4d4   : > { %7837 = vrot.lane.b32.xlu0 %v16904_v59, %s13391_s27  ;;  %v3005_v57 = vadd.f32 %v16471_v60, %v22495_v39  ;;  %v16927_v63 = vcombine.low %v6363_v12, %v6370_v56  ;;  %v21941_v5 = vrot.slane %v16896_v50, 7  ;;  %v21940_v20 = vrot.slane %v16906_v38, 7  ;;  %v16949_v39 = vpop.permute.xlu0 %7813 }
 0x4d5   : > { %v22497_v27 = vcombine.high %v16738_v51, %v16738_v51  ;;  %v22498_v25 = vrot.slane %v16734_v35, %v13526_v26  ;;  %vm3041_vm13 = vcmp.ge.f32.partialorder %v2995_v8, 0.0  ;;  %v6662_v56 = vcombine.low %v16919_v11, %v16909_v3  ;;  %22499 = vst [vmem:[#allocation201_spill] sm:$0xff] %v16949_v39 }
 0x4d6   : > { %8015 = vrot.lane.b32.xlu1 %v16743_v23, %s13392_s28  ;;  %v16940_v23 = vcombine.low %v5586_v54, %v5590_v4  ;;  %v4473_v12 = vcombine.high %v4469_v28, %v4469_v28  ;;  %v7047_v51 = vsel %vm551_vm0, %v6892_v13, 0.0  ;;  %v16956_v54 = vsel %vm551_vm0, %v21940_v20, %v21941_v5 }
 0x4d7   : > { %v5518_v32 = vrot.slane %v22497_v27, %v13526_v26  ;;  %v6576_v46 = vcombine.low %v22498_v25, %v5510_v14  ;;  %22500 = vst [vmem:[#allocation202_spill] sm:$0xff] %v16956_v54  ;;  %v5570_v35 = vrot.slane %v16874_v22, %v13526_v26  ;;  %v5574_v14 = vrot.slane %v4469_v28, %v13526_v26  ;;  %v22501_v25 = vld [vmem:[#allocation87_spill] sm:$0xff] }
 0x4d8   : > { %8017 = vrot.lane.b32.xlu0 %v16822_v45, %s13392_s28  ;;  %v4587_v4 = vcombine.high %v4579_v40, %v4579_v40  ;;  %v3010_v3 = vadd.f32 %v16471_v60, %v22501_v25  ;;  %v5578_v13 = vrot.slane %v4471_v53, %v13526_v26  ;;  %v16964_v11 = vsel %vm3041_vm13, %v2995_v8, %v3073_v18  ;;  %v17001_v25 = vpop.permute.xlu0 %7993 }
 0x4d9   : > { %v3075_v27 = vmul.f32 0.5, %v3005_v57  ;;  %v21943_v39 = vrot.slane %v16927_v63, 7  ;;  %vm3043_vm14 = vcmp.ge.f32.partialorder %v3005_v57, 0.0  ;;  %v22502_v20 = vrot.slane %v16597_v10, 7  ;;  %v16983_v10 = vpop.permute.xlu1 %7991  ;;  %22508 = vst [vmem:[#allocation205_spill] sm:$0xff] %v17001_v25 }
 0x4da   : > { %8019 = vrot.lane.b32.xlu1 %v16791_v21, %s13392_s28  ;;  %v22503_v5 = vrot.slane %v16650_v15, 7  ;;  %v7165_v28 = vrot.slane %v16904_v59, 1  ;;  %v7167_v21 = vrot.slane %v7047_v51, 1  ;;  %v5582_v60 = vrot.slane %v4473_v12, %v13526_v26  ;;  %22505 = vst [vmem:[#allocation203_spill] sm:$0xff] %v16983_v10 }
 0x4db   : > { %v16977_v53 = vrot.slane %v4579_v40, %v22255_v42  ;;  %v22506_v15 = vcombine.low %v16754_v30, %v16731_v7  ;;  %v16990_v18 = vrot.slane %v4587_v4, %v22255_v42  ;;  %v4523_v40 = vcombine.high %v16964_v11, %v16964_v11 }
 0x4dc   : > { %v16972_v22 = vsel %vm551_vm0, %v22503_v5, %v22502_v20  ;;  %vm3044_vm15 = vcmp.ge.f32.partialorder %v3010_v3, 0.0  ;;  %v3076_v5 = vmul.f32 0.5, %v3010_v3  ;;  %v16994_v20 = vsel %vm3043_vm14, %v3005_v57, %v3075_v27 }
 0x4dd   : > { %22504 = vst [vmem:[#allocation87_spill] sm:$0xff] %v16972_v22  ;;  %7833 = vrot.lane.b32.xlu0 %v16972_v22, %s13391_s27  ;;  %v6608_v8 = vrot.slane %v22506_v15, %v13534_v33  ;;  %v16999_v12 = vsel %vm551_vm0, 0.0, %v21943_v39  ;;  %v6601_v7 = vrot.slane %v16774_v2, %v13534_v33  ;;  %v6577_v30 = vcombine.low %v16888_v17, %v5518_v32  ;;  %v17026_v45 = vpop.permute.xlu1 %7995 }
 0x4de   : > { %7835 = vrot.lane.b32.xlu1 %v16640_v9, %s13391_s27  ;;  %22507 = vst [vmem:[#allocation204_spill] sm:$0xff] %v16999_v12  ;;  %v17007_v4 = vsel %vm572_vm2, %v7165_v28, %v7167_v21  ;;  %v7161_v15 = vrot.slane %v16972_v22, 1  ;;  %v7312_v27 = vrot.slane %v7047_v51, 2  ;;  %v6584_v2 = vrot.slane %v6576_v46, %v13534_v33  ;;  %22510 = vst [vmem:[#allocation207_spill] sm:$0xff] %v17026_v45 }
 0x4df   : > { %22509 = vst [vmem:[#allocation206_spill] sm:$0xff] %v17007_v4  ;;  %v17015_v39 = vcombine.low %v6601_v7, %v6608_v8  ;;  %v6591_v17 = vrot.slane %v6577_v30, %v13534_v33  ;;  %v6644_v32 = vcombine.low %v5570_v35, %v5574_v14  ;;  %v4537_v21 = vrot.slane %v4523_v40, %v22255_v42 }
 0x4e0   : > { %v17021_v0 = vsel %vm3044_vm15, %v3010_v3, %v3076_v5  ;;  %v7160_v51 = vrot.slane %v16712_v48, 1  ;;  %v4621_v57 = vcombine.high %v16994_v20, %v16994_v20  ;;  %v6407_v8 = vcombine.low %v16288_v36, %v16320_v49  ;;  %v17050_v49 = vpop.permute.xlu0 %7809 }
 0x4e1   : > { %7449 = vrot.lane.b32.xlu0 %v17007_v4, %s13390_s26  ;;  %v17030_v7 = vcombine.low %v6584_v2, %v6591_v17  ;;  %v6645_v46 = vcombine.low %v5578_v13, %v5582_v60  ;;  %v22512_v14 = vrot.slane %v16904_v59, 2  ;;  %v7163_v40 = vrot.slane %v16640_v9, 1  ;;  %22514 = vst [vmem:[#allocation210_spill] sm:$0xff] %v17050_v49 }
 0x4e2   : > { %7839 = vrot.lane.b32.xlu1 %v16999_v12, %s13391_s27  ;;  %v17033_v35 = vsel %vm572_vm2, %v7160_v51, %v7161_v15  ;;  %v6676_v5 = vrot.slane %v6662_v56, %v13534_v33  ;;  %v4617_v30 = vcombine.high %v16977_v53, %v16977_v53  ;;  %v4619_v36 = vcombine.high %v16990_v18, %v16990_v18 }
 0x4e3   : > { %22511 = vst [vmem:[#allocation208_spill] sm:$0xff] %v17033_v35  ;;  %v17038_v3 = vsel %vm588_vm1, %v22512_v14, %v7312_v27  ;;  %v21954_v13 = vrot.slane %v17015_v39, 7  ;;  %v21953_v60 = vrot.slane %v17030_v7, 7  ;;  %v4539_v27 = vcombine.high %v4537_v21, %v4537_v21 }
 0x4e4   : > { %22513 = vst [vmem:[#allocation209_spill] sm:$0xff] %v17038_v3  ;;  %v4677_v56 = vrot.slane %v17021_v0, %v22255_v42  ;;  %v6669_v2 = vrot.slane %v16940_v23, %v13534_v33  ;;  %v6659_v17 = vrot.slane %v6645_v46, %v13534_v33  ;;  %v5366_v51 = vrot.slane %v16503_v41, %v13526_v26 }
 0x4e5   : > { %7644 = vrot.lane.b32.xlu0 %v17038_v3, %s13389_s23  ;;  %v4635_v14 = vrot.slane %v4621_v57, %v22255_v42  ;;  %v7306_v3 = vrot.slane %v16972_v22, 2  ;;  %v17068_v49 = vsel %vm551_vm0, %v21953_v60, %v21954_v13  ;;  %v17071_v24 = vsel %vm572_vm2, %v7163_v40, %v7165_v28 }
 0x4e6   : > { %7443 = vrot.lane.b32.xlu1 %v17033_v35, %s13390_s26  ;;  %22515 = vst [vmem:[#allocation211_spill] sm:$0xff] %v17068_v49  ;;  %22516 = vst [vmem:[#allocation212_spill] sm:$0xff] %v17071_v24  ;;  %v6421_v23 = vrot.slane %v6407_v8, %v13534_v33  ;;  %v17074_v46 = vcombine.low %v6669_v2, %v6676_v5  ;;  %v6652_v25 = vrot.slane %v6644_v32, %v13534_v33  ;;  %v17088_v8 = vpop.permute.xlu1 %7811 }
 0x4e7   : > { %v22517_v57 = vcombine.high %v16503_v41, %v16503_v41  ;;  %v5658_v45 = vrot.slane %v4617_v30, %v13526_v26  ;;  %v5662_v10 = vrot.slane %v4619_v36, %v13526_v26  ;;  %v7305_v28 = vrot.slane %v16712_v48, 2  ;;  %22518 = vst [vmem:[#allocation213_spill] sm:$0xff] %v17088_v8 }
 0x4e8   : > { %v4567_v32 = vrot.slane %v4539_v27, %v22255_v42  ;;  %v4685_v5 = vcombine.high %v4677_v56, %v4677_v56  ;;  %v6414_v41 = vrot.slane %v16326_v1, %v13534_v33  ;;  %v17093_v2 = vcombine.low %v6652_v25, %v6659_v17  ;;  %v17100_v13 = vpop.permute.xlu0 %7425 }
 0x4e9   : > { %v5374_v22 = vrot.slane %v22517_v57, %v13526_v26  ;;  %8029 = vrot.lane.b32.xlu0 %v17007_v4, %s13392_s28  ;;  %v4553_v30 = vrot.slane %v4537_v21, %v22255_v42  ;;  %v4637_v36 = vcombine.high %v4635_v14, %v4635_v14  ;;  %v17097_v57 = vsel %vm588_vm1, %v7305_v28, %v7306_v3 }
 0x4ea   : > { %7447 = vrot.lane.b32.xlu1 %v17071_v24, %s13390_s26  ;;  %22519 = vst [vmem:[#allocation214_spill] sm:$0xff] %v17097_v57  ;;  %v7308_v60 = vrot.slane %v16640_v9, 2  ;;  %22520 = vst [vmem:[#allocation215_spill] sm:$0xff] %v17100_v13  ;;  %v17103_v4 = vsel %vm572_vm2, %v7161_v15, %v7163_v40  ;;  %v6422_v27 = vcombine.low %v6414_v41, %v6421_v23  ;;  %v21962_v48 = vrot.slane %v17074_v46, 7  ;;  %v17133_v9 = vpop.permute.xlu1 %7815 }
 0x4eb   : > { %22521 = vst [vmem:[#allocation216_spill] sm:$0xff] %v17103_v4  ;;  %v21961_v1 = vrot.slane %v17093_v2, 7  ;;  %v22522_v25 = vcombine.high %v16460_v34, %v16460_v34  ;;  %v5650_v17 = vrot.slane %v16977_v53, %v13526_v26  ;;  %v5654_v28 = vrot.slane %v16990_v18, %v13526_v26  ;;  %22524 = vst [vmem:[#allocation218_spill] sm:$0xff] %v17133_v9 }
 0x4ec   : > { %v6730_v15 = vcombine.low %v5658_v45, %v5662_v10  ;;  %v4571_v40 = vcombine.high %v4567_v32, %v4567_v32  ;;  %v17120_v23 = vrot.slane %v4685_v5, %v22255_v42  ;;  %v4569_v41 = vcombine.high %v4553_v30, %v4553_v30 }
 0x4ed   : > { %v5370_v21 = vrot.slane %v22522_v25, %v13526_v26  ;;  %7445 = vrot.lane.b32.xlu0 %v17103_v4, %s13390_s26  ;;  %v17127_v53 = vsel %vm551_vm0, %v21961_v1, %v21962_v48  ;;  %v4693_v18 = vrot.slane %v4677_v56, %v22255_v42  ;;  %v17131_v25 = vrot.slane %v4637_v36, %v22255_v42 }
 0x4ee   : > { %7638 = vrot.lane.b32.xlu1 %v17097_v57, %s13389_s23  ;;  %22523 = vst [vmem:[#allocation217_spill] sm:$0xff] %v17127_v53  ;;  %v5638_v10 = vrot.slane %v4567_v32, %v13526_v26  ;;  %v22525_v5 = vrot.slane %v16904_v59, 2  ;;  %v17142_v8 = vsel %vm588_vm1, %v7306_v3, %v7308_v60  ;;  %v6899_v1 = vrot.slane %v6422_v27, 7 }
 0x4ef   : > { %v6424_v45 = vcombine.low %v5370_v21, %v5374_v22  ;;  %22527 = vst [vmem:[#allocation220_spill] sm:$0xff] %v17142_v8  ;;  %v22528_v56 = vrot.slane %v16460_v34, %v13526_v26  ;;  %v6729_v36 = vcombine.low %v5650_v17, %v5654_v28  ;;  %v17151_v22 = vpop.permute.xlu0 %7620  ;;  %v5634_v32 = vrot.slane %v4553_v30, %v13526_v26 }
 0x4f0   : > { %v17139_v13 = vsel %vm588_vm1, %v7308_v60, %v22525_v5  ;;  %22529 = vst [vmem:[#allocation221_spill] sm:$0xff] %v17151_v22  ;;  %v5646_v21 = vrot.slane %v4571_v40, %v13526_v26  ;;  %v4717_v3 = vcombine.high %v17120_v23, %v17120_v23  ;;  %v4651_v60 = vrot.slane %v4635_v14, %v22255_v42 }
 0x4f1   : > { %22526 = vst [vmem:[#allocation219_spill] sm:$0xff] %v17139_v13  ;;  %v6423_v48 = vcombine.low %v22528_v56, %v5366_v51  ;;  %7640 = vrot.lane.b32.xlu0 %v17142_v8, %s13389_s23  ;;  %v22530_v34 = vcombine.high %v16363_v31, %v16363_v31  ;;  %v4715_v27 = vcombine.high %v4693_v18, %v4693_v18  ;;  %v22531_v5 = vrot.slane %v16704_v19, 7 }
 0x4f2   : > { %7642 = vrot.lane.b32.xlu1 %v17139_v13, %s13389_s23  ;;  %v4669_v17 = vcombine.high %v17131_v25, %v17131_v25  ;;  %v6438_v28 = vrot.slane %v6424_v45, %v13534_v33  ;;  %v5642_v30 = vrot.slane %v4569_v41, %v13526_v26  ;;  %v6712_v40 = vcombine.low %v5634_v32, %v5638_v10  ;;  %v17182_v45 = vpop.permute.xlu1 %7419 }
 0x4f3   : > { %v17162_v51 = vrot.slane %v22530_v34, %v22255_v42  ;;  %v17171_v56 = vsel %vm551_vm0, %v22531_v5, %v6899_v1  ;;  %v6744_v14 = vrot.slane %v6730_v15, %v13534_v33  ;;  %v17176_v34 = vrot.slane %v16363_v31, %v22255_v42  ;;  %22533 = vst [vmem:[#allocation223_spill] sm:$0xff] %v17182_v45  ;;  %v17191_v59 = vpop.permute.xlu0 %8005 }
 0x4f4   : > { %22532 = vst [vmem:[#allocation222_spill] sm:$0xff] %v17171_v56  ;;  %v6431_v41 = vrot.slane %v6423_v48, %v13534_v33  ;;  %v5726_v19 = vrot.slane %v4717_v3, %v13526_v26  ;;  %v4667_v10 = vcombine.high %v4651_v60, %v4651_v60  ;;  %v6737_v32 = vrot.slane %v6729_v36, %v13534_v33 }
 0x4f5   : > { %7845 = vrot.lane.b32.xlu0 %v17171_v56, %s13391_s27  ;;  %v6713_v15 = vcombine.low %v5642_v30, %v5646_v21  ;;  %v4228_v31 = vcombine.high %v17162_v51, %v17162_v51  ;;  %v5722_v5 = vrot.slane %v4715_v27, %v13526_v26  ;;  %v5710_v13 = vrot.slane %v4669_v17, %v13526_v26 }
 0x4f6   : > { %8023 = vrot.lane.b32.xlu1 %v17033_v35, %s13392_s28  ;;  %22534 = vst [vmem:[#allocation224_spill] sm:$0xff] %v17191_v59  ;;  %v17193_v9 = vcombine.low %v6431_v41, %v6438_v28  ;;  %v7048_v22 = vsel %vm551_vm0, %v6899_v1, 0.0  ;;  %v17196_v48 = vcombine.low %v6737_v32, %v6744_v14  ;;  %v6720_v3 = vrot.slane %v6712_v40, %v13534_v33 }
 0x4f7   : > { %v6727_v36 = vrot.slane %v6713_v15, %v13534_v33  ;;  %v4236_v21 = vrot.slane %v16429_v61, %v22255_v42  ;;  %v5714_v30 = vrot.slane %v4693_v18, %v13526_v26  ;;  %v5718_v27 = vrot.slane %v17120_v23, %v13526_v26 }
 0x4f8   : > { %v6798_v1 = vcombine.low %v5722_v5, %v5726_v19  ;;  %v5702_v17 = vrot.slane %v17131_v25, %v13526_v26  ;;  %v5706_v28 = vrot.slane %v4667_v10, %v13526_v26  ;;  %v5698_v61 = vrot.slane %v4651_v60, %v13526_v26 }
 0x4f9   : > { %8025 = vrot.lane.b32.xlu0 %v17103_v4, %s13392_s28  ;;  %v17212_v40 = vcombine.low %v6720_v3, %v6727_v36  ;;  %v21970_v23 = vrot.slane %v17193_v9, 7  ;;  %v7174_v14 = vrot.slane %v17171_v56, 1  ;;  %v7176_v41 = vrot.slane %v7048_v22, 1 }
 0x4fa   : > { %8027 = vrot.lane.b32.xlu1 %v17071_v24, %s13392_s28  ;;  %v17215_v18 = vpop.permute.xlu1 %7423  ;;  %v22536_v32 = vrot.slane %v16728_v47, 7  ;;  %v22537_v19 = vrot.slane %v16927_v63, 7  ;;  %v21969_v25 = vrot.slane %v17196_v48, 7  ;;  %v6781_v5 = vcombine.low %v5706_v28, %v5710_v13 }
 0x4fb   : > { %22535 = vst [vmem:[#allocation225_spill] sm:$0xff] %v17215_v18  ;;  %v21968_v10 = vrot.slane %v17212_v40, 7  ;;  %v6797_v60 = vcombine.low %v5714_v30, %v5718_v27  ;;  %v4226_v47 = vcombine.high %v17176_v34, %v17176_v34  ;;  %v5422_v63 = vrot.slane %v4228_v31, %v13526_v26 }
 0x4fc   : > { %v17224_v15 = vsel %vm551_vm0, %v22537_v19, %v22536_v32  ;;  %v17232_v3 = vpop.permute.xlu0 %7421  ;;  %v6780_v36 = vcombine.low %v5698_v61, %v5702_v17  ;;  %v4244_v30 = vcombine.high %v4236_v21, %v4236_v21  ;;  %v7319_v28 = vrot.slane %v17171_v56, 2 }
 0x4fd   : > { %22538 = vst [vmem:[#allocation226_spill] sm:$0xff] %v17224_v15  ;;  %7841 = vrot.lane.b32.xlu0 %v17224_v15, %s13391_s27  ;;  %22539 = vst [vmem:[#allocation227_spill] sm:$0xff] %v17232_v3  ;;  %v17242_v13 = vsel %vm551_vm0, %v21968_v10, %v21969_v25  ;;  %v7321_v32 = vrot.slane %v7048_v22, 2  ;;  %v6812_v19 = vrot.slane %v6798_v1, %v13534_v33  ;;  %v17251_v31 = vsel %vm551_vm0, 0.0, %v21970_v23 }
 0x4fe   : > { %7843 = vrot.lane.b32.xlu1 %v16769_v16, %s13391_s27  ;;  %22540 = vst [vmem:[#allocation228_spill] sm:$0xff] %v17242_v13  ;;  %v17244_v27 = vpop.permute.xlu1 %7614  ;;  %22542 = vst [vmem:[#allocation230_spill] sm:$0xff] %v17251_v31  ;;  %v17254_v17 = vsel %vm572_vm2, %v7174_v14, %v7176_v41  ;;  %v7170_v61 = vrot.slane %v17224_v15, 1  ;;  %v6795_v10 = vrot.slane %v6781_v5, %v13534_v33  ;;  %v7169_v23 = vrot.slane %v16999_v12, 1 }
 0x4ff   : > { %22541 = vst [vmem:[#allocation229_spill] sm:$0xff] %v17244_v27  ;;  %22543 = vst [vmem:[#allocation231_spill] sm:$0xff] %v17254_v17  ;;  %v6805_v1 = vrot.slane %v6797_v60, %v13534_v33  ;;  %v5414_v25 = vrot.slane %v17162_v51, %v13526_v26  ;;  %v5418_v41 = vrot.slane %v4226_v47, %v13526_v26  ;;  %v7172_v47 = vrot.slane %v16769_v16, 1 }
 0x500   : > { %v17262_v22 = vpop.permute.xlu0 %7616  ;;  %v6788_v24 = vrot.slane %v6780_v36, %v13534_v33  ;;  %v5410_v5 = vrot.slane %v17176_v34, %v13526_v26  ;;  %v4266_v18 = vrot.slane %v4244_v30, %v22255_v42  ;;  %v17276_v4 = vsel %vm588_vm1, %v7319_v28, %v7321_v32 }
 0x501   : > { %7457 = vrot.lane.b32.xlu0 %v17254_v17, %s13390_s26  ;;  %22544 = vst [vmem:[#allocation232_spill] sm:$0xff] %v17262_v22  ;;  %22546 = vst [vmem:[#allocation234_spill] sm:$0xff] %v17276_v4  ;;  %v17278_v60 = vcombine.low %v6805_v1, %v6812_v19  ;;  %v17281_v51 = vsel %vm572_vm2, %v7169_v23, %v7170_v61  ;;  %v6475_v22 = vcombine.low %v5418_v41, %v5422_v63 }
 0x502   : > { %7847 = vrot.lane.b32.xlu1 %v17251_v31, %s13391_s27  ;;  %v17273_v8 = vpop.permute.xlu1 %7618  ;;  %22547 = vst [vmem:[#allocation235_spill] sm:$0xff] %v17281_v51  ;;  %v17284_v3 = vcombine.low %v6788_v24, %v6795_v10  ;;  %v6474_v34 = vcombine.low %v5410_v5, %v5414_v25  ;;  %v4252_v36 = vrot.slane %v4236_v21, %v22255_v42  ;;  %v7315_v10 = vrot.slane %v17224_v15, 2 }
 0x503   : > { %22545 = vst [vmem:[#allocation233_spill] sm:$0xff] %v17273_v8  ;;  %v4276_v32 = vcombine.high %v4266_v18, %v4266_v18  ;;  %v21978_v63 = vrot.slane %v17278_v60, 7  ;;  %v17298_v24 = vsel %vm572_vm2, %v7172_v47, %v7174_v14  ;;  %v6489_v1 = vrot.slane %v6475_v22, %v13534_v33 }
 0x504   : > { %v21977_v30 = vrot.slane %v17284_v3, 7  ;;  %22550 = vst [vmem:[#allocation238_spill] sm:$0xff] %v17298_v24  ;;  %v4274_v25 = vcombine.high %v4252_v36, %v4252_v36  ;;  %v7314_v14 = vrot.slane %v16999_v12, 2  ;;  %v6482_v41 = vrot.slane %v6474_v34, %v13534_v33 }
 0x505   : > { %7652 = vrot.lane.b32.xlu0 %v17276_v4, %s13389_s23  ;;  %v17294_v23 = vpop.permute.xlu0 %7821  ;;  %v4278_v22 = vcombine.high %v16405_v58, %v16405_v58  ;;  %v5438_v5 = vrot.slane %v4276_v32, %v13526_v26  ;;  %v5430_v58 = vrot.slane %v4266_v18, %v13526_v26  ;;  %v7326_v56 = vrot.slane %v16883_v52, 2 }
 0x506   : > { %7451 = vrot.lane.b32.xlu1 %v17281_v51, %s13390_s26  ;;  %v17292_v19 = vpop.permute.xlu1 %7999  ;;  %22549 = vst [vmem:[#allocation237_spill] sm:$0xff] %v17294_v23  ;;  %v17311_v21 = vsel %vm551_vm0, %v21977_v30, %v21978_v63  ;;  %v17323_v8 = vsel %vm588_vm1, %v7314_v14, %v7315_v10  ;;  %v17326_v30 = vsel %vm572_vm2, %v7170_v61, %v7172_v47  ;;  %v7317_v63 = vrot.slane %v16769_v16, 2 }
 0x507   : > { %22548 = vst [vmem:[#allocation236_spill] sm:$0xff] %v17292_v19  ;;  %22551 = vst [vmem:[#allocation239_spill] sm:$0xff] %v17311_v21  ;;  %v6490_v35 = vcombine.low %v6482_v41, %v6489_v1  ;;  %v5434_v34 = vrot.slane %v4274_v25, %v13526_v26  ;;  %v4292_v32 = vrot.slane %v4278_v22, %v22255_v42 }
 0x508   : > { %22554 = vst [vmem:[#allocation242_spill] sm:$0xff] %v17323_v8  ;;  %22555 = vst [vmem:[#allocation243_spill] sm:$0xff] %v17326_v30  ;;  %v5426_v14 = vrot.slane %v4252_v36, %v13526_v26  ;;  %v17342_v47 = vsel %vm588_vm1, %v7317_v63, %v7319_v28  ;;  %v17345_v1 = vsel %vm588_vm1, %v7315_v10, %v7317_v63  ;;  %v22562_v28 = vrot.slane %v16829_v55, 7 }
 0x509   : > { %8037 = vrot.lane.b32.xlu0 %v17254_v17, %s13392_s28  ;;  %v17320_v17 = vpop.permute.xlu0 %8001  ;;  %22558 = vst [vmem:[#allocation246_spill] sm:$0xff] %v17342_v47  ;;  %22559 = vst [vmem:[#allocation247_spill] sm:$0xff] %v17345_v1  ;;  %v6906_v41 = vrot.slane %v6490_v35, 7  ;;  %v6492_v45 = vcombine.low %v5434_v34, %v5438_v5  ;;  %v4294_v36 = vcombine.high %v4292_v32, %v4292_v32 }
 0x50a   : > { %7455 = vrot.lane.b32.xlu1 %v17298_v24, %s13390_s26  ;;  %v17318_v23 = vpop.permute.xlu1 %8003  ;;  %22553 = vst [vmem:[#allocation241_spill] sm:$0xff] %v17320_v17  ;;  %v6491_v18 = vcombine.low %v5426_v14, %v5430_v58  ;;  %v4308_v34 = vrot.slane %v4292_v32, %v22255_v42 }
 0x50b   : > { %22552 = vst [vmem:[#allocation240_spill] sm:$0xff] %v17318_v23  ;;  %v6506_v35 = vrot.slane %v6492_v45, %v13534_v33  ;;  %v4322_v10 = vrot.slane %v4294_v36, %v22255_v42  ;;  %v7049_v45 = vsel %vm551_vm0, %v6906_v41, 0.0 }
 0x50c   : > { %v6499_v63 = vrot.slane %v6491_v18, %v13534_v33  ;;  %v22566_v18 = vld [vmem:[#allocation147_spill] sm:$0xff]  ;;  %v7185_v32 = vrot.slane %v7049_v45, 1 }
 0x50d   : > { %7453 = vrot.lane.b32.xlu0 %v17326_v30, %s13390_s26  ;;  %v4326_v14 = vcombine.high %v4322_v10, %v4322_v10  ;;  %v4334_v36 = vrot.slane %v22566_v18, %v22255_v42  ;;  %v4324_v18 = vcombine.high %v4308_v34, %v4308_v34 }
 0x50e   : > { %7646 = vrot.lane.b32.xlu1 %v17323_v8, %s13389_s23  ;;  %v17337_v27 = vpop.permute.xlu1 %7819  ;;  %v17339_v61 = vpop.permute.xlu0 %7817  ;;  %v17371_v55 = vcombine.low %v6499_v63, %v6506_v35  ;;  %v22569_v35 = vrot.slane %v16845_v43, 7  ;;  %v22570_v63 = vrot.slane %v17193_v9, 7 }
 0x50f   : > { %22556 = vst [vmem:[#allocation244_spill] sm:$0xff] %v17337_v27  ;;  %22557 = vst [vmem:[#allocation245_spill] sm:$0xff] %v17339_v61  ;;  %v17358_v61 = vsel %vm551_vm0, %v22562_v28, %v6906_v41  ;;  %v4342_v43 = vcombine.high %v4334_v36, %v4334_v36 }
 0x510   : > { %22563 = vst [vmem:[#allocation250_spill] sm:$0xff] %v17358_v61  ;;  %v7183_v41 = vrot.slane %v17358_v61, 1 }
 0x511   : > { %7648 = vrot.lane.b32.xlu0 %v17345_v1, %s13389_s23 }
 0x512   : > { %7650 = vrot.lane.b32.xlu1 %v17342_v47, %s13389_s23  ;;  %v17351_v25 = vpop.permute.xlu1 %7823  ;;  %v17353_v22 = vpop.permute.xlu0 %7433 }
 0x513   : > { %22560 = vst [vmem:[#allocation248_spill] sm:$0xff] %v17351_v25  ;;  %22561 = vst [vmem:[#allocation249_spill] sm:$0xff] %v17353_v22 }
 0x515   : > { %7853 = vrot.lane.b32.xlu0 %v17358_v61, %s13391_s27 }
 0x516   : > { %8031 = vrot.lane.b32.xlu1 %v17281_v51, %s13392_s28  ;;  %v17367_v5 = vpop.permute.xlu1 %7427  ;;  %v17369_v58 = vpop.permute.xlu0 %7628 }
 0x517   : > { %22564 = vst [vmem:[#allocation251_spill] sm:$0xff] %v17367_v5  ;;  %22565 = vst [vmem:[#allocation252_spill] sm:$0xff] %v17369_v58  ;;  %v17410_v58 = vsel %vm572_vm2, %v7183_v41, %v7185_v32  ;;  %v7330_v5 = vrot.slane %v7049_v45, 2  ;;  %v4364_v32 = vrot.slane %v4342_v43, %v22255_v42 }
 0x519   : > { %8033 = vrot.lane.b32.xlu0 %v17326_v30, %s13392_s28  ;;  %v21985_v30 = vrot.slane %v17371_v55, 7  ;;  %v4374_v43 = vcombine.high %v4364_v32, %v4364_v32 }
 0x51a   : > { %8035 = vrot.lane.b32.xlu1 %v17298_v24, %s13392_s28  ;;  %v17381_v28 = vpop.permute.xlu1 %7431  ;;  %v17383_v25 = vpop.permute.xlu0 %8013  ;;  %v17390_v24 = vsel %vm551_vm0, %v22570_v63, %v22569_v35  ;;  %v7328_v35 = vrot.slane %v17358_v61, 2 }
 0x51b   : > { %22567 = vst [vmem:[#allocation147_spill] sm:$0xff] %v17381_v28  ;;  %22568 = vst [vmem:[#allocation253_spill] sm:$0xff] %v17383_v25  ;;  %v5486_v28 = vrot.slane %v4326_v14, %v13526_v26  ;;  %v17407_v63 = vsel %vm551_vm0, 0.0, %v21985_v30  ;;  %v7179_v22 = vrot.slane %v17390_v24, 1  ;;  %v5478_v14 = vrot.slane %v4322_v10, %v13526_v26 }
 0x51c   : > { %22571 = vst [vmem:[#allocation254_spill] sm:$0xff] %v17390_v24  ;;  %22574 = vst [vmem:[#allocation257_spill] sm:$0xff] %v17407_v63  ;;  %v5474_v30 = vrot.slane %v4308_v34, %v13526_v26  ;;  %v17430_v59 = vsel %vm588_vm1, %v7328_v35, %v7330_v5  ;;  %v7181_v10 = vrot.slane %v16883_v52, 1 }
 0x51d   : > { %7849 = vrot.lane.b32.xlu0 %v17390_v24, %s13391_s27  ;;  %22577 = vst [vmem:[#allocation260_spill] sm:$0xff] %v17430_v59 }
 0x51e   : > { %7851 = vrot.lane.b32.xlu1 %v16883_v52, %s13391_s27  ;;  %v17401_v9 = vpop.permute.xlu0 %7429  ;;  %v6542_v34 = vcombine.low %v5474_v30, %v5478_v14  ;;  %v17443_v5 = vsel %vm572_vm2, %v7181_v10, %v7183_v41  ;;  %v22580_v14 = vld [vmem:[#allocation178_spill] sm:$0xff]  ;;  %v5502_v41 = vrot.slane %v4374_v43, %v13526_v26  ;;  %v17464_v19 = vsel %vm572_vm2, %v7179_v22, %v7181_v10 }
 0x51f   : > { %22573 = vst [vmem:[#allocation256_spill] sm:$0xff] %v17401_v9  ;;  %v5482_v9 = vrot.slane %v4324_v18, %v13526_v26  ;;  %v4350_v18 = vrot.slane %v4334_v36, %v22255_v42  ;;  %v7323_v36 = vrot.slane %v17251_v31, 2  ;;  %v17480_v10 = vsel %vm588_vm1, %v7326_v56, %v7328_v35 }
 0x520   : > { %v17399_v51 = vpop.permute.xlu1 %7622  ;;  %22585 = vst [vmem:[#allocation266_spill] sm:$0xff] %v17480_v10  ;;  %v22588_v35 = vrot.slane %v16896_v50, 7 }
 0x521   : > { %22572 = vst [vmem:[#allocation255_spill] sm:$0xff] %v17399_v51  ;;  %7465 = vrot.lane.b32.xlu0 %v17410_v58, %s13390_s26  ;;  %v7178_v51 = vrot.slane %v17251_v31, 1  ;;  %v6543_v17 = vcombine.low %v5482_v9, %v5486_v28  ;;  %v4372_v30 = vcombine.high %v4350_v18, %v4350_v18  ;;  %v6550_v9 = vrot.slane %v6542_v34, %v13534_v33 }
 0x522   : > { %7855 = vrot.lane.b32.xlu1 %v17407_v63, %s13391_s27  ;;  %v17424_v27 = vpop.permute.xlu0 %7624  ;;  %v5494_v34 = vrot.slane %v4364_v32, %v13526_v26 }
 0x523   : > { %22576 = vst [vmem:[#allocation259_spill] sm:$0xff] %v17424_v27  ;;  %v17427_v45 = vsel %vm572_vm2, %v7178_v51, %v7179_v22  ;;  %v7324_v27 = vrot.slane %v17390_v24, 2  ;;  %v6557_v28 = vrot.slane %v6543_v17, %v13534_v33  ;;  %v5498_v43 = vrot.slane %v4372_v30, %v13526_v26 }
 0x524   : > { %v17422_v25 = vpop.permute.xlu1 %7626 }
 0x525   : > { %22575 = vst [vmem:[#allocation258_spill] sm:$0xff] %v17422_v25  ;;  %7660 = vrot.lane.b32.xlu0 %v17430_v59, %s13389_s23  ;;  %v17461_v17 = vsel %vm588_vm1, %v7323_v36, %v7324_v27  ;;  %v6558_v16 = vcombine.low %v6550_v9, %v6557_v28  ;;  %v5490_v36 = vrot.slane %v4350_v18, %v13526_v26 }
 0x526   : > { %7459 = vrot.lane.b32.xlu1 %v17427_v45, %s13390_s26  ;;  %v17440_v51 = vpop.permute.xlu0 %7829  ;;  %v17483_v28 = vsel %vm588_vm1, %v7324_v27, %v7326_v56 }
 0x527   : > { %22579 = vst [vmem:[#allocation262_spill] sm:$0xff] %v17440_v51  ;;  %v4376_v51 = vcombine.high %v22580_v14, %v22580_v14  ;;  %v6913_v9 = vrot.slane %v6558_v16, 7  ;;  %v6559_v32 = vcombine.low %v5490_v36, %v5494_v34 }
 0x528   : > { %v17438_v25 = vpop.permute.xlu1 %8007 }
 0x529   : > { %22578 = vst [vmem:[#allocation261_spill] sm:$0xff] %v17438_v25  ;;  %8045 = vrot.lane.b32.xlu0 %v17410_v58, %s13392_s28  ;;  %v4390_v14 = vrot.slane %v4376_v51, %v22255_v42  ;;  %v6567_v56 = vrot.slane %v6559_v32, %v13534_v33  ;;  %v4432_v32 = vrot.slane %v16777_v37, %v22255_v42 }
 0x52a   : > { %7463 = vrot.lane.b32.xlu1 %v17443_v5, %s13390_s26  ;;  %v17458_v23 = vpop.permute.xlu0 %8009 }
 0x52b   : > { %22582 = vst [vmem:[#allocation263_spill] sm:$0xff] %v17458_v23  ;;  %v4392_v18 = vcombine.high %v4390_v14, %v4390_v14 }
 0x52c   : > { %v17456_v25 = vpop.permute.xlu1 %8011 }
 0x52d   : > { %22581 = vst [vmem:[#allocation178_spill] sm:$0xff] %v17456_v25  ;;  %7461 = vrot.lane.b32.xlu0 %v17464_v19, %s13390_s26  ;;  %v6560_v25 = vcombine.low %v5498_v43, %v5502_v41  ;;  %v4420_v27 = vrot.slane %v4392_v18, %v22255_v42  ;;  %v4406_v43 = vrot.slane %v4390_v14, %v22255_v42 }
 0x52e   : > { %7654 = vrot.lane.b32.xlu1 %v17461_v17, %s13389_s23  ;;  %v17477_v22 = vpop.permute.xlu0 %7825 }
 0x52f   : > { %22584 = vst [vmem:[#allocation265_spill] sm:$0xff] %v17477_v22  ;;  %v17496_v22 = vsel %vm551_vm0, %v22588_v35, %v6913_v9  ;;  %v6574_v16 = vrot.slane %v6560_v25, %v13534_v33  ;;  %v7050_v25 = vsel %vm551_vm0, %v6913_v9, 0.0  ;;  %v4424_v36 = vcombine.high %v4420_v27, %v4420_v27 }
 0x530   : > { %v17475_v23 = vpop.permute.xlu1 %7827  ;;  %22589 = vst [vmem:[#allocation269_spill] sm:$0xff] %v17496_v22  ;;  %v7192_v9 = vrot.slane %v17496_v22, 1  ;;  %v7194_v14 = vrot.slane %v7050_v25, 1  ;;  %v4422_v37 = vcombine.high %v4406_v43, %v4406_v43 }
 0x531   : > { %22583 = vst [vmem:[#allocation264_spill] sm:$0xff] %v17475_v23  ;;  %7656 = vrot.lane.b32.xlu0 %v17483_v28, %s13389_s23  ;;  %v17509_v50 = vcombine.low %v6567_v56, %v6574_v16  ;;  %v22594_v16 = vrot.slane %v16906_v38, 7  ;;  %v22595_v56 = vrot.slane %v17371_v55, 7  ;;  %v4440_v38 = vcombine.high %v4432_v32, %v4432_v32 }
 0x532   : > { %7658 = vrot.lane.b32.xlu1 %v17480_v10, %s13389_s23  ;;  %v17491_v30 = vpop.permute.xlu0 %7441  ;;  %v7339_v23 = vrot.slane %v7050_v25, 2 }
 0x533   : > { %22587 = vst [vmem:[#allocation268_spill] sm:$0xff] %v17491_v30 }
 0x534   : > { %v17489_v51 = vpop.permute.xlu1 %7831 }
 0x535   : > { %22586 = vst [vmem:[#allocation267_spill] sm:$0xff] %v17489_v51  ;;  %7861 = vrot.lane.b32.xlu0 %v17496_v22, %s13391_s27  ;;  %v17528_v51 = vsel %vm551_vm0, %v22595_v56, %v22594_v16  ;;  %v7337_v16 = vrot.slane %v17496_v22, 2 }
 0x536   : > { %8039 = vrot.lane.b32.xlu1 %v17427_v45, %s13392_s28  ;;  %v17507_v34 = vpop.permute.xlu0 %7636  ;;  %22596 = vst [vmem:[#allocation274_spill] sm:$0xff] %v17528_v51 }
 0x537   : > { %22591 = vst [vmem:[#allocation271_spill] sm:$0xff] %v17507_v34  ;;  %v22004_v34 = vrot.slane %v17509_v50, 7  ;;  %v17568_v22 = vsel %vm588_vm1, %v7337_v16, %v7339_v23 }
 0x538   : > { %v17505_v41 = vpop.permute.xlu1 %7435  ;;  %22603 = vst [vmem:[#allocation281_spill] sm:$0xff] %v17568_v22 }
 0x539   : > { %22590 = vst [vmem:[#allocation270_spill] sm:$0xff] %v17505_v41  ;;  %8041 = vrot.lane.b32.xlu0 %v17464_v19, %s13392_s28  ;;  %v17545_v56 = vsel %vm551_vm0, 0.0, %v22004_v34  ;;  %v17548_v41 = vsel %vm572_vm2, %v7192_v9, %v7194_v14  ;;  %v5538_v34 = vrot.slane %v4406_v43, %v13526_v26  ;;  %v4462_v14 = vrot.slane %v4440_v38, %v22255_v42  ;;  %v22604_v38 = vld [vmem:[#allocation188_spill] sm:$0xff] }
 0x53a   : > { %8043 = vrot.lane.b32.xlu1 %v17443_v5, %s13392_s28  ;;  %v17521_v35 = vpop.permute.xlu0 %8021  ;;  %22599 = vst [vmem:[#allocation277_spill] sm:$0xff] %v17545_v56  ;;  %22600 = vst [vmem:[#allocation278_spill] sm:$0xff] %v17548_v41 }
 0x53b   : > { %22593 = vst [vmem:[#allocation273_spill] sm:$0xff] %v17521_v35  ;;  %v7188_v35 = vrot.slane %v17528_v51, 1 }
 0x53c   : > { %v17519_v18 = vpop.permute.xlu1 %7439 }
 0x53d   : > { %22592 = vst [vmem:[#allocation272_spill] sm:$0xff] %v17519_v18  ;;  %7857 = vrot.lane.b32.xlu0 %v17528_v51, %s13391_s27  ;;  %v5550_v18 = vrot.slane %v4424_v36, %v13526_v26  ;;  %v5542_v36 = vrot.slane %v4420_v27, %v13526_v26  ;;  %v7190_v27 = vrot.slane %v16956_v54, 1 }
 0x53e   : > { %7859 = vrot.lane.b32.xlu1 %v16956_v54, %s13391_s27  ;;  %v17539_v55 = vpop.permute.xlu0 %7437 }
 0x53f   : > { %22598 = vst [vmem:[#allocation276_spill] sm:$0xff] %v17539_v55  ;;  %v5546_v55 = vrot.slane %v4422_v37, %v13526_v26  ;;  %v4448_v37 = vrot.slane %v4432_v32, %v22255_v42  ;;  %v6610_v43 = vcombine.low %v5538_v34, %v5542_v36  ;;  %v17583_v10 = vsel %vm572_vm2, %v7190_v27, %v7192_v9 }
 0x540   : > { %v17537_v30 = vpop.permute.xlu1 %7630  ;;  %22607 = vst [vmem:[#allocation283_spill] sm:$0xff] %v17583_v10  ;;  %v7333_v32 = vrot.slane %v17528_v51, 2  ;;  %v7332_v34 = vrot.slane %v17407_v63, 2 }
 0x541   : > { %22597 = vst [vmem:[#allocation275_spill] sm:$0xff] %v17537_v30  ;;  %7473 = vrot.lane.b32.xlu0 %v17548_v41, %s13390_s26  ;;  %v7187_v30 = vrot.slane %v17407_v63, 1  ;;  %v6611_v59 = vcombine.low %v5546_v55, %v5550_v18  ;;  %v4470_v55 = vcombine.high %v4448_v37, %v4448_v37  ;;  %v6618_v36 = vrot.slane %v6610_v43, %v13534_v33 }
 0x542   : > { %7863 = vrot.lane.b32.xlu1 %v17545_v56, %s13391_s27  ;;  %v17562_v12 = vpop.permute.xlu0 %7632  ;;  %v5558_v63 = vrot.slane %v4462_v14, %v13526_v26 }
 0x543   : > { %22602 = vst [vmem:[#allocation280_spill] sm:$0xff] %v17562_v12  ;;  %v17565_v25 = vsel %vm572_vm2, %v7187_v30, %v7188_v35  ;;  %v4472_v30 = vcombine.high %v4462_v14, %v4462_v14  ;;  %v6625_v18 = vrot.slane %v6611_v59, %v13534_v33  ;;  %v17600_v59 = vsel %vm588_vm1, %v7332_v34, %v7333_v32 }
 0x544   : > { %v17560_v15 = vpop.permute.xlu1 %7634  ;;  %v5562_v43 = vrot.slane %v4470_v55, %v13526_v26 }
 0x545   : > { %22601 = vst [vmem:[#allocation279_spill] sm:$0xff] %v17560_v15  ;;  %7668 = vrot.lane.b32.xlu0 %v17568_v22, %s13389_s23  ;;  %v4474_v15 = vcombine.high %v22604_v38, %v22604_v38  ;;  %v5566_v9 = vrot.slane %v4472_v30, %v13526_v26  ;;  %v17603_v22 = vsel %vm572_vm2, %v7188_v35, %v7190_v27 }
 0x546   : > { %7467 = vrot.lane.b32.xlu1 %v17565_v25, %s13390_s26  ;;  %v17580_v23 = vpop.permute.xlu0 %7837  ;;  %v6626_v51 = vcombine.low %v6618_v36, %v6625_v18  ;;  %v5554_v30 = vrot.slane %v4448_v37, %v13526_v26 }
 0x547   : > { %22606 = vst [vmem:[#allocation282_spill] sm:$0xff] %v17580_v23  ;;  %v4488_v38 = vrot.slane %v4474_v15, %v22255_v42  ;;  %v6628_v27 = vcombine.low %v5562_v43, %v5566_v9  ;;  %v22615_v9 = vrot.slane %v17015_v39, 7  ;;  %v4530_v43 = vrot.slane %v16964_v11, %v22255_v42 }
 0x548   : > { %v17578_v12 = vpop.permute.xlu1 %8015  ;;  %v6920_v55 = vrot.slane %v6626_v51, 7  ;;  %v6627_v36 = vcombine.low %v5554_v30, %v5558_v63 }
 0x549   : > { %22605 = vst [vmem:[#allocation188_spill] sm:$0xff] %v17578_v12  ;;  %8053 = vrot.lane.b32.xlu0 %v17548_v41, %s13392_s28  ;;  %v7335_v41 = vrot.slane %v16956_v54, 2  ;;  %v4490_v15 = vcombine.high %v4488_v38, %v4488_v38  ;;  %v4504_v63 = vrot.slane %v4488_v38, %v22255_v42 }
 0x54a   : > { %7471 = vrot.lane.b32.xlu1 %v17583_v10, %s13390_s26  ;;  %v17597_v12 = vpop.permute.xlu0 %8017  ;;  %v6635_v51 = vrot.slane %v6627_v36, %v13534_v33  ;;  %v7051_v38 = vsel %vm551_vm0, %v6920_v55, 0.0 }
 0x54b   : > { %22609 = vst [vmem:[#allocation285_spill] sm:$0xff] %v17597_v12  ;;  %v17618_v18 = vsel %vm588_vm1, %v7335_v41, %v7337_v16  ;;  %v17621_v14 = vsel %vm588_vm1, %v7333_v32, %v7335_v41  ;;  %v4518_v37 = vrot.slane %v4490_v15, %v22255_v42  ;;  %v6642_v16 = vrot.slane %v6628_v27, %v13534_v33 }
 0x54c   : > { %v17595_v23 = vpop.permute.xlu1 %8019  ;;  %22612 = vst [vmem:[#allocation288_spill] sm:$0xff] %v17618_v18  ;;  %v17636_v41 = vsel %vm551_vm0, %v22615_v9, %v6920_v55  ;;  %v4520_v27 = vcombine.high %v4504_v63, %v4504_v63  ;;  %v4538_v9 = vcombine.high %v4530_v43, %v4530_v43 }
 0x54d   : > { %22608 = vst [vmem:[#allocation284_spill] sm:$0xff] %v17595_v23  ;;  %7469 = vrot.lane.b32.xlu0 %v17603_v22, %s13390_s26  ;;  %22616 = vst [vmem:[#allocation291_spill] sm:$0xff] %v17636_v41  ;;  %v4522_v32 = vcombine.high %v4518_v37, %v4518_v37  ;;  %v17650_v30 = vcombine.low %v6635_v51, %v6642_v16  ;;  %v22621_v16 = vrot.slane %v17030_v7, 7  ;;  %v22622_v51 = vrot.slane %v17509_v50, 7 }
 0x54e   : > { %7662 = vrot.lane.b32.xlu1 %v17600_v59, %s13389_s23  ;;  %v7201_v12 = vrot.slane %v17636_v41, 1  ;;  %v7203_v23 = vrot.slane %v7051_v38, 1  ;;  %v5606_v55 = vrot.slane %v4518_v37, %v13526_v26  ;;  %v5602_v7 = vrot.slane %v4504_v63, %v13526_v26 }
 0x54f   : > { %v17615_v35 = vpop.permute.xlu0 %7833  ;;  %v5614_v36 = vrot.slane %v4522_v32, %v13526_v26  ;;  %v5610_v32 = vrot.slane %v4520_v27, %v13526_v26  ;;  %v4572_v50 = vcombine.high %v16891_v6, %v16891_v6  ;;  %v22626_v37 = vrot.slane %v17650_v30, 7 }
 0x550   : > { %v17613_v34 = vpop.permute.xlu1 %7835  ;;  %22611 = vst [vmem:[#allocation287_spill] sm:$0xff] %v17615_v35  ;;  %v7348_v6 = vrot.slane %v7051_v38, 2 }
 0x551   : > { %22610 = vst [vmem:[#allocation286_spill] sm:$0xff] %v17613_v34  ;;  %7664 = vrot.lane.b32.xlu0 %v17621_v14, %s13389_s23  ;;  %v17688_v27 = vsel %vm551_vm0, 0.0, %v22626_v37  ;;  %v7196_v37 = vrot.slane %v17545_v56, 1 }
 0x552   : > { %7666 = vrot.lane.b32.xlu1 %v17618_v18, %s13389_s23  ;;  %22627 = vst [vmem:[#allocation299_spill] sm:$0xff] %v17688_v27  ;;  %v6678_v18 = vcombine.low %v5602_v7, %v5606_v55 }
 0x553   : > { %v17630_v35 = vpop.permute.xlu0 %7449 }
 0x554   : > { %v17628_v34 = vpop.permute.xlu1 %7839  ;;  %22614 = vst [vmem:[#allocation290_spill] sm:$0xff] %v17630_v35 }
 0x555   : > { %22613 = vst [vmem:[#allocation289_spill] sm:$0xff] %v17628_v34  ;;  %7869 = vrot.lane.b32.xlu0 %v17636_v41, %s13391_s27  ;;  %v7346_v34 = vrot.slane %v17636_v41, 2 }
 0x556   : > { %8047 = vrot.lane.b32.xlu1 %v17565_v25, %s13392_s28 }
 0x557   : > { %v17648_v39 = vpop.permute.xlu0 %7644  ;;  %v17711_v7 = vsel %vm588_vm1, %v7346_v34, %v7348_v6 }
 0x558   : > { %v17646_v15 = vpop.permute.xlu1 %7443  ;;  %22618 = vst [vmem:[#allocation293_spill] sm:$0xff] %v17648_v39  ;;  %v17668_v39 = vsel %vm551_vm0, %v22622_v51, %v22621_v16  ;;  %v4560_v16 = vrot.slane %v4538_v9, %v22255_v42  ;;  %v4546_v9 = vrot.slane %v4530_v43, %v22255_v42  ;;  %22632 = vst [vmem:[#allocation304_spill] sm:$0xff] %v17711_v7 }
 0x559   : > { %22617 = vst [vmem:[#allocation292_spill] sm:$0xff] %v17646_v15  ;;  %8049 = vrot.lane.b32.xlu0 %v17603_v22, %s13392_s28  ;;  %22623 = vst [vmem:[#allocation296_spill] sm:$0xff] %v17668_v39  ;;  %v7197_v63 = vrot.slane %v17668_v39, 1  ;;  %v6686_v43 = vrot.slane %v6678_v18, %v13534_v33  ;;  %v7342_v54 = vrot.slane %v17668_v39, 2 }
 0x55a   : > { %8051 = vrot.lane.b32.xlu1 %v17583_v10, %s13392_s28  ;;  %v5622_v18 = vrot.slane %v4560_v16, %v13526_v26 }
 0x55b   : > { %v17660_v11 = vpop.permute.xlu0 %8029  ;;  %v17708_v55 = vsel %vm572_vm2, %v7196_v37, %v7197_v63 }
 0x55c   : > { %v17658_v35 = vpop.permute.xlu1 %7447  ;;  %22620 = vst [vmem:[#allocation295_spill] sm:$0xff] %v17660_v11  ;;  %v17691_v11 = vsel %vm572_vm2, %v7201_v12, %v7203_v23  ;;  %v4570_v23 = vcombine.high %v4560_v16, %v4560_v16  ;;  %22631 = vst [vmem:[#allocation303_spill] sm:$0xff] %v17708_v55 }
 0x55d   : > { %22619 = vst [vmem:[#allocation294_spill] sm:$0xff] %v17658_v35  ;;  %7865 = vrot.lane.b32.xlu0 %v17668_v39, %s13391_s27  ;;  %v6679_v35 = vcombine.low %v5610_v32, %v5614_v36  ;;  %22628 = vst [vmem:[#allocation300_spill] sm:$0xff] %v17691_v11  ;;  %v4586_v36 = vrot.slane %v4572_v50, %v22255_v42  ;;  %v4568_v50 = vcombine.high %v4546_v9, %v4546_v9 }
 0x55e   : > { %7867 = vrot.lane.b32.xlu1 %v17068_v49, %s13391_s27 }
 0x55f   : > { %v17683_v15 = vpop.permute.xlu0 %7445  ;;  %v6693_v38 = vrot.slane %v6679_v35, %v13534_v33  ;;  %v5630_v35 = vrot.slane %v4570_v23, %v13526_v26  ;;  %v5626_v23 = vrot.slane %v4568_v50, %v13526_v26 }
 0x560   : > { %v17681_v51 = vpop.permute.xlu1 %7638  ;;  %22625 = vst [vmem:[#allocation298_spill] sm:$0xff] %v17683_v15 }
 0x561   : > { %22624 = vst [vmem:[#allocation297_spill] sm:$0xff] %v17681_v51  ;;  %7481 = vrot.lane.b32.xlu0 %v17691_v11, %s13390_s26  ;;  %v7199_v51 = vrot.slane %v17068_v49, 1  ;;  %v6694_v6 = vcombine.low %v6686_v43, %v6693_v38  ;;  %v6696_v16 = vcombine.low %v5626_v23, %v5630_v35  ;;  %v22644_v35 = vrot.slane %v17074_v46, 7 }
 0x562   : > { %7871 = vrot.lane.b32.xlu1 %v17688_v27, %s13391_s27 }
 0x563   : > { %v17704_v15 = vpop.permute.xlu0 %7640  ;;  %v17725_v41 = vsel %vm572_vm2, %v7199_v51, %v7201_v12  ;;  %v17728_v10 = vsel %vm572_vm2, %v7197_v63, %v7199_v51  ;;  %v7341_v12 = vrot.slane %v17545_v56, 2  ;;  %v5618_v51 = vrot.slane %v4546_v9, %v13526_v26 }
 0x564   : > { %v17702_v32 = vpop.permute.xlu1 %7642  ;;  %22630 = vst [vmem:[#allocation302_spill] sm:$0xff] %v17704_v15  ;;  %v4588_v15 = vcombine.high %v4586_v36, %v4586_v36  ;;  %22635 = vst [vmem:[#allocation307_spill] sm:$0xff] %v17725_v41  ;;  %v6710_v23 = vrot.slane %v6696_v16, %v13534_v33  ;;  %v22648_v16 = vrot.slane %v17093_v2, 7 }
 0x565   : > { %22629 = vst [vmem:[#allocation301_spill] sm:$0xff] %v17702_v32  ;;  %7676 = vrot.lane.b32.xlu0 %v17711_v7, %s13389_s23  ;;  %22636 = vst [vmem:[#allocation308_spill] sm:$0xff] %v17728_v10  ;;  %v7344_v7 = vrot.slane %v17068_v49, 2  ;;  %v6927_v49 = vrot.slane %v6694_v6, 7  ;;  %v6695_v9 = vcombine.low %v5618_v51, %v5622_v18 }
 0x566   : > { %7475 = vrot.lane.b32.xlu1 %v17708_v55, %s13390_s26  ;;  %v4616_v38 = vrot.slane %v4588_v15, %v22255_v42  ;;  %v4602_v15 = vrot.slane %v4586_v36, %v22255_v42 }
 0x567   : > { %v17722_v37 = vpop.permute.xlu0 %7845  ;;  %v17768_v6 = vsel %vm551_vm0, %v22644_v35, %v6927_v49  ;;  %v6703_v18 = vrot.slane %v6695_v9, %v13534_v33  ;;  %v22649_v35 = vrot.slane %v17650_v30, 7 }
 0x568   : > { %v17720_v32 = vpop.permute.xlu1 %8023  ;;  %22634 = vst [vmem:[#allocation306_spill] sm:$0xff] %v17722_v37  ;;  %v17749_v37 = vsel %vm588_vm1, %v7342_v54, %v7344_v7  ;;  %v4620_v50 = vcombine.high %v4616_v38, %v4616_v38  ;;  %22645 = vst [vmem:[#allocation316_spill] sm:$0xff] %v17768_v6  ;;  %v4618_v36 = vcombine.high %v4602_v15, %v4602_v15 }
 0x569   : > { %22633 = vst [vmem:[#allocation305_spill] sm:$0xff] %v17720_v32  ;;  %7477 = vrot.lane.b32.xlu0 %v17728_v10, %s13390_s26  ;;  %v17746_v32 = vsel %vm588_vm1, %v7341_v12, %v7342_v54  ;;  %22640 = vst [vmem:[#allocation312_spill] sm:$0xff] %v17749_v37  ;;  %v17763_v54 = vsel %vm588_vm1, %v7344_v7, %v7346_v34  ;;  %v5670_v9 = vrot.slane %v4616_v38, %v13526_v26 }
 0x56a   : > { %7479 = vrot.lane.b32.xlu1 %v17725_v41, %s13390_s26  ;;  %22639 = vst [vmem:[#allocation311_spill] sm:$0xff] %v17746_v32  ;;  %22643 = vst [vmem:[#allocation315_spill] sm:$0xff] %v17763_v54  ;;  %v5678_v34 = vrot.slane %v4620_v50, %v13526_v26  ;;  %v5674_v2 = vrot.slane %v4618_v36, %v13526_v26  ;;  %v5666_v30 = vrot.slane %v4602_v15, %v13526_v26 }
 0x56b   : > { %v17743_v43 = vpop.permute.xlu0 %8025  ;;  %v4670_v50 = vcombine.high %v17021_v0, %v17021_v0 }
 0x56c   : > { %v17741_v63 = vpop.permute.xlu1 %8027  ;;  %22638 = vst [vmem:[#allocation310_spill] sm:$0xff] %v17743_v43  ;;  %v6747_v36 = vcombine.low %v5674_v2, %v5678_v34  ;;  %v6746_v0 = vcombine.low %v5666_v30, %v5670_v9  ;;  %v22657_v2 = vrot.slane %v17768_v6, 2 }
 0x56d   : > { %22637 = vst [vmem:[#allocation309_spill] sm:$0xff] %v17741_v63  ;;  %7672 = vrot.lane.b32.xlu0 %v17749_v37, %s13389_s23  ;;  %v4628_v63 = vrot.slane %v16994_v20, %v22255_v42  ;;  %v7052_v20 = vsel %vm551_vm0, %v6927_v49, 0.0  ;;  %v17790_v37 = vcombine.low %v6703_v18, %v6710_v23 }
 0x56e   : > { %7670 = vrot.lane.b32.xlu1 %v17746_v32, %s13389_s23  ;;  %v7212_v49 = vrot.slane %v7052_v20, 1  ;;  %v6761_v30 = vrot.slane %v6747_v36, %v13534_v33 }
 0x56f   : > { %v17760_v43 = vpop.permute.xlu0 %7841  ;;  %v4636_v7 = vcombine.high %v4628_v63, %v4628_v63  ;;  %v4644_v15 = vrot.slane %v4628_v63, %v22255_v42  ;;  %v7208_v63 = vrot.slane %v17127_v53, 1 }
 0x570   : > { %v17758_v12 = vpop.permute.xlu1 %7843  ;;  %22642 = vst [vmem:[#allocation314_spill] sm:$0xff] %v17760_v43 }
 0x571   : > { %22641 = vst [vmem:[#allocation313_spill] sm:$0xff] %v17758_v12  ;;  %7877 = vrot.lane.b32.xlu0 %v17768_v6, %s13391_s27  ;;  %v7210_v12 = vrot.slane %v17768_v6, 1 }
 0x572   : > { %7674 = vrot.lane.b32.xlu1 %v17763_v54, %s13389_s23  ;;  %v17787_v54 = vsel %vm551_vm0, %v22649_v35, %v22648_v16  ;;  %v4658_v16 = vrot.slane %v4636_v7, %v22255_v42  ;;  %v4684_v7 = vrot.slane %v4670_v50, %v22255_v42  ;;  %v4666_v50 = vcombine.high %v4644_v15, %v4644_v15 }
 0x573   : > { %v17780_v51 = vpop.permute.xlu0 %7457  ;;  %22650 = vst [vmem:[#allocation319_spill] sm:$0xff] %v17787_v54  ;;  %v7206_v38 = vrot.slane %v17787_v54, 1  ;;  %v7351_v36 = vrot.slane %v17787_v54, 2 }
 0x574   : > { %v17778_v46 = vpop.permute.xlu1 %7847  ;;  %22647 = vst [vmem:[#allocation318_spill] sm:$0xff] %v17780_v51  ;;  %v7357_v51 = vrot.slane %v7052_v20, 2  ;;  %v22655_v20 = vrot.slane %v17790_v37, 7 }
 0x575   : > { %22646 = vst [vmem:[#allocation317_spill] sm:$0xff] %v17778_v46  ;;  %7873 = vrot.lane.b32.xlu0 %v17787_v54, %s13391_s27  ;;  %v17808_v46 = vsel %vm572_vm2, %v7210_v12, %v7212_v49 }
 0x576   : > { %8055 = vrot.lane.b32.xlu1 %v17708_v55, %s13392_s28  ;;  %22652 = vst [vmem:[#allocation321_spill] sm:$0xff] %v17808_v46  ;;  %v17825_v34 = vsel %vm551_vm0, 0.0, %v22655_v20  ;;  %v17830_v9 = vsel %vm588_vm1, %v22657_v2, %v7357_v51  ;;  %v6754_v20 = vrot.slane %v6746_v0, %v13534_v33  ;;  %v17850_v55 = vsel %vm572_vm2, %v7206_v38, %v7208_v63 }
 0x577   : > { %v17804_v23 = vpop.permute.xlu0 %7652  ;;  %22656 = vst [vmem:[#allocation324_spill] sm:$0xff] %v17825_v34  ;;  %22658 = vst [vmem:[#allocation325_spill] sm:$0xff] %v17830_v9  ;;  %v5690_v0 = vrot.slane %v4666_v50, %v13526_v26 }
 0x578   : > { %v17802_v35 = vpop.permute.xlu1 %7451  ;;  %22651 = vst [vmem:[#allocation320_spill] sm:$0xff] %v17804_v23  ;;  %v4668_v23 = vcombine.high %v4658_v16, %v4658_v16  ;;  %22662 = vst [vmem:[#allocation329_spill] sm:$0xff] %v17850_v55  ;;  %v6762_v39 = vcombine.low %v6754_v20, %v6761_v30  ;;  %v17866_v30 = vsel %vm572_vm2, %v7208_v63, %v7210_v12 }
 0x579   : > { %7489 = vrot.lane.b32.xlu0 %v17808_v46, %s13390_s26  ;;  %22665 = vst [vmem:[#allocation332_spill] sm:$0xff] %v17866_v30 }
 0x57a   : > { %7875 = vrot.lane.b32.xlu1 %v17127_v53, %s13391_s27  ;;  %v5694_v32 = vrot.slane %v4668_v23, %v13526_v26  ;;  %v5686_v23 = vrot.slane %v4658_v16, %v13526_v26  ;;  %v4700_v16 = vrot.slane %v4684_v7, %v22255_v42 }
 0x57b   : > { %v17819_v49 = vpop.permute.xlu0 %8037 }
 0x57c   : > { %v17817_v18 = vpop.permute.xlu1 %7455  ;;  %22654 = vst [vmem:[#allocation323_spill] sm:$0xff] %v17819_v49  ;;  %v7205_v49 = vrot.slane %v17688_v27, 1  ;;  %v6764_v56 = vcombine.low %v5690_v0, %v5694_v32 }
 0x57d   : > { %22653 = vst [vmem:[#allocation322_spill] sm:$0xff] %v17817_v18  ;;  %7684 = vrot.lane.b32.xlu0 %v17830_v9, %s13389_s23  ;;  %v4686_v18 = vcombine.high %v4684_v7, %v4684_v7  ;;  %v7353_v9 = vrot.slane %v17127_v53, 2  ;;  %v6934_v53 = vrot.slane %v6762_v39, 7  ;;  %v22670_v39 = vrot.slane %v17196_v48, 7 }
 0x57e   : > { %7879 = vrot.lane.b32.xlu1 %v17825_v34, %s13391_s27  ;;  %v17847_v43 = vsel %vm572_vm2, %v7205_v49, %v7206_v38  ;;  %v5682_v49 = vrot.slane %v4644_v15, %v13526_v26  ;;  %v7350_v15 = vrot.slane %v17688_v27, 2  ;;  %v6778_v32 = vrot.slane %v6764_v56, %v13534_v33 }
 0x57f   : > { %v17843_v2 = vpop.permute.xlu0 %7453  ;;  %22661 = vst [vmem:[#allocation328_spill] sm:$0xff] %v17847_v43  ;;  %v4714_v54 = vrot.slane %v4686_v18, %v22255_v42  ;;  %v17869_v20 = vsel %vm588_vm1, %v7351_v36, %v7353_v9  ;;  %v17887_v42 = vsel %vm551_vm0, %v22670_v39, %v6934_v53  ;;  %v4716_v7 = vcombine.high %v4700_v16, %v4700_v16 }
 0x580   : > { %v17841_v51 = vpop.permute.xlu1 %7646  ;;  %22660 = vst [vmem:[#allocation327_spill] sm:$0xff] %v17843_v2  ;;  %22666 = vst [vmem:[#allocation333_spill] sm:$0xff] %v17869_v20  ;;  %v6763_v18 = vcombine.low %v5682_v49, %v5686_v23  ;;  %v17882_v63 = vsel %vm588_vm1, %v7350_v15, %v7351_v36  ;;  %v7053_v23 = vsel %vm551_vm0, %v6934_v53, 0.0  ;;  %v22674_v15 = vrot.slane %v17768_v6, 2 }
 0x581   : > { %22659 = vst [vmem:[#allocation326_spill] sm:$0xff] %v17841_v51  ;;  %7485 = vrot.lane.b32.xlu0 %v17850_v55, %s13390_s26  ;;  %v4718_v50 = vcombine.high %v4714_v54, %v4714_v54  ;;  %22669 = vst [vmem:[#allocation336_spill] sm:$0xff] %v17882_v63  ;;  %v22676_v39 = vrot.slane %v17212_v40, 7  ;;  %v7219_v53 = vrot.slane %v17887_v42, 1  ;;  %v5738_v27 = vrot.slane %v4716_v7, %v13526_v26 }
 0x582   : > { %7483 = vrot.lane.b32.xlu1 %v17847_v43, %s13390_s26  ;;  %22671 = vst [vmem:[#allocation337_spill] sm:$0xff] %v17887_v42  ;;  %v6771_v0 = vrot.slane %v6763_v18, %v13534_v33  ;;  %v17904_v56 = vsel %vm588_vm1, %v7353_v9, %v22674_v15  ;;  %v7221_v18 = vrot.slane %v7053_v23, 1  ;;  %v5734_v9 = vrot.slane %v4714_v54, %v13526_v26 }
 0x583   : > { %v17863_v38 = vpop.permute.xlu0 %7648  ;;  %v5742_v36 = vrot.slane %v4718_v50, %v13526_v26  ;;  %22675 = vst [vmem:[#allocation340_spill] sm:$0xff] %v17904_v56  ;;  %v5730_v40 = vrot.slane %v4700_v16, %v13526_v26  ;;  %v7364_v7 = vrot.slane %v17887_v42, 2 }
 0x584   : > { %v17861_v2 = vpop.permute.xlu1 %7650  ;;  %22664 = vst [vmem:[#allocation331_spill] sm:$0xff] %v17863_v38  ;;  %v6779_v50 = vcombine.low %v6771_v0, %v6778_v32  ;;  %v7366_v0 = vrot.slane %v7053_v23, 2 }
 0x585   : > { %22663 = vst [vmem:[#allocation330_spill] sm:$0xff] %v17861_v2  ;;  %7680 = vrot.lane.b32.xlu0 %v17869_v20, %s13389_s23  ;;  %v22677_v20 = vrot.slane %v17790_v37, 7  ;;  %v6815_v15 = vcombine.low %v5738_v27, %v5742_v36  ;;  %v6814_v54 = vcombine.low %v5730_v40, %v5734_v9  ;;  %v7214_v9 = vrot.slane %v17825_v34, 1 }
 0x586   : > { %7487 = vrot.lane.b32.xlu1 %v17866_v30, %s13390_s26  ;;  %v6936_v32 = vrot.slane %v6779_v50, 7  ;;  %v7217_v50 = vrot.slane %v17242_v13, 1 }
 0x587   : > { %v17879_v12 = vpop.permute.xlu0 %7853  ;;  %v6829_v27 = vrot.slane %v6815_v15, %v13534_v33  ;;  %v6822_v40 = vrot.slane %v6814_v54, %v13534_v33 }
 0x588   : > { %v17877_v2 = vpop.permute.xlu1 %8031  ;;  %22668 = vst [vmem:[#allocation335_spill] sm:$0xff] %v17879_v12  ;;  %v17939_v36 = vsel %vm551_vm0, 0.0, %v6936_v32  ;;  %v22783_v12 = vld [vmem:[#allocation140_spill] sm:$0xff] }
 0x589   : > { %22667 = vst [vmem:[#allocation334_spill] sm:$0xff] %v17877_v2  ;;  %7885 = vrot.lane.b32.xlu0 %v17887_v42, %s13391_s27  ;;  %22684 = vst [vmem:[#allocation347_spill] sm:$0xff] %v17939_v36  ;;  %v6830_v6 = vcombine.low %v6822_v40, %v6829_v27  ;;  %v7359_v27 = vrot.slane %v17825_v34, 2  ;;  %v22848_v2 = vld [vmem:[#allocation57_spill] sm:$0xff] }
 0x58a   : > { %7678 = vrot.lane.b32.xlu1 %v17882_v63, %s13389_s23  ;;  %v17911_v63 = vsel %vm551_vm0, %v22677_v20, %v22676_v39  ;;  %v17926_v39 = vsel %vm572_vm2, %v7219_v53, %v7221_v18  ;;  %v17942_v18 = vsel %vm588_vm1, %v7364_v7, %v7366_v0 }
 0x58b   : > { %v17899_v48 = vpop.permute.xlu0 %8033  ;;  %22678 = vst [vmem:[#allocation341_spill] sm:$0xff] %v17911_v63  ;;  %22681 = vst [vmem:[#allocation344_spill] sm:$0xff] %v17926_v39  ;;  %v7215_v23 = vrot.slane %v17911_v63, 1  ;;  %v7360_v0 = vrot.slane %v17911_v63, 2 }
 0x58c   : > { %v17897_v49 = vpop.permute.xlu1 %8035  ;;  %22673 = vst [vmem:[#allocation339_spill] sm:$0xff] %v17899_v48  ;;  %22685 = vst [vmem:[#allocation348_spill] sm:$0xff] %v17942_v18 }
 0x58d   : > { %22672 = vst [vmem:[#allocation338_spill] sm:$0xff] %v17897_v49  ;;  %7881 = vrot.lane.b32.xlu0 %v17911_v63, %s13391_s27  ;;  %v17988_v63 = vsel %vm588_vm1, %v7359_v27, %v7360_v0 }
 0x58e   : > { %7682 = vrot.lane.b32.xlu1 %v17904_v56, %s13389_s23  ;;  %v17961_v56 = vsel %vm572_vm2, %v7215_v23, %v7217_v50  ;;  %22696 = vst [vmem:[#allocation359_spill] sm:$0xff] %v17988_v63 }
 0x58f   : > { %v17923_v20 = vpop.permute.xlu0 %7849  ;;  %22689 = vst [vmem:[#allocation352_spill] sm:$0xff] %v17961_v56 }
 0x590   : > { %v17921_v37 = vpop.permute.xlu1 %7851  ;;  %22680 = vst [vmem:[#allocation343_spill] sm:$0xff] %v17923_v20  ;;  %v22786_v20 = vld [vmem:[#allocation132_spill] sm:$0xff] }
 0x591   : > { %22679 = vst [vmem:[#allocation342_spill] sm:$0xff] %v17921_v37  ;;  %7497 = vrot.lane.b32.xlu0 %v17926_v39, %s13390_s26 }
 0x592   : > { %7883 = vrot.lane.b32.xlu1 %v17242_v13, %s13391_s27 }
 0x593   : > { %v17935_v16 = vpop.permute.xlu0 %7465 }
 0x594   : > { %v17933_v26 = vpop.permute.xlu1 %7855  ;;  %22683 = vst [vmem:[#allocation346_spill] sm:$0xff] %v17935_v16  ;;  %v7362_v16 = vrot.slane %v17242_v13, 2 }
 0x595   : > { %22682 = vst [vmem:[#allocation345_spill] sm:$0xff] %v17933_v26  ;;  %7692 = vrot.lane.b32.xlu0 %v17942_v18, %s13389_s23  ;;  %v17958_v26 = vsel %vm572_vm2, %v7214_v9, %v7215_v23  ;;  %v17973_v18 = vsel %vm572_vm2, %v7217_v50, %v7219_v53  ;;  %v6941_v23 = vrot.slane %v6830_v6, 7  ;;  %v22697_v53 = vrot.slane %v17278_v60, 7 }
 0x596   : > { %7887 = vrot.lane.b32.xlu1 %v17939_v36, %s13391_s27  ;;  %22688 = vst [vmem:[#allocation351_spill] sm:$0xff] %v17958_v26  ;;  %22692 = vst [vmem:[#allocation355_spill] sm:$0xff] %v17973_v18  ;;  %v17976_v9 = vsel %vm588_vm1, %v7360_v0, %v7362_v16  ;;  %v18005_v0 = vsel %vm588_vm1, %v7362_v16, %v7364_v7  ;;  %v22702_v60 = vrot.slane %v17284_v3, 7 }
 0x597   : > { %v17954_v42 = vpop.permute.xlu0 %7660  ;;  %22693 = vst [vmem:[#allocation356_spill] sm:$0xff] %v17976_v9  ;;  %v17993_v50 = vsel %vm551_vm0, %v22697_v53, %v6941_v23  ;;  %v7054_v6 = vsel %vm551_vm0, %v6941_v23, 0.0  ;;  %22701 = vst [vmem:[#allocation363_spill] sm:$0xff] %v18005_v0 }
 0x598   : > { %v17952_v15 = vpop.permute.xlu1 %7459  ;;  %22687 = vst [vmem:[#allocation350_spill] sm:$0xff] %v17954_v42  ;;  %22698 = vst [vmem:[#allocation360_spill] sm:$0xff] %v17993_v50  ;;  %v18010_v27 = vsel %vm551_vm0, %v6936_v32, %v22702_v60  ;;  %v7228_v53 = vrot.slane %v17993_v50, 1  ;;  %v7373_v32 = vrot.slane %v17993_v50, 2  ;;  %v7375_v16 = vrot.slane %v7054_v6, 2 }
 0x599   : > { %22686 = vst [vmem:[#allocation349_spill] sm:$0xff] %v17952_v15  ;;  %7493 = vrot.lane.b32.xlu0 %v17961_v56, %s13390_s26  ;;  %22703 = vst [vmem:[#allocation364_spill] sm:$0xff] %v18010_v27  ;;  %v7224_v3 = vrot.slane %v18010_v27, 1  ;;  %v7223_v60 = vrot.slane %v17939_v36, 1  ;;  %v22779_v15 = vld [vmem:[#allocation156_spill] sm:$0xff]  ;;  %vm11686_vm0 = vcmask 31744  }
 0x59a   : > { %7491 = vrot.lane.b32.xlu1 %v17958_v26, %s13390_s26 }
 0x59b   : > { %v17970_v54 = vpop.permute.xlu0 %8045 }
 0x59c   : > { %v17968_v33 = vpop.permute.xlu1 %7463  ;;  %22691 = vst [vmem:[#allocation354_spill] sm:$0xff] %v17970_v54 }
 0x59d   : > { %22690 = vst [vmem:[#allocation353_spill] sm:$0xff] %v17968_v33  ;;  %7688 = vrot.lane.b32.xlu0 %v17976_v9, %s13389_s23 }
 0x59e   : > { %7495 = vrot.lane.b32.xlu1 %v17973_v18, %s13390_s26 }
 0x59f   : > { %v17985_v13 = vpop.permute.xlu0 %7461 }
 0x5a0   : > { %v17983_v40 = vpop.permute.xlu1 %7654  ;;  %22695 = vst [vmem:[#allocation358_spill] sm:$0xff] %v17985_v13  ;;  %v7371_v13 = vrot.slane %v17311_v21, 2 }
 0x5a1   : > { %22694 = vst [vmem:[#allocation357_spill] sm:$0xff] %v17983_v40  ;;  %7893 = vrot.lane.b32.xlu0 %v17993_v50, %s13391_s27 }
 0x5a2   : > { %7686 = vrot.lane.b32.xlu1 %v17988_v63, %s13389_s23  ;;  %v7230_v63 = vrot.slane %v7054_v6, 1  ;;  %v7226_v6 = vrot.slane %v17311_v21, 1 }
 0x5a3   : > { %v18002_v34 = vpop.permute.xlu0 %7656 }
 0x5a4   : > { %v18000_v9 = vpop.permute.xlu1 %7658  ;;  %22700 = vst [vmem:[#allocation362_spill] sm:$0xff] %v18002_v34  ;;  %v18022_v7 = vsel %vm572_vm2, %v7228_v53, %v7230_v63  ;;  %v18036_v63 = vsel %vm572_vm2, %v7223_v60, %v7224_v3  ;;  %v18051_v34 = vsel %vm572_vm2, %v7226_v6, %v7228_v53  ;;  %v18054_v60 = vsel %vm572_vm2, %v7224_v3, %v7226_v6 }
 0x5a5   : > { %22699 = vst [vmem:[#allocation361_spill] sm:$0xff] %v18000_v9  ;;  %7889 = vrot.lane.b32.xlu0 %v18010_v27, %s13391_s27  ;;  %22706 = vst [vmem:[#allocation367_spill] sm:$0xff] %v18022_v7 }
 0x5a6   : > { %7690 = vrot.lane.b32.xlu1 %v18005_v0, %s13389_s23  ;;  %22709 = vst [vmem:[#allocation370_spill] sm:$0xff] %v18036_v63  ;;  %22713 = vst [vmem:[#allocation374_spill] sm:$0xff] %v18051_v34 }
 0x5a7   : > { %v18019_v42 = vpop.permute.xlu0 %7861  ;;  %22714 = vst [vmem:[#allocation375_spill] sm:$0xff] %v18054_v60 }
 0x5a8   : > { %v18017_v23 = vpop.permute.xlu1 %8039  ;;  %22705 = vst [vmem:[#allocation366_spill] sm:$0xff] %v18019_v42  ;;  %v18039_v42 = vsel %vm588_vm1, %v7373_v32, %v7375_v16  ;;  %v7369_v16 = vrot.slane %v18010_v27, 2  ;;  %v18082_v27 = vsel %vm588_vm1, %v7371_v13, %v7373_v32 }
 0x5a9   : > { %22704 = vst [vmem:[#allocation365_spill] sm:$0xff] %v18017_v23  ;;  %7505 = vrot.lane.b32.xlu0 %v18022_v7, %s13390_s26  ;;  %22710 = vst [vmem:[#allocation371_spill] sm:$0xff] %v18039_v42  ;;  %v3112_v23 = vld [vmem:[#allocation2 + $0x18] sm:$0xff] }
 0x5aa   : > { %7891 = vrot.lane.b32.xlu1 %v17311_v21, %s13391_s27  ;;  %v18071_v3 = vsel %vm588_vm1, %v7369_v16, %v7371_v13  ;;  %22721 = vst [vmem:[#allocation382_spill] sm:$0xff] %v18082_v27  ;;  %s12199_s27 = sshll.u32 %s23328_s25, 10 }
 0x5ab   : > { %v18033_v9 = vpop.permute.xlu0 %8041  ;;  %22718 = vst [vmem:[#allocation379_spill] sm:$0xff] %v18071_v3  ;;  %s19954_s12 = scalar_lea.vmem %s21693_s7, %s12199_s27 }
 0x5ac   : > { %v18031_v0 = vpop.permute.xlu1 %8043  ;;  %22708 = vst [vmem:[#allocation369_spill] sm:$0xff] %v18033_v9 }
 0x5ad   : > { %22707 = vst [vmem:[#allocation368_spill] sm:$0xff] %v18031_v0  ;;  %7700 = vrot.lane.b32.xlu0 %v18039_v42, %s13389_s23  ;;  %v7368_v42 = vrot.slane %v17939_v36, 2  ;;  %v3109_v0 = vld [vmem:[#allocation2] sm:$0xff] }
 0x5ae   : > { %7499 = vrot.lane.b32.xlu1 %v18036_v63, %s13390_s26 }
 0x5af   : > { %v18048_v33 = vpop.permute.xlu0 %7857  ;;  %v18068_v53 = vsel %vm588_vm1, %v7368_v42, %v7369_v16 }
 0x5b0   : > { %v18046_v50 = vpop.permute.xlu1 %7859  ;;  %22712 = vst [vmem:[#allocation373_spill] sm:$0xff] %v18048_v33  ;;  %22717 = vst [vmem:[#allocation378_spill] sm:$0xff] %v18068_v53 }
 0x5b1   : > { %22711 = vst [vmem:[#allocation372_spill] sm:$0xff] %v18046_v50  ;;  %7501 = vrot.lane.b32.xlu0 %v18054_v60, %s13390_s26 }
 0x5b2   : > { %7503 = vrot.lane.b32.xlu1 %v18051_v34, %s13390_s26 }
 0x5b3   : > { %v18065_v33 = vpop.permute.xlu0 %7473 }
 0x5b4   : > { %v18063_v50 = vpop.permute.xlu1 %7863  ;;  %22716 = vst [vmem:[#allocation377_spill] sm:$0xff] %v18065_v33 }
 0x5b5   : > { %22715 = vst [vmem:[#allocation376_spill] sm:$0xff] %v18063_v50  ;;  %7696 = vrot.lane.b32.xlu0 %v18071_v3, %s13389_s23 }
 0x5b6   : > { %7694 = vrot.lane.b32.xlu1 %v18068_v53, %s13389_s23 }
 0x5b7   : > { %v18079_v21 = vpop.permute.xlu0 %7668 }
 0x5b8   : > { %v18077_v6 = vpop.permute.xlu1 %7467  ;;  %22720 = vst [vmem:[#allocation381_spill] sm:$0xff] %v18079_v21 }
 0x5b9   : > { %22719 = vst [vmem:[#allocation380_spill] sm:$0xff] %v18077_v6  ;;  %8057 = vrot.lane.b32.xlu0 %v17728_v10, %s13392_s28  ;;  %v22759_v6 = vld [vmem:[#allocation50_spill] sm:$0xff] }
 0x5ba   : > { %7698 = vrot.lane.b32.xlu1 %v18082_v27, %s13389_s23  ;;  %v22847_v10 = vld [vmem:[#allocation46_spill] sm:$0xff] }
 0x5bb   : > { %v18090_v16 = vpop.permute.xlu0 %8053 }
 0x5bc   : > { %v18088_v42 = vpop.permute.xlu1 %7471  ;;  %22723 = vst [vmem:[#allocation384_spill] sm:$0xff] %v18090_v16 }
 0x5bd   : > { %22722 = vst [vmem:[#allocation383_spill] sm:$0xff] %v18088_v42  ;;  %8061 = vrot.lane.b32.xlu0 %v17691_v11, %s13392_s28 }
 0x5be   : > { %8059 = vrot.lane.b32.xlu1 %v17725_v41, %s13392_s28 }
 0x5bf   : > { %v18098_v13 = vpop.permute.xlu0 %7469 }
 0x5c0   : > { %v18096_v3 = vpop.permute.xlu1 %7662  ;;  %22725 = vst [vmem:[#allocation386_spill] sm:$0xff] %v18098_v13 }
 0x5c1   : > { %22724 = vst [vmem:[#allocation385_spill] sm:$0xff] %v18096_v3  ;;  %8065 = vrot.lane.b32.xlu0 %v17850_v55, %s13392_s28 }
 0x5c2   : > { %8063 = vrot.lane.b32.xlu1 %v17847_v43, %s13392_s28  ;;  %v22775_v43 = vld [vmem:[#allocation106_spill] sm:$0xff] }
 0x5c3   : > { %v18106_v27 = vpop.permute.xlu0 %7664 }
 0x5c4   : > { %v18104_v32 = vpop.permute.xlu1 %7666  ;;  %22727 = vst [vmem:[#allocation388_spill] sm:$0xff] %v18106_v27  ;;  %v22751_v27 = vld [vmem:[#allocation37_spill] sm:$0xff] }
 0x5c5   : > { %22726 = vst [vmem:[#allocation387_spill] sm:$0xff] %v18104_v32  ;;  %8069 = vrot.lane.b32.xlu0 %v17808_v46, %s13392_s28 }
 0x5c6   : > { %8067 = vrot.lane.b32.xlu1 %v17866_v30, %s13392_s28  ;;  %v22771_v30 = vld [vmem:[#allocation114_spill] sm:$0xff] }
 0x5c7   : > { %v18114_v36 = vpop.permute.xlu0 %7869 }
 0x5c8   : > { %v18112_v53 = vpop.permute.xlu1 %8047  ;;  %22729 = vst [vmem:[#allocation390_spill] sm:$0xff] %v18114_v36 }
 0x5c9   : > { %22728 = vst [vmem:[#allocation389_spill] sm:$0xff] %v18112_v53  ;;  %8073 = vrot.lane.b32.xlu0 %v17961_v56, %s13392_s28  ;;  %v22767_v53 = vld [vmem:[#allocation66_spill] sm:$0xff] }
 0x5ca   : > { %8071 = vrot.lane.b32.xlu1 %v17958_v26, %s13392_s28  ;;  %v22755_v26 = vld [vmem:[#allocation55_spill] sm:$0xff] }
 0x5cb   : > { %v18122_v21 = vpop.permute.xlu0 %8049 }
 0x5cc   : > { %v18120_v50 = vpop.permute.xlu1 %8051  ;;  %22731 = vst [vmem:[#allocation392_spill] sm:$0xff] %v18122_v21 }
 0x5cd   : > { %22730 = vst [vmem:[#allocation391_spill] sm:$0xff] %v18120_v50  ;;  %8077 = vrot.lane.b32.xlu0 %v17926_v39, %s13392_s28  ;;  %v22763_v50 = vld [vmem:[#allocation79_spill] sm:$0xff] }
 0x5ce   : > { %8075 = vrot.lane.b32.xlu1 %v17973_v18, %s13392_s28  ;;  %v22747_v18 = vld [vmem:[#allocation42_spill] sm:$0xff] }
 0x5cf   : > { %v18130_v32 = vpop.permute.xlu0 %7865 }
 0x5d0   : > { %v18128_v33 = vpop.permute.xlu1 %7867  ;;  %22733 = vst [vmem:[#allocation394_spill] sm:$0xff] %v18130_v32  ;;  %v22738_v32 = vld [vmem:[#allocation28_spill] sm:$0xff] }
 0x5d1   : > { %22732 = vst [vmem:[#allocation393_spill] sm:$0xff] %v18128_v33  ;;  %8081 = vrot.lane.b32.xlu0 %v18054_v60, %s13392_s28 }
 0x5d2   : > { %8079 = vrot.lane.b32.xlu1 %v18036_v63, %s13392_s28  ;;  %v22739_v63 = vld [vmem:[#allocation31_spill] sm:$0xff] }
 0x5d3   : > { %v18138_v42 = vpop.permute.xlu0 %7481 }
 0x5d4   : > { %v18136_v36 = vpop.permute.xlu1 %7871  ;;  %22735 = vst [vmem:[#allocation396_spill] sm:$0xff] %v18138_v42  ;;  %v22742_v42 = vld [vmem:[#allocation30_spill] sm:$0xff] }
 0x5d5   : > { %22734 = vst [vmem:[#allocation395_spill] sm:$0xff] %v18136_v36  ;;  %8085 = vrot.lane.b32.xlu0 %v18022_v7, %s13392_s28 }
 0x5d6   : > { %8083 = vrot.lane.b32.xlu1 %v18051_v34, %s13392_s28  ;;  %v22743_v34 = vld [vmem:[#allocation8_spill] sm:$0xff] }
 0x5d7   : > { %v18146_v33 = vpop.permute.xlu0 %7676 }
 0x5d8   : > { %v18144_v39 = vpop.permute.xlu1 %7475  ;;  %22737 = vst [vmem:[#allocation398_spill] sm:$0xff] %v18146_v33  ;;  %v22746_v33 = vld [vmem:[#allocation39_spill] sm:$0xff] }
 0x5d9   : > { %22736 = vst [vmem:[#allocation397_spill] sm:$0xff] %v18144_v39  ;;  %8153 = vrot.lane.b32.xlu0 %v22739_v63, %s13393_s29 }
 0x5da   : > { %8151 = vrot.lane.b32.xlu1 %v22738_v32, %s13393_s29 }
 0x5db   : > { %v18154_v36 = vpop.permute.xlu0 %7477 }
 0x5dc   : > { %v18152_v60 = vpop.permute.xlu1 %7479  ;;  %22741 = vst [vmem:[#allocation31_spill] sm:$0xff] %v18154_v36  ;;  %v22750_v36 = vld [vmem:[#allocation41_spill] sm:$0xff] }
 0x5dd   : > { %22740 = vst [vmem:[#allocation28_spill] sm:$0xff] %v18152_v60  ;;  %8157 = vrot.lane.b32.xlu0 %v22743_v34, %s13393_s29 }
 0x5de   : > { %8155 = vrot.lane.b32.xlu1 %v22742_v42, %s13393_s29 }
 0x5df   : > { %v18162_v39 = vpop.permute.xlu0 %7672 }
 0x5e0   : > { %v18160_v7 = vpop.permute.xlu1 %7670  ;;  %22745 = vst [vmem:[#allocation8_spill] sm:$0xff] %v18162_v39  ;;  %v22754_v39 = vld [vmem:[#allocation52_spill] sm:$0xff] }
 0x5e1   : > { %22744 = vst [vmem:[#allocation30_spill] sm:$0xff] %v18160_v7  ;;  %8161 = vrot.lane.b32.xlu0 %v22747_v18, %s13393_s29 }
 0x5e2   : > { %8159 = vrot.lane.b32.xlu1 %v22746_v33, %s13393_s29 }
 0x5e3   : > { %v18170_v60 = vpop.permute.xlu0 %7877 }
 0x5e4   : > { %v18168_v56 = vpop.permute.xlu1 %7674  ;;  %22749 = vst [vmem:[#allocation42_spill] sm:$0xff] %v18170_v60  ;;  %v22758_v60 = vld [vmem:[#allocation54_spill] sm:$0xff] }
 0x5e5   : > { %22748 = vst [vmem:[#allocation39_spill] sm:$0xff] %v18168_v56  ;;  %8165 = vrot.lane.b32.xlu0 %v22751_v27, %s13393_s29 }
 0x5e6   : > { %8163 = vrot.lane.b32.xlu1 %v22750_v36, %s13393_s29 }
 0x5e7   : > { %v18178_v7 = vpop.permute.xlu0 %7873 }
 0x5e8   : > { %v18176_v13 = vpop.permute.xlu1 %8055  ;;  %22753 = vst [vmem:[#allocation37_spill] sm:$0xff] %v18178_v7  ;;  %v22762_v7 = vld [vmem:[#allocation72_spill] sm:$0xff] }
 0x5e9   : > { %22752 = vst [vmem:[#allocation41_spill] sm:$0xff] %v18176_v13  ;;  %8169 = vrot.lane.b32.xlu0 %v22755_v26, %s13393_s29 }
 0x5ea   : > { %8167 = vrot.lane.b32.xlu1 %v22754_v39, %s13393_s29 }
 0x5eb   : > { %v18186_v56 = vpop.permute.xlu0 %7489 }
 0x5ec   : > { %v18184_v3 = vpop.permute.xlu1 %7875  ;;  %22757 = vst [vmem:[#allocation55_spill] sm:$0xff] %v18186_v56  ;;  %v22766_v56 = vld [vmem:[#allocation77_spill] sm:$0xff] }
 0x5ed   : > { %22756 = vst [vmem:[#allocation52_spill] sm:$0xff] %v18184_v3  ;;  %8173 = vrot.lane.b32.xlu0 %v22759_v6, %s13393_s29 }
 0x5ee   : > { %8171 = vrot.lane.b32.xlu1 %v22758_v60, %s13393_s29 }
 0x5ef   : > { %v18194_v13 = vpop.permute.xlu0 %7684 }
 0x5f0   : > { %v18192_v16 = vpop.permute.xlu1 %7879  ;;  %22761 = vst [vmem:[#allocation50_spill] sm:$0xff] %v18194_v13  ;;  %v22770_v13 = vld [vmem:[#allocation108_spill] sm:$0xff] }
 0x5f1   : > { %22760 = vst [vmem:[#allocation54_spill] sm:$0xff] %v18192_v16  ;;  %8177 = vrot.lane.b32.xlu0 %v22763_v50, %s13393_s29 }
 0x5f2   : > { %8175 = vrot.lane.b32.xlu1 %v22762_v7, %s13393_s29 }
 0x5f3   : > { %v18202_v3 = vpop.permute.xlu0 %7485 }
 0x5f4   : > { %v18200_v21 = vpop.permute.xlu1 %7483  ;;  %22765 = vst [vmem:[#allocation79_spill] sm:$0xff] %v18202_v3  ;;  %v22774_v3 = vld [vmem:[#allocation110_spill] sm:$0xff] }
 0x5f5   : > { %22764 = vst [vmem:[#allocation72_spill] sm:$0xff] %v18200_v21  ;;  %8181 = vrot.lane.b32.xlu0 %v22767_v53, %s13393_s29 }
 0x5f6   : > { %8179 = vrot.lane.b32.xlu1 %v22766_v56, %s13393_s29 }
 0x5f7   : > { %v18210_v16 = vpop.permute.xlu0 %7680 }
 0x5f8   : > { %v18208_v46 = vpop.permute.xlu1 %7487  ;;  %22769 = vst [vmem:[#allocation66_spill] sm:$0xff] %v18210_v16  ;;  %v22778_v16 = vld [vmem:[#allocation155_spill] sm:$0xff] }
 0x5f9   : > { %22768 = vst [vmem:[#allocation77_spill] sm:$0xff] %v18208_v46  ;;  %8185 = vrot.lane.b32.xlu0 %v22771_v30, %s13393_s29 }
 0x5fa   : > { %8183 = vrot.lane.b32.xlu1 %v22770_v13, %s13393_s29 }
 0x5fb   : > { %v18218_v21 = vpop.permute.xlu0 %7885 }
 0x5fc   : > { %v18216_v55 = vpop.permute.xlu1 %7678  ;;  %22773 = vst [vmem:[#allocation114_spill] sm:$0xff] %v18218_v21  ;;  %v22782_v21 = vld [vmem:[#allocation158_spill] sm:$0xff] }
 0x5fd   : > { %22772 = vst [vmem:[#allocation108_spill] sm:$0xff] %v18216_v55  ;;  %8189 = vrot.lane.b32.xlu0 %v22775_v43, %s13393_s29 }
 0x5fe   : > { %8187 = vrot.lane.b32.xlu1 %v22774_v3, %s13393_s29 }
 0x5ff   : > { %v18226_v46 = vpop.permute.xlu0 %7881 }
 0x600   : > { %v18224_v40 = vpop.permute.xlu1 %7682  ;;  %22777 = vst [vmem:[#allocation106_spill] sm:$0xff] %v18226_v46 }
 0x601   : > { %22776 = vst [vmem:[#allocation110_spill] sm:$0xff] %v18224_v40  ;;  %8193 = vrot.lane.b32.xlu0 %v22779_v15, %s13393_s29  ;;  %v3110_v40 = vld [vmem:[#allocation2 + $0x8] sm:$0xff] }
 0x602   : > { %8191 = vrot.lane.b32.xlu1 %v22778_v16, %s13393_s29  ;;  %v12733_v37 = vpack.c.bf16 %v3110_v40, %v3109_v0  ;;  %v22790_v0 = vld [vmem:[#allocation180_spill] sm:$0xff] }
 0x603   : > { %v18234_v55 = vpop.permute.xlu0 %7497 }
 0x604   : > { %v18232_v54 = vpop.permute.xlu1 %7883  ;;  %22781 = vst [vmem:[#allocation156_spill] sm:$0xff] %v18234_v55  ;;  %12734 = vmatprep.subr.bf16.mxu0 %v12733_v37  ;;  %12749 = vmatprep.subr.bf16.mxu1 %v12733_v37  ;;  %v22787_v55 = vld [vmem:[#allocation181_spill] sm:$0xff] }
 0x605   : > { %22780 = vst [vmem:[#allocation155_spill] sm:$0xff] %v18232_v54  ;;  %8197 = vrot.lane.b32.xlu0 %v22783_v12, %s13393_s29  ;;  %v3111_v54 = vld [vmem:[#allocation2 + $0x10] sm:$0xff]  ;;  %12736 = vmatpush3.bf16.msra.mxu0 %v12733_v37  ;;  %v22851_v12 = vld [vmem:[#allocation73_spill] sm:$0xff] }
 0x606   : > { %8195 = vrot.lane.b32.xlu1 %v22782_v21, %s13393_s29  ;;  %v12737_v11 = vpack.c.bf16 %v3112_v23, %v3111_v54  ;;  %12754 = vmatpush3.bf16.msra.mxu1 %v12733_v37  ;;  %v3115_v54 = vld [vmem:[#allocation2 + $0x30] sm:$0xff]  ;;  %v3116_v23 = vld [vmem:[#allocation2 + $0x38] sm:$0xff] }
 0x607   : > { %v18242_v9 = vpop.permute.xlu0 %7692 }
 0x608   : > { %v18240_v46 = vpop.permute.xlu1 %7887  ;;  %22785 = vst [vmem:[#allocation399_spill] sm:$0xff] %v18242_v9  ;;  %12738 = vmatprep.subr.bf16.mxu0 %v12737_v11  ;;  %12750 = vmatprep.subr.bf16.mxu1 %v12737_v11  ;;  %v3113_v9 = vld [vmem:[#allocation2 + $0x20] sm:$0xff] }
 0x609   : > { %22784 = vst [vmem:[#allocation158_spill] sm:$0xff] %v18240_v46  ;;  %8201 = vrot.lane.b32.xlu0 %v22787_v55, %s13393_s29  ;;  %v22791_v46 = vld [vmem:[#allocation170_spill] sm:$0xff]  ;;  %12740 = vmatpush3.bf16.msra.mxu0 %v12737_v11 }
 0x60a   : > { %8199 = vrot.lane.b32.xlu1 %v22786_v20, %s13393_s29  ;;  %v3114_v20 = vld [vmem:[#allocation2 + $0x28] sm:$0xff]  ;;  %12755 = vmatpush3.bf16.msra.mxu1 %v12737_v11 }
 0x60b   : > { %v18250_v40 = vpop.permute.xlu0 %7493  ;;  %v12741_v55 = vpack.c.bf16 %v3114_v20, %v3113_v9  ;;  %v22796_v20 = vld [vmem:[#allocation191_spill] sm:$0xff]  ;;  %v3117_v9 = vld [vmem:[#allocation2 + $0x40] sm:$0xff] }
 0x60c   : > { %v18248_v49 = vpop.permute.xlu1 %7491  ;;  %22789 = vst [vmem:[#allocation401_spill] sm:$0xff] %v18250_v40  ;;  %v12745_v40 = vpack.c.bf16 %v3116_v23, %v3115_v54 }
 0x60d   : > { %22788 = vst [vmem:[#allocation400_spill] sm:$0xff] %v18248_v49  ;;  %8205 = vrot.lane.b32.xlu0 %v22791_v46, %s13393_s29  ;;  %12742 = vmatprep.subr.bf16.mxu0 %v12741_v55  ;;  %v22846_v46 = vld [vmem:[#allocation48_spill] sm:$0xff] }
 0x60e   : > { %8203 = vrot.lane.b32.xlu1 %v22790_v0, %s13393_s29  ;;  %12751 = vmatprep.subr.bf16.mxu1 %v12741_v55 }
 0x60f   : > { %v18258_v37 = vpop.permute.xlu0 %7688  ;;  %12744 = vmatpush3.bf16.msra.mxu0 %v12741_v55  ;;  %12756 = vmatpush3.bf16.msra.mxu1 %v12741_v55  ;;  %v22799_v55 = vld [vmem:[#allocation23_spill] sm:$0xff] }
 0x610   : > { %v18256_v41 = vpop.permute.xlu1 %7495  ;;  %22793 = vst [vmem:[#allocation403_spill] sm:$0xff] %v18258_v37  ;;  %12746 = vmatprep.subr.bf16.mxu0 %v12745_v40  ;;  %12752 = vmatprep.subr.bf16.mxu1 %v12745_v40 }
 0x611   : > { %22792 = vst [vmem:[#allocation402_spill] sm:$0xff] %v18256_v41  ;;  %8209 = vrot.lane.b32.xlu0 %v16853_v62, %s13393_s29  ;;  %v22844_v62 = vld [vmem:[#allocation43_spill] sm:$0xff] }
 0x612   : > { %8207 = vrot.lane.b32.xlu1 %v16819_v44, %s13393_s29 }
 0x613   : > { %v18266_v11 = vpop.permute.xlu0 %7893  ;;  %12748 = vmatpush3.bf16.msra.mxu0 %v12745_v40  ;;  %12757 = vmatpush3.bf16.msra.mxu1 %v12745_v40  ;;  %v22802_v40 = vld [vmem:[#allocation14_spill] sm:$0xff] }
 0x614   : > { %v18264_v49 = vpop.permute.xlu1 %7686  ;;  %22795 = vst [vmem:[#allocation405_spill] sm:$0xff] %v18266_v11  ;;  %12507 = vmatprep.subr.mxu0 %v3117_v9  ;;  %12753 = vmatprep.subr.mxu1 %v3117_v9  ;;  %v22803_v11 = vld [vmem:[#allocation9_spill] sm:$0xff] }
 0x615   : > { %22794 = vst [vmem:[#allocation404_spill] sm:$0xff] %v18264_v49  ;;  %8213 = vrot.lane.b32.xlu0 %v22796_v20, %s13393_s29  ;;  %v22806_v49 = vld [vmem:[#allocation29_spill] sm:$0xff]  ;;  %v22843_v20 = vld [vmem:[#allocation44_spill] sm:$0xff] }
 0x616   : > { %8211 = vrot.lane.b32.xlu1 %v16850_v29, %s13393_s29 }
 0x617   : > { %v18274_v37 = vpop.permute.xlu0 %7889  ;;  %12508 = vmatpush3.msra.mxu0 %v3117_v9  ;;  %12758 = vmatpush3.msra.mxu1 %v3117_v9 }
 0x618   : > { %v18272_v41 = vpop.permute.xlu1 %7690  ;;  %22798 = vst [vmem:[#allocation407_spill] sm:$0xff] %v18274_v37 }
 0x619   : > { %22797 = vst [vmem:[#allocation406_spill] sm:$0xff] %v18272_v41  ;;  %8343 = vrot.lane.b32.xlu0 %v22799_v55, %s13394_s15 }
 0x61a   : > { %8215 = vrot.lane.b32.xlu1 %v17097_v57, %s13393_s29  ;;  %v22822_v57 = vld [vmem:[#allocation33_spill] sm:$0xff] }
 0x61b   : > { %v18282_v23 = vpop.permute.xlu0 %7505 }
 0x61c   : > { %v18280_v54 = vpop.permute.xlu1 %7891  ;;  %22801 = vst [vmem:[#allocation408_spill] sm:$0xff] %v18282_v23  ;;  %v22809_v23 = vld [vmem:[#allocation22_spill] sm:$0xff] }
 0x61d   : > { %22800 = vst [vmem:[#allocation23_spill] sm:$0xff] %v18280_v54  ;;  %8535 = vrot.lane.b32.xlu0 %v22803_v11, %s13395_s8 }
 0x61e   : > { %8345 = vrot.lane.b32.xlu1 %v22802_v40, %s13394_s15 }
 0x61f   : > { %v18290_v41 = vpop.permute.xlu0 %7700 }
 0x620   : > { %v18288_v37 = vpop.permute.xlu1 %7499  ;;  %22805 = vst [vmem:[#allocation9_spill] sm:$0xff] %v18290_v41  ;;  %v22812_v41 = vld [vmem:[#allocation24_spill] sm:$0xff] }
 0x621   : > { %22804 = vst [vmem:[#allocation14_spill] sm:$0xff] %v18288_v37  ;;  %8730 = vrot.lane.b32.xlu0 %v22738_v32, %s13396_s11 }
 0x622   : > { %8537 = vrot.lane.b32.xlu1 %v22806_v49, %s13395_s8  ;;  %v22813_v49 = vld [vmem:[#allocation27_spill] sm:$0xff] }
 0x623   : > { %v18298_v54 = vpop.permute.xlu0 %7501 }
 0x624   : > { %v18296_v9 = vpop.permute.xlu1 %7503  ;;  %22808 = vst [vmem:[#allocation409_spill] sm:$0xff] %v18298_v54  ;;  %v22816_v54 = vld [vmem:[#allocation15_spill] sm:$0xff] }
 0x625   : > { %22807 = vst [vmem:[#allocation29_spill] sm:$0xff] %v18296_v9  ;;  %8347 = vrot.lane.b32.xlu0 %v22809_v23, %s13394_s15 }
 0x626   : > { %8732 = vrot.lane.b32.xlu1 %v22739_v63, %s13396_s11 }
 0x627   : > { %v18306_v37 = vpop.permute.xlu0 %7696 }
 0x628   : > { %v18304_v11 = vpop.permute.xlu1 %7694  ;;  %22811 = vst [vmem:[#allocation410_spill] sm:$0xff] %v18306_v37  ;;  %v22819_v37 = vld [vmem:[#allocation13_spill] sm:$0xff] }
 0x629   : > { %22810 = vst [vmem:[#allocation22_spill] sm:$0xff] %v18304_v11  ;;  %8539 = vrot.lane.b32.xlu0 %v22813_v49, %s13395_s8 }
 0x62a   : > { %8349 = vrot.lane.b32.xlu1 %v22812_v41, %s13394_s15 }
 0x62b   : > { %v18314_v9 = vpop.permute.xlu0 %8057 }
 0x62c   : > { %v18312_v32 = vpop.permute.xlu1 %7698  ;;  %22815 = vst [vmem:[#allocation27_spill] sm:$0xff] %v18314_v9 }
 0x62d   : > { %22814 = vst [vmem:[#allocation24_spill] sm:$0xff] %v18312_v32  ;;  %8734 = vrot.lane.b32.xlu0 %v22742_v42, %s13396_s11 }
 0x62e   : > { %8541 = vrot.lane.b32.xlu1 %v22816_v54, %s13395_s8  ;;  %v22823_v54 = vld [vmem:[#allocation36_spill] sm:$0xff] }
 0x62f   : > { %v18322_v11 = vpop.permute.xlu0 %8061 }
 0x630   : > { %v18320_v63 = vpop.permute.xlu1 %8059  ;;  %22818 = vst [vmem:[#allocation411_spill] sm:$0xff] %v18322_v11  ;;  %v22826_v11 = vld [vmem:[#allocation40_spill] sm:$0xff] }
 0x631   : > { %22817 = vst [vmem:[#allocation15_spill] sm:$0xff] %v18320_v63  ;;  %8351 = vrot.lane.b32.xlu0 %v22819_v37, %s13394_s15 }
 0x632   : > { %8736 = vrot.lane.b32.xlu1 %v22743_v34, %s13396_s11 }
 0x633   : > { %v18330_v32 = vpop.permute.xlu0 %8065 }
 0x634   : > { %v18328_v49 = vpop.permute.xlu1 %8063  ;;  %22821 = vst [vmem:[#allocation412_spill] sm:$0xff] %v18330_v32  ;;  %v22829_v32 = vld [vmem:[#allocation20_spill] sm:$0xff] }
 0x635   : > { %22820 = vst [vmem:[#allocation13_spill] sm:$0xff] %v18328_v49  ;;  %8543 = vrot.lane.b32.xlu0 %v22823_v54, %s13395_s8 }
 0x636   : > { %8353 = vrot.lane.b32.xlu1 %v22822_v57, %s13394_s15 }
 0x637   : > { %v18338_v63 = vpop.permute.xlu0 %8069 }
 0x638   : > { %v18336_v42 = vpop.permute.xlu1 %8067  ;;  %22825 = vst [vmem:[#allocation36_spill] sm:$0xff] %v18338_v63  ;;  %v22832_v63 = vld [vmem:[#allocation32_spill] sm:$0xff] }
 0x639   : > { %22824 = vst [vmem:[#allocation33_spill] sm:$0xff] %v18336_v42  ;;  %8738 = vrot.lane.b32.xlu0 %v22746_v33, %s13396_s11 }
 0x63a   : > { %8545 = vrot.lane.b32.xlu1 %v22826_v11, %s13395_s8  ;;  %v22833_v11 = vld [vmem:[#allocation38_spill] sm:$0xff] }
 0x63b   : > { %v18346_v49 = vpop.permute.xlu0 %8073 }
 0x63c   : > { %v18344_v34 = vpop.permute.xlu1 %8071  ;;  %22828 = vst [vmem:[#allocation413_spill] sm:$0xff] %v18346_v49  ;;  %v22836_v49 = vld [vmem:[#allocation35_spill] sm:$0xff] }
 0x63d   : > { %22827 = vst [vmem:[#allocation40_spill] sm:$0xff] %v18344_v34  ;;  %8355 = vrot.lane.b32.xlu0 %v22829_v32, %s13394_s15 }
 0x63e   : > { %8740 = vrot.lane.b32.xlu1 %v22747_v18, %s13396_s11 }
 0x63f   : > { %v18354_v42 = vpop.permute.xlu0 %8077 }
 0x640   : > { %v18352_v54 = vpop.permute.xlu1 %8075  ;;  %22831 = vst [vmem:[#allocation414_spill] sm:$0xff] %v18354_v42  ;;  %v22839_v42 = vld [vmem:[#allocation34_spill] sm:$0xff] }
 0x641   : > { %22830 = vst [vmem:[#allocation20_spill] sm:$0xff] %v18352_v54  ;;  %8547 = vrot.lane.b32.xlu0 %v22833_v11, %s13395_s8 }
 0x642   : > { %8357 = vrot.lane.b32.xlu1 %v22832_v63, %s13394_s15 }
 0x643   : > { %v18362_v34 = vpop.permute.xlu0 %8081 }
 0x644   : > { %v18360_v33 = vpop.permute.xlu1 %8079  ;;  %22835 = vst [vmem:[#allocation38_spill] sm:$0xff] %v18362_v34  ;;  %v22840_v34 = vld [vmem:[#allocation45_spill] sm:$0xff] }
 0x645   : > { %22834 = vst [vmem:[#allocation32_spill] sm:$0xff] %v18360_v33  ;;  %8742 = vrot.lane.b32.xlu0 %v22750_v36, %s13396_s11 }
 0x646   : > { %8549 = vrot.lane.b32.xlu1 %v22836_v49, %s13395_s8  ;;  %v22841_v49 = vld [vmem:[#allocation49_spill] sm:$0xff] }
 0x647   : > { %v18370_v54 = vpop.permute.xlu0 %8085 }
 0x648   : > { %v18368_v18 = vpop.permute.xlu1 %8083  ;;  %22838 = vst [vmem:[#allocation415_spill] sm:$0xff] %v18370_v54  ;;  %v22842_v54 = vld [vmem:[#allocation53_spill] sm:$0xff] }
 0x649   : > { %22837 = vst [vmem:[#allocation35_spill] sm:$0xff] %v18368_v18  ;;  %8359 = vrot.lane.b32.xlu0 %v22839_v42, %s13394_s15 }
 0x64a   : > { %8744 = vrot.lane.b32.xlu1 %v22751_v27, %s13396_s11 }
 0x64b   : > { %v18378_v33 = vpop.permute.xlu0 %8153 }
 0x64c   : > { %v18376_v11 = vpop.permute.xlu1 %8151 }
 0x64d   : > { %8551 = vrot.lane.b32.xlu0 %v22841_v49, %s13395_s8 }
 0x64e   : > { %8361 = vrot.lane.b32.xlu1 %v22840_v34, %s13394_s15 }
 0x64f   : > { %v18386_v18 = vpop.permute.xlu0 %8157 }
 0x650   : > { %v18384_v36 = vpop.permute.xlu1 %8155 }
 0x651   : > { %8746 = vrot.lane.b32.xlu0 %v22754_v39, %s13396_s11 }
 0x652   : > { %8553 = vrot.lane.b32.xlu1 %v22842_v54, %s13395_s8  ;;  %v22845_v54 = vld [vmem:[#allocation51_spill] sm:$0xff] }
 0x653   : > { %v18394_v9 = vpop.permute.xlu0 %8161 }
 0x654   : > { %v18392_v27 = vpop.permute.xlu1 %8159 }
 0x655   : > { %8363 = vrot.lane.b32.xlu0 %v22843_v20, %s13394_s15 }
 0x656   : > { %8748 = vrot.lane.b32.xlu1 %v22755_v26, %s13396_s11 }
 0x657   : > { %v18402_v29 = vpop.permute.xlu0 %8165 }
 0x658   : > { %v18400_v49 = vpop.permute.xlu1 %8163 }
 0x659   : > { %8555 = vrot.lane.b32.xlu0 %v22845_v54, %s13395_s8 }
 0x65a   : > { %8365 = vrot.lane.b32.xlu1 %v22844_v62, %s13394_s15 }
 0x65b   : > { %v18410_v44 = vpop.permute.xlu0 %8169 }
 0x65c   : > { %v18408_v39 = vpop.permute.xlu1 %8167 }
 0x65d   : > { %8750 = vrot.lane.b32.xlu0 %v22758_v60, %s13396_s11 }
 0x65e   : > { %8557 = vrot.lane.b32.xlu1 %v22846_v46, %s13395_s8  ;;  %v22849_v46 = vld [vmem:[#allocation63_spill] sm:$0xff] }
 0x65f   : > { %v18418_v0 = vpop.permute.xlu0 %8173 }
 0x660   : > { %v18416_v26 = vpop.permute.xlu1 %8171 }
 0x661   : > { %8367 = vrot.lane.b32.xlu0 %v22847_v10, %s13394_s15 }
 0x662   : > { %8752 = vrot.lane.b32.xlu1 %v22759_v6, %s13396_s11 }
 0x663   : > { %v18426_v48 = vpop.permute.xlu0 %8177 }
 0x664   : > { %v18424_v54 = vpop.permute.xlu1 %8175 }
 0x665   : > { %8559 = vrot.lane.b32.xlu0 %v22849_v46, %s13395_s8 }
 0x666   : > { %8369 = vrot.lane.b32.xlu1 %v22848_v2, %s13394_s15  ;;  %v22854_v2 = vld [vmem:[#allocation47_spill] sm:$0xff] }
 0x667   : > { %v18434_v38 = vpop.permute.xlu0 %8181 }
 0x668   : > { %v18432_v60 = vpop.permute.xlu1 %8179  ;;  %22850 = vst [vmem:[#allocation34_spill] sm:$0xff] %v18434_v38  ;;  %v22857_v38 = vld [vmem:[#allocation56_spill] sm:$0xff] }
 0x669   : > { %8754 = vrot.lane.b32.xlu0 %v22762_v7, %s13396_s11 }
 0x66a   : > { %8561 = vrot.lane.b32.xlu1 %v22851_v12, %s13395_s8  ;;  %v22858_v12 = vld [vmem:[#allocation67_spill] sm:$0xff] }
 0x66b   : > { %v18442_v10 = vpop.permute.xlu0 %8185 }
 0x66c   : > { %v18440_v6 = vpop.permute.xlu1 %8183  ;;  %22853 = vst [vmem:[#allocation49_spill] sm:$0xff] %v18442_v10  ;;  %v22861_v10 = vld [vmem:[#allocation62_spill] sm:$0xff] }
 0x66d   : > { %22852 = vst [vmem:[#allocation45_spill] sm:$0xff] %v18440_v6  ;;  %8371 = vrot.lane.b32.xlu0 %v22854_v2, %s13394_s15 }
 0x66e   : > { %8756 = vrot.lane.b32.xlu1 %v22763_v50, %s13396_s11 }
 0x66f   : > { %v18450_v51 = vpop.permute.xlu0 %8189 }
 0x670   : > { %v18448_v46 = vpop.permute.xlu1 %8187  ;;  %22856 = vst [vmem:[#allocation44_spill] sm:$0xff] %v18450_v51 }
 0x671   : > { %22855 = vst [vmem:[#allocation53_spill] sm:$0xff] %v18448_v46  ;;  %8563 = vrot.lane.b32.xlu0 %v22858_v12, %s13395_s8 }
 0x672   : > { %8373 = vrot.lane.b32.xlu1 %v22857_v38, %s13394_s15 }
 0x673   : > { %v18458_v6 = vpop.permute.xlu0 %8193 }
 0x674   : > { %v18456_v7 = vpop.permute.xlu1 %8191  ;;  %22860 = vst [vmem:[#allocation51_spill] sm:$0xff] %v18458_v6  ;;  %v22878_v6 = vld [vmem:[#allocation86_spill] sm:$0xff] }
 0x675   : > { %22859 = vst [vmem:[#allocation43_spill] sm:$0xff] %v18456_v7  ;;  %8758 = vrot.lane.b32.xlu0 %v22766_v56, %s13396_s11 }
 0x676   : > { %8565 = vrot.lane.b32.xlu1 %v22861_v10, %s13395_s8 }
 0x677   : > { %v18466_v46 = vpop.permute.xlu0 %8197 }
 0x678   : > { %v18464_v50 = vpop.permute.xlu1 %8195  ;;  %22863 = vst [vmem:[#allocation63_spill] sm:$0xff] %v18466_v46 }
 0x679   : > { %22862 = vst [vmem:[#allocation48_spill] sm:$0xff] %v18464_v50  ;;  %8760 = vrot.lane.b32.xlu0 %v22767_v53, %s13396_s11 }
 0x67a   : > { %8223 = vrot.lane.b32.xlu1 %v17323_v8, %s13393_s29 }
 0x67b   : > { %v18474_v7 = vpop.permute.xlu0 %8201 }
 0x67c   : > { %v18472_v12 = vpop.permute.xlu1 %8199  ;;  %22865 = vst [vmem:[#allocation47_spill] sm:$0xff] %v18474_v7  ;;  %v22876_v7 = vld [vmem:[#allocation25_spill] sm:$0xff] }
 0x67d   : > { %22864 = vst [vmem:[#allocation73_spill] sm:$0xff] %v18472_v12  ;;  %8423 = vrot.lane.b32.xlu0 %v17251_v31, %s13394_s15  ;;  %v22877_v12 = vld [vmem:[#allocation5_spill] sm:$0xff] }
 0x67e   : > { %8225 = vrot.lane.b32.xlu1 %v17345_v1, %s13393_s29 }
 0x67f   : > { %v18482_v56 = vpop.permute.xlu0 %8205 }
 0x680   : > { %v18480_v10 = vpop.permute.xlu1 %8203  ;;  %22867 = vst [vmem:[#allocation62_spill] sm:$0xff] %v18482_v56 }
 0x681   : > { %22866 = vst [vmem:[#allocation67_spill] sm:$0xff] %v18480_v10  ;;  %8615 = vrot.lane.b32.xlu0 %v17427_v45, %s13395_s8  ;;  %v22872_v45 = vld [vmem:[#allocation16_spill] sm:$0xff] }
 0x682   : > { %8425 = vrot.lane.b32.xlu1 %v17390_v24, %s13394_s15  ;;  %v22880_v24 = vld [vmem:[#allocation91_spill] sm:$0xff] }
 0x683   : > { %v18490_v8 = vpop.permute.xlu0 %8209 }
 0x684   : > { %v18488_v53 = vpop.permute.xlu1 %8207  ;;  %22869 = vst [vmem:[#allocation417_spill] sm:$0xff] %v18490_v8 }
 0x685   : > { %22868 = vst [vmem:[#allocation416_spill] sm:$0xff] %v18488_v53  ;;  %8810 = vrot.lane.b32.xlu0 %v17461_v17, %s13396_s11  ;;  %v12820_v53 = vunpack.i.h.bf16 %v22872_v45 }
 0x686   : > { %8617 = vrot.lane.b32.xlu1 %v17464_v19, %s13395_s8  ;;  %v22874_v19 = vld [vmem:[#allocation17_spill] sm:$0xff] }
 0x687   : > { %v18498_v10 = vpop.permute.xlu0 %8213  ;;  %v8925_v46 = vsel %vm715_vm3, %v22877_v12, %v12820_v53 }
 0x688   : > { %v18496_v1 = vpop.permute.xlu1 %8211  ;;  %22871 = vst [vmem:[#allocation419_spill] sm:$0xff] %v18498_v10  ;;  %v22875_v10 = vld [vmem:[#allocation58_spill] sm:$0xff] }
 0x689   : > { %22870 = vst [vmem:[#allocation418_spill] sm:$0xff] %v18496_v1  ;;  %8812 = vrot.lane.b32.xlu0 %v17483_v28, %s13396_s11  ;;  %v12825_v1 = vunpack.i.h.bf16 %v22874_v19 }
 0x68a   : > { %8227 = vrot.lane.b32.xlu1 %v17342_v47, %s13393_s29  ;;  %v9055_v47 = vsel %vm727_vm5, %v22876_v7, %v22875_v10 }
 0x68b   : > { %v8344_v8 = vpop.permute.xlu0 %8343  ;;  %v8990_v19 = vsel %vm721_vm4, %v8925_v46, %v12825_v1 }
 0x68c   : > { %v18505_v56 = vpop.permute.xlu1 %8215 }
 0x68d   : > { %22873 = vst [vmem:[#allocation16_spill] sm:$0xff] %v18505_v56  ;;  %8427 = vrot.lane.b32.xlu0 %v16883_v52, %s13394_s15  ;;  %v9183_v56 = vsel %vm736_vm6, %v9055_v47, %v22878_v6  ;;  %v22879_v52 = vld [vmem:[#allocation64_spill] sm:$0xff] }
 0x68e   : > { %8229 = vrot.lane.b32.xlu1 %v17276_v4, %s13393_s29  ;;  %v9311_v4 = vsel %vm745_vm7, %v9183_v56, %v18376_v11  ;;  %v9056_v12 = vsel %vm727_vm5, %v8990_v19, %v22879_v52 }
 0x68f   : > { %v8536_v45 = vpop.permute.xlu0 %8535  ;;  %v9439_v7 = vsel %vm754_vm8, %v9311_v4, %v8344_v8  ;;  %v9184_v56 = vsel %vm736_vm6, %v9056_v12, %v22880_v24  ;;  %v22881_v4 = vld [vmem:[#allocation266_spill] sm:$0xff] }
 0x690   : > { %v8346_v50 = vpop.permute.xlu1 %8345  ;;  %v9567_v53 = vsel %vm763_vm9, %v9439_v7, %v8536_v45  ;;  %v22883_v7 = vld [vmem:[#allocation61_spill] sm:$0xff] }
 0x691   : > { %8619 = vrot.lane.b32.xlu0 %v17443_v5, %s13395_s8  ;;  %v9057_v12 = vsel %vm727_vm5, %v8990_v19, %v22883_v7 }
 0x692   : > { %8429 = vrot.lane.b32.xlu1 %v17358_v61, %s13394_s15  ;;  %v9312_v61 = vsel %vm745_vm7, %v9184_v56, %v18378_v33  ;;  %v22886_v56 = vld [vmem:[#allocation60_spill] sm:$0xff] }
 0x693   : > { %v8731_v47 = vpop.permute.xlu0 %8730  ;;  %v9440_v8 = vsel %vm754_vm8, %v9312_v61, %v8346_v50 }
 0x694   : > { %v8538_v51 = vpop.permute.xlu1 %8537  ;;  %v9695_v31 = vsel %vm772_vm10, %v9567_v53, %v8731_v47  ;;  %v22885_v47 = vld [vmem:[#allocation59_spill] sm:$0xff] }
 0x695   : > { %8814 = vrot.lane.b32.xlu0 %v22881_v4, %s13396_s11  ;;  %12509 = vmatprep.mubr.msk.f32.mxu0 %vm787_vm11, %v9695_v31  ;;  %v9568_v1 = vsel %vm763_vm9, %v9440_v8, %v8538_v51  ;;  %v22884_v31 = vld [vmem:[#allocation90_spill] sm:$0xff] }
 0x696   : > { %8621 = vrot.lane.b32.xlu1 %v17410_v58, %s13395_s8  ;;  %v22882_v58 = vld [vmem:[#allocation260_spill] sm:$0xff]  ;;  %v9185_v51 = vsel %vm736_vm6, %v9057_v12, %v22884_v31  ;;  %v22887_v8 = vld [vmem:[#allocation26_spill] sm:$0xff] }
 0x697   : > { %v8348_v46 = vpop.permute.xlu0 %8347  ;;  %v9313_v53 = vsel %vm745_vm7, %v9185_v51, %v18384_v36  ;;  %v9058_v19 = vsel %vm727_vm5, %v22887_v8, %v22886_v56  ;;  %v22888_v12 = vld [vmem:[#allocation74_spill] sm:$0xff]  ;;  %v22890_v8 = vld [vmem:[#allocation101_spill] sm:$0xff] }
 0x698   : > { %v8733_v5 = vpop.permute.xlu1 %8732  ;;  %v9186_v38 = vsel %vm736_vm6, %v9058_v19, %v22888_v12 }
 0x699   : > { %v9696_v45 = vsel %vm772_vm10, %v9568_v1, %v8733_v5  ;;  %8816 = vrot.lane.b32.xlu0 %v22882_v58, %s13396_s11 }
 0x69a   : > { %8231 = vrot.lane.b32.xlu1 %v17461_v17, %s13393_s29  ;;  %12510 = vmatmul.mubr.msk.f32.vlgmr.msra.gmra.mrb[8].mxu0 %vm787_vm11, %v9696_v45  ;;  %v9441_v17 = vsel %vm754_vm8, %v9313_v53, %v8348_v46  ;;  %v22889_v46 = vld [vmem:[#allocation97_spill] sm:$0xff] }
 0x69b   : > { %v8540_v50 = vpop.permute.xlu0 %8539 }
 0x69c   : > { %v8350_v61 = vpop.permute.xlu1 %8349  ;;  %v9569_v1 = vsel %vm763_vm9, %v9441_v17, %v8540_v50  ;;  %v22891_v50 = vld [vmem:[#allocation69_spill] sm:$0xff] }
 0x69d   : > { %8375 = vrot.lane.b32.xlu0 %v22885_v47, %s13394_s15  ;;  %v8926_v17 = vsel %vm715_vm3, %v22799_v55, %v22891_v50 }
 0x69e   : > { %8233 = vrot.lane.b32.xlu1 %v17483_v28, %s13393_s29  ;;  %v9314_v28 = vsel %vm745_vm7, %v9186_v38, %v18386_v18  ;;  %v22892_v38 = vld [vmem:[#allocation76_spill] sm:$0xff] }
 0x69f   : > { %v8735_v45 = vpop.permute.xlu0 %8734  ;;  %v9442_v53 = vsel %vm754_vm8, %v9314_v28, %v8350_v61  ;;  %v8991_v47 = vsel %vm721_vm4, %v8926_v17, %v22892_v38  ;;  %v22894_v61 = vld [vmem:[#allocation80_spill] sm:$0xff]  ;;  %v22897_v38 = vld [vmem:[#allocation71_spill] sm:$0xff] }
 0x6a0   : > { %v8542_v5 = vpop.permute.xlu1 %8541  ;;  %v9697_v51 = vsel %vm772_vm10, %v9569_v1, %v8735_v45  ;;  %v9059_v55 = vsel %vm727_vm5, %v8991_v47, %v22875_v10 }
 0x6a1   : > { %12512 = vmatprep.mubr.msk.f32.mxu0 %vm787_vm11, %v9697_v51  ;;  %8567 = vrot.lane.b32.xlu0 %v22890_v8, %s13395_s8  ;;  %v9570_v19 = vsel %vm763_vm9, %v9442_v53, %v8542_v5  ;;  %v22893_v51 = vld [vmem:[#allocation112_spill] sm:$0xff]  ;;  %v8927_v5 = vsel %vm715_vm3, %v22802_v40, %v22894_v61  ;;  %v9187_v17 = vsel %vm736_vm6, %v9059_v55, %v22878_v6  ;;  %v22898_v61 = vld [vmem:[#allocation82_spill] sm:$0xff] }
 0x6a2   : > { %8377 = vrot.lane.b32.xlu1 %v22889_v46, %s13394_s15  ;;  %v22895_v8 = vld [vmem:[#allocation84_spill] sm:$0xff] }
 0x6a3   : > { %v18578_v45 = vpop.permute.xlu0 %8351  ;;  %v8992_v50 = vsel %vm721_vm4, %v8927_v5, %v22895_v8  ;;  %v22899_v8 = vld [vmem:[#allocation94_spill] sm:$0xff] }
 0x6a4   : > { %v8737_v1 = vpop.permute.xlu1 %8736  ;;  %v9060_v40 = vsel %vm727_vm5, %v8992_v50, %v22879_v52 }
 0x6a5   : > { %v9698_v46 = vsel %vm772_vm10, %v9570_v19, %v8737_v1  ;;  %8762 = vrot.lane.b32.xlu0 %v22770_v13, %s13396_s11 }
 0x6a6   : > { %8569 = vrot.lane.b32.xlu1 %v22893_v51, %s13395_s8  ;;  %12513 = vmatmul.mubr.msk.f32.gmra.mrb[10].mxu0 %vm787_vm11, %v9698_v46  ;;  %v9315_v46 = vsel %vm745_vm7, %v9187_v17, %v18376_v11  ;;  %v9188_v11 = vsel %vm736_vm6, %v9060_v40, %v22880_v24  ;;  %v8928_v24 = vsel %vm715_vm3, %v22809_v23, %v22897_v38  ;;  %v22900_v17 = vld [vmem:[#allocation105_spill] sm:$0xff]  ;;  %v22901_v23 = vld [vmem:[#allocation68_spill] sm:$0xff]  ;;  %v22903_v38 = vld [vmem:[#allocation103_spill] sm:$0xff] }
 0x6a7   : > { %v8544_v53 = vpop.permute.xlu0 %8543  ;;  %v9443_v13 = vsel %vm754_vm8, %v9315_v46, %v18578_v45  ;;  %v8929_v46 = vsel %vm715_vm3, %v22812_v41, %v22901_v23  ;;  %v22905_v23 = vld [vmem:[#allocation116_spill] sm:$0xff] }
 0x6a8   : > { %v18593_v28 = vpop.permute.xlu1 %8353  ;;  %v9571_v10 = vsel %vm763_vm9, %v9443_v13, %v8544_v53 }
 0x6a9   : > { %8764 = vrot.lane.b32.xlu0 %v22771_v30, %s13396_s11  ;;  %v22896_v30 = vld [vmem:[#allocation96_spill] sm:$0xff] }
 0x6aa   : > { %8235 = vrot.lane.b32.xlu1 %v22881_v4, %s13393_s29  ;;  %v9316_v4 = vsel %vm745_vm7, %v9188_v11, %v18378_v33  ;;  %v22902_v11 = vld [vmem:[#allocation70_spill] sm:$0xff] }
 0x6ab   : > { %v8739_v6 = vpop.permute.xlu0 %8738  ;;  %v9444_v52 = vsel %vm754_vm8, %v9316_v4, %v18593_v28 }
 0x6ac   : > { %v18610_v19 = vpop.permute.xlu1 %8545  ;;  %v9699_v1 = vsel %vm772_vm10, %v9571_v10, %v8739_v6 }
 0x6ad   : > { %12515 = vmatprep.mubr.msk.f32.mxu0 %vm787_vm11, %v9699_v1  ;;  %8379 = vrot.lane.b32.xlu0 %v22896_v30, %s13394_s15  ;;  %v9572_v51 = vsel %vm763_vm9, %v9444_v52, %v18610_v19  ;;  %v8994_v1 = vsel %vm721_vm4, %v8929_v46, %v22902_v11 }
 0x6ae   : > { %8237 = vrot.lane.b32.xlu1 %v22882_v58, %s13393_s29  ;;  %v8993_v58 = vsel %vm721_vm4, %v8928_v24, %v22898_v61  ;;  %v9062_v41 = vsel %vm727_vm5, %v8994_v1, %v22886_v56  ;;  %v22906_v56 = vld [vmem:[#allocation88_spill] sm:$0xff] }
 0x6af   : > { %v8356_v33 = vpop.permute.xlu0 %8355  ;;  %v9061_v13 = vsel %vm727_vm5, %v8993_v58, %v22883_v7 }
 0x6b0   : > { %v18629_v55 = vpop.permute.xlu1 %8740  ;;  %v9189_v4 = vsel %vm736_vm6, %v9061_v13, %v22884_v31  ;;  %v9190_v31 = vsel %vm736_vm6, %v9062_v41, %v22888_v12  ;;  %v9066_v13 = vsel %vm727_vm5, %v8994_v1, %v22906_v56  ;;  %v22907_v12 = vld [vmem:[#allocation92_spill] sm:$0xff] }
 0x6b1   : > { %v9700_v5 = vsel %vm772_vm10, %v9572_v51, %v18629_v55  ;;  %8571 = vrot.lane.b32.xlu0 %v22900_v17, %s13395_s8  ;;  %v9317_v52 = vsel %vm745_vm7, %v9189_v4, %v18384_v36  ;;  %v9065_v11 = vsel %vm727_vm5, %v8993_v58, %v22907_v12 }
 0x6b2   : > { %8381 = vrot.lane.b32.xlu1 %v22899_v8, %s13394_s15  ;;  %12516 = vmatmul.mubr.msk.f32.gmra.mrb[12].mxu0 %vm787_vm11, %v9700_v5  ;;  %v9445_v24 = vsel %vm754_vm8, %v9317_v52, %v8356_v33  ;;  %v22904_v5 = vld [vmem:[#allocation65_spill] sm:$0xff] }
 0x6b3   : > { %v8548_v10 = vpop.permute.xlu0 %8547  ;;  %v9063_v36 = vsel %vm727_vm5, %v8991_v47, %v22904_v5  ;;  %v22908_v52 = vld [vmem:[#allocation257_spill] sm:$0xff] }
 0x6b4   : > { %v8358_v40 = vpop.permute.xlu1 %8357  ;;  %v9573_v7 = vsel %vm763_vm9, %v9445_v24, %v8548_v10  ;;  %v9191_v46 = vsel %vm736_vm6, %v9063_v36, %v22905_v23 }
 0x6b5   : > { %8766 = vrot.lane.b32.xlu0 %v22774_v3, %s13396_s11  ;;  %v9318_v3 = vsel %vm745_vm7, %v9190_v31, %v18386_v18  ;;  %v9319_v47 = vsel %vm745_vm7, %v9191_v46, %v18392_v27  ;;  %v22909_v18 = vld [vmem:[#allocation93_spill] sm:$0xff] }
 0x6b6   : > { %8573 = vrot.lane.b32.xlu1 %v22903_v38, %s13395_s8  ;;  %v9446_v4 = vsel %vm754_vm8, %v9318_v3, %v8358_v40  ;;  %v9064_v38 = vsel %vm727_vm5, %v8992_v50, %v22909_v18  ;;  %v9447_v1 = vsel %vm754_vm8, %v9319_v47, %v18578_v45  ;;  %v22911_v31 = vld [vmem:[#allocation109_spill] sm:$0xff]  ;;  %v22914_v47 = vld [vmem:[#allocation274_spill] sm:$0xff] }
 0x6b7   : > { %v8743_v61 = vpop.permute.xlu0 %8742  ;;  %v9575_v50 = vsel %vm763_vm9, %v9447_v1, %v8544_v53 }
 0x6b8   : > { %v8550_v51 = vpop.permute.xlu1 %8549  ;;  %v9701_v17 = vsel %vm772_vm10, %v9573_v7, %v8743_v61 }
 0x6b9   : > { %12518 = vmatprep.mubr.msk.f32.mxu0 %vm787_vm11, %v9701_v17  ;;  %8431 = vrot.lane.b32.xlu0 %v22908_v52, %s13394_s15  ;;  %v9574_v58 = vsel %vm763_vm9, %v9446_v4, %v8550_v51  ;;  %v22912_v17 = vld [vmem:[#allocation120_spill] sm:$0xff]  ;;  %v9703_v4 = vsel %vm772_vm10, %v9575_v50, %v8739_v6 }
 0x6ba   : > { %8768 = vrot.lane.b32.xlu1 %v22775_v43, %s13396_s11  ;;  %v22910_v43 = vld [vmem:[#allocation100_spill] sm:$0xff]  ;;  %v9192_v46 = vsel %vm736_vm6, %v9064_v38, %v22912_v17 }
 0x6bb   : > { %v8930_v24 = vsel %vm715_vm3, %v22819_v37, %v22910_v43  ;;  %v18688_v7 = vpop.permute.xlu0 %8359  ;;  %v22913_v37 = vld [vmem:[#allocation119_spill] sm:$0xff]  ;;  %v9320_v45 = vsel %vm745_vm7, %v9192_v46, %v18394_v9 }
 0x6bc   : > { %v8745_v41 = vpop.permute.xlu1 %8744  ;;  %v18692_v36 = vsel %vm721_vm4, %v8930_v24, %v22911_v31  ;;  %v9193_v43 = vsel %vm736_vm6, %v9065_v11, %v22913_v37  ;;  %v22915_v24 = vld [vmem:[#allocation107_spill] sm:$0xff]  ;;  %v9448_v1 = vsel %vm754_vm8, %v9320_v45, %v18593_v28 }
 0x6bd   : > { %v9702_v3 = vsel %vm772_vm10, %v9574_v58, %v8745_v41  ;;  %v9194_v38 = vsel %vm736_vm6, %v9066_v13, %v22915_v24  ;;  %v9321_v53 = vsel %vm745_vm7, %v9193_v43, %v18400_v49  ;;  %8623 = vrot.lane.b32.xlu0 %v17565_v25, %s13395_s8  ;;  %v9067_v11 = vsel %vm727_vm5, %v18692_v36, %v22904_v5  ;;  %v22916_v58 = vld [vmem:[#allocation111_spill] sm:$0xff] }
 0x6be   : > { %8433 = vrot.lane.b32.xlu1 %v22914_v47, %s13394_s15  ;;  %12519 = vmatmul.mubr.msk.f32.gmra.mrb[14].mxu0 %vm787_vm11, %v9702_v3  ;;  %v8931_v6 = vsel %vm715_vm3, %v22822_v57, %v22916_v58  ;;  %v9576_v13 = vsel %vm763_vm9, %v9448_v1, %v18610_v19  ;;  %v9449_v31 = vsel %vm754_vm8, %v9321_v53, %v8356_v33  ;;  %v22917_v25 = vld [vmem:[#allocation115_spill] sm:$0xff]  ;;  %v22920_v58 = vld [vmem:[#allocation113_spill] sm:$0xff] }
 0x6bf   : > { %12521 = vmatprep.mubr.msk.f32.mxu0 %vm787_vm11, %v9703_v4  ;;  %v18726_v28 = vpop.permute.xlu0 %8551  ;;  %v18730_v50 = vsel %vm721_vm4, %v8931_v6, %v22917_v25  ;;  %v9195_v5 = vsel %vm736_vm6, %v9067_v11, %v22905_v23  ;;  %v9577_v3 = vsel %vm763_vm9, %v9449_v31, %v8548_v10  ;;  %v9704_v57 = vsel %vm772_vm10, %v9576_v13, %v18629_v55  ;;  %v22921_v31 = vld [vmem:[#allocation269_spill] sm:$0xff]  ;;  %v22922_v25 = vld [vmem:[#allocation283_spill] sm:$0xff] }
 0x6c0   : > { %v18724_v46 = vpop.permute.xlu1 %8361  ;;  %v9323_v19 = vsel %vm745_vm7, %v9195_v5, %v18392_v27  ;;  %v9322_v33 = vsel %vm745_vm7, %v9194_v38, %v18402_v29  ;;  %v9705_v43 = vsel %vm772_vm10, %v9577_v3, %v8743_v61  ;;  %v9068_v27 = vsel %vm727_vm5, %v18730_v50, %v22909_v18  ;;  %v22918_v18 = vld [vmem:[#allocation202_spill] sm:$0xff] }
 0x6c1   : > { %v9450_v23 = vsel %vm754_vm8, %v9322_v33, %v8358_v40  ;;  %v9451_v10 = vsel %vm754_vm8, %v9323_v19, %v18688_v7  ;;  %8818 = vrot.lane.b32.xlu0 %v17600_v59, %s13396_s11  ;;  %v9196_v45 = vsel %vm736_vm6, %v9068_v27, %v22912_v17  ;;  %v22919_v17 = vld [vmem:[#allocation104_spill] sm:$0xff]  ;;  %v22924_v33 = vld [vmem:[#allocation102_spill] sm:$0xff] }
 0x6c2   : > { %8625 = vrot.lane.b32.xlu1 %v17603_v22, %s13395_s8  ;;  %12522 = vmatmul.mubr.msk.f32.gmra.mrb[16].mxu0 %vm787_vm11, %v9704_v57  ;;  %v9578_v22 = vsel %vm763_vm9, %v9450_v23, %v8550_v51  ;;  %v9579_v55 = vsel %vm763_vm9, %v9451_v10, %v18726_v28  ;;  %v9324_v53 = vsel %vm745_vm7, %v9196_v45, %v18394_v9  ;;  %v22925_v27 = vld [vmem:[#allocation278_spill] sm:$0xff] }
 0x6c3   : > { %12524 = vmatprep.mubr.msk.f32.mxu0 %vm787_vm11, %v9705_v43  ;;  %v8747_v40 = vpop.permute.xlu0 %8746  ;;  %v9706_v4 = vsel %vm772_vm10, %v9578_v22, %v8745_v41  ;;  %v9452_v51 = vsel %vm754_vm8, %v9324_v53, %v18724_v46  ;;  %v8932_v41 = vsel %vm715_vm3, %v22829_v32, %v22919_v17  ;;  %v22923_v32 = vld [vmem:[#allocation98_spill] sm:$0xff] }
 0x6c4   : > { %v18757_v61 = vpop.permute.xlu1 %8553  ;;  %v9707_v38 = vsel %vm772_vm10, %v9579_v55, %v8747_v40  ;;  %v8997_v6 = vsel %vm721_vm4, %v8932_v41, %v22920_v58  ;;  %v8933_v5 = vsel %vm715_vm3, %v22832_v63, %v22923_v32  ;;  %v22926_v63 = vld [vmem:[#allocation288_spill] sm:$0xff]  ;;  %v22933_v32 = vld [vmem:[#allocation126_spill] sm:$0xff] }
 0x6c5   : > { %8435 = vrot.lane.b32.xlu0 %v22918_v18, %s13394_s15  ;;  %v9580_v9 = vsel %vm763_vm9, %v9452_v51, %v18757_v61  ;;  %v9069_v3 = vsel %vm727_vm5, %v8997_v6, %v22907_v12  ;;  %v8998_v43 = vsel %vm721_vm4, %v8933_v5, %v22924_v33  ;;  %v22928_v51 = vld [vmem:[#allocation141_spill] sm:$0xff]  ;;  %v8934_v5 = vsel %vm715_vm3, %v22839_v42, %v22933_v32 }
 0x6c6   : > { %8820 = vrot.lane.b32.xlu1 %v17621_v14, %s13396_s11  ;;  %12525 = vmatmul.mubr.msk.f32.gmra.mrb[18].mxu0 %vm787_vm11, %v9706_v4  ;;  %v9197_v23 = vsel %vm736_vm6, %v9069_v3, %v22913_v37  ;;  %v9070_v12 = vsel %vm727_vm5, %v8998_v43, %v22906_v56  ;;  %v22929_v56 = vld [vmem:[#allocation118_spill] sm:$0xff] }
 0x6c7   : > { %12527 = vmatprep.mubr.msk.f32.mxu0 %vm787_vm11, %v9707_v38  ;;  %v8364_v11 = vpop.permute.xlu0 %8363  ;;  %v9325_v10 = vsel %vm745_vm7, %v9197_v23, %v18400_v49  ;;  %v9198_v37 = vsel %vm736_vm6, %v9070_v12, %v22915_v24  ;;  %v22927_v38 = vld [vmem:[#allocation95_spill] sm:$0xff]  ;;  %v9074_v24 = vsel %vm727_vm5, %v8998_v43, %v22929_v56  ;;  %v22934_v23 = vld [vmem:[#allocation133_spill] sm:$0xff]  ;;  %v22936_v12 = vld [vmem:[#allocation146_spill] sm:$0xff] }
 0x6c8   : > { %v18778_v1 = vpop.permute.xlu1 %8748  ;;  %v9453_v22 = vsel %vm754_vm8, %v9325_v10, %v8364_v11  ;;  %v9071_v49 = vsel %vm727_vm5, %v18692_v36, %v22927_v38  ;;  %v9326_v41 = vsel %vm745_vm7, %v9198_v37, %v18402_v29  ;;  %v22932_v29 = vld [vmem:[#allocation122_spill] sm:$0xff]  ;;  %v18843_v10 = vsel %vm721_vm4, %v8934_v5, %v22934_v23 }
 0x6c9   : > { %v9708_v13 = vsel %vm772_vm10, %v9580_v9, %v18778_v1  ;;  %8627 = vrot.lane.b32.xlu0 %v22922_v25, %s13395_s8  ;;  %v9199_v17 = vsel %vm736_vm6, %v9071_v49, %v22928_v51  ;;  %v22930_v9 = vld [vmem:[#allocation121_spill] sm:$0xff]  ;;  %v22937_v49 = vld [vmem:[#allocation127_spill] sm:$0xff] }
 0x6ca   : > { %8437 = vrot.lane.b32.xlu1 %v22921_v31, %s13394_s15  ;;  %12528 = vmatmul.mubr.msk.f32.gmra.mrb[20].mxu0 %vm787_vm11, %v9708_v13  ;;  %v9073_v58 = vsel %vm727_vm5, %v8997_v6, %v22930_v9  ;;  %v9327_v36 = vsel %vm745_vm7, %v9199_v17, %v18408_v39  ;;  %v22931_v25 = vld [vmem:[#allocation281_spill] sm:$0xff] }
 0x6cb   : > { %v8556_v19 = vpop.permute.xlu0 %8555  ;;  %v9455_v3 = vsel %vm754_vm8, %v9327_v36, %v18688_v7  ;;  %v9201_v7 = vsel %vm736_vm6, %v9073_v58, %v22936_v12  ;;  %v22939_v58 = vld [vmem:[#allocation131_spill] sm:$0xff] }
 0x6cc   : > { %v8366_v57 = vpop.permute.xlu1 %8365  ;;  %v9581_v55 = vsel %vm763_vm9, %v9453_v22, %v8556_v19 }
 0x6cd   : > { %8822 = vrot.lane.b32.xlu0 %v22926_v63, %s13396_s11  ;;  %v9454_v13 = vsel %vm754_vm8, %v9326_v41, %v8366_v57  ;;  %v22938_v41 = vld [vmem:[#allocation99_spill] sm:$0xff] }
 0x6ce   : > { %8629 = vrot.lane.b32.xlu1 %v22925_v27, %s13395_s8  ;;  %v22935_v27 = vld [vmem:[#allocation143_spill] sm:$0xff] }
 0x6cf   : > { %v8751_v4 = vpop.permute.xlu0 %8750 }
 0x6d0   : > { %v8558_v45 = vpop.permute.xlu1 %8557  ;;  %v9709_v53 = vsel %vm772_vm10, %v9581_v55, %v8751_v4 }
 0x6d1   : > { %12530 = vmatprep.mubr.msk.f32.mxu0 %vm787_vm11, %v9709_v53  ;;  %8824 = vrot.lane.b32.xlu0 %v22931_v25, %s13396_s11  ;;  %v9582_v6 = vsel %vm763_vm9, %v9454_v13, %v8558_v45  ;;  %v9202_v53 = vsel %vm736_vm6, %v9074_v24, %v22937_v49 }
 0x6d2   : > { %8239 = vrot.lane.b32.xlu1 %v17600_v59, %s13393_s29  ;;  %v9072_v59 = vsel %vm727_vm5, %v18730_v50, %v22932_v29  ;;  %v9583_v50 = vsel %vm763_vm9, %v9455_v3, %v18726_v28  ;;  %v9329_v28 = vsel %vm745_vm7, %v9201_v7, %v18416_v26  ;;  %v22941_v3 = vld [vmem:[#allocation129_spill] sm:$0xff] }
 0x6d3   : > { %v18839_v43 = vpop.permute.xlu0 %8367  ;;  %v9200_v22 = vsel %vm736_vm6, %v9072_v59, %v22935_v27  ;;  %v9711_v37 = vsel %vm772_vm10, %v9583_v50, %v8747_v40  ;;  %v8935_v40 = vsel %vm715_vm3, %v22840_v34, %v22939_v58  ;;  %v9457_v36 = vsel %vm754_vm8, %v9329_v28, %v8364_v11  ;;  %v22940_v59 = vld [vmem:[#allocation134_spill] sm:$0xff]  ;;  %v22945_v28 = vld [vmem:[#allocation136_spill] sm:$0xff] }
 0x6d4   : > { %v8753_v33 = vpop.permute.xlu1 %8752  ;;  %v9328_v55 = vsel %vm745_vm7, %v9200_v22, %v18410_v44  ;;  %v9000_v32 = vsel %vm721_vm4, %v8935_v40, %v22940_v59  ;;  %v9330_v11 = vsel %vm745_vm7, %v9202_v53, %v18418_v0 }
 0x6d5   : > { %v9710_v42 = vsel %vm772_vm10, %v9582_v6, %v8753_v33  ;;  %v9456_v17 = vsel %vm754_vm8, %v9328_v55, %v18724_v46  ;;  %8383 = vrot.lane.b32.xlu0 %v22938_v41, %s13394_s15 }
 0x6d6   : > { %8241 = vrot.lane.b32.xlu1 %v17621_v14, %s13393_s29  ;;  %12531 = vmatmul.mubr.msk.f32.gmra.mrb[22].mxu0 %vm787_vm11, %v9710_v42  ;;  %v9075_v14 = vsel %vm727_vm5, %v18843_v10, %v22927_v38  ;;  %v9584_v24 = vsel %vm763_vm9, %v9456_v17, %v18757_v61  ;;  %v9585_v38 = vsel %vm763_vm9, %v9457_v36, %v8556_v19  ;;  %v22947_v36 = vld [vmem:[#allocation125_spill] sm:$0xff] }
 0x6d7   : > { %12533 = vmatprep.mubr.msk.f32.mxu0 %vm787_vm11, %v9711_v37  ;;  %v18878_v46 = vpop.permute.xlu0 %8559  ;;  %v9203_v5 = vsel %vm736_vm6, %v9075_v14, %v22928_v51  ;;  %v9712_v34 = vsel %vm772_vm10, %v9584_v24, %v18778_v1  ;;  %v9713_v6 = vsel %vm772_vm10, %v9585_v38, %v8751_v4  ;;  %v9458_v51 = vsel %vm754_vm8, %v9330_v11, %v8366_v57  ;;  %v22942_v1 = vld [vmem:[#allocation139_spill] sm:$0xff]  ;;  %v22949_v11 = vld [vmem:[#allocation124_spill] sm:$0xff] }
 0x6d8   : > { %v18876_v13 = vpop.permute.xlu1 %8369  ;;  %v9331_v61 = vsel %vm745_vm7, %v9203_v5, %v18408_v39  ;;  %v9076_v39 = vsel %vm727_vm5, %v9000_v32, %v22932_v29  ;;  %v9586_v23 = vsel %vm763_vm9, %v9458_v51, %v8558_v45  ;;  %v22943_v29 = vld [vmem:[#allocation153_spill] sm:$0xff] }
 0x6d9   : > { %v9459_v19 = vsel %vm754_vm8, %v9331_v61, %v18839_v43  ;;  %8575 = vrot.lane.b32.xlu0 %v22942_v1, %s13395_s8  ;;  %v9204_v57 = vsel %vm736_vm6, %v9076_v39, %v22935_v27  ;;  %v9714_v42 = vsel %vm772_vm10, %v9586_v23, %v8753_v33  ;;  %v22944_v27 = vld [vmem:[#allocation130_spill] sm:$0xff]  ;;  %v22953_v39 = vld [vmem:[#allocation148_spill] sm:$0xff] }
 0x6da   : > { %8385 = vrot.lane.b32.xlu1 %v22941_v3, %s13394_s15  ;;  %12534 = vmatmul.mubr.msk.f32.gmra.mrb[24].mxu0 %vm787_vm11, %v9712_v34  ;;  %v9587_v22 = vsel %vm763_vm9, %v9459_v19, %v18878_v46  ;;  %v9332_v55 = vsel %vm745_vm7, %v9204_v57, %v18410_v44  ;;  %v8936_v33 = vsel %vm715_vm3, %v22843_v20, %v22944_v27 }
 0x6db   : > { %12536 = vmatprep.mubr.msk.f32.mxu0 %vm787_vm11, %v9713_v6  ;;  %v8755_v4 = vpop.permute.xlu0 %8754  ;;  %v9460_v45 = vsel %vm754_vm8, %v9332_v55, %v18876_v13  ;;  %v9001_v17 = vsel %vm721_vm4, %v8936_v33, %v22945_v28  ;;  %v22950_v6 = vld [vmem:[#allocation177_spill] sm:$0xff]  ;;  %v9080_v23 = vsel %vm727_vm5, %v9000_v32, %v22953_v39  ;;  %v22957_v32 = vld [vmem:[#allocation150_spill] sm:$0xff] }
 0x6dc   : > { %v18906_v50 = vpop.permute.xlu1 %8561  ;;  %v9715_v7 = vsel %vm772_vm10, %v9587_v22, %v8755_v4  ;;  %v9077_v58 = vsel %vm727_vm5, %v9001_v17, %v22930_v9  ;;  %v22958_v28 = vld [vmem:[#allocation137_spill] sm:$0xff] }
 0x6dd   : > { %8770 = vrot.lane.b32.xlu0 %v22778_v16, %s13396_s11  ;;  %v9588_v44 = vsel %vm763_vm9, %v9460_v45, %v18906_v50  ;;  %v22946_v16 = vld [vmem:[#allocation123_spill] sm:$0xff] }
 0x6de   : > { %8577 = vrot.lane.b32.xlu1 %v22943_v29, %s13395_s8  ;;  %12537 = vmatmul.mubr.msk.f32.gmra.mrb[26].mxu0 %vm787_vm11, %v9714_v42  ;;  %v8937_v20 = vsel %vm715_vm3, %v22844_v62, %v22946_v16  ;;  %v22948_v62 = vld [vmem:[#allocation128_spill] sm:$0xff]  ;;  %v22956_v29 = vld [vmem:[#allocation179_spill] sm:$0xff]  ;;  %v22959_v16 = vld [vmem:[#allocation138_spill] sm:$0xff] }
 0x6df   : > { %12539 = vmatprep.mubr.msk.f32.mxu0 %vm787_vm11, %v9715_v7  ;;  %v8372_v53 = vpop.permute.xlu0 %8371  ;;  %v9002_v59 = vsel %vm721_vm4, %v8937_v20, %v22947_v36  ;;  %v22955_v7 = vld [vmem:[#allocation152_spill] sm:$0xff]  ;;  %v9208_v45 = vsel %vm736_vm6, %v9080_v23, %v22956_v29 }
 0x6e0   : > { %v8757_v37 = vpop.permute.xlu1 %8756  ;;  %v9078_v9 = vsel %vm727_vm5, %v9002_v59, %v22929_v56  ;;  %v22951_v56 = vld [vmem:[#allocation117_spill] sm:$0xff]  ;;  %v9081_v55 = vsel %vm727_vm5, %v9001_v17, %v22955_v7  ;;  %v9082_v20 = vsel %vm727_vm5, %v9002_v59, %v22959_v16 }
 0x6e1   : > { %v9716_v14 = vsel %vm772_vm10, %v9588_v44, %v8757_v37  ;;  %8772 = vrot.lane.b32.xlu0 %v22779_v15, %s13396_s11  ;;  %v9209_v44 = vsel %vm736_vm6, %v9081_v55, %v22957_v32 }
 0x6e2   : > { %8243 = vrot.lane.b32.xlu1 %v22926_v63, %s13393_s29  ;;  %12540 = vmatmul.mubr.msk.f32.gmra.mrb[28].mxu0 %vm787_vm11, %v9716_v14  ;;  %v9205_v63 = vsel %vm736_vm6, %v9077_v58, %v22936_v12  ;;  %v9206_v12 = vsel %vm736_vm6, %v9078_v9, %v22937_v49  ;;  %v9337_v14 = vsel %vm745_vm7, %v9209_v44, %v18432_v60  ;;  %v22960_v58 = vld [vmem:[#allocation204_spill] sm:$0xff]  ;;  %v22963_v9 = vld [vmem:[#allocation326_spill] sm:$0xff]  ;;  %v22973_v44 = vld [vmem:[#allocation303_spill] sm:$0xff] }
 0x6e3   : > { %v8564_v24 = vpop.permute.xlu0 %8563  ;;  %v9333_v5 = vsel %vm745_vm7, %v9205_v63, %v18416_v26  ;;  %v9079_v26 = vsel %vm727_vm5, %v18843_v10, %v22949_v11  ;;  %v9334_v19 = vsel %vm745_vm7, %v9206_v12, %v18418_v0  ;;  %v22952_v10 = vld [vmem:[#allocation151_spill] sm:$0xff]  ;;  %v8962_v36 = vsel %vm715_vm3, %v22960_v58, %v17802_v35  ;;  %v22964_v12 = vld [vmem:[#allocation34_spill] sm:$0xff] }
 0x6e4   : > { %v8374_v40 = vpop.permute.xlu1 %8373  ;;  %v9461_v15 = vsel %vm754_vm8, %v9333_v5, %v8372_v53  ;;  %v9207_v51 = vsel %vm736_vm6, %v9079_v26, %v22950_v6  ;;  %v9465_v63 = vsel %vm754_vm8, %v9337_v14, %v8372_v53  ;;  %v22965_v53 = vld [vmem:[#allocation140_spill] sm:$0xff] }
 0x6e5   : > { %8387 = vrot.lane.b32.xlu0 %v22948_v62, %s13394_s15  ;;  %v9589_v38 = vsel %vm763_vm9, %v9461_v15, %v8564_v24  ;;  %v9335_v49 = vsel %vm745_vm7, %v9207_v51, %v18424_v54  ;;  %v9462_v1 = vsel %vm754_vm8, %v9334_v19, %v8374_v40  ;;  %v22962_v15 = vld [vmem:[#allocation163_spill] sm:$0xff]  ;;  %v9593_v59 = vsel %vm763_vm9, %v9465_v63, %v8564_v24  ;;  %v22966_v51 = vld [vmem:[#allocation277_spill] sm:$0xff]  ;;  %v22976_v63 = vld [vmem:[#allocation308_spill] sm:$0xff] }
 0x6e6   : > { %8245 = vrot.lane.b32.xlu1 %v22931_v25, %s13393_s29  ;;  %v9463_v22 = vsel %vm754_vm8, %v9335_v49, %v18839_v43  ;;  %v9336_v43 = vsel %vm745_vm7, %v9208_v45, %v18426_v48  ;;  %v22967_v24 = vld [vmem:[#allocation289_spill] sm:$0xff]  ;;  %v22968_v19 = vld [vmem:[#allocation327_spill] sm:$0xff]  ;;  %v22969_v49 = vld [vmem:[#allocation226_spill] sm:$0xff] }
 0x6e7   : > { %v8759_v61 = vpop.permute.xlu0 %8758  ;;  %v9591_v27 = vsel %vm763_vm9, %v9463_v22, %v18878_v46  ;;  %v9464_v46 = vsel %vm754_vm8, %v9336_v43, %v18876_v13  ;;  %v22974_v43 = vld [vmem:[#allocation314_spill] sm:$0xff] }
 0x6e8   : > { %v8566_v34 = vpop.permute.xlu1 %8565  ;;  %v9717_v25 = vsel %vm772_vm10, %v9589_v38, %v8759_v61  ;;  %v9719_v17 = vsel %vm772_vm10, %v9591_v27, %v8755_v4  ;;  %v9592_v4 = vsel %vm763_vm9, %v9464_v46, %v18906_v50  ;;  %v19017_v38 = vsel %vm721_vm4, %v8962_v36, %v22963_v9  ;;  %v22975_v46 = vld [vmem:[#allocation339_spill] sm:$0xff] }
 0x6e9   : > { %12542 = vmatprep.mubr.msk.f32.mxu0 %vm787_vm11, %v9717_v25  ;;  %8579 = vrot.lane.b32.xlu0 %v22952_v10, %s13395_s8  ;;  %v9590_v0 = vsel %vm763_vm9, %v9462_v1, %v8566_v34  ;;  %v9720_v35 = vsel %vm772_vm10, %v9592_v4, %v8757_v37  ;;  %v9721_v26 = vsel %vm772_vm10, %v9593_v59, %v8759_v61  ;;  %v22977_v9 = vld [vmem:[#allocation311_spill] sm:$0xff] }
 0x6ea   : > { %8389 = vrot.lane.b32.xlu1 %v22951_v56, %s13394_s15  ;;  %v9131_v37 = vsel %vm727_vm5, %v19017_v38, %v22967_v24  ;;  %v8963_v1 = vsel %vm715_vm3, %v22969_v49, %v22968_v19  ;;  %v22982_v19 = vld [vmem:[#allocation142_spill] sm:$0xff]  ;;  %v23004_v24 = vld [vmem:[#allocation169_spill] sm:$0xff] }
 0x6eb   : > { %v8761_v42 = vpop.permute.xlu0 %8760  ;;  %v23046_v49 = vld [vmem:[#allocation254_spill] sm:$0xff] }
 0x6ec   : > { %v18977_v57 = vpop.permute.xlu1 %8223  ;;  %v9718_v33 = vsel %vm772_vm10, %v9590_v0, %v8761_v42  ;;  %v22971_v0 = vld [vmem:[#allocation334_spill] sm:$0xff] }
 0x6ed   : > { %22954 = vst [vmem:[#allocation17_spill] sm:$0xff] %v18977_v57  ;;  %12543 = vmatmul.mubr.msk.f32.gmra.mrb[30].mxu0 %vm787_vm11, %v9718_v33  ;;  %8774 = vrot.lane.b32.xlu0 %v22782_v21, %s13396_s11  ;;  %v9210_v21 = vsel %vm736_vm6, %v9082_v20, %v22962_v15  ;;  %v9259_v55 = vsel %vm736_vm6, %v9131_v37, %v22971_v0  ;;  %v22972_v33 = vld [vmem:[#allocation296_spill] sm:$0xff]  ;;  %v22981_v37 = vld [vmem:[#allocation322_spill] sm:$0xff]  ;;  %v22998_v0 = vld [vmem:[#allocation365_spill] sm:$0xff] }
 0x6ee   : > { %8581 = vrot.lane.b32.xlu1 %v22958_v28, %s13395_s8  ;;  %12545 = vmatprep.mubr.msk.f32.mxu0 %vm787_vm11, %v9719_v17  ;;  %v9338_v50 = vsel %vm745_vm7, %v9210_v21, %v22964_v12  ;;  %v9387_v27 = vsel %vm745_vm7, %v9259_v55, %v18977_v57  ;;  %v22984_v55 = vld [vmem:[#allocation330_spill] sm:$0xff] }
 0x6ef   : > { %v19011_v13 = vpop.permute.xlu0 %8423  ;;  %v9466_v25 = vsel %vm754_vm8, %v9338_v50, %v8374_v40  ;;  %v22970_v40 = vld [vmem:[#allocation331_spill] sm:$0xff] }
 0x6f0   : > { %v19009_v5 = vpop.permute.xlu1 %8225  ;;  %v9594_v10 = vsel %vm763_vm9, %v9466_v25, %v8566_v34  ;;  %v19044_v22 = vsel %vm721_vm4, %v8963_v1, %v22970_v40  ;;  %v9515_v34 = vsel %vm754_vm8, %v9387_v27, %v19011_v13  ;;  %v22980_v25 = vld [vmem:[#allocation211_spill] sm:$0xff]  ;;  %v8964_v1 = vsel %vm715_vm3, %v22982_v19, %v22981_v37  ;;  %v23036_v19 = vld [vmem:[#allocation349_spill] sm:$0xff] }
 0x6f1   : > { %22961 = vst [vmem:[#allocation58_spill] sm:$0xff] %v19009_v5  ;;  %12546 = vmatmul.mubr.msk.f32.gmra.mrb[32].mxu0 %vm787_vm11, %v9720_v35  ;;  %8439 = vrot.lane.b32.xlu0 %v22966_v51, %s13394_s15  ;;  %v9722_v45 = vsel %vm772_vm10, %v9594_v10, %v8761_v42  ;;  %v9132_v28 = vsel %vm727_vm5, %v19044_v22, %v22974_v43  ;;  %v22985_v27 = vld [vmem:[#allocation291_spill] sm:$0xff]  ;;  %v23001_v43 = vld [vmem:[#allocation369_spill] sm:$0xff] }
 0x6f2   : > { %8776 = vrot.lane.b32.xlu1 %v22965_v53, %s13396_s11  ;;  %12548 = vmatprep.mubr.msk.f32.mxu0 %vm787_vm11, %v9721_v26  ;;  %v9260_v20 = vsel %vm736_vm6, %v9132_v28, %v22975_v46  ;;  %v22979_v26 = vld [vmem:[#allocation312_spill] sm:$0xff] }
 0x6f3   : > { %v19040_v61 = vpop.permute.xlu0 %8615  ;;  %v9388_v4 = vsel %vm745_vm7, %v9260_v20, %v19009_v5  ;;  %v22993_v5 = vld [vmem:[#allocation315_spill] sm:$0xff] }
 0x6f4   : > { %v19038_v23 = vpop.permute.xlu1 %8425  ;;  %v9643_v42 = vsel %vm763_vm9, %v9515_v34, %v19040_v61  ;;  %v22986_v34 = vld [vmem:[#allocation307_spill] sm:$0xff] }
 0x6f5   : > { %12549 = vmatmul.mubr.msk.f32.gmra.mrb[34].mxu0 %vm787_vm11, %v9722_v45  ;;  %8631 = vrot.lane.b32.xlu0 %v22973_v44, %s13395_s8  ;;  %v9516_v21 = vsel %vm754_vm8, %v9388_v4, %v19038_v23  ;;  %v19096_v45 = vsel %vm721_vm4, %v8964_v1, %v22984_v55  ;;  %v22987_v44 = vld [vmem:[#allocation313_spill] sm:$0xff]  ;;  %v22989_v4 = vld [vmem:[#allocation222_spill] sm:$0xff]  ;;  %v22992_v55 = vld [vmem:[#allocation300_spill] sm:$0xff] }
 0x6f6   : > { %8441 = vrot.lane.b32.xlu1 %v22972_v33, %s13394_s15  ;;  %v9133_v28 = vsel %vm727_vm5, %v19096_v45, %v22987_v44  ;;  %v23003_v44 = vld [vmem:[#allocation46_spill] sm:$0xff] }
 0x6f7   : > { %v8811_v14 = vpop.permute.xlu0 %8810 }
 0x6f8   : > { %v19063_v17 = vpop.permute.xlu1 %8617  ;;  %v9771_v36 = vsel %vm772_vm10, %v9643_v42, %v8811_v14 }
 0x6f9   : > { %12623 = vmatprep.mubr.msk.f32.mxu1 %vm787_vm11, %v9771_v36  ;;  %8826 = vrot.lane.b32.xlu0 %v22977_v9, %s13396_s11  ;;  %v9644_v59 = vsel %vm763_vm9, %v9516_v21, %v19063_v17  ;;  %v22988_v36 = vld [vmem:[#allocation318_spill] sm:$0xff] }
 0x6fa   : > { %8633 = vrot.lane.b32.xlu1 %v22976_v63, %s13395_s8  ;;  %v8965_v63 = vsel %vm715_vm3, %v22989_v4, %v22988_v36  ;;  %v22990_v21 = vld [vmem:[#allocation338_spill] sm:$0xff]  ;;  %v23035_v4 = vld [vmem:[#allocation205_spill] sm:$0xff] }
 0x6fb   : > { %v8813_v50 = vpop.permute.xlu0 %8812 }
 0x6fc   : > { %v19079_v35 = vpop.permute.xlu1 %8227  ;;  %v9772_v53 = vsel %vm772_vm10, %v9644_v59, %v8813_v50  ;;  %v9261_v59 = vsel %vm736_vm6, %v9133_v28, %v22990_v21  ;;  %v22997_v21 = vld [vmem:[#allocation304_spill] sm:$0xff] }
 0x6fd   : > { %22978 = vst [vmem:[#allocation25_spill] sm:$0xff] %v19079_v35  ;;  %12624 = vmatmul.mubr.msk.f32.vlgmr.msra.gmra.mrb[32].mxu1 %vm787_vm11, %v9772_v53  ;;  %8443 = vrot.lane.b32.xlu0 %v22980_v25, %s13394_s15  ;;  %v22991_v53 = vld [vmem:[#allocation320_spill] sm:$0xff]  ;;  %v9389_v1 = vsel %vm745_vm7, %v9261_v59, %v19079_v35 }
 0x6fe   : > { %8828 = vrot.lane.b32.xlu1 %v22979_v26, %s13396_s11  ;;  %v19116_v37 = vsel %vm721_vm4, %v8965_v63, %v22991_v53  ;;  %v22994_v63 = vld [vmem:[#allocation306_spill] sm:$0xff] }
 0x6ff   : > { %v19092_v40 = vpop.permute.xlu0 %8427  ;;  %v9134_v59 = vsel %vm727_vm5, %v19116_v37, %v22994_v63 }
 0x700   : > { %v19090_v10 = vpop.permute.xlu1 %8229 }
 0x701   : > { %22983 = vst [vmem:[#allocation5_spill] sm:$0xff] %v19090_v10  ;;  %8635 = vrot.lane.b32.xlu0 %v22986_v34, %s13395_s8  ;;  %v9517_v34 = vsel %vm754_vm8, %v9389_v1, %v19092_v40 }
 0x702   : > { %8445 = vrot.lane.b32.xlu1 %v22985_v27, %s13394_s15 }
 0x703   : > { %v19107_v20 = vpop.permute.xlu0 %8619 }
 0x704   : > { %v19105_v42 = vpop.permute.xlu1 %8429  ;;  %v9645_v36 = vsel %vm763_vm9, %v9517_v34, %v19107_v20  ;;  %v22996_v34 = vld [vmem:[#allocation317_spill] sm:$0xff] }
 0x705   : > { %8830 = vrot.lane.b32.xlu0 %v22993_v5, %s13396_s11  ;;  %v9135_v35 = vsel %vm727_vm5, %v19017_v38, %v22996_v34 }
 0x706   : > { %8637 = vrot.lane.b32.xlu1 %v22992_v55, %s13395_s8  ;;  %v22995_v55 = vld [vmem:[#allocation323_spill] sm:$0xff] }
 0x707   : > { %v19130_v57 = vpop.permute.xlu0 %8814  ;;  %v9262_v1 = vsel %vm736_vm6, %v9134_v59, %v22995_v55 }
 0x708   : > { %v19128_v28 = vpop.permute.xlu1 %8621  ;;  %v9773_v53 = vsel %vm772_vm10, %v9645_v36, %v19130_v57  ;;  %v9390_v46 = vsel %vm745_vm7, %v9262_v1, %v19090_v10  ;;  %v9263_v36 = vsel %vm736_vm6, %v9135_v35, %v22998_v0 }
 0x709   : > { %12626 = vmatprep.mubr.msk.f32.mxu1 %vm787_vm11, %v9773_v53  ;;  %8832 = vrot.lane.b32.xlu0 %v22997_v21, %s13396_s11  ;;  %v9518_v59 = vsel %vm754_vm8, %v9390_v46, %v19105_v42  ;;  %v22999_v46 = vld [vmem:[#allocation343_spill] sm:$0xff] }
 0x70a   : > { %8247 = vrot.lane.b32.xlu1 %v22977_v9, %s13393_s29  ;;  %v9646_v9 = vsel %vm763_vm9, %v9518_v59, %v19128_v28  ;;  %v9136_v10 = vsel %vm727_vm5, %v19044_v22, %v22999_v46  ;;  %v23000_v59 = vld [vmem:[#allocation135_spill] sm:$0xff] }
 0x70b   : > { %v19159_v53 = vpop.permute.xlu0 %8816 }
 0x70c   : > { %v19153_v55 = vpop.permute.xlu1 %8231  ;;  %v9774_v35 = vsel %vm772_vm10, %v9646_v9, %v19159_v53  ;;  %v23002_v9 = vld [vmem:[#allocation161_spill] sm:$0xff] }
 0x70d   : > { %v9391_v38 = vsel %vm745_vm7, %v9263_v36, %v19153_v55  ;;  %8391 = vrot.lane.b32.xlu0 %v23000_v59, %s13394_s15  ;;  %12627 = vmatmul.mubr.msk.f32.gmra.mrb[34].mxu1 %vm787_vm11, %v9774_v35  ;;  %v8938_v63 = vsel %vm715_vm3, %v23003_v44, %v23002_v9 }
 0x70e   : > { %v9519_v1 = vsel %vm754_vm8, %v9391_v38, %v19011_v13  ;;  %8249 = vrot.lane.b32.xlu1 %v22979_v26, %s13393_s29  ;;  %v9264_v13 = vsel %vm736_vm6, %v9136_v10, %v23001_v43 }
 0x70f   : > { %v9647_v36 = vsel %vm763_vm9, %v9519_v1, %v19040_v61  ;;  %v19186_v35 = vpop.permute.xlu0 %8375  ;;  %v19190_v61 = vsel %vm721_vm4, %v8938_v63, %v23004_v24  ;;  %v23006_v1 = vld [vmem:[#allocation172_spill] sm:$0xff]  ;;  %v23007_v63 = vld [vmem:[#allocation166_spill] sm:$0xff] }
 0x710   : > { %v19177_v38 = vpop.permute.xlu1 %8233  ;;  %v9775_v26 = vsel %vm772_vm10, %v9647_v36, %v8811_v14  ;;  %v23005_v14 = vld [vmem:[#allocation165_spill] sm:$0xff]  ;;  %v9083_v24 = vsel %vm727_vm5, %v19190_v61, %v22949_v11 }
 0x711   : > { %v9392_v22 = vsel %vm745_vm7, %v9264_v13, %v19177_v38  ;;  %12629 = vmatprep.mubr.msk.f32.mxu1 %vm787_vm11, %v9775_v26  ;;  %8583 = vrot.lane.b32.xlu0 %v23006_v1, %s13395_s8  ;;  %v23008_v26 = vld [vmem:[#allocation57_spill] sm:$0xff] }
 0x712   : > { %v9520_v10 = vsel %vm754_vm8, %v9392_v22, %v19038_v23  ;;  %8393 = vrot.lane.b32.xlu1 %v23005_v14, %s13394_s15  ;;  %v8939_v23 = vsel %vm715_vm3, %v23008_v26, %v23007_v63  ;;  %v23009_v22 = vld [vmem:[#allocation171_spill] sm:$0xff] }
 0x713   : > { %v9648_v44 = vsel %vm763_vm9, %v9520_v10, %v19063_v17  ;;  %v19210_v9 = vpop.permute.xlu0 %8567  ;;  %v19214_v1 = vsel %vm721_vm4, %v8939_v23, %v23009_v22  ;;  %v9211_v17 = vsel %vm736_vm6, %v9083_v24, %v22950_v6  ;;  %v23011_v10 = vld [vmem:[#allocation132_spill] sm:$0xff]  ;;  %v23012_v23 = vld [vmem:[#allocation342_spill] sm:$0xff] }
 0x714   : > { %v19200_v36 = vpop.permute.xlu1 %8377  ;;  %v9776_v13 = vsel %vm772_vm10, %v9648_v44, %v8813_v50  ;;  %v23010_v50 = vld [vmem:[#allocation75_spill] sm:$0xff]  ;;  %v9339_v11 = vsel %vm745_vm7, %v9211_v17, %v18424_v54  ;;  %v9084_v63 = vsel %vm727_vm5, %v19214_v1, %v22953_v39  ;;  %v9137_v22 = vsel %vm727_vm5, %v19096_v45, %v23012_v23  ;;  %v23013_v17 = vld [vmem:[#allocation181_spill] sm:$0xff] }
 0x715   : > { %12630 = vmatmul.mubr.msk.f32.gmra.mrb[36].mxu1 %vm787_vm11, %v9776_v13  ;;  %8778 = vrot.lane.b32.xlu0 %v23011_v10, %s13396_s11  ;;  %v9467_v44 = vsel %vm754_vm8, %v9339_v11, %v19186_v35  ;;  %v9212_v54 = vsel %vm736_vm6, %v9084_v63, %v22956_v29 }
 0x716   : > { %8585 = vrot.lane.b32.xlu1 %v23010_v50, %s13395_s8  ;;  %v9595_v6 = vsel %vm763_vm9, %v9467_v44, %v19210_v9  ;;  %v9340_v39 = vsel %vm745_vm7, %v9212_v54, %v18426_v48  ;;  %v23014_v50 = vld [vmem:[#allocation368_spill] sm:$0xff] }
 0x717   : > { %v19233_v24 = vpop.permute.xlu0 %8762  ;;  %v9265_v29 = vsel %vm736_vm6, %v9137_v22, %v23014_v50 }
 0x718   : > { %v19226_v13 = vpop.permute.xlu1 %8569  ;;  %v9723_v26 = vsel %vm772_vm10, %v9595_v6, %v19233_v24  ;;  %v23015_v6 = vld [vmem:[#allocation335_spill] sm:$0xff] }
 0x719   : > { %8780 = vrot.lane.b32.xlu0 %v23013_v17, %s13396_s11  ;;  %12551 = vmatprep.mubr.msk.f32.mxu0 %vm787_vm11, %v9723_v26  ;;  %v9138_v54 = vsel %vm727_vm5, %v19116_v37, %v23015_v6  ;;  %v23016_v26 = vld [vmem:[#allocation162_spill] sm:$0xff] }
 0x71a   : > { %8251 = vrot.lane.b32.xlu1 %v22993_v5, %s13393_s29  ;;  %v9468_v5 = vsel %vm754_vm8, %v9340_v39, %v19200_v36  ;;  %v23017_v39 = vld [vmem:[#allocation354_spill] sm:$0xff] }
 0x71b   : > { %v9596_v10 = vsel %vm763_vm9, %v9468_v5, %v19226_v13  ;;  %v19259_v48 = vpop.permute.xlu0 %8764 }
 0x71c   : > { %v19253_v11 = vpop.permute.xlu1 %8235  ;;  %v9724_v63 = vsel %vm772_vm10, %v9596_v10, %v19259_v48 }
 0x71d   : > { %v9393_v45 = vsel %vm745_vm7, %v9265_v29, %v19253_v11  ;;  %8395 = vrot.lane.b32.xlu0 %v23016_v26, %s13394_s15  ;;  %12552 = vmatmul.mubr.msk.f32.gmra.mrb[36].mxu0 %vm787_vm11, %v9724_v63  ;;  %v23018_v29 = vld [vmem:[#allocation164_spill] sm:$0xff] }
 0x71e   : > { %v9521_v44 = vsel %vm754_vm8, %v9393_v45, %v19092_v40  ;;  %8253 = vrot.lane.b32.xlu1 %v22997_v21, %s13393_s29  ;;  %v9266_v40 = vsel %vm736_vm6, %v9138_v54, %v23017_v39  ;;  %v8940_v37 = vsel %vm715_vm3, %v22854_v2, %v23018_v29  ;;  %v23019_v45 = vld [vmem:[#allocation173_spill] sm:$0xff]  ;;  %v23020_v63 = vld [vmem:[#allocation160_spill] sm:$0xff]  ;;  %v23022_v54 = vld [vmem:[#allocation154_spill] sm:$0xff] }
 0x71f   : > { %v9649_v22 = vsel %vm763_vm9, %v9521_v44, %v19107_v20  ;;  %v8380_v10 = vpop.permute.xlu0 %8379  ;;  %v9005_v20 = vsel %vm721_vm4, %v8940_v37, %v23019_v45  ;;  %v23024_v37 = vld [vmem:[#allocation159_spill] sm:$0xff] }
 0x720   : > { %v19277_v17 = vpop.permute.xlu1 %8237  ;;  %v9777_v21 = vsel %vm772_vm10, %v9649_v22, %v19130_v57  ;;  %v23021_v57 = vld [vmem:[#allocation174_spill] sm:$0xff]  ;;  %v23023_v22 = vld [vmem:[#allocation56_spill] sm:$0xff] }
 0x721   : > { %v9394_v5 = vsel %vm745_vm7, %v9266_v40, %v19277_v17  ;;  %12632 = vmatprep.mubr.msk.f32.mxu1 %vm787_vm11, %v9777_v21  ;;  %8587 = vrot.lane.b32.xlu0 %v23021_v57, %s13395_s8  ;;  %v8941_v40 = vsel %vm715_vm3, %v23023_v22, %v23022_v54 }
 0x722   : > { %v9522_v44 = vsel %vm754_vm8, %v9394_v5, %v19105_v42  ;;  %8397 = vrot.lane.b32.xlu1 %v23020_v63, %s13394_s15  ;;  %v9006_v42 = vsel %vm721_vm4, %v8941_v40, %v23024_v37  ;;  %v9085_v5 = vsel %vm727_vm5, %v9005_v20, %v22955_v7  ;;  %v23027_v40 = vld [vmem:[#allocation157_spill] sm:$0xff] }
 0x723   : > { %v9650_v2 = vsel %vm763_vm9, %v9522_v44, %v19128_v28  ;;  %v8572_v45 = vpop.permute.xlu0 %8571  ;;  %v9213_v28 = vsel %vm736_vm6, %v9085_v5, %v22957_v32  ;;  %v23025_v44 = vld [vmem:[#allocation167_spill] sm:$0xff]  ;;  %v9087_v32 = vsel %vm727_vm5, %v19190_v61, %v23027_v40  ;;  %v23038_v63 = vld [vmem:[#allocation357_spill] sm:$0xff] }
 0x724   : > { %v19300_v21 = vpop.permute.xlu1 %8381  ;;  %v9778_v29 = vsel %vm772_vm10, %v9650_v2, %v19159_v53  ;;  %v9341_v57 = vsel %vm745_vm7, %v9213_v28, %v18432_v60  ;;  %v23026_v53 = vld [vmem:[#allocation180_spill] sm:$0xff]  ;;  %v9086_v2 = vsel %vm727_vm5, %v9006_v42, %v22959_v16  ;;  %v23028_v60 = vld [vmem:[#allocation203_spill] sm:$0xff]  ;;  %v23029_v16 = vld [vmem:[#allocation170_spill] sm:$0xff] }
 0x725   : > { %12633 = vmatmul.mubr.msk.f32.gmra.mrb[38].mxu1 %vm787_vm11, %v9778_v29  ;;  %8782 = vrot.lane.b32.xlu0 %v23026_v53, %s13396_s11  ;;  %v9469_v7 = vsel %vm754_vm8, %v9341_v57, %v8380_v10  ;;  %v9214_v22 = vsel %vm736_vm6, %v9086_v2, %v22962_v15  ;;  %v9215_v5 = vsel %vm736_vm6, %v9087_v32, %v23028_v60  ;;  %v23030_v57 = vld [vmem:[#allocation78_spill] sm:$0xff]  ;;  %v23031_v53 = vld [vmem:[#allocation45_spill] sm:$0xff]  ;;  %v23034_v32 = vld [vmem:[#allocation207_spill] sm:$0xff] }
 0x726   : > { %8589 = vrot.lane.b32.xlu1 %v23025_v44, %s13395_s8  ;;  %v9597_v29 = vsel %vm763_vm9, %v9469_v7, %v8572_v45  ;;  %v9342_v28 = vsel %vm745_vm7, %v9214_v22, %v22964_v12  ;;  %v9089_v15 = vsel %vm727_vm5, %v9005_v20, %v23030_v57  ;;  %v9343_v61 = vsel %vm745_vm7, %v9215_v5, %v23031_v53  ;;  %v23032_v7 = vld [vmem:[#allocation299_spill] sm:$0xff] }
 0x727   : > { %v8767_v37 = vpop.permute.xlu0 %8766  ;;  %v9470_v2 = vsel %vm754_vm8, %v9342_v28, %v19300_v21  ;;  %v23033_v12 = vld [vmem:[#allocation183_spill] sm:$0xff]  ;;  %v9471_v20 = vsel %vm754_vm8, %v9343_v61, %v19186_v35  ;;  %v23039_v61 = vld [vmem:[#allocation49_spill] sm:$0xff] }
 0x728   : > { %v8574_v54 = vpop.permute.xlu1 %8573  ;;  %v9725_v44 = vsel %vm772_vm10, %v9597_v29, %v8767_v37  ;;  %v9088_v22 = vsel %vm727_vm5, %v19214_v1, %v23033_v12  ;;  %v9217_v29 = vsel %vm736_vm6, %v9089_v15, %v23034_v32  ;;  %v9599_v26 = vsel %vm763_vm9, %v9471_v20, %v19210_v9  ;;  %v23041_v9 = vld [vmem:[#allocation176_spill] sm:$0xff]  ;;  %v23042_v20 = vld [vmem:[#allocation53_spill] sm:$0xff] }
 0x729   : > { %8447 = vrot.lane.b32.xlu0 %v23032_v7, %s13394_s15  ;;  %12554 = vmatprep.mubr.msk.f32.mxu0 %vm787_vm11, %v9725_v44  ;;  %v9598_v5 = vsel %vm763_vm9, %v9470_v2, %v8574_v54  ;;  %v9216_v28 = vsel %vm736_vm6, %v9088_v22, %v23035_v4  ;;  %v23037_v7 = vld [vmem:[#allocation230_spill] sm:$0xff]  ;;  %v23040_v22 = vld [vmem:[#allocation319_spill] sm:$0xff] }
 0x72a   : > { %8784 = vrot.lane.b32.xlu1 %v23029_v16, %s13396_s11  ;;  %v8966_v44 = vsel %vm715_vm3, %v23037_v7, %v23036_v19  ;;  %v9344_v2 = vsel %vm745_vm7, %v9216_v28, %v23039_v61  ;;  %v9727_v19 = vsel %vm772_vm10, %v9599_v26, %v19233_v24  ;;  %v9090_v7 = vsel %vm727_vm5, %v9006_v42, %v23041_v9  ;;  %v23044_v28 = vld [vmem:[#allocation192_spill] sm:$0xff] }
 0x72b   : > { %v19357_v1 = vpop.permute.xlu0 %8431  ;;  %v19362_v35 = vsel %vm721_vm4, %v8966_v44, %v23038_v63  ;;  %v9472_v63 = vsel %vm754_vm8, %v9344_v2, %v19200_v36  ;;  %v23043_v44 = vld [vmem:[#allocation328_spill] sm:$0xff]  ;;  %v23047_v2 = vld [vmem:[#allocation362_spill] sm:$0xff] }
 0x72c   : > { %v8769_v16 = vpop.permute.xlu1 %8768  ;;  %v9600_v26 = vsel %vm763_vm9, %v9472_v63, %v19226_v13  ;;  %v9139_v36 = vsel %vm727_vm5, %v19362_v35, %v22996_v34 }
 0x72d   : > { %v9726_v15 = vsel %vm772_vm10, %v9598_v5, %v8769_v16  ;;  %v9345_v5 = vsel %vm745_vm7, %v9217_v29, %v23042_v20  ;;  %8639 = vrot.lane.b32.xlu0 %v23043_v44, %s13395_s8  ;;  %v9267_v13 = vsel %vm736_vm6, %v9139_v36, %v22998_v0 }
 0x72e   : > { %8449 = vrot.lane.b32.xlu1 %v23040_v22, %s13394_s15  ;;  %12555 = vmatmul.mubr.msk.f32.gmra.mrb[38].mxu0 %vm787_vm11, %v9726_v15  ;;  %v9218_v15 = vsel %vm736_vm6, %v9090_v7, %v23044_v28  ;;  %v23045_v22 = vld [vmem:[#allocation358_spill] sm:$0xff]  ;;  %v9473_v42 = vsel %vm754_vm8, %v9345_v5, %v8380_v10  ;;  %v23048_v10 = vld [vmem:[#allocation44_spill] sm:$0xff]  ;;  %v23049_v5 = vld [vmem:[#allocation329_spill] sm:$0xff] }
 0x72f   : > { %12557 = vmatprep.mubr.msk.f32.mxu0 %vm787_vm11, %v9727_v19  ;;  %v8967_v24 = vsel %vm715_vm3, %v23046_v49, %v23045_v22  ;;  %v9601_v7 = vsel %vm763_vm9, %v9473_v42, %v8572_v45  ;;  %v19398_v44 = vpop.permute.xlu0 %8623  ;;  %v9728_v49 = vsel %vm772_vm10, %v9600_v26, %v19259_v48  ;;  %v9346_v22 = vsel %vm745_vm7, %v9218_v15, %v23048_v10  ;;  %v23050_v48 = vld [vmem:[#allocation336_spill] sm:$0xff] }
 0x730   : > { %v19388_v29 = vpop.permute.xlu1 %8433  ;;  %v19395_v19 = vsel %vm721_vm4, %v8967_v24, %v23047_v2  ;;  %v9729_v34 = vsel %vm772_vm10, %v9601_v7, %v8767_v37  ;;  %v9395_v45 = vsel %vm745_vm7, %v9267_v13, %v19153_v55  ;;  %v9474_v63 = vsel %vm754_vm8, %v9346_v22, %v19300_v21 }
 0x731   : > { %8834 = vrot.lane.b32.xlu0 %v23050_v48, %s13396_s11  ;;  %v9140_v0 = vsel %vm727_vm5, %v19395_v19, %v22999_v46  ;;  %v9602_v15 = vsel %vm763_vm9, %v9474_v63, %v8574_v54  ;;  %v9523_v37 = vsel %vm754_vm8, %v9395_v45, %v19357_v1  ;;  %v23051_v46 = vld [vmem:[#allocation333_spill] sm:$0xff]  ;;  %v23056_v63 = vld [vmem:[#allocation316_spill] sm:$0xff] }
 0x732   : > { %8641 = vrot.lane.b32.xlu1 %v23049_v5, %s13395_s8  ;;  %12558 = vmatmul.mubr.msk.f32.gmra.mrb[40].mxu0 %vm787_vm11, %v9728_v49  ;;  %v9268_v55 = vsel %vm736_vm6, %v9140_v0, %v23001_v43  ;;  %v9651_v21 = vsel %vm763_vm9, %v9523_v37, %v19398_v44  ;;  %v9730_v42 = vsel %vm772_vm10, %v9602_v15, %v8769_v16  ;;  %v23052_v43 = vld [vmem:[#allocation217_spill] sm:$0xff]  ;;  %v23057_v0 = vld [vmem:[#allocation332_spill] sm:$0xff]  ;;  %v23058_v37 = vld [vmem:[#allocation346_spill] sm:$0xff] }
 0x733   : > { %12560 = vmatprep.mubr.msk.f32.mxu0 %vm787_vm11, %v9729_v34  ;;  %v8819_v26 = vpop.permute.xlu0 %8818  ;;  %v9396_v36 = vsel %vm745_vm7, %v9268_v55, %v19177_v38  ;;  %v23053_v38 = vld [vmem:[#allocation353_spill] sm:$0xff]  ;;  %v23059_v55 = vld [vmem:[#allocation250_spill] sm:$0xff] }
 0x734   : > { %v19423_v24 = vpop.permute.xlu1 %8625  ;;  %v9779_v54 = vsel %vm772_vm10, %v9651_v21, %v8819_v26  ;;  %v9524_v2 = vsel %vm754_vm8, %v9396_v36, %v19388_v29  ;;  %v23054_v49 = vld [vmem:[#allocation85_spill] sm:$0xff]  ;;  %v8969_v21 = vsel %vm715_vm3, %v23059_v55, %v23058_v37 }
 0x735   : > { %8451 = vrot.lane.b32.xlu0 %v23052_v43, %s13394_s15  ;;  %12635 = vmatprep.mubr.msk.f32.mxu1 %vm787_vm11, %v9779_v54  ;;  %v9652_v16 = vsel %vm763_vm9, %v9524_v2, %v19423_v24  ;;  %v8968_v13 = vsel %vm715_vm3, %v23054_v49, %v23053_v38  ;;  %v23055_v34 = vld [vmem:[#allocation361_spill] sm:$0xff]  ;;  %v23060_v54 = vld [vmem:[#allocation350_spill] sm:$0xff] }
 0x736   : > { %8836 = vrot.lane.b32.xlu1 %v23051_v46, %s13396_s11  ;;  %12561 = vmatmul.mubr.msk.f32.gmra.mrb[42].mxu0 %vm787_vm11, %v9730_v42  ;;  %v19451_v45 = vsel %vm721_vm4, %v8968_v13, %v23055_v34  ;;  %v19470_v2 = vsel %vm721_vm4, %v8969_v21, %v23060_v54  ;;  %v23061_v38 = vld [vmem:[#allocation321_spill] sm:$0xff]  ;;  %v23062_v13 = vld [vmem:[#allocation340_spill] sm:$0xff] }
 0x737   : > { %v19446_v22 = vpop.permute.xlu0 %8435  ;;  %v9141_v42 = vsel %vm727_vm5, %v19451_v45, %v23012_v23  ;;  %v9142_v34 = vsel %vm727_vm5, %v19470_v2, %v23015_v6  ;;  %v23063_v55 = vld [vmem:[#allocation345_spill] sm:$0xff] }
 0x738   : > { %v8821_v7 = vpop.permute.xlu1 %8820  ;;  %v9143_v21 = vsel %vm727_vm5, %v19362_v35, %v23063_v55  ;;  %v23065_v54 = vld [vmem:[#allocation389_spill] sm:$0xff] }
 0x739   : > { %v9780_v5 = vsel %vm772_vm10, %v9652_v16, %v8821_v7  ;;  %8643 = vrot.lane.b32.xlu0 %v23057_v0, %s13395_s8  ;;  %v9269_v16 = vsel %vm736_vm6, %v9141_v42, %v23014_v50  ;;  %v23064_v42 = vld [vmem:[#allocation325_spill] sm:$0xff] }
 0x73a   : > { %8453 = vrot.lane.b32.xlu1 %v23056_v63, %s13394_s15  ;;  %12636 = vmatmul.mubr.msk.f32.gmra.mrb[40].mxu1 %vm787_vm11, %v9780_v5  ;;  %v9397_v49 = vsel %vm745_vm7, %v9269_v16, %v19253_v11  ;;  %v9270_v11 = vsel %vm736_vm6, %v9142_v34, %v23017_v39  ;;  %v9271_v39 = vsel %vm736_vm6, %v9143_v21, %v23065_v54  ;;  %v23066_v34 = vld [vmem:[#allocation373_spill] sm:$0xff]  ;;  %v23068_v21 = vld [vmem:[#allocation392_spill] sm:$0xff] }
 0x73b   : > { %v19466_v36 = vpop.permute.xlu0 %8627  ;;  %v9525_v23 = vsel %vm754_vm8, %v9397_v49, %v19446_v22  ;;  %v9398_v6 = vsel %vm745_vm7, %v9270_v11, %v19277_v17  ;;  %v23067_v11 = vld [vmem:[#allocation168_spill] sm:$0xff] }
 0x73c   : > { %v19458_v15 = vpop.permute.xlu1 %8437  ;;  %v9653_v50 = vsel %vm763_vm9, %v9525_v23, %v19466_v36 }
 0x73d   : > { %8838 = vrot.lane.b32.xlu0 %v23062_v13, %s13396_s11 }
 0x73e   : > { %8645 = vrot.lane.b32.xlu1 %v23061_v38, %s13395_s8 }
 0x73f   : > { %v19489_v0 = vpop.permute.xlu0 %8822 }
 0x740   : > { %v19482_v5 = vpop.permute.xlu1 %8629  ;;  %v9781_v37 = vsel %vm772_vm10, %v9653_v50, %v19489_v0  ;;  %v9144_v50 = vsel %vm727_vm5, %v19395_v19, %v23066_v34 }
 0x741   : > { %8840 = vrot.lane.b32.xlu0 %v23064_v42, %s13396_s11  ;;  %12638 = vmatprep.mubr.msk.f32.mxu1 %vm787_vm11, %v9781_v37 }
 0x742   : > { %8255 = vrot.lane.b32.xlu1 %v23050_v48, %s13393_s29  ;;  %v9526_v48 = vsel %vm754_vm8, %v9398_v6, %v19458_v15 }
 0x743   : > { %v9654_v38 = vsel %vm763_vm9, %v9526_v48, %v19482_v5  ;;  %v19515_v17 = vpop.permute.xlu0 %8824  ;;  %v23070_v48 = vld [vmem:[#allocation59_spill] sm:$0xff] }
 0x744   : > { %v19509_v16 = vpop.permute.xlu1 %8239  ;;  %v9782_v23 = vsel %vm772_vm10, %v9654_v38, %v19515_v17 }
 0x745   : > { %v9399_v35 = vsel %vm745_vm7, %v9271_v39, %v19509_v16  ;;  %8399 = vrot.lane.b32.xlu0 %v23067_v11, %s13394_s15  ;;  %12639 = vmatmul.mubr.msk.f32.gmra.mrb[42].mxu1 %vm787_vm11, %v9782_v23  ;;  %v23069_v39 = vld [vmem:[#allocation144_spill] sm:$0xff]  ;;  %v23071_v23 = vld [vmem:[#allocation198_spill] sm:$0xff] }
 0x746   : > { %v9527_v49 = vsel %vm754_vm8, %v9399_v35, %v19357_v1  ;;  %8257 = vrot.lane.b32.xlu1 %v23051_v46, %s13393_s29  ;;  %v9272_v1 = vsel %vm736_vm6, %v9144_v50, %v23068_v21  ;;  %v8942_v38 = vsel %vm715_vm3, %v23070_v48, %v23069_v39  ;;  %v23073_v50 = vld [vmem:[#allocation190_spill] sm:$0xff]  ;;  %v23074_v48 = vld [vmem:[#allocation195_spill] sm:$0xff] }
 0x747   : > { %v9655_v37 = vsel %vm763_vm9, %v9527_v49, %v19398_v44  ;;  %v19542_v35 = vpop.permute.xlu0 %8383  ;;  %v19546_v44 = vsel %vm721_vm4, %v8942_v38, %v23071_v23  ;;  %v23075_v38 = vld [vmem:[#allocation97_spill] sm:$0xff]  ;;  %v23076_v23 = vld [vmem:[#allocation199_spill] sm:$0xff] }
 0x748   : > { %v19533_v6 = vpop.permute.xlu1 %8241  ;;  %v9783_v46 = vsel %vm772_vm10, %v9655_v37, %v8819_v26  ;;  %v23072_v26 = vld [vmem:[#allocation185_spill] sm:$0xff]  ;;  %v9091_v39 = vsel %vm727_vm5, %v19546_v44, %v23027_v40 }
 0x749   : > { %v9400_v19 = vsel %vm745_vm7, %v9272_v1, %v19533_v6  ;;  %12641 = vmatprep.mubr.msk.f32.mxu1 %vm787_vm11, %v9783_v46  ;;  %8591 = vrot.lane.b32.xlu0 %v23073_v50, %s13395_s8 }
 0x74a   : > { %v9528_v49 = vsel %vm754_vm8, %v9400_v19, %v19388_v29  ;;  %8401 = vrot.lane.b32.xlu1 %v23072_v26, %s13394_s15  ;;  %v8943_v29 = vsel %vm715_vm3, %v23075_v38, %v23074_v48  ;;  %v23161_v26 = vld [vmem:[#allocation219_spill] sm:$0xff] }
 0x74b   : > { %v9656_v37 = vsel %vm763_vm9, %v9528_v49, %v19423_v24  ;;  %v19566_v19 = vpop.permute.xlu0 %8575  ;;  %v19570_v50 = vsel %vm721_vm4, %v8943_v29, %v23076_v23  ;;  %v9219_v24 = vsel %vm736_vm6, %v9091_v39, %v23028_v60  ;;  %v23078_v49 = vld [vmem:[#allocation83_spill] sm:$0xff]  ;;  %v23079_v29 = vld [vmem:[#allocation372_spill] sm:$0xff] }
 0x74c   : > { %v19556_v1 = vpop.permute.xlu1 %8385  ;;  %v9784_v46 = vsel %vm772_vm10, %v9656_v37, %v8821_v7  ;;  %v23077_v7 = vld [vmem:[#allocation145_spill] sm:$0xff]  ;;  %v9347_v40 = vsel %vm745_vm7, %v9219_v24, %v23031_v53  ;;  %v9092_v48 = vsel %vm727_vm5, %v19570_v50, %v23033_v12  ;;  %v9145_v23 = vsel %vm727_vm5, %v19451_v45, %v23079_v29 }
 0x74d   : > { %12642 = vmatmul.mubr.msk.f32.gmra.mrb[44].mxu1 %vm787_vm11, %v9784_v46  ;;  %8786 = vrot.lane.b32.xlu0 %v23078_v49, %s13396_s11  ;;  %v9475_v37 = vsel %vm754_vm8, %v9347_v40, %v19542_v35  ;;  %v9220_v53 = vsel %vm736_vm6, %v9092_v48, %v23035_v4  ;;  %v23080_v24 = vld [vmem:[#allocation197_spill] sm:$0xff] }
 0x74e   : > { %8593 = vrot.lane.b32.xlu1 %v23077_v7, %s13395_s8  ;;  %v9603_v60 = vsel %vm763_vm9, %v9475_v37, %v19566_v19  ;;  %v9348_v12 = vsel %vm745_vm7, %v9220_v53, %v23039_v61  ;;  %v23081_v7 = vld [vmem:[#allocation391_spill] sm:$0xff] }
 0x74f   : > { %v19589_v39 = vpop.permute.xlu0 %8770  ;;  %v9273_v4 = vsel %vm736_vm6, %v9145_v23, %v23081_v7 }
 0x750   : > { %v19582_v46 = vpop.permute.xlu1 %8577  ;;  %v9731_v38 = vsel %vm772_vm10, %v9603_v60, %v19589_v39  ;;  %v23082_v60 = vld [vmem:[#allocation366_spill] sm:$0xff] }
 0x751   : > { %8788 = vrot.lane.b32.xlu0 %v23080_v24, %s13396_s11  ;;  %12563 = vmatprep.mubr.msk.f32.mxu0 %vm787_vm11, %v9731_v38  ;;  %v9146_v53 = vsel %vm727_vm5, %v19470_v2, %v23082_v60  ;;  %v23083_v38 = vld [vmem:[#allocation175_spill] sm:$0xff] }
 0x752   : > { %8259 = vrot.lane.b32.xlu1 %v23062_v13, %s13393_s29  ;;  %v9476_v13 = vsel %vm754_vm8, %v9348_v12, %v19556_v1  ;;  %v23084_v12 = vld [vmem:[#allocation384_spill] sm:$0xff] }
 0x753   : > { %v9604_v49 = vsel %vm763_vm9, %v9476_v13, %v19582_v46  ;;  %v19615_v61 = vpop.permute.xlu0 %8772 }
 0x754   : > { %v19609_v40 = vpop.permute.xlu1 %8243  ;;  %v9732_v48 = vsel %vm772_vm10, %v9604_v49, %v19615_v61 }
 0x755   : > { %v9401_v45 = vsel %vm745_vm7, %v9273_v4, %v19609_v40  ;;  %8403 = vrot.lane.b32.xlu0 %v23083_v38, %s13394_s15  ;;  %12564 = vmatmul.mubr.msk.f32.gmra.mrb[44].mxu0 %vm787_vm11, %v9732_v48  ;;  %v23085_v4 = vld [vmem:[#allocation194_spill] sm:$0xff]  ;;  %v23102_v38 = vld [vmem:[#allocation380_spill] sm:$0xff] }
 0x756   : > { %v9529_v37 = vsel %vm754_vm8, %v9401_v45, %v19446_v22  ;;  %8261 = vrot.lane.b32.xlu1 %v23064_v42, %s13393_s29  ;;  %v9274_v22 = vsel %vm736_vm6, %v9146_v53, %v23084_v12  ;;  %v8944_v2 = vsel %vm715_vm3, %v22896_v30, %v23085_v4  ;;  %v23086_v45 = vld [vmem:[#allocation89_spill] sm:$0xff]  ;;  %v23087_v48 = vld [vmem:[#allocation182_spill] sm:$0xff]  ;;  %v23089_v53 = vld [vmem:[#allocation184_spill] sm:$0xff] }
 0x757   : > { %v9657_v23 = vsel %vm763_vm9, %v9529_v37, %v19466_v36  ;;  %v8388_v49 = vpop.permute.xlu0 %8387  ;;  %v9009_v36 = vsel %vm721_vm4, %v8944_v2, %v23086_v45  ;;  %v23090_v4 = vld [vmem:[#allocation189_spill] sm:$0xff]  ;;  %v23091_v45 = vld [vmem:[#allocation187_spill] sm:$0xff] }
 0x758   : > { %v19633_v24 = vpop.permute.xlu1 %8245  ;;  %v9785_v42 = vsel %vm772_vm10, %v9657_v23, %v19489_v0  ;;  %v23088_v0 = vld [vmem:[#allocation193_spill] sm:$0xff]  ;;  %v8945_v23 = vsel %vm715_vm3, %v22899_v8, %v23089_v53  ;;  %v9093_v2 = vsel %vm727_vm5, %v9009_v36, %v23030_v57 }
 0x759   : > { %v9402_v13 = vsel %vm745_vm7, %v9274_v22, %v19633_v24  ;;  %12644 = vmatprep.mubr.msk.f32.mxu1 %vm787_vm11, %v9785_v42  ;;  %8595 = vrot.lane.b32.xlu0 %v23088_v0, %s13395_s8  ;;  %v23093_v53 = vld [vmem:[#allocation81_spill] sm:$0xff] }
 0x75a   : > { %v9530_v37 = vsel %vm754_vm8, %v9402_v13, %v19458_v15  ;;  %8405 = vrot.lane.b32.xlu1 %v23087_v48, %s13394_s15  ;;  %v9010_v15 = vsel %vm721_vm4, %v8945_v23, %v23090_v4  ;;  %v23103_v48 = vld [vmem:[#allocation385_spill] sm:$0xff] }
 0x75b   : > { %v9658_v30 = vsel %vm763_vm9, %v9530_v37, %v19482_v5  ;;  %v8580_v13 = vpop.permute.xlu0 %8579  ;;  %v9221_v5 = vsel %vm736_vm6, %v9093_v2, %v23034_v32  ;;  %v9094_v37 = vsel %vm727_vm5, %v9010_v15, %v23041_v9  ;;  %v9095_v32 = vsel %vm727_vm5, %v19546_v44, %v23093_v53  ;;  %v23095_v9 = vld [vmem:[#allocation191_spill] sm:$0xff] }
 0x75c   : > { %v19656_v22 = vpop.permute.xlu1 %8389  ;;  %v9786_v42 = vsel %vm772_vm10, %v9658_v30, %v19515_v17  ;;  %v9349_v8 = vsel %vm745_vm7, %v9221_v5, %v23042_v20  ;;  %v23092_v17 = vld [vmem:[#allocation196_spill] sm:$0xff]  ;;  %v9222_v30 = vsel %vm736_vm6, %v9094_v37, %v23044_v28 }
 0x75d   : > { %12645 = vmatmul.mubr.msk.f32.gmra.mrb[46].mxu1 %vm787_vm11, %v9786_v42  ;;  %8790 = vrot.lane.b32.xlu0 %v23092_v17, %s13396_s11  ;;  %v9477_v57 = vsel %vm754_vm8, %v9349_v8, %v8388_v49  ;;  %v23094_v20 = vld [vmem:[#allocation236_spill] sm:$0xff]  ;;  %v9350_v2 = vsel %vm745_vm7, %v9222_v30, %v23048_v10  ;;  %v23097_v8 = vld [vmem:[#allocation43_spill] sm:$0xff]  ;;  %v23099_v10 = vld [vmem:[#allocation210_spill] sm:$0xff] }
 0x75e   : > { %8597 = vrot.lane.b32.xlu1 %v23091_v45, %s13395_s8  ;;  %v9605_v23 = vsel %vm763_vm9, %v9477_v57, %v8580_v13  ;;  %v9223_v4 = vsel %vm736_vm6, %v9095_v32, %v23094_v20  ;;  %v23096_v45 = vld [vmem:[#allocation213_spill] sm:$0xff]  ;;  %v9478_v17 = vsel %vm754_vm8, %v9350_v2, %v19656_v22  ;;  %v23098_v37 = vld [vmem:[#allocation324_spill] sm:$0xff]  ;;  %v9096_v57 = vsel %vm727_vm5, %v19570_v50, %v23099_v10 }
 0x75f   : > { %v8775_v42 = vpop.permute.xlu0 %8774  ;;  %v9097_v28 = vsel %vm727_vm5, %v9009_v36, %v23096_v45  ;;  %v9351_v44 = vsel %vm745_vm7, %v9223_v4, %v23097_v8  ;;  %v23100_v30 = vld [vmem:[#allocation240_spill] sm:$0xff] }
 0x760   : > { %v8582_v0 = vpop.permute.xlu1 %8581  ;;  %v9733_v5 = vsel %vm772_vm10, %v9605_v23, %v8775_v42  ;;  %v9225_v32 = vsel %vm736_vm6, %v9097_v28, %v23100_v30  ;;  %v9479_v36 = vsel %vm754_vm8, %v9351_v44, %v19542_v35  ;;  %v23104_v44 = vld [vmem:[#allocation51_spill] sm:$0xff] }
 0x761   : > { %8455 = vrot.lane.b32.xlu0 %v23098_v37, %s13394_s15  ;;  %12566 = vmatprep.mubr.msk.f32.mxu0 %vm787_vm11, %v9733_v5  ;;  %v9606_v23 = vsel %vm763_vm9, %v9478_v17, %v8582_v0  ;;  %v8970_v5 = vsel %vm715_vm3, %v22908_v52, %v23102_v38  ;;  %v9607_v37 = vsel %vm763_vm9, %v9479_v36, %v19566_v19  ;;  %v23106_v19 = vld [vmem:[#allocation201_spill] sm:$0xff]  ;;  %v23107_v36 = vld [vmem:[#allocation48_spill] sm:$0xff] }
 0x762   : > { %8792 = vrot.lane.b32.xlu1 %v23095_v9, %s13396_s11  ;;  %v23101_v9 = vld [vmem:[#allocation241_spill] sm:$0xff]  ;;  %v19718_v35 = vsel %vm721_vm4, %v8970_v5, %v23103_v48  ;;  %v9735_v52 = vsel %vm772_vm10, %v9607_v37, %v19589_v39  ;;  %v9098_v38 = vsel %vm727_vm5, %v9010_v15, %v23106_v19  ;;  %v23108_v5 = vld [vmem:[#allocation351_spill] sm:$0xff] }
 0x763   : > { %v9224_v2 = vsel %vm736_vm6, %v9096_v57, %v23101_v9  ;;  %v19713_v50 = vpop.permute.xlu0 %8439  ;;  %v23105_v57 = vld [vmem:[#allocation341_spill] sm:$0xff] }
 0x764   : > { %v8777_v4 = vpop.permute.xlu1 %8776  ;;  %v9352_v17 = vsel %vm745_vm7, %v9224_v2, %v23104_v44  ;;  %v23109_v2 = vld [vmem:[#allocation224_spill] sm:$0xff] }
 0x765   : > { %v9734_v28 = vsel %vm772_vm10, %v9606_v23, %v8777_v4  ;;  %v9353_v23 = vsel %vm745_vm7, %v9225_v32, %v23107_v36  ;;  %v9480_v48 = vsel %vm754_vm8, %v9352_v17, %v19556_v1  ;;  %8647 = vrot.lane.b32.xlu0 %v23108_v5, %s13395_s8  ;;  %v9147_v1 = vsel %vm727_vm5, %v19718_v35, %v23063_v55  ;;  %v23111_v17 = vld [vmem:[#allocation388_spill] sm:$0xff] }
 0x766   : > { %8457 = vrot.lane.b32.xlu1 %v23105_v57, %s13394_s15  ;;  %12567 = vmatmul.mubr.msk.f32.gmra.mrb[46].mxu0 %vm787_vm11, %v9734_v28  ;;  %v9226_v28 = vsel %vm736_vm6, %v9098_v38, %v23109_v2  ;;  %v23110_v57 = vld [vmem:[#allocation386_spill] sm:$0xff]  ;;  %v9608_v15 = vsel %vm763_vm9, %v9480_v48, %v19582_v46  ;;  %v9481_v37 = vsel %vm754_vm8, %v9353_v23, %v8388_v49  ;;  %v23112_v49 = vld [vmem:[#allocation63_spill] sm:$0xff]  ;;  %v23113_v23 = vld [vmem:[#allocation352_spill] sm:$0xff] }
 0x767   : > { %12569 = vmatprep.mubr.msk.f32.mxu0 %vm787_vm11, %v9735_v52  ;;  %v8971_v39 = vsel %vm715_vm3, %v22914_v47, %v23110_v57  ;;  %v9609_v38 = vsel %vm763_vm9, %v9481_v37, %v8580_v13  ;;  %v19754_v5 = vpop.permute.xlu0 %8631  ;;  %v9736_v47 = vsel %vm772_vm10, %v9608_v15, %v19615_v61  ;;  %v9275_v46 = vsel %vm736_vm6, %v9147_v1, %v23065_v54  ;;  %v23114_v61 = vld [vmem:[#allocation359_spill] sm:$0xff]  ;;  %v19776_v54 = vld [vmem:[%s21692_s6] ss:$0 sm:$0xff] }
 0x768   : > { %v19744_v32 = vpop.permute.xlu1 %8441  ;;  %v19751_v52 = vsel %vm721_vm4, %v8971_v39, %v23111_v17  ;;  %v9354_v57 = vsel %vm745_vm7, %v9226_v28, %v23112_v49  ;;  %v9737_v55 = vsel %vm772_vm10, %v9609_v38, %v8775_v42  ;;  %v9403_v13 = vsel %vm745_vm7, %v9275_v46, %v19509_v16  ;;  %v23115_v38 = vld [vmem:[#allocation356_spill] sm:$0xff] }
 0x769   : > { %v9482_v48 = vsel %vm754_vm8, %v9354_v57, %v19656_v22  ;;  %8842 = vrot.lane.b32.xlu0 %v23114_v61, %s13396_s11  ;;  %v9148_v42 = vsel %vm727_vm5, %v19751_v52, %v23066_v34  ;;  %v9531_v16 = vsel %vm754_vm8, %v9403_v13, %v19713_v50  ;;  %v23117_v13 = vld [vmem:[#allocation383_spill] sm:$0xff] }
 0x76a   : > { %8649 = vrot.lane.b32.xlu1 %v23113_v23, %s13395_s8  ;;  %12570 = vmatmul.mubr.msk.f32.gmra.mrb[48].mxu0 %vm787_vm11, %v9736_v47  ;;  %v9610_v28 = vsel %vm763_vm9, %v9482_v48, %v8582_v0  ;;  %v9276_v39 = vsel %vm736_vm6, %v9148_v42, %v23068_v21  ;;  %v9659_v15 = vsel %vm763_vm9, %v9531_v16, %v19754_v5 }
 0x76b   : > { %12572 = vmatprep.mubr.msk.f32.mxu0 %vm787_vm11, %v9737_v55  ;;  %v19790_v1 = vpop.permute.xlu0 %8826  ;;  %v9738_v17 = vsel %vm772_vm10, %v9610_v28, %v8777_v4  ;;  %v9404_v34 = vsel %vm745_vm7, %v9276_v39, %v19533_v6  ;;  %v23116_v4 = vld [vmem:[#allocation228_spill] sm:$0xff]  ;;  %v8972_v48 = vsel %vm715_vm3, %v22918_v18, %v23117_v13  ;;  %v23118_v39 = vld [vmem:[#allocation387_spill] sm:$0xff] }
 0x76c   : > { %v19784_v22 = vpop.permute.xlu1 %8633  ;;  %v9787_v21 = vsel %vm772_vm10, %v9659_v15, %v19790_v1  ;;  %v9532_v46 = vsel %vm754_vm8, %v9404_v34, %v19744_v32  ;;  %v19820_v15 = vsel %vm721_vm4, %v8972_v48, %v23118_v39  ;;  %v23121_v34 = vld [vmem:[#allocation377_spill] sm:$0xff] }
 0x76d   : > { %v12511_v37 = vpop.f32.mrb[8].mxu0  ;;  %8459 = vrot.lane.b32.xlu0 %v23116_v4, %s13394_s15  ;;  %12647 = vmatprep.mubr.msk.f32.mxu1 %vm787_vm11, %v9787_v21  ;;  %v9660_v6 = vsel %vm763_vm9, %v9532_v46, %v19784_v22  ;;  %v23122_v46 = vld [vmem:[#allocation381_spill] sm:$0xff]  ;;  %v23158_v4 = vld [vmem:[#allocation263_spill] sm:$0xff] }
 0x76e   : > { %v10285_v0 = vadd.f32 %v12511_v37, %v19776_v54  ;;  %8844 = vrot.lane.b32.xlu1 %v23115_v38, %s13396_s11  ;;  %v10279_v47 = vpop.f32.mrb[9].mxu0  ;;  %12573 = vmatmul.mubr.msk.f32.gmra.mrb[50].mxu0 %vm787_vm11, %v9738_v17  ;;  %v23119_v37 = vld [vmem:[#allocation337_spill] sm:$0xff]  ;;  %v23120_v17 = vld [vmem:[#allocation355_spill] sm:$0xff] }
 0x76f   : > { %v10280_v57 = vadd.f32 %v19776_v54, %v10279_v47  ;;  %v19814_v28 = vpop.permute.xlu0 %8443  ;;  %v9149_v47 = vsel %vm727_vm5, %v19820_v15, %v23079_v29 }
 0x770   : > { %v12069_v23 = vmul.f32 -1.442695, %v10285_v0  ;;  %v19809_v55 = vpop.permute.xlu1 %8828  ;;  %v8973_v0 = vsel %vm715_vm3, %v22921_v31, %v23121_v34  ;;  %v23124_v31 = vld [vmem:[#allocation363_spill] sm:$0xff] }
 0x771   : > { %v12068_v42 = vmul.f32 -1.442695, %v10280_v57  ;;  %v9788_v16 = vsel %vm772_vm10, %v9660_v6, %v19809_v55  ;;  %8651 = vrot.lane.b32.xlu0 %v23120_v17, %s13395_s8  ;;  %v19839_v57 = vsel %vm721_vm4, %v8973_v0, %v23122_v46  ;;  %v9277_v6 = vsel %vm736_vm6, %v9149_v47, %v23081_v7  ;;  %v23125_v47 = vld [vmem:[#allocation376_spill] sm:$0xff] }
 0x772   : > { %12826 = vpow2.f32 %v12069_v23  ;;  %8461 = vrot.lane.b32.xlu1 %v23119_v37, %s13394_s15  ;;  %12648 = vmatmul.mubr.msk.f32.gmra.mrb[48].mxu1 %vm787_vm11, %v9788_v16  ;;  %v23123_v23 = vld [vmem:[#allocation344_spill] sm:$0xff]  ;;  %v9405_v13 = vsel %vm745_vm7, %v9277_v6, %v19609_v40 }
 0x773   : > { %12828 = vpow2.f32 %v12068_v42  ;;  %v19835_v21 = vpop.permute.xlu0 %8635  ;;  %v9533_v29 = vsel %vm754_vm8, %v9405_v13, %v19814_v28  ;;  %v9150_v42 = vsel %vm727_vm5, %v19839_v57, %v23082_v60  ;;  %v9151_v60 = vsel %vm727_vm5, %v19718_v35, %v23125_v47 }
 0x774   : > { %v19827_v18 = vpop.permute.xlu1 %8445  ;;  %v9661_v7 = vsel %vm763_vm9, %v9533_v29, %v19835_v21  ;;  %v9278_v40 = vsel %vm736_vm6, %v9150_v42, %v23084_v12  ;;  %v23126_v12 = vld [vmem:[#allocation348_spill] sm:$0xff] }
 0x775   : > { %8846 = vrot.lane.b32.xlu0 %v23124_v31, %s13396_s11  ;;  %v9406_v46 = vsel %vm745_vm7, %v9278_v40, %v19633_v24 }
 0x776   : > { %8653 = vrot.lane.b32.xlu1 %v23123_v23, %s13395_s8  ;;  %v9534_v29 = vsel %vm754_vm8, %v9406_v46, %v19827_v18  ;;  %v23128_v46 = vld [vmem:[#allocation394_spill] sm:$0xff] }
 0x777   : > { %v19858_v39 = vpop.permute.xlu0 %8830 }
 0x778   : > { %v19851_v48 = vpop.permute.xlu1 %8637  ;;  %v9789_v0 = vsel %vm772_vm10, %v9661_v7, %v19858_v39 }
 0x779   : > { %v12514_v16 = vpop.f32.mrb[10].mxu0  ;;  %8848 = vrot.lane.b32.xlu0 %v23126_v12, %s13396_s11  ;;  %12650 = vmatprep.mubr.msk.f32.mxu1 %vm787_vm11, %v9789_v0  ;;  %v9662_v24 = vsel %vm763_vm9, %v9534_v29, %v19851_v48 }
 0x77a   : > { %v10295_v17 = vadd.f32 %v12514_v16, %v19776_v54  ;;  %8263 = vrot.lane.b32.xlu1 %v23114_v61, %s13393_s29  ;;  %v10289_v34 = vpop.f32.mrb[11].mxu0  ;;  %v23127_v61 = vld [vmem:[#allocation41_spill] sm:$0xff] }
 0x77b   : > { %v10290_v6 = vadd.f32 %v19776_v54, %v10289_v34  ;;  %v9279_v13 = vsel %vm736_vm6, %v9151_v60, %v23127_v61  ;;  %v19886_v0 = vpop.permute.xlu0 %8832 }
 0x77c   : > { %v12827_v23 = vpop.eup %12826  ;;  %v12071_v42 = vmul.f32 -1.442695, %v10295_v17  ;;  %v19880_v7 = vpop.permute.xlu1 %8247  ;;  %v9790_v17 = vsel %vm772_vm10, %v9662_v24, %v19886_v0  ;;  %v23132_v24 = vld [vmem:[#allocation229_spill] sm:$0xff] }
 0x77d   : > { %v12829_v35 = vpop.eup %12828  ;;  %v11303_v16 = vadd.f32 1.0, %v12827_v23  ;;  %v12070_v40 = vmul.f32 -1.442695, %v10290_v6  ;;  %v9407_v34 = vsel %vm745_vm7, %v9279_v13, %v19880_v7  ;;  %v9152_v6 = vsel %vm727_vm5, %v19751_v52, %v23128_v46  ;;  %v23129_v23 = vld [vmem:[#allocation186_spill] sm:$0xff]  ;;  %12651 = vmatmul.mubr.msk.f32.gmra.mrb[50].mxu1 %vm787_vm11, %v9790_v17  ;;  %v23130_v13 = vld [vmem:[#allocation27_spill] sm:$0xff] }
 0x77e   : > { %v11302_v37 = vadd.f32 1.0, %v12829_v35  ;;  %12830 = vpow2.f32 %v12071_v42  ;;  %v9535_v60 = vsel %vm754_vm8, %v9407_v34, %v19713_v50  ;;  %8265 = vrot.lane.b32.xlu1 %v23115_v38, %s13393_s29  ;;  %8407 = vrot.lane.b32.xlu0 %v23129_v23, %s13394_s15  ;;  %v9280_v38 = vsel %vm736_vm6, %v9152_v6, %v23130_v13  ;;  %v23131_v52 = vld [vmem:[#allocation223_spill] sm:$0xff] }
 0x77f   : > { %12832 = vrcp.f32 %v11303_v16  ;;  %v9663_v50 = vsel %vm763_vm9, %v9535_v60, %v19754_v5  ;;  %v8946_v35 = vsel %vm715_vm3, %v22938_v41, %v23131_v52  ;;  %v19914_v5 = vpop.permute.xlu0 %8391  ;;  %v23134_v41 = vld [vmem:[#allocation208_spill] sm:$0xff] }
 0x780   : > { %12834 = vrcp.f32 %v11302_v37  ;;  %v19904_v29 = vpop.permute.xlu1 %8249  ;;  %v9791_v42 = vsel %vm772_vm10, %v9663_v50, %v19790_v1  ;;  %v19918_v37 = vsel %vm721_vm4, %v8946_v35, %v23132_v24  ;;  %v23133_v1 = vld [vmem:[#allocation87_spill] sm:$0xff] }
 0x781   : > { %12836 = vpow2.f32 %v12070_v40  ;;  %v9408_v16 = vsel %vm745_vm7, %v9280_v38, %v19904_v29  ;;  %12653 = vmatprep.mubr.msk.f32.mxu1 %vm787_vm11, %v9791_v42  ;;  %v9099_v6 = vsel %vm727_vm5, %v19918_v37, %v23093_v53  ;;  %v23137_v53 = vld [vmem:[#allocation216_spill] sm:$0xff] }
 0x782   : > { %v9536_v34 = vsel %vm754_vm8, %v9408_v16, %v19744_v32  ;;  %8409 = vrot.lane.b32.xlu1 %v23133_v1, %s13394_s15  ;;  %8599 = vrot.lane.b32.xlu0 %v23134_v41, %s13395_s8  ;;  %v23135_v32 = vld [vmem:[#allocation227_spill] sm:$0xff] }
 0x783   : > { %v9664_v40 = vsel %vm763_vm9, %v9536_v34, %v19784_v22  ;;  %v8947_v50 = vsel %vm715_vm3, %v22941_v3, %v23135_v32  ;;  %v19940_v42 = vpop.permute.xlu0 %8583  ;;  %v23136_v22 = vld [vmem:[#allocation232_spill] sm:$0xff] }
 0x784   : > { %v19929_v60 = vpop.permute.xlu1 %8393  ;;  %v9792_v17 = vsel %vm772_vm10, %v9664_v40, %v19809_v55  ;;  %v19944_v52 = vsel %vm721_vm4, %v8947_v50, %v23136_v22  ;;  %v9227_v55 = vsel %vm736_vm6, %v9099_v6, %v23094_v20  ;;  %v23138_v20 = vld [vmem:[#allocation214_spill] sm:$0xff] }
 0x785   : > { %v12517_v38 = vpop.f32.mrb[12].mxu0  ;;  %12654 = vmatmul.mubr.msk.f32.gmra.mrb[52].mxu1 %vm787_vm11, %v9792_v17  ;;  %v9355_v3 = vsel %vm745_vm7, %v9227_v55, %v23097_v8  ;;  %v9100_v8 = vsel %vm727_vm5, %v19944_v52, %v23099_v10 }
 0x786   : > { %v10305_v35 = vadd.f32 %v12517_v38, %v19776_v54  ;;  %8601 = vrot.lane.b32.xlu1 %v23137_v53, %s13395_s8  ;;  %v10299_v16 = vpop.f32.mrb[13].mxu0  ;;  %8794 = vrot.lane.b32.xlu0 %v23138_v20, %s13396_s11  ;;  %v9483_v41 = vsel %vm754_vm8, %v9355_v3, %v19914_v5  ;;  %v9228_v53 = vsel %vm736_vm6, %v9100_v8, %v23101_v9 }
 0x787   : > { %v10300_v24 = vadd.f32 %v19776_v54, %v10299_v16  ;;  %v9611_v50 = vsel %vm763_vm9, %v9483_v41, %v19940_v42  ;;  %v19970_v22 = vpop.permute.xlu0 %8778  ;;  %v23139_v16 = vld [vmem:[#allocation215_spill] sm:$0xff]  ;;  %v9356_v9 = vsel %vm745_vm7, %v9228_v53, %v23104_v44 }
 0x788   : > { %v12831_v34 = vpop.eup %12830  ;;  %v12073_v40 = vmul.f32 -1.442695, %v10305_v35  ;;  %v19963_v17 = vpop.permute.xlu1 %8585  ;;  %v9739_v10 = vsel %vm772_vm10, %v9611_v50, %v19970_v22  ;;  %v8949_v3 = vsel %vm715_vm3, %v22951_v56, %v23139_v16  ;;  %v9484_v56 = vsel %vm754_vm8, %v9356_v9, %v19929_v60  ;;  %v23147_v9 = vld [vmem:[#allocation149_spill] sm:$0xff] }
 0x789   : > { %v12833_v6 = vpop.eup %12832  ;;  %v11305_v32 = vadd.f32 1.0, %v12831_v34  ;;  %v12072_v38 = vmul.f32 -1.442695, %v10300_v24  ;;  %v23140_v24 = vld [vmem:[#allocation393_spill] sm:$0xff]  ;;  %12575 = vmatprep.mubr.msk.f32.mxu0 %vm787_vm11, %v9739_v10  ;;  %v23142_v34 = vld [vmem:[#allocation15_spill] sm:$0xff]  ;;  %v9612_v8 = vsel %vm763_vm9, %v9484_v56, %v19963_v17 }
 0x78a   : > { %v12835_v55 = vpop.eup %12834  ;;  %11688 = vst.msk [vmem:[%s19954_s12 + $0x8] sm:$0xff] %vm11686_vm0, %v12833_v6  ;;  %12838 = vpow2.f32 %v12073_v40  ;;  %8267 = vrot.lane.b32.xlu1 %v23124_v31, %s13393_s29  ;;  %v9153_v20 = vsel %vm727_vm5, %v19820_v15, %v23140_v24  ;;  %v23141_v31 = vld [vmem:[#allocation220_spill] sm:$0xff]  ;;  %v23143_v6 = vld [vmem:[#allocation221_spill] sm:$0xff] }
 0x78b   : > { %v12837_v35 = vpop.eup %12836  ;;  %11687 = vst.msk [vmem:[%s19954_s12] sm:$0xff] %vm11686_vm0, %v12835_v55  ;;  %12840 = vrcp.f32 %v11305_v32  ;;  %8796 = vrot.lane.b32.xlu0 %v23141_v31, %s13396_s11  ;;  %v9281_v41 = vsel %vm736_vm6, %v9153_v20, %v23142_v34  ;;  %v9014_v44 = vsel %vm721_vm4, %v8949_v3, %v23143_v6  ;;  %v20005_v50 = vpop.permute.xlu0 %8780  ;;  %v23144_v55 = vld [vmem:[#allocation225_spill] sm:$0xff]  ;;  %v23146_v3 = vld [vmem:[#allocation390_spill] sm:$0xff] }
 0x78c   : > { %v11304_v40 = vadd.f32 1.0, %v12837_v35  ;;  %12842 = vpow2.f32 %v12072_v38  ;;  %v19997_v15 = vpop.permute.xlu1 %8251  ;;  %v8948_v53 = vsel %vm715_vm3, %v22948_v62, %v23144_v55  ;;  %v9740_v10 = vsel %vm772_vm10, %v9612_v8, %v20005_v50  ;;  %v23145_v35 = vld [vmem:[#allocation233_spill] sm:$0xff]  ;;  %v23149_v6 = vld [vmem:[#allocation218_spill] sm:$0xff] }
 0x78d   : > { %v9409_v32 = vsel %vm745_vm7, %v9281_v41, %v19997_v15  ;;  %v9013_v16 = vsel %vm721_vm4, %v8948_v53, %v23145_v35  ;;  %v9154_v20 = vsel %vm727_vm5, %v19839_v57, %v23146_v3  ;;  %12576 = vmatmul.mubr.msk.f32.gmra.mrb[52].mxu0 %vm787_vm11, %v9740_v10  ;;  %v23148_v41 = vld [vmem:[#allocation411_spill] sm:$0xff]  ;;  %v9103_v8 = vsel %vm727_vm5, %v19918_v37, %v23149_v6  ;;  %v23150_v53 = vld [vmem:[#allocation237_spill] sm:$0xff]  ;;  %v23151_v37 = vld [vmem:[#allocation200_spill] sm:$0xff] }
 0x78e   : > { %12844 = vrcp.f32 %v11304_v40  ;;  %v9537_v38 = vsel %vm754_vm8, %v9409_v32, %v19814_v28  ;;  %8269 = vrot.lane.b32.xlu1 %v23126_v12, %s13393_s29  ;;  %v9102_v28 = vsel %vm727_vm5, %v9014_v44, %v23106_v19  ;;  %v9282_v12 = vsel %vm736_vm6, %v9154_v20, %v23148_v41  ;;  %v23152_v20 = vld [vmem:[#allocation244_spill] sm:$0xff] }
 0x78f   : > { %8411 = vrot.lane.b32.xlu0 %v23147_v9, %s13394_s15  ;;  %v9665_v62 = vsel %vm763_vm9, %v9537_v38, %v19835_v21  ;;  %v9230_v57 = vsel %vm736_vm6, %v9102_v28, %v23109_v2  ;;  %v20042_v19 = vpop.permute.xlu0 %8395  ;;  %v9101_v55 = vsel %vm727_vm5, %v9013_v16, %v23096_v45  ;;  %v23153_v28 = vld [vmem:[#allocation212_spill] sm:$0xff] }
 0x790   : > { %v20030_v40 = vpop.permute.xlu1 %8253  ;;  %v9793_v56 = vsel %vm772_vm10, %v9665_v62, %v19858_v39  ;;  %v9106_v39 = vsel %vm727_vm5, %v9014_v44, %v23150_v53  ;;  %v9229_v35 = vsel %vm736_vm6, %v9101_v55, %v23100_v30  ;;  %v9105_v62 = vsel %vm727_vm5, %v9013_v16, %v23152_v20 }
 0x791   : > { %v9410_v21 = vsel %vm745_vm7, %v9282_v12, %v20030_v40  ;;  %v12520_v32 = vpop.f32.mrb[14].mxu0  ;;  %12656 = vmatprep.mubr.msk.f32.mxu1 %vm787_vm11, %v9793_v56  ;;  %v23154_v12 = vld [vmem:[#allocation245_spill] sm:$0xff] }
 0x792   : > { %v9538_v2 = vsel %vm754_vm8, %v9410_v21, %v19827_v18  ;;  %v10315_v38 = vadd.f32 %v12520_v32, %v19776_v54  ;;  %8413 = vrot.lane.b32.xlu1 %v23151_v37, %s13394_s15  ;;  %v10309_v10 = vpop.f32.mrb[15].mxu0  ;;  %v9104_v56 = vsel %vm727_vm5, %v19944_v52, %v23154_v12  ;;  %v23155_v21 = vld [vmem:[#allocation253_spill] sm:$0xff] }
 0x793   : > { %v10310_v45 = vadd.f32 %v19776_v54, %v10309_v10  ;;  %8603 = vrot.lane.b32.xlu0 %v23153_v28, %s13395_s8  ;;  %v9666_v18 = vsel %vm763_vm9, %v9538_v2, %v19851_v48  ;;  %v20067_v30 = vsel %vm736_vm6, %v9106_v39, %v23155_v21  ;;  %v23156_v28 = vld [vmem:[#allocation261_spill] sm:$0xff]  ;;  %v23157_v2 = vld [vmem:[#allocation178_spill] sm:$0xff]  ;;  %v20080_v39 = vpop.permute.xlu0 %8587  ;;  %v9232_v37 = vsel %vm736_vm6, %v9104_v56, %v23158_v4 }
 0x794   : > { %v12839_v44 = vpop.eup %12838  ;;  %v12075_v32 = vmul.f32 -1.442695, %v10315_v38  ;;  %v20069_v16 = vpop.permute.xlu1 %8397  ;;  %v9794_v55 = vsel %vm772_vm10, %v9666_v18, %v19886_v0  ;;  %v9231_v48 = vsel %vm736_vm6, %v9103_v8, %v23156_v28  ;;  %v20077_v1 = vsel %vm736_vm6, %v9105_v62, %v23157_v2  ;;  %v23159_v0 = vld [vmem:[#allocation397_spill] sm:$0xff]  ;;  %v23160_v62 = vld [vmem:[#allocation206_spill] sm:$0xff] }
 0x795   : > { %v12841_v10 = vpop.eup %12840  ;;  %v11307_v52 = vadd.f32 1.0, %v12839_v44  ;;  %v12074_v9 = vmul.f32 -1.442695, %v10310_v45  ;;  %v12523_v23 = vpop.f32.mrb[16].mxu0  ;;  %12657 = vmatmul.mubr.msk.f32.gmra.mrb[54].mxu1 %vm787_vm11, %v9794_v55  ;;  %v8974_v18 = vsel %vm715_vm3, %v22966_v51, %v23159_v0  ;;  %v9357_v44 = vsel %vm745_vm7, %v9229_v35, %v23107_v36  ;;  %v23163_v36 = vld [vmem:[#allocation30_spill] sm:$0xff] }
 0x796   : > { %v12843_v38 = vpop.eup %12842  ;;  %11690 = vst.msk [vmem:[%s19954_s12 + $0x18] sm:$0xff] %vm11686_vm0, %v12841_v10  ;;  %12846 = vpow2.f32 %v12075_v32  ;;  %v10325_v8 = vadd.f32 %v12523_v23, %v19776_v54  ;;  %8605 = vrot.lane.b32.xlu1 %v23160_v62, %s13395_s8  ;;  %v10319_v45 = vpop.f32.mrb[17].mxu0  ;;  %v23162_v10 = vld [vmem:[#allocation31_spill] sm:$0xff]  ;;  %v9485_v23 = vsel %vm754_vm8, %v9357_v44, %v20042_v19  ;;  %v20106_v35 = vsel %vm721_vm4, %v8974_v18, %v23163_v36  ;;  %v23164_v18 = vld [vmem:[#allocation209_spill] sm:$0xff] }
 0x797   : > { %12848 = vrcp.f32 %v11307_v52  ;;  %v11306_v55 = vadd.f32 1.0, %v12843_v38  ;;  %v10320_v56 = vadd.f32 %v19776_v54, %v10319_v45  ;;  %8798 = vrot.lane.b32.xlu0 %v23161_v26, %s13396_s11  ;;  %v8975_v32 = vsel %vm715_vm3, %v22972_v33, %v23162_v10  ;;  %v8783_v33 = vpop.permute.xlu0 %8782 }
 0x798   : > { %v12845_v51 = vpop.eup %12844  ;;  %12850 = vpow2.f32 %v12074_v9  ;;  %v12077_v0 = vmul.f32 -1.442695, %v10325_v8  ;;  %v20102_v62 = vpop.permute.xlu1 %8589  ;;  %v9613_v52 = vsel %vm763_vm9, %v9485_v23, %v20080_v39  ;;  %v9358_v44 = vsel %vm745_vm7, %v9230_v57, %v23112_v49  ;;  %v23166_v49 = vld [vmem:[#allocation8_spill] sm:$0xff] }
 0x799   : > { %11689 = vst.msk [vmem:[%s19954_s12 + $0x10] sm:$0xff] %vm11686_vm0, %v12845_v51  ;;  %12852 = vrcp.f32 %v11306_v55  ;;  %v12076_v38 = vmul.f32 -1.442695, %v10320_v56  ;;  %v12526_v45 = vpop.f32.mrb[18].mxu0  ;;  %v9741_v8 = vsel %vm772_vm10, %v9613_v52, %v8783_v33  ;;  %v23165_v51 = vld [vmem:[#allocation73_spill] sm:$0xff]  ;;  %v9486_v56 = vsel %vm754_vm8, %v9358_v44, %v20069_v16 }
 0x79a   : > { %12854 = vpow2.f32 %v12077_v0  ;;  %v10335_v9 = vadd.f32 %v12526_v45, %v19776_v54  ;;  %8800 = vrot.lane.b32.xlu1 %v23164_v18, %s13396_s11  ;;  %v10329_v10 = vpop.f32.mrb[19].mxu0  ;;  %v9359_v55 = vsel %vm745_vm7, %v9231_v48, %v23165_v51  ;;  %12578 = vmatprep.mubr.msk.f32.mxu0 %vm787_vm11, %v9741_v8  ;;  %v20128_v57 = vsel %vm721_vm4, %v8975_v32, %v23166_v49 }
 0x79b   : > { %12856 = vpow2.f32 %v12076_v38  ;;  %v10330_v23 = vadd.f32 %v19776_v54, %v10329_v10  ;;  %8217 = vrot.lane.b32.xlu0 %v23141_v31, %s13393_s29  ;;  %v9487_v0 = vsel %vm754_vm8, %v9359_v55, %v19914_v5  ;;  %v9614_v48 = vsel %vm763_vm9, %v9486_v56, %v20102_v62  ;;  %v20140_v8 = vpop.permute.xlu0 %8447  ;;  %v23167_v10 = vld [vmem:[#allocation47_spill] sm:$0xff] }
 0x79c   : > { %v12079_v36 = vmul.f32 -1.442695, %v10335_v9  ;;  %v8785_v52 = vpop.permute.xlu1 %8784  ;;  %v9155_v38 = vsel %vm727_vm5, %v20106_v35, %v23125_v47  ;;  %v9615_v31 = vsel %vm763_vm9, %v9487_v0, %v19940_v42  ;;  %v9360_v5 = vsel %vm745_vm7, %v9232_v37, %v23167_v10  ;;  %v23168_v55 = vld [vmem:[#allocation347_spill] sm:$0xff]  ;;  %v23170_v0 = vld [vmem:[#allocation364_spill] sm:$0xff] }
 0x79d   : > { %v12078_v45 = vmul.f32 -1.442695, %v10330_v23  ;;  %v9742_v44 = vsel %vm772_vm10, %v9614_v48, %v8785_v52  ;;  %v12529_v32 = vpop.f32.mrb[20].mxu0  ;;  %v9743_v47 = vsel %vm772_vm10, %v9615_v31, %v19970_v22  ;;  %v23169_v42 = vld [vmem:[#allocation67_spill] sm:$0xff]  ;;  %v9488_v49 = vsel %vm754_vm8, %v9360_v5, %v19929_v60 }
 0x79e   : > { %12858 = vpow2.f32 %v12079_v36  ;;  %v10345_v9 = vadd.f32 %v12529_v32, %v19776_v54  ;;  %8463 = vrot.lane.b32.xlu1 %v23168_v55, %s13394_s15  ;;  %v10339_v56 = vpop.f32.mrb[21].mxu0  ;;  %12579 = vmatmul.mubr.msk.f32.gmra.mrb[54].mxu0 %vm787_vm11, %v9742_v44  ;;  %v9361_v23 = vsel %vm745_vm7, %v20077_v1, %v23169_v42  ;;  %v9156_v22 = vsel %vm727_vm5, %v20128_v57, %v23128_v46 }
 0x79f   : > { %12860 = vpow2.f32 %v12078_v45  ;;  %v10340_v37 = vadd.f32 %v19776_v54, %v10339_v56  ;;  %8465 = vrot.lane.b32.xlu0 %v23170_v0, %s13394_s15  ;;  %12581 = vmatprep.mubr.msk.f32.mxu0 %vm787_vm11, %v9743_v47  ;;  %v9616_v1 = vsel %vm763_vm9, %v9488_v49, %v19963_v17  ;;  %v9489_v60 = vsel %vm754_vm8, %v9361_v23, %v20042_v19  ;;  %v20172_v47 = vpop.permute.xlu0 %8639  ;;  %v23171_v49 = vld [vmem:[#allocation62_spill] sm:$0xff] }
 0x7a0   : > { %v12847_v48 = vpop.eup %12846  ;;  %v12081_v36 = vmul.f32 -1.442695, %v10345_v9  ;;  %v20166_v31 = vpop.permute.xlu1 %8449  ;;  %v9744_v44 = vsel %vm772_vm10, %v9616_v1, %v20005_v50  ;;  %v9617_v5 = vsel %vm763_vm9, %v9489_v60, %v20080_v39  ;;  %v9283_v17 = vsel %vm736_vm6, %v9155_v38, %v23127_v61  ;;  %v23172_v9 = vld [vmem:[#allocation370_spill] sm:$0xff] }
 0x7a1   : > { %v12849_v45 = vpop.eup %12848  ;;  %v11309_v32 = vadd.f32 1.0, %v12847_v48  ;;  %v12080_v56 = vmul.f32 -1.442695, %v10340_v37  ;;  %v9362_v19 = vsel %vm745_vm7, %v20067_v30, %v23171_v49  ;;  %v9745_v50 = vsel %vm772_vm10, %v9617_v5, %v8783_v33  ;;  %v23173_v30 = vld [vmem:[#allocation375_spill] sm:$0xff] }
 0x7a2   : > { %v12851_v46 = vpop.eup %12850  ;;  %11692 = vst.msk [vmem:[%s19954_s12 + $0x28] sm:$0xff] %vm11686_vm0, %v12849_v45  ;;  %12862 = vpow2.f32 %v12081_v36  ;;  %8655 = vrot.lane.b32.xlu1 %v23172_v9, %s13395_s8  ;;  %12582 = vmatmul.mubr.msk.f32.gmra.mrb[56].mxu0 %vm787_vm11, %v9744_v44  ;;  %v9411_v23 = vsel %vm745_vm7, %v9283_v17, %v19880_v7  ;;  %v9490_v38 = vsel %vm754_vm8, %v9362_v19, %v20069_v16  ;;  %v23175_v17 = vld [vmem:[#allocation28_spill] sm:$0xff] }
 0x7a3   : > { %v12853_v39 = vpop.eup %12852  ;;  %12864 = vrcp.f32 %v11309_v32  ;;  %v11308_v61 = vadd.f32 1.0, %v12851_v46  ;;  %8657 = vrot.lane.b32.xlu0 %v23173_v30, %s13395_s8  ;;  %12584 = vmatprep.mubr.msk.f32.mxu0 %vm787_vm11, %v9745_v50  ;;  %v9284_v37 = vsel %vm736_vm6, %v9156_v22, %v23130_v13  ;;  %v9618_v48 = vsel %vm763_vm9, %v9490_v38, %v20102_v62  ;;  %v20205_v13 = vpop.permute.xlu0 %8834  ;;  %v23174_v32 = vld [vmem:[#allocation378_spill] sm:$0xff] }
 0x7a4   : > { %v12855_v33 = vpop.eup %12854  ;;  %11691 = vst.msk [vmem:[%s19954_s12 + $0x20] sm:$0xff] %vm11686_vm0, %v12853_v39  ;;  %v9539_v7 = vsel %vm754_vm8, %v9411_v23, %v20140_v8  ;;  %12866 = vpow2.f32 %v12080_v56  ;;  %v20200_v1 = vpop.permute.xlu1 %8641  ;;  %v9746_v36 = vsel %vm772_vm10, %v9618_v48, %v8785_v52  ;;  %v9412_v22 = vsel %vm745_vm7, %v9284_v37, %v19904_v29  ;;  %v23176_v23 = vld [vmem:[#allocation39_spill] sm:$0xff] }
 0x7a5   : > { %v12857_v16 = vpop.eup %12856  ;;  %12868 = vrcp.f32 %v11308_v61  ;;  %v11311_v60 = vadd.f32 1.0, %v12855_v33  ;;  %v9667_v45 = vsel %vm763_vm9, %v9539_v7, %v20172_v47  ;;  %v9540_v52 = vsel %vm754_vm8, %v9412_v22, %v20166_v31  ;;  %v23177_v33 = vld [vmem:[#allocation379_spill] sm:$0xff] }
 0x7a6   : > { %v11310_v62 = vadd.f32 1.0, %v12857_v16  ;;  %v9795_v44 = vsel %vm772_vm10, %v9667_v45, %v20205_v13  ;;  %8850 = vrot.lane.b32.xlu1 %v23174_v32, %s13396_s11  ;;  %12585 = vmatmul.mubr.msk.f32.gmra.mrb[58].mxu0 %vm787_vm11, %v9746_v36  ;;  %v9668_v29 = vsel %vm763_vm9, %v9540_v52, %v20200_v1  ;;  %v8976_v19 = vsel %vm715_vm3, %v22980_v25, %v23175_v17  ;;  %v23178_v36 = vld [vmem:[#allocation396_spill] sm:$0xff] }
 0x7a7   : > { %12870 = vrcp.f32 %v11311_v60  ;;  %8219 = vrot.lane.b32.xlu0 %v23161_v26, %s13393_s29  ;;  %12659 = vmatprep.mubr.msk.f32.mxu1 %vm787_vm11, %v9795_v44  ;;  %v20228_v26 = vpop.permute.xlu0 %8451  ;;  %v20232_v61 = vsel %vm721_vm4, %v8976_v19, %v23176_v23  ;;  %v8977_v45 = vsel %vm715_vm3, %v22985_v27, %v23178_v36 }
 0x7a8   : > { %v12859_v5 = vpop.eup %12858  ;;  %12872 = vrcp.f32 %v11310_v62  ;;  %v20221_v56 = vpop.permute.xlu1 %8836  ;;  %v9157_v22 = vsel %vm727_vm5, %v20232_v61, %v23140_v24  ;;  %v23180_v24 = vld [vmem:[#allocation239_spill] sm:$0xff] }
 0x7a9   : > { %v12861_v46 = vpop.eup %12860  ;;  %v11313_v50 = vadd.f32 1.0, %v12859_v5  ;;  %v9796_v9 = vsel %vm772_vm10, %v9668_v29, %v20221_v56  ;;  %v12532_v39 = vpop.f32.mrb[22].mxu0  ;;  %v23179_v29 = vld [vmem:[#allocation398_spill] sm:$0xff]  ;;  %v9285_v17 = vsel %vm736_vm6, %v9157_v22, %v23142_v34 }
 0x7aa   : > { %v11312_v38 = vadd.f32 1.0, %v12861_v46  ;;  %v10355_v30 = vadd.f32 %v12532_v39, %v19776_v54  ;;  %8852 = vrot.lane.b32.xlu1 %v23177_v33, %s13396_s11  ;;  %v10349_v37 = vpop.f32.mrb[23].mxu0  ;;  %12660 = vmatmul.mubr.msk.f32.gmra.mrb[56].mxu1 %vm787_vm11, %v9796_v9  ;;  %v20253_v46 = vsel %vm721_vm4, %v8977_v45, %v23179_v29  ;;  %v9413_v9 = vsel %vm745_vm7, %v9285_v17, %v19997_v15 }
 0x7ab   : > { %12874 = vrcp.f32 %v11313_v50  ;;  %v10350_v25 = vadd.f32 %v19776_v54, %v10349_v37  ;;  %8221 = vrot.lane.b32.xlu0 %v23164_v18, %s13393_s29  ;;  %v20249_v5 = vpop.permute.xlu0 %8643  ;;  %v9541_v34 = vsel %vm754_vm8, %v9413_v9, %v20228_v26  ;;  %v9158_v15 = vsel %vm727_vm5, %v20253_v46, %v23146_v3 }
 0x7ac   : > { %v12863_v48 = vpop.eup %12862  ;;  %12876 = vrcp.f32 %v11312_v38  ;;  %v12083_v7 = vmul.f32 -1.442695, %v10355_v30  ;;  %v20241_v16 = vpop.permute.xlu1 %8453  ;;  %v23181_v38 = vld [vmem:[#allocation360_spill] sm:$0xff]  ;;  %v9286_v22 = vsel %vm736_vm6, %v9158_v15, %v23148_v41 }
 0x7ad   : > { %v12865_v60 = vpop.eup %12864  ;;  %v11315_v62 = vadd.f32 1.0, %v12863_v48  ;;  %v12082_v44 = vmul.f32 -1.442695, %v10350_v25  ;;  %v12535_v52 = vpop.f32.mrb[24].mxu0  ;;  %v9669_v48 = vsel %vm763_vm9, %v9541_v34, %v20249_v5  ;;  %v9414_v17 = vsel %vm745_vm7, %v9286_v22, %v20030_v40  ;;  %v23186_v22 = vld [vmem:[#allocation382_spill] sm:$0xff] }
 0x7ae   : > { %v12867_v18 = vpop.eup %12866  ;;  %11694 = vst.msk [vmem:[%s19954_s12 + $0x38] sm:$0xff] %vm11686_vm0, %v12865_v60  ;;  %12878 = vpow2.f32 %v12083_v7  ;;  %v10365_v27 = vadd.f32 %v12535_v52, %v19776_v54  ;;  %8467 = vrot.lane.b32.xlu1 %v23180_v24, %s13394_s15  ;;  %v10359_v19 = vpop.f32.mrb[25].mxu0 }
 0x7af   : > { %v12869_v50 = vpop.eup %12868  ;;  %12880 = vrcp.f32 %v11315_v62  ;;  %v11314_v39 = vadd.f32 1.0, %v12867_v18  ;;  %v10360_v23 = vadd.f32 %v19776_v54, %v10359_v19  ;;  %8469 = vrot.lane.b32.xlu0 %v23181_v38, %s13394_s15  ;;  %v20278_v36 = vpop.permute.xlu0 %8838  ;;  %v23183_v18 = vld [vmem:[#allocation395_spill] sm:$0xff]  ;;  %v23185_v19 = vld [vmem:[#allocation13_spill] sm:$0xff] }
 0x7b0   : > { %11693 = vst.msk [vmem:[%s19954_s12 + $0x30] sm:$0xff] %vm11686_vm0, %v12869_v50  ;;  %12882 = vpow2.f32 %v12082_v44  ;;  %v12085_v30 = vmul.f32 -1.442695, %v10365_v27  ;;  %v20271_v37 = vpop.permute.xlu1 %8645  ;;  %v9797_v3 = vsel %vm772_vm10, %v9669_v48, %v20278_v36  ;;  %v23182_v44 = vld [vmem:[#allocation374_spill] sm:$0xff]  ;;  %v9159_v29 = vsel %vm727_vm5, %v20106_v35, %v23183_v18  ;;  %v23184_v27 = vld [vmem:[#allocation367_spill] sm:$0xff] }
 0x7b1   : > { %v12871_v25 = vpop.eup %12870  ;;  %12884 = vrcp.f32 %v11314_v39  ;;  %v12084_v7 = vmul.f32 -1.442695, %v10360_v23  ;;  %v12538_v60 = vpop.f32.mrb[26].mxu0  ;;  %12662 = vmatprep.mubr.msk.f32.mxu1 %vm787_vm11, %v9797_v3  ;;  %v9287_v50 = vsel %vm736_vm6, %v9159_v29, %v23185_v19  ;;  %v9542_v35 = vsel %vm754_vm8, %v9414_v17, %v20241_v16  ;;  %v23187_v3 = vld [vmem:[#allocation37_spill] sm:$0xff]  ;;  %v23188_v17 = vld [vmem:[#allocation412_spill] sm:$0xff] }
 0x7b2   : > { %v12873_v45 = vpop.eup %12872  ;;  %11696 = vst.msk [vmem:[%s19954_s12 + $0x48] sm:$0xff] %vm11686_vm0, %v12871_v25  ;;  %12886 = vpow2.f32 %v12085_v30  ;;  %v10375_v62 = vadd.f32 %v12538_v60, %v19776_v54  ;;  %8659 = vrot.lane.b32.xlu1 %v23182_v44, %s13395_s8  ;;  %v10369_v52 = vpop.f32.mrb[27].mxu0  ;;  %v9670_v23 = vsel %vm763_vm9, %v9542_v35, %v20271_v37  ;;  %v9160_v44 = vsel %vm727_vm5, %v20128_v57, %v23187_v3 }
 0x7b3   : > { %11695 = vst.msk [vmem:[%s19954_s12 + $0x40] sm:$0xff] %vm11686_vm0, %v12873_v45  ;;  %12888 = vpow2.f32 %v12084_v7  ;;  %v10370_v41 = vadd.f32 %v19776_v54, %v10369_v52  ;;  %8661 = vrot.lane.b32.xlu0 %v23184_v27, %s13395_s8  ;;  %v20310_v15 = vpop.permute.xlu0 %8840 }
 0x7b4   : > { %v12087_v9 = vmul.f32 -1.442695, %v10375_v62  ;;  %v20304_v39 = vpop.permute.xlu1 %8255  ;;  %v9798_v45 = vsel %vm772_vm10, %v9670_v23, %v20310_v15 }
 0x7b5   : > { %v12875_v40 = vpop.eup %12874  ;;  %v12086_v34 = vmul.f32 -1.442695, %v10370_v41  ;;  %v9415_v30 = vsel %vm745_vm7, %v9287_v50, %v20304_v39  ;;  %v12541_v25 = vpop.f32.mrb[28].mxu0  ;;  %12663 = vmatmul.mubr.msk.f32.gmra.mrb[58].mxu1 %vm787_vm11, %v9798_v45  ;;  %v9288_v41 = vsel %vm736_vm6, %v9160_v44, %v23188_v17 }
 0x7b6   : > { %v12877_v48 = vpop.eup %12876  ;;  %11698 = vst.msk [vmem:[%s19954_s12 + $0x58] sm:$0xff] %vm11686_vm0, %v12875_v40  ;;  %12890 = vpow2.f32 %v12087_v9  ;;  %v9543_v7 = vsel %vm754_vm8, %v9415_v30, %v20140_v8  ;;  %v10385_v60 = vadd.f32 %v12541_v25, %v19776_v54  ;;  %8854 = vrot.lane.b32.xlu1 %v23186_v22, %s13396_s11  ;;  %v10379_v62 = vpop.f32.mrb[29].mxu0  ;;  %v23189_v9 = vld [vmem:[#allocation251_spill] sm:$0xff] }
 0x7b7   : > { %11697 = vst.msk [vmem:[%s19954_s12 + $0x50] sm:$0xff] %vm11686_vm0, %v12877_v48  ;;  %12892 = vpow2.f32 %v12086_v34  ;;  %v10380_v52 = vadd.f32 %v19776_v54, %v10379_v62  ;;  %8271 = vrot.lane.b32.xlu0 %v23174_v32, %s13393_s29  ;;  %v9671_v8 = vsel %vm763_vm9, %v9543_v7, %v20172_v47  ;;  %v8950_v32 = vsel %vm715_vm3, %v23000_v59, %v23189_v9  ;;  %v20344_v34 = vpop.permute.xlu0 %8399  ;;  %v23190_v25 = vld [vmem:[#allocation255_spill] sm:$0xff] }
 0x7b8   : > { %v12879_v29 = vpop.eup %12878  ;;  %v12089_v27 = vmul.f32 -1.442695, %v10385_v60  ;;  %v20334_v57 = vpop.permute.xlu1 %8257  ;;  %v9799_v50 = vsel %vm772_vm10, %v9671_v8, %v20205_v13  ;;  %v20348_v48 = vsel %vm721_vm4, %v8950_v32, %v23190_v25  ;;  %v23191_v13 = vld [vmem:[#allocation371_spill] sm:$0xff]  ;;  %v23195_v32 = vld [vmem:[#allocation249_spill] sm:$0xff] }
 0x7b9   : > { %v12881_v35 = vpop.eup %12880  ;;  %v11317_v40 = vadd.f32 1.0, %v12879_v29  ;;  %v12088_v23 = vmul.f32 -1.442695, %v10380_v52  ;;  %v9416_v47 = vsel %vm745_vm7, %v9288_v41, %v20334_v57  ;;  %12665 = vmatprep.mubr.msk.f32.mxu1 %vm787_vm11, %v9799_v50  ;;  %v9107_v8 = vsel %vm727_vm5, %v20348_v48, %v23149_v6  ;;  %v23192_v29 = vld [vmem:[#allocation256_spill] sm:$0xff]  ;;  %v23194_v6 = vld [vmem:[#allocation226_spill] sm:$0xff] }
 0x7ba   : > { %v12883_v30 = vpop.eup %12882  ;;  %11700 = vst.msk [vmem:[%s19954_s12 + $0x68] sm:$0xff] %vm11686_vm0, %v12881_v35  ;;  %12894 = vpow2.f32 %v12089_v27  ;;  %v9544_v59 = vsel %vm754_vm8, %v9416_v47, %v20166_v31  ;;  %8856 = vrot.lane.b32.xlu1 %v23191_v13, %s13396_s11  ;;  %v23193_v27 = vld [vmem:[#allocation259_spill] sm:$0xff] }
 0x7bb   : > { %v12885_v7 = vpop.eup %12884  ;;  %12896 = vrcp.f32 %v11317_v40  ;;  %v11316_v60 = vadd.f32 1.0, %v12883_v30  ;;  %8273 = vrot.lane.b32.xlu0 %v23177_v33, %s13393_s29  ;;  %v9672_v45 = vsel %vm763_vm9, %v9544_v59, %v20200_v1  ;;  %v8951_v33 = vsel %vm715_vm3, %v23005_v14, %v23192_v29  ;;  %v20373_v41 = vpop.permute.xlu0 %8591  ;;  %v23196_v40 = vld [vmem:[#allocation160_spill] sm:$0xff] }
 0x7bc   : > { %v12887_v62 = vpop.eup %12886  ;;  %11699 = vst.msk [vmem:[%s19954_s12 + $0x60] sm:$0xff] %vm11686_vm0, %v12885_v7  ;;  %12898 = vpow2.f32 %v12088_v23  ;;  %v20362_v44 = vpop.permute.xlu1 %8401  ;;  %v9800_v31 = vsel %vm772_vm10, %v9672_v45, %v20221_v56  ;;  %v20377_v50 = vsel %vm721_vm4, %v8951_v33, %v23193_v27  ;;  %v9235_v56 = vsel %vm736_vm6, %v9107_v8, %v23156_v28  ;;  %v23198_v8 = vld [vmem:[#allocation235_spill] sm:$0xff]  ;;  %v23199_v33 = vld [vmem:[#allocation52_spill] sm:$0xff] }
 0x7bd   : > { %v12889_v52 = vpop.eup %12888  ;;  %12900 = vrcp.f32 %v11316_v60  ;;  %v11319_v1 = vadd.f32 1.0, %v12887_v62  ;;  %12666 = vmatmul.mubr.msk.f32.gmra.mrb[60].mxu1 %vm787_vm11, %v9800_v31  ;;  %v9363_v14 = vsel %vm745_vm7, %v9235_v56, %v23165_v51  ;;  %v8953_v23 = vsel %vm715_vm3, %v23196_v40, %v23195_v32  ;;  %v23200_v56 = vld [vmem:[#allocation243_spill] sm:$0xff] }
 0x7be   : > { %v11318_v35 = vadd.f32 1.0, %v12889_v52  ;;  %8415 = vrot.lane.b32.xlu1 %v22960_v58, %s13394_s15  ;;  %v9491_v28 = vsel %vm754_vm8, %v9363_v14, %v20344_v34  ;;  %v23197_v58 = vld [vmem:[#allocation252_spill] sm:$0xff]  ;;  %v9108_v51 = vsel %vm727_vm5, %v20377_v50, %v23154_v12  ;;  %v23201_v14 = vld [vmem:[#allocation33_spill] sm:$0xff] }
 0x7bf   : > { %12902 = vrcp.f32 %v11319_v1  ;;  %8417 = vrot.lane.b32.xlu0 %v23194_v6, %s13394_s15  ;;  %v20396_v25 = vsel %vm721_vm4, %v8953_v23, %v23197_v58  ;;  %v9619_v7 = vsel %vm763_vm9, %v9491_v28, %v20373_v41  ;;  %v20403_v60 = vpop.permute.xlu0 %8786  ;;  %v9236_v62 = vsel %vm736_vm6, %v9108_v51, %v23158_v4 }
 0x7c0   : > { %v12891_v9 = vpop.eup %12890  ;;  %12904 = vrcp.f32 %v11318_v35  ;;  %v20392_v47 = vpop.permute.xlu1 %8593  ;;  %v9747_v52 = vsel %vm772_vm10, %v9619_v7, %v20403_v60  ;;  %v9161_v1 = vsel %vm727_vm5, %v20232_v61, %v23199_v33  ;;  %v9364_v27 = vsel %vm745_vm7, %v9236_v62, %v23167_v10  ;;  %v23202_v7 = vld [vmem:[#allocation42_spill] sm:$0xff] }
 0x7c1   : > { %v12893_v30 = vpop.eup %12892  ;;  %v11321_v59 = vadd.f32 1.0, %v12891_v9  ;;  %v12544_v45 = vpop.f32.mrb[30].mxu0  ;;  %12587 = vmatprep.mubr.msk.f32.mxu0 %vm787_vm11, %v9747_v52  ;;  %v9289_v6 = vsel %vm736_vm6, %v9161_v1, %v23201_v14  ;;  %v9492_v61 = vsel %vm754_vm8, %v9364_v27, %v20362_v44  ;;  %v23203_v52 = vld [vmem:[#allocation242_spill] sm:$0xff] }
 0x7c2   : > { %v11320_v31 = vadd.f32 1.0, %v12893_v30  ;;  %8607 = vrot.lane.b32.xlu1 %v23198_v8, %s13395_s8  ;;  %v10395_v29 = vadd.f32 %v12544_v45, %v19776_v54  ;;  %v10389_v12 = vpop.f32.mrb[31].mxu0  ;;  %v9620_v23 = vsel %vm763_vm9, %v9492_v61, %v20392_v47  ;;  %v9162_v45 = vsel %vm727_vm5, %v20253_v46, %v23202_v7  ;;  %v23205_v27 = vld [vmem:[#allocation162_spill] sm:$0xff] }
 0x7c3   : > { %12906 = vrcp.f32 %v11321_v59  ;;  %v10390_v4 = vadd.f32 %v19776_v54, %v10389_v12  ;;  %8609 = vrot.lane.b32.xlu0 %v23200_v56, %s13395_s8  ;;  %v20431_v58 = vpop.permute.xlu0 %8788  ;;  %v23206_v56 = vld [vmem:[#allocation36_spill] sm:$0xff] }
 0x7c4   : > { %v12895_v35 = vpop.eup %12894  ;;  %12908 = vrcp.f32 %v11320_v31  ;;  %v12091_v9 = vmul.f32 -1.442695, %v10395_v29  ;;  %v20425_v32 = vpop.permute.xlu1 %8259  ;;  %v9748_v31 = vsel %vm772_vm10, %v9620_v23, %v20431_v58 }
 0x7c5   : > { %v12897_v10 = vpop.eup %12896  ;;  %v11323_v40 = vadd.f32 1.0, %v12895_v35  ;;  %v12090_v28 = vmul.f32 -1.442695, %v10390_v4  ;;  %v9417_v30 = vsel %vm745_vm7, %v9289_v6, %v20425_v32  ;;  %v12547_v51 = vpop.f32.mrb[32].mxu0  ;;  %12588 = vmatmul.mubr.msk.f32.gmra.mrb[60].mxu0 %vm787_vm11, %v9748_v31  ;;  %v9290_v35 = vsel %vm736_vm6, %v9162_v45, %v23206_v56  ;;  %v23208_v45 = vld [vmem:[#allocation247_spill] sm:$0xff] }
 0x7c6   : > { %v12899_v59 = vpop.eup %12898  ;;  %11702 = vst.msk [vmem:[%s19954_s12 + $0x78] sm:$0xff] %vm11686_vm0, %v12897_v10  ;;  %12910 = vpow2.f32 %v12091_v9  ;;  %v9545_v62 = vsel %vm754_vm8, %v9417_v30, %v20228_v26  ;;  %8802 = vrot.lane.b32.xlu1 %v23203_v52, %s13396_s11  ;;  %v10399_v8 = vpop.f32.mrb[33].mxu0  ;;  %v10405_v1 = vadd.f32 %v12547_v51, %v19776_v54  ;;  %v23204_v26 = vld [vmem:[#allocation147_spill] sm:$0xff]  ;;  %v23207_v51 = vld [vmem:[#allocation258_spill] sm:$0xff]  ;;  %v9110_v31 = vsel %vm727_vm5, %v20396_v25, %v23150_v53 }
 0x7c7   : > { %v12901_v29 = vpop.eup %12900  ;;  %12912 = vrcp.f32 %v11323_v40  ;;  %v11322_v12 = vadd.f32 1.0, %v12899_v59  ;;  %v10400_v46 = vadd.f32 %v19776_v54, %v10399_v8  ;;  %8275 = vrot.lane.b32.xlu0 %v23186_v22, %s13393_s29  ;;  %v8952_v4 = vsel %vm715_vm3, %v23205_v27, %v23204_v26  ;;  %v20462_v40 = vpop.permute.xlu0 %8403  ;;  %v23209_v8 = vld [vmem:[#allocation248_spill] sm:$0xff] }
 0x7c8   : > { %11701 = vst.msk [vmem:[%s19954_s12 + $0x70] sm:$0xff] %vm11686_vm0, %v12901_v29  ;;  %12914 = vpow2.f32 %v12090_v28  ;;  %v20456_v6 = vpop.permute.xlu1 %8261  ;;  %v9673_v54 = vsel %vm763_vm9, %v9545_v62, %v20249_v5  ;;  %v12093_v61 = vmul.f32 -1.442695, %v10405_v1  ;;  %v12550_v23 = vpop.f32.mrb[34].mxu0  ;;  %v9017_v28 = vsel %vm721_vm4, %v8952_v4, %v23207_v51 }
 0x7c9   : > { %v12903_v22 = vpop.eup %12902  ;;  %12916 = vrcp.f32 %v11322_v12  ;;  %v12092_v9 = vmul.f32 -1.442695, %v10400_v46  ;;  %v9418_v10 = vsel %vm745_vm7, %v9290_v35, %v20456_v6  ;;  %v9801_v59 = vsel %vm772_vm10, %v9673_v54, %v20278_v36  ;;  %v10409_v62 = vpop.f32.mrb[35].mxu0 }
 0x7ca   : > { %v12905_v30 = vpop.eup %12904  ;;  %11704 = vst.msk [vmem:[%s19954_s12 + $0x88] sm:$0xff] %vm11686_vm0, %v12903_v22  ;;  %v9546_v5 = vsel %vm754_vm8, %v9418_v10, %v20241_v16  ;;  %8804 = vrot.lane.b32.xlu1 %v23208_v45, %s13396_s11  ;;  %12918 = vpow2.f32 %v12093_v61  ;;  %12668 = vmatprep.mubr.msk.f32.mxu1 %vm787_vm11, %v9801_v59  ;;  %v20483_v16 = vld [vmem:[%s21692_s6] ss:$0 sm:$0xff]  ;;  %v9238_v53 = vsel %vm736_vm6, %v9110_v31, %v23155_v21  ;;  %v23211_v22 = vld [vmem:[#allocation264_spill] sm:$0xff]  ;;  %v23212_v61 = vld [vmem:[#allocation265_spill] sm:$0xff] }
 0x7cb   : > { %11703 = vst.msk [vmem:[%s19954_s12 + $0x80] sm:$0xff] %vm11686_vm0, %v12905_v30  ;;  %v10415_v36 = vadd.f32 %v20483_v16, %v12550_v23  ;;  %v10410_v52 = vadd.f32 %v20483_v16, %v10409_v62  ;;  %8277 = vrot.lane.b32.xlu0 %v23191_v13, %s13393_s29  ;;  %v9111_v29 = vsel %vm727_vm5, %v20348_v48, %v23209_v8  ;;  %12920 = vpow2.f32 %v12092_v9  ;;  %v23210_v13 = vld [vmem:[#allocation262_spill] sm:$0xff]  ;;  %v20503_v35 = vpop.permute.xlu0 %8595  ;;  %v23214_v10 = vld [vmem:[#allocation273_spill] sm:$0xff] }
 0x7cc   : > { %v20494_v12 = vpop.permute.xlu1 %8405  ;;  %v9674_v1 = vsel %vm763_vm9, %v9546_v5, %v20271_v37  ;;  %v9109_v26 = vsel %vm727_vm5, %v9017_v28, %v23152_v20  ;;  %v9114_v27 = vsel %vm727_vm5, %v20396_v25, %v23210_v13  ;;  %v9113_v37 = vsel %vm727_vm5, %v9017_v28, %v23211_v22  ;;  %v23213_v25 = vld [vmem:[#allocation142_spill] sm:$0xff]  ;;  %v23217_v28 = vld [vmem:[#allocation284_spill] sm:$0xff]  ;;  %v23218_v59 = vld [vmem:[#allocation285_spill] sm:$0xff] }
 0x7cd   : > { %v12907_v46 = vpop.eup %12906  ;;  %v12095_v21 = vmul.f32 -1.442695, %v10415_v36  ;;  %v12094_v4 = vmul.f32 -1.442695, %v10410_v52  ;;  %v9237_v54 = vsel %vm736_vm6, %v9109_v26, %v23157_v2  ;;  %v9112_v9 = vsel %vm727_vm5, %v20377_v50, %v23212_v61  ;;  %v23215_v2 = vld [vmem:[#allocation188_spill] sm:$0xff]  ;;  %v23220_v52 = vld [vmem:[#allocation299_spill] sm:$0xff] }
 0x7ce   : > { %v12909_v48 = vpop.eup %12908  ;;  %11706 = vst.msk [vmem:[%s19954_s12 + $0x98] sm:$0xff] %vm11686_vm0, %v12907_v46  ;;  %v9802_v20 = vsel %vm772_vm10, %v9674_v1, %v20310_v15  ;;  %8419 = vrot.lane.b32.xlu1 %v23213_v25, %s13394_s15  ;;  %v20520_v23 = vsel %vm736_vm6, %v9114_v27, %v23214_v10  ;;  %v9239_v30 = vsel %vm736_vm6, %v9111_v29, %v23215_v2  ;;  %v23216_v15 = vld [vmem:[#allocation222_spill] sm:$0xff]  ;;  %v23219_v36 = vld [vmem:[#allocation72_spill] sm:$0xff]  ;;  %v23221_v1 = vld [vmem:[#allocation79_spill] sm:$0xff] }
 0x7cf   : > { %v9365_v51 = vsel %vm745_vm7, %v9237_v54, %v23169_v42  ;;  %11705 = vst.msk [vmem:[%s19954_s12 + $0x90] sm:$0xff] %vm11686_vm0, %v12909_v48  ;;  %12922 = vpow2.f32 %v12095_v21  ;;  %12669 = vmatmul.mubr.msk.f32.gmra.mrb[62].mxu1 %vm787_vm11, %v9802_v20  ;;  %8421 = vrot.lane.b32.xlu0 %v23216_v15, %s13394_s15  ;;  %v9241_v5 = vsel %vm736_vm6, %v9113_v37, %v23217_v28  ;;  %v23222_v46 = vld [vmem:[#allocation319_spill] sm:$0xff]  ;;  %v8791_v48 = vpop.permute.xlu0 %8790 }
 0x7d0   : > { %v12911_v50 = vpop.eup %12910  ;;  %v9240_v45 = vsel %vm736_vm6, %v9112_v9, %v23218_v59  ;;  %v9493_v62 = vsel %vm754_vm8, %v9365_v51, %v20462_v40  ;;  %12924 = vpow2.f32 %v12094_v4  ;;  %v20537_v42 = vpop.permute.xlu1 %8597  ;;  %v8978_v29 = vsel %vm715_vm3, %v23220_v52, %v23219_v36  ;;  %v23223_v9 = vld [vmem:[#allocation416_spill] sm:$0xff]  ;;  %v23224_v51 = vld [vmem:[#allocation238_spill] sm:$0xff] }
 0x7d1   : > { %v12913_v31 = vpop.eup %12912  ;;  %v8979_v26 = vsel %vm715_vm3, %v23222_v46, %v23221_v1  ;;  %v11325_v27 = vadd.f32 1.0, %v12911_v50  ;;  %v9621_v21 = vsel %vm763_vm9, %v9493_v62, %v20503_v35  ;;  %v12625_v54 = vpop.f32.mrb[32].mxu1  ;;  %v9366_v4 = vsel %vm745_vm7, %v9238_v53, %v23171_v49  ;;  %v23225_v53 = vld [vmem:[#allocation231_spill] sm:$0xff] }
 0x7d2   : > { %v12915_v37 = vpop.eup %12914  ;;  %v9367_v20 = vsel %vm745_vm7, %v9239_v30, %v23223_v9  ;;  %11708 = vst.msk [vmem:[%s19954_s12 + $0xa8] sm:$0xff] %vm11686_vm0, %v12913_v31  ;;  %v9749_v25 = vsel %vm772_vm10, %v9621_v21, %v8791_v48  ;;  %8611 = vrot.lane.b32.xlu1 %v23224_v51, %s13395_s8  ;;  %v10665_v15 = vadd.f32 %v20483_v16, %v12625_v54  ;;  %v10659_v50 = vpop.f32.mrb[33].mxu1  ;;  %v23226_v30 = vld [vmem:[#allocation108_spill] sm:$0xff] }
 0x7d3   : > { %v12917_v62 = vpop.eup %12916  ;;  %12926 = vrcp.f32 %v11325_v27  ;;  %v11324_v36 = vadd.f32 1.0, %v12915_v37  ;;  %v9494_v52 = vsel %vm754_vm8, %v9366_v4, %v20494_v12  ;;  %v10660_v49 = vadd.f32 %v20483_v16, %v10659_v50  ;;  %8613 = vrot.lane.b32.xlu0 %v23225_v53, %s13395_s8  ;;  %12590 = vmatprep.mubr.msk.f32.mxu0 %vm787_vm11, %v9749_v25  ;;  %v23227_v50 = vld [vmem:[#allocation417_spill] sm:$0xff] }
 0x7d4   : > { %v20565_v31 = vsel %vm721_vm4, %v8978_v29, %v23226_v30  ;;  %11707 = vst.msk [vmem:[%s19954_s12 + $0xa0] sm:$0xff] %vm11686_vm0, %v12917_v62  ;;  %v9495_v1 = vsel %vm754_vm8, %v9367_v20, %v20344_v34  ;;  %v9622_v46 = vsel %vm763_vm9, %v9494_v52, %v20537_v42  ;;  %v12145_v27 = vmul.f32 -1.442695, %v10665_v15  ;;  %v8793_v21 = vpop.permute.xlu1 %8792  ;;  %v12919_v54 = vpop.eup %12918  ;;  %v23228_v15 = vld [vmem:[#allocation246_spill] sm:$0xff] }
 0x7d5   : > { %v9623_v37 = vsel %vm763_vm9, %v9495_v1, %v20373_v41  ;;  %12928 = vrcp.f32 %v11324_v36  ;;  %v12144_v4 = vmul.f32 -1.442695, %v10660_v49  ;;  %v9750_v25 = vsel %vm772_vm10, %v9622_v46, %v8793_v21  ;;  %v20576_v29 = vpop.permute.xlu0 %8455  ;;  %v12921_v51 = vpop.eup %12920  ;;  %v23229_v41 = vld [vmem:[#allocation418_spill] sm:$0xff] }
 0x7d6   : > { %v9368_v62 = vsel %vm745_vm7, %v9240_v45, %v23227_v50  ;;  %v9751_v34 = vsel %vm772_vm10, %v9623_v37, %v20403_v60  ;;  %v11327_v20 = vadd.f32 1.0, %v12919_v54  ;;  %12930 = vpow2.f32 %v12145_v27  ;;  %8806 = vrot.lane.b32.xlu1 %v23228_v15, %s13396_s11  ;;  %12591 = vmatmul.mubr.msk.f32.gmra.mrb[62].mxu0 %vm787_vm11, %v9750_v25  ;;  %v23230_v45 = vld [vmem:[#allocation234_spill] sm:$0xff]  ;;  %v23232_v37 = vld [vmem:[#allocation419_spill] sm:$0xff] }
 0x7d7   : > { %v9369_v36 = vsel %vm745_vm7, %v9241_v5, %v23229_v41  ;;  %v9496_v52 = vsel %vm754_vm8, %v9368_v62, %v20362_v44  ;;  %v11326_v49 = vadd.f32 1.0, %v12921_v51  ;;  %12932 = vpow2.f32 %v12144_v4  ;;  %8808 = vrot.lane.b32.xlu0 %v23230_v45, %s13396_s11  ;;  %12593 = vmatprep.mubr.msk.f32.mxu0 %vm787_vm11, %v9751_v34  ;;  %v23231_v60 = vld [vmem:[#allocation66_spill] sm:$0xff]  ;;  %v23233_v51 = vld [vmem:[#allocation7_spill] sm:$0xff] }
 0x7d8   : > { %v20594_v53 = vsel %vm721_vm4, %v8979_v26, %v23231_v60  ;;  %v9624_v30 = vsel %vm763_vm9, %v9496_v52, %v20392_v47  ;;  %12934 = vrcp.f32 %v11327_v20  ;;  %v9497_v5 = vsel %vm754_vm8, %v9369_v36, %v20462_v40  ;;  %v20600_v1 = vpop.permute.xlu1 %8457  ;;  %v23234_v62 = vld [vmem:[#allocation6_spill] sm:$0xff] }
 0x7d9   : > { %v12923_v44 = vpop.eup %12922  ;;  %v9163_v46 = vsel %vm727_vm5, %v20565_v31, %v23183_v18  ;;  %v9752_v27 = vsel %vm772_vm10, %v9624_v30, %v20431_v58  ;;  %12936 = vrcp.f32 %v11326_v49  ;;  %v9625_v26 = vsel %vm763_vm9, %v9497_v5, %v20503_v35  ;;  %v20609_v54 = vpop.permute.xlu0 %8647  ;;  %v23235_v30 = vld [vmem:[#allocation77_spill] sm:$0xff] }
 0x7da   : > { %v12925_v47 = vpop.eup %12924  ;;  %v9291_v40 = vsel %vm736_vm6, %v9163_v46, %v23185_v19  ;;  %v9370_v4 = vsel %vm745_vm7, %v20520_v23, %v23232_v37  ;;  %v11329_v25 = vadd.f32 1.0, %v12923_v44  ;;  %v9753_v18 = vsel %vm772_vm10, %v9625_v26, %v8791_v48  ;;  %8663 = vrot.lane.b32.xlu1 %v23233_v51, %s13395_s8  ;;  %12594 = vmatmul.mubr.msk.f32.gmra.mrb[64].mxu0 %vm787_vm11, %v9752_v27 }
 0x7db   : > { %v9419_v58 = vsel %vm745_vm7, %v9291_v40, %v20304_v39  ;;  %v11328_v35 = vadd.f32 1.0, %v12925_v47  ;;  %v9498_v19 = vsel %vm754_vm8, %v9370_v4, %v20494_v12  ;;  %8858 = vrot.lane.b32.xlu0 %v23234_v62, %s13396_s11  ;;  %12596 = vmatprep.mubr.msk.f32.mxu0 %vm787_vm11, %v9753_v18  ;;  %v9164_v23 = vsel %vm727_vm5, %v20594_v53, %v23187_v3  ;;  %v23236_v47 = vld [vmem:[#allocation110_spill] sm:$0xff] }
 0x7dc   : > { %12938 = vrcp.f32 %v11329_v25  ;;  %v9626_v48 = vsel %vm763_vm9, %v9498_v19, %v20537_v42  ;;  %v9547_v39 = vsel %vm754_vm8, %v9419_v58, %v20576_v29  ;;  %v20634_v34 = vpop.permute.xlu1 %8649  ;;  %v9292_v20 = vsel %vm736_vm6, %v9164_v23, %v23188_v17  ;;  %v23237_v19 = vld [vmem:[#allocation55_spill] sm:$0xff] }
 0x7dd   : > { %v12927_v12 = vpop.eup %12926  ;;  %12940 = vrcp.f32 %v11328_v35  ;;  %v9754_v15 = vsel %vm772_vm10, %v9626_v48, %v8793_v21  ;;  %v9675_v3 = vsel %vm763_vm9, %v9547_v39, %v20609_v54  ;;  %v20641_v36 = vpop.permute.xlu0 %8842  ;;  %v9420_v42 = vsel %vm745_vm7, %v9292_v20, %v20334_v57  ;;  %v23238_v20 = vld [vmem:[#allocation50_spill] sm:$0xff] }
 0x7de   : > { %11710 = vst.msk [vmem:[%s19954_s12 + $0xb8] sm:$0xff] %vm11686_vm0, %v12927_v12  ;;  %v9803_v52 = vsel %vm772_vm10, %v9675_v3, %v20641_v36  ;;  %12597 = vmatmul.mubr.msk.f32.gmra.mrb[66].mxu0 %vm787_vm11, %v9754_v15  ;;  %v9548_v17 = vsel %vm754_vm8, %v9420_v42, %v20600_v1  ;;  %v8980_v5 = vsel %vm715_vm3, %v23052_v43, %v23235_v30 }
 0x7df   : > { %v12929_v49 = vpop.eup %12928  ;;  %12671 = vmatprep.mubr.msk.f32.mxu1 %vm787_vm11, %v9803_v52  ;;  %v9676_v57 = vsel %vm763_vm9, %v9548_v17, %v20634_v34  ;;  %v20668_v40 = vsel %vm721_vm4, %v8980_v5, %v23236_v47  ;;  %v8981_v62 = vsel %vm715_vm3, %v23056_v63, %v23237_v19 }
 0x7e0   : > { %v12931_v21 = vpop.eup %12930  ;;  %11709 = vst.msk [vmem:[%s19954_s12 + $0xb0] sm:$0xff] %vm11686_vm0, %v12929_v49  ;;  %v20657_v45 = vpop.permute.xlu1 %8844  ;;  %v9165_v23 = vsel %vm727_vm5, %v20668_v40, %v23199_v33  ;;  %v20689_v15 = vsel %vm721_vm4, %v8981_v62, %v23238_v20 }
 0x7e1   : > { %v12933_v60 = vpop.eup %12932  ;;  %v11379_v44 = vadd.f32 1.0, %v12931_v21  ;;  %v9804_v46 = vsel %vm772_vm10, %v9676_v57, %v20657_v45  ;;  %v20664_v27 = vpop.permute.xlu0 %8459  ;;  %v9293_v3 = vsel %vm736_vm6, %v9165_v23, %v23201_v14  ;;  %v9166_v14 = vsel %vm727_vm5, %v20689_v15, %v23202_v7 }
 0x7e2   : > { %v12935_v26 = vpop.eup %12934  ;;  %v11378_v4 = vadd.f32 1.0, %v12933_v60  ;;  %v12628_v25 = vpop.f32.mrb[34].mxu1  ;;  %12672 = vmatmul.mubr.msk.f32.gmra.mrb[64].mxu1 %vm787_vm11, %v9804_v46  ;;  %v9421_v63 = vsel %vm745_vm7, %v9293_v3, %v20425_v32  ;;  %v9294_v30 = vsel %vm736_vm6, %v9166_v14, %v23206_v56  ;;  %v23239_v46 = vld [vmem:[#allocation54_spill] sm:$0xff]  ;;  %v23242_v3 = vld [vmem:[#allocation413_spill] sm:$0xff] }
 0x7e3   : > { %v12937_v18 = vpop.eup %12936  ;;  %11712 = vst.msk [vmem:[%s19954_s12 + $0xc8] sm:$0xff] %vm11686_vm0, %v12935_v26  ;;  %12942 = vrcp.f32 %v11379_v44  ;;  %v10675_v43 = vadd.f32 %v20483_v16, %v12628_v25  ;;  %v10669_v51 = vpop.f32.mrb[35].mxu1  ;;  %v9549_v33 = vsel %vm754_vm8, %v9421_v63, %v20664_v27  ;;  %v9167_v7 = vsel %vm727_vm5, %v20565_v31, %v23239_v46 }
 0x7e4   : > { %11711 = vst.msk [vmem:[%s19954_s12 + $0xc0] sm:$0xff] %vm11686_vm0, %v12937_v18  ;;  %12944 = vrcp.f32 %v11378_v4  ;;  %v10670_v58 = vadd.f32 %v20483_v16, %v10669_v51  ;;  %v20677_v35 = vpop.permute.xlu1 %8461  ;;  %v9422_v26 = vsel %vm745_vm7, %v9294_v30, %v20456_v6  ;;  %v23240_v4 = vld [vmem:[#allocation40_spill] sm:$0xff] }
 0x7e5   : > { %v12147_v48 = vmul.f32 -1.442695, %v10675_v43  ;;  %v20685_v39 = vpop.permute.xlu0 %8651  ;;  %v9295_v56 = vsel %vm736_vm6, %v9167_v7, %v23240_v4  ;;  %v9550_v25 = vsel %vm754_vm8, %v9422_v26, %v20677_v35 }
 0x7e6   : > { %v12939_v12 = vpop.eup %12938  ;;  %v12146_v42 = vmul.f32 -1.442695, %v10670_v58  ;;  %v9677_v21 = vsel %vm763_vm9, %v9549_v33, %v20685_v39  ;;  %v23243_v33 = vld [vmem:[#allocation270_spill] sm:$0xff] }
 0x7e7   : > { %v12941_v52 = vpop.eup %12940  ;;  %11714 = vst.msk [vmem:[%s19954_s12 + $0xd8] sm:$0xff] %vm11686_vm0, %v12939_v12  ;;  %12946 = vpow2.f32 %v12147_v48  ;;  %v23241_v48 = vld [vmem:[#allocation106_spill] sm:$0xff] }
 0x7e8   : > { %11713 = vst.msk [vmem:[%s19954_s12 + $0xd0] sm:$0xff] %vm11686_vm0, %v12941_v52  ;;  %12948 = vpow2.f32 %v12146_v42  ;;  %v20701_v49 = vpop.permute.xlu1 %8653  ;;  %v12631_v17 = vpop.f32.mrb[36].mxu1  ;;  %v9168_v12 = vsel %vm727_vm5, %v20594_v53, %v23241_v48  ;;  %v8954_v53 = vsel %vm715_vm3, %v23067_v11, %v23243_v33 }
 0x7e9   : > { %v10685_v32 = vadd.f32 %v20483_v16, %v12631_v17  ;;  %v10679_v57 = vpop.f32.mrb[37].mxu1  ;;  %v20709_v60 = vpop.permute.xlu0 %8846  ;;  %v9678_v31 = vsel %vm763_vm9, %v9550_v25, %v20701_v49  ;;  %v9296_v42 = vsel %vm736_vm6, %v9168_v12, %v23242_v3  ;;  %v23245_v25 = vld [vmem:[#allocation276_spill] sm:$0xff] }
 0x7ea   : > { %v10680_v5 = vadd.f32 %v20483_v16, %v10679_v57  ;;  %v9805_v44 = vsel %vm772_vm10, %v9677_v21, %v20709_v60  ;;  %v23244_v21 = vld [vmem:[#allocation275_spill] sm:$0xff] }
 0x7eb   : > { %v12149_v47 = vmul.f32 -1.442695, %v10685_v32  ;;  %12674 = vmatprep.mubr.msk.f32.mxu1 %vm787_vm11, %v9805_v44  ;;  %v20764_v32 = vsel %vm721_vm4, %v8954_v53, %v23244_v21 }
 0x7ec   : > { %v12148_v18 = vmul.f32 -1.442695, %v10680_v5  ;;  %v20726_v43 = vpop.permute.xlu1 %8263 }
 0x7ed   : > { %v12943_v51 = vpop.eup %12942  ;;  %12950 = vpow2.f32 %v12149_v47  ;;  %v9423_v6 = vsel %vm745_vm7, %v9295_v56, %v20726_v43  ;;  %v20732_v58 = vpop.permute.xlu0 %8848 }
 0x7ee   : > { %v12945_v19 = vpop.eup %12944  ;;  %11764 = vst.msk [vmem:[%s19954_s12 + $0x268] sm:$0xff] %vm11686_vm0, %v12943_v51  ;;  %12952 = vpow2.f32 %v12148_v18  ;;  %v9551_v62 = vsel %vm754_vm8, %v9423_v6, %v20576_v29  ;;  %v9806_v23 = vsel %vm772_vm10, %v9678_v31, %v20732_v58  ;;  %v23246_v18 = vld [vmem:[#allocation185_spill] sm:$0xff]  ;;  %v23247_v6 = vld [vmem:[#allocation280_spill] sm:$0xff] }
 0x7ef   : > { %11763 = vst.msk [vmem:[%s19954_s12 + $0x260] sm:$0xff] %vm11686_vm0, %v12945_v19  ;;  %12675 = vmatmul.mubr.msk.f32.gmra.mrb[66].mxu1 %vm787_vm11, %v9806_v23  ;;  %v9679_v20 = vsel %vm763_vm9, %v9551_v62, %v20609_v54  ;;  %v8955_v51 = vsel %vm715_vm3, %v23246_v18, %v23245_v25 }
 0x7f0   : > { %v20750_v52 = vpop.permute.xlu1 %8265  ;;  %v9807_v29 = vsel %vm772_vm10, %v9679_v20, %v20641_v36  ;;  %v12553_v30 = vpop.f32.mrb[36].mxu0  ;;  %v20787_v19 = vsel %vm721_vm4, %v8955_v51, %v23247_v6  ;;  %v23250_v6 = vld [vmem:[#allocation114_spill] sm:$0xff] }
 0x7f1   : > { %v12947_v63 = vpop.eup %12946  ;;  %v9424_v17 = vsel %vm745_vm7, %v9296_v42, %v20750_v52  ;;  %12677 = vmatprep.mubr.msk.f32.mxu1 %vm787_vm11, %v9807_v29  ;;  %v20760_v14 = vpop.permute.xlu0 %8407  ;;  %v10425_v11 = vadd.f32 %v20483_v16, %v12553_v30  ;;  %v9116_v33 = vsel %vm727_vm5, %v20787_v19, %v23212_v61  ;;  %v23248_v30 = vld [vmem:[#allocation155_spill] sm:$0xff] }
 0x7f2   : > { %v12949_v54 = vpop.eup %12948  ;;  %v11381_v57 = vadd.f32 1.0, %v12947_v63  ;;  %v9552_v36 = vsel %vm754_vm8, %v9424_v17, %v20600_v1  ;;  %v10419_v44 = vpop.f32.mrb[37].mxu0  ;;  %v9115_v1 = vsel %vm727_vm5, %v20764_v32, %v23209_v8  ;;  %v9244_v21 = vsel %vm736_vm6, %v9116_v33, %v23218_v59  ;;  %v23254_v33 = vld [vmem:[#allocation271_spill] sm:$0xff] }
 0x7f3   : > { %v11380_v5 = vadd.f32 1.0, %v12949_v54  ;;  %v9680_v7 = vsel %vm763_vm9, %v9552_v36, %v20634_v34  ;;  %v10420_v26 = vadd.f32 %v20483_v16, %v10419_v44  ;;  %v12097_v31 = vmul.f32 -1.442695, %v10425_v11  ;;  %v23249_v44 = vld [vmem:[#allocation20_spill] sm:$0xff] }
 0x7f4   : > { %12954 = vrcp.f32 %v11381_v57  ;;  %v20772_v47 = vpop.permute.xlu1 %8409  ;;  %v9808_v56 = vsel %vm772_vm10, %v9680_v7, %v20657_v45  ;;  %v9243_v45 = vsel %vm736_vm6, %v9115_v1, %v23215_v2  ;;  %v9169_v61 = vsel %vm727_vm5, %v20668_v40, %v23248_v30 }
 0x7f5   : > { %12956 = vrcp.f32 %v11380_v5  ;;  %12678 = vmatmul.mubr.msk.f32.gmra.mrb[68].mxu1 %vm787_vm11, %v9808_v56  ;;  %v20783_v34 = vpop.permute.xlu0 %8599  ;;  %v12096_v62 = vmul.f32 -1.442695, %v10420_v26  ;;  %v9371_v8 = vsel %vm745_vm7, %v9243_v45, %v23223_v9  ;;  %v9372_v5 = vsel %vm745_vm7, %v9244_v21, %v23227_v50 }
 0x7f6   : > { %12958 = vpow2.f32 %v12097_v31  ;;  %v9499_v42 = vsel %vm754_vm8, %v9371_v8, %v20760_v14  ;;  %v9297_v59 = vsel %vm736_vm6, %v9169_v61, %v23249_v44  ;;  %v9500_v7 = vsel %vm754_vm8, %v9372_v5, %v20772_v47  ;;  %v23252_v8 = vld [vmem:[#allocation182_spill] sm:$0xff]  ;;  %v23257_v61 = vld [vmem:[#allocation279_spill] sm:$0xff] }
 0x7f7   : > { %v12951_v23 = vpop.eup %12950  ;;  %12960 = vpow2.f32 %v12096_v62  ;;  %v9627_v53 = vsel %vm763_vm9, %v9499_v42, %v20783_v34  ;;  %v9170_v45 = vsel %vm727_vm5, %v20689_v15, %v23250_v6 }
 0x7f8   : > { %v12953_v12 = vpop.eup %12952  ;;  %v11383_v20 = vadd.f32 1.0, %v12951_v23  ;;  %v20795_v29 = vpop.permute.xlu1 %8601  ;;  %v23251_v23 = vld [vmem:[#allocation268_spill] sm:$0xff] }
 0x7f9   : > { %v12634_v63 = vpop.f32.mrb[38].mxu1  ;;  %v11382_v2 = vadd.f32 1.0, %v12953_v12  ;;  %v20803_v54 = vpop.permute.xlu0 %8794  ;;  %v9628_v40 = vsel %vm763_vm9, %v9500_v7, %v20795_v29  ;;  %v8957_v12 = vsel %vm715_vm3, %v23252_v8, %v23251_v23 }
 0x7fa   : > { %v10695_v9 = vadd.f32 %v20483_v16, %v12634_v63  ;;  %v10689_v17 = vpop.f32.mrb[39].mxu1  ;;  %12962 = vrcp.f32 %v11383_v20  ;;  %v9755_v36 = vsel %vm772_vm10, %v9627_v53, %v20803_v54  ;;  %v23256_v53 = vld [vmem:[#allocation175_spill] sm:$0xff] }
 0x7fb   : > { %v10690_v57 = vadd.f32 %v20483_v16, %v10689_v17  ;;  %12964 = vrcp.f32 %v11382_v2  ;;  %12599 = vmatprep.mubr.msk.f32.mxu0 %vm787_vm11, %v9755_v36  ;;  %v20853_v2 = vsel %vm721_vm4, %v8957_v12, %v23254_v33  ;;  %v23258_v12 = vld [vmem:[#allocation267_spill] sm:$0xff] }
 0x7fc   : > { %v12151_v11 = vmul.f32 -1.442695, %v10695_v9  ;;  %v20820_v56 = vpop.permute.xlu1 %8267 }
 0x7fd   : > { %v12150_v26 = vmul.f32 -1.442695, %v10690_v57  ;;  %v9425_v50 = vsel %vm745_vm7, %v9297_v59, %v20820_v56  ;;  %v20826_v1 = vpop.permute.xlu0 %8796 }
 0x7fe   : > { %12966 = vpow2.f32 %v12151_v11  ;;  %v12955_v25 = vpop.eup %12954  ;;  %v9553_v18 = vsel %vm754_vm8, %v9425_v50, %v20664_v27  ;;  %v9756_v51 = vsel %vm772_vm10, %v9628_v40, %v20826_v1  ;;  %v23253_v27 = vld [vmem:[#allocation414_spill] sm:$0xff] }
 0x7ff   : > { %12968 = vpow2.f32 %v12150_v26  ;;  %v12957_v31 = vpop.eup %12956  ;;  %11766 = vst.msk [vmem:[%s19954_s12 + $0x278] sm:$0xff] %vm11686_vm0, %v12955_v25  ;;  %12600 = vmatmul.mubr.msk.f32.gmra.mrb[68].mxu0 %vm787_vm11, %v9756_v51  ;;  %v9681_v62 = vsel %vm763_vm9, %v9553_v18, %v20685_v39  ;;  %v9298_v20 = vsel %vm736_vm6, %v9170_v45, %v23253_v27  ;;  %v23255_v39 = vld [vmem:[#allocation272_spill] sm:$0xff]  ;;  %v9118_v18 = vsel %vm727_vm5, %v20853_v2, %v23210_v13 }
 0x800   : > { %11765 = vst.msk [vmem:[%s19954_s12 + $0x270] sm:$0xff] %vm11686_vm0, %v12957_v31  ;;  %v20847_v42 = vpop.permute.xlu1 %8269  ;;  %v9809_v15 = vsel %vm772_vm10, %v9681_v62, %v20709_v60  ;;  %v12959_v63 = vpop.eup %12958  ;;  %v8956_v9 = vsel %vm715_vm3, %v23256_v53, %v23255_v39  ;;  %v9246_v62 = vsel %vm736_vm6, %v9118_v18, %v23214_v10 }
 0x801   : > { %v9426_v17 = vsel %vm745_vm7, %v9298_v20, %v20847_v42  ;;  %v12556_v21 = vpop.f32.mrb[38].mxu0  ;;  %12680 = vmatprep.mubr.msk.f32.mxu1 %vm787_vm11, %v9809_v15  ;;  %v20861_v57 = vpop.permute.xlu0 %8411  ;;  %v20865_v60 = vsel %vm721_vm4, %v8956_v9, %v23257_v61  ;;  %v11331_v5 = vadd.f32 1.0, %v12959_v63  ;;  %v23259_v63 = vld [vmem:[#allocation287_spill] sm:$0xff]  ;;  %v23260_v9 = vld [vmem:[#allocation305_spill] sm:$0xff] }
 0x802   : > { %v12961_v36 = vpop.eup %12960  ;;  %v9554_v11 = vsel %vm754_vm8, %v9426_v17, %v20677_v35  ;;  %v10435_v59 = vadd.f32 %v20483_v16, %v12556_v21  ;;  %v10429_v7 = vpop.f32.mrb[39].mxu0  ;;  %v9120_v33 = vsel %vm727_vm5, %v20787_v19, %v23259_v63 }
 0x803   : > { %v11330_v26 = vadd.f32 1.0, %v12961_v36  ;;  %v10430_v40 = vadd.f32 %v20483_v16, %v10429_v7  ;;  %v9682_v50 = vsel %vm763_vm9, %v9554_v11, %v20701_v49  ;;  %12970 = vrcp.f32 %v11331_v5  ;;  %v23261_v5 = vld [vmem:[#allocation310_spill] sm:$0xff] }
 0x804   : > { %v12963_v25 = vpop.eup %12962  ;;  %v12099_v51 = vmul.f32 -1.442695, %v10435_v59  ;;  %v20876_v31 = vpop.permute.xlu1 %8413  ;;  %v9810_v35 = vsel %vm772_vm10, %v9682_v50, %v20732_v58  ;;  %v9117_v49 = vsel %vm727_vm5, %v20865_v60, %v23211_v22  ;;  %v9119_v58 = vsel %vm727_vm5, %v20764_v32, %v23258_v12 }
 0x805   : > { %v12965_v45 = vpop.eup %12964  ;;  %11768 = vst.msk [vmem:[%s19954_s12 + $0x288] sm:$0xff] %vm11686_vm0, %v12963_v25  ;;  %12972 = vrcp.f32 %v11330_v26  ;;  %v12098_v13 = vmul.f32 -1.442695, %v10430_v40  ;;  %v12559_v23 = vpop.f32.mrb[40].mxu0  ;;  %12681 = vmatmul.mubr.msk.f32.gmra.mrb[70].mxu1 %vm787_vm11, %v9810_v35  ;;  %v9245_v10 = vsel %vm736_vm6, %v9117_v49, %v23217_v28  ;;  %v9247_v28 = vsel %vm736_vm6, %v9119_v58, %v23260_v9 }
 0x806   : > { %v20888_v8 = vpop.permute.xlu0 %8603  ;;  %11767 = vst.msk [vmem:[%s19954_s12 + $0x280] sm:$0xff] %vm11686_vm0, %v12965_v45  ;;  %12974 = vpow2.f32 %v12099_v51  ;;  %v10445_v22 = vadd.f32 %v20483_v16, %v12559_v23  ;;  %v10439_v20 = vpop.f32.mrb[41].mxu0  ;;  %v9373_v39 = vsel %vm745_vm7, %v9245_v10, %v23229_v41  ;;  %v9248_v19 = vsel %vm736_vm6, %v9120_v33, %v23261_v5  ;;  %v23262_v51 = vld [vmem:[#allocation16_spill] sm:$0xff] }
 0x807   : > { %12976 = vpow2.f32 %v12098_v13  ;;  %v10440_v32 = vadd.f32 %v20483_v16, %v10439_v20  ;;  %v9501_v21 = vsel %vm754_vm8, %v9373_v39, %v20861_v57  ;;  %v9374_v40 = vsel %vm745_vm7, %v9246_v62, %v23232_v37 }
 0x808   : > { %v12967_v15 = vpop.eup %12966  ;;  %v12101_v36 = vmul.f32 -1.442695, %v10445_v22  ;;  %v20908_v61 = vpop.permute.xlu1 %8605  ;;  %v9629_v41 = vsel %vm763_vm9, %v9501_v21, %v20888_v8  ;;  %v9375_v35 = vsel %vm745_vm7, %v9247_v28, %v23262_v51  ;;  %v9502_v45 = vsel %vm754_vm8, %v9374_v40, %v20876_v31  ;;  %v23263_v21 = vld [vmem:[#allocation400_spill] sm:$0xff] }
 0x809   : > { %v12969_v53 = vpop.eup %12968  ;;  %v11385_v17 = vadd.f32 1.0, %v12967_v15  ;;  %v12100_v59 = vmul.f32 -1.442695, %v10440_v32  ;;  %v12562_v7 = vpop.f32.mrb[42].mxu0  ;;  %v9503_v37 = vsel %vm754_vm8, %v9375_v35, %v20760_v14  ;;  %v9630_v62 = vsel %vm763_vm9, %v9502_v45, %v20908_v61  ;;  %v23265_v40 = vld [vmem:[#allocation404_spill] sm:$0xff] }
 0x80a   : > { %v11384_v11 = vadd.f32 1.0, %v12969_v53  ;;  %v20914_v26 = vpop.permute.xlu0 %8798  ;;  %v10455_v50 = vadd.f32 %v20483_v16, %v12562_v7  ;;  %v10449_v18 = vpop.f32.mrb[43].mxu0  ;;  %v9631_v58 = vsel %vm763_vm9, %v9503_v37, %v20783_v34  ;;  %v23267_v37 = vld [vmem:[#allocation341_spill] sm:$0xff] }
 0x80b   : > { %12978 = vrcp.f32 %v11385_v17  ;;  %v9757_v25 = vsel %vm772_vm10, %v9629_v41, %v20914_v26  ;;  %v10450_v49 = vadd.f32 %v20483_v16, %v10449_v18  ;;  %v9759_v33 = vsel %vm772_vm10, %v9631_v58, %v20803_v54 }
 0x80c   : > { %12980 = vrcp.f32 %v11384_v11  ;;  %12602 = vmatprep.mubr.msk.f32.mxu0 %vm787_vm11, %v9757_v25  ;;  %v12103_v13 = vmul.f32 -1.442695, %v10455_v50  ;;  %v20931_v23 = vpop.permute.xlu1 %8800 }
 0x80d   : > { %12982 = vpow2.f32 %v12101_v36  ;;  %v12102_v10 = vmul.f32 -1.442695, %v10450_v49  ;;  %v9758_v22 = vsel %vm772_vm10, %v9630_v62, %v20931_v23  ;;  %v12637_v20 = vpop.f32.mrb[40].mxu1  ;;  %v12971_v14 = vpop.eup %12970  ;;  %v23264_v36 = vld [vmem:[#allocation324_spill] sm:$0xff]  ;;  %v23266_v49 = vld [vmem:[#allocation401_spill] sm:$0xff] }
 0x80e   : > { %12984 = vpow2.f32 %v12100_v59  ;;  %v20937_v15 = vpop.permute.xlu0 %8217  ;;  %v10705_v39 = vadd.f32 %v20483_v16, %v12637_v20  ;;  %12603 = vmatmul.mubr.msk.f32.gmra.mrb[70].mxu0 %vm787_vm11, %v9758_v22  ;;  %v10699_v34 = vpop.f32.mrb[41].mxu1  ;;  %11716 = vst.msk [vmem:[%s19954_s12 + $0xe8] sm:$0xff] %vm11686_vm0, %v12971_v14  ;;  %v8982_v11 = vsel %vm715_vm3, %v23264_v36, %v23263_v21  ;;  %v8983_v62 = vsel %vm715_vm3, %v23267_v37, %v23266_v49 }
 0x80f   : > { %12986 = vpow2.f32 %v12103_v13  ;;  %v9376_v32 = vsel %vm745_vm7, %v9248_v19, %v20937_v15  ;;  %v12973_v53 = vpop.eup %12972  ;;  %v10700_v17 = vadd.f32 %v20483_v16, %v10699_v34  ;;  %12605 = vmatprep.mubr.msk.f32.mxu0 %vm787_vm11, %v9759_v33 }
 0x810   : > { %12988 = vpow2.f32 %v12102_v10  ;;  %v9504_v28 = vsel %vm754_vm8, %v9376_v32, %v20772_v47  ;;  %v12975_v54 = vpop.eup %12974  ;;  %11715 = vst.msk [vmem:[%s19954_s12 + $0xe0] sm:$0xff] %vm11686_vm0, %v12973_v53  ;;  %v12153_v19 = vmul.f32 -1.442695, %v10705_v39  ;;  %v20956_v41 = vpop.permute.xlu1 %8463  ;;  %v20962_v47 = vsel %vm721_vm4, %v8982_v11, %v23265_v40  ;;  %v23269_v39 = vld [vmem:[#allocation282_spill] sm:$0xff]  ;;  %v23272_v11 = vld [vmem:[#allocation309_spill] sm:$0xff] }
 0x811   : > { %v9632_v59 = vsel %vm763_vm9, %v9504_v28, %v20795_v29  ;;  %v12977_v7 = vpop.eup %12976  ;;  %v11333_v50 = vadd.f32 1.0, %v12975_v54  ;;  %v12152_v25 = vmul.f32 -1.442695, %v10700_v17  ;;  %v9171_v13 = vsel %vm727_vm5, %v20962_v47, %v23239_v46  ;;  %v23270_v53 = vld [vmem:[#allocation286_spill] sm:$0xff]  ;;  %v23271_v28 = vld [vmem:[#allocation295_spill] sm:$0xff] }
 0x812   : > { %v20964_v18 = vpop.permute.xlu0 %8465  ;;  %v9760_v35 = vsel %vm772_vm10, %v9632_v59, %v20826_v1  ;;  %v11332_v45 = vadd.f32 1.0, %v12977_v7  ;;  %12990 = vpow2.f32 %v12153_v19  ;;  %v23268_v1 = vld [vmem:[#allocation403_spill] sm:$0xff]  ;;  %v9299_v20 = vsel %vm736_vm6, %v9171_v13, %v23240_v4 }
 0x813   : > { %12606 = vmatmul.mubr.msk.f32.gmra.mrb[72].mxu0 %vm787_vm11, %v9760_v35  ;;  %12992 = vrcp.f32 %v11333_v50  ;;  %v20979_v22 = vsel %vm721_vm4, %v8983_v62, %v23268_v1  ;;  %v9122_v46 = vsel %vm727_vm5, %v20853_v2, %v23269_v39  ;;  %v9427_v32 = vsel %vm745_vm7, %v9299_v20, %v20726_v43 }
 0x814   : > { %12994 = vrcp.f32 %v11332_v45  ;;  %v20975_v58 = vpop.permute.xlu1 %8655  ;;  %v9121_v4 = vsel %vm727_vm5, %v20865_v60, %v23270_v53  ;;  %v9250_v17 = vsel %vm736_vm6, %v9122_v46, %v23271_v28  ;;  %v9555_v21 = vsel %vm754_vm8, %v9427_v32, %v20956_v41 }
 0x815   : > { %v12979_v29 = vpop.eup %12978  ;;  %12996 = vpow2.f32 %v12152_v25  ;;  %v9249_v2 = vsel %vm736_vm6, %v9121_v4, %v23272_v11  ;;  %v9172_v43 = vsel %vm727_vm5, %v20979_v22, %v23241_v48  ;;  %v9683_v59 = vsel %vm763_vm9, %v9555_v21, %v20975_v58 }
 0x816   : > { %v12981_v10 = vpop.eup %12980  ;;  %11770 = vst.msk [vmem:[%s19954_s12 + $0x298] sm:$0xff] %vm11686_vm0, %v12979_v29  ;;  %v20985_v14 = vpop.permute.xlu0 %8657  ;;  %v9300_v40 = vsel %vm736_vm6, %v9172_v43, %v23242_v3 }
 0x817   : > { %v12983_v33 = vpop.eup %12982  ;;  %11769 = vst.msk [vmem:[%s19954_s12 + $0x290] sm:$0xff] %vm11686_vm0, %v12981_v10  ;;  %v9428_v48 = vsel %vm745_vm7, %v9300_v40, %v20750_v52 }
 0x818   : > { %v12985_v34 = vpop.eup %12984  ;;  %v11335_v54 = vadd.f32 1.0, %v12983_v33  ;;  %v21008_v60 = vpop.permute.xlu1 %8850  ;;  %v9556_v3 = vsel %vm754_vm8, %v9428_v48, %v20964_v18 }
 0x819   : > { %v12987_v36 = vpop.eup %12986  ;;  %v11334_v19 = vadd.f32 1.0, %v12985_v34  ;;  %v9811_v25 = vsel %vm772_vm10, %v9683_v59, %v21008_v60  ;;  %v12640_v49 = vpop.f32.mrb[42].mxu1  ;;  %v9684_v10 = vsel %vm763_vm9, %v9556_v3, %v20985_v14  ;;  %v23278_v3 = vld [vmem:[#allocation406_spill] sm:$0xff] }
 0x81a   : > { %v12989_v7 = vpop.eup %12988  ;;  %12998 = vrcp.f32 %v11335_v54  ;;  %v11337_v50 = vadd.f32 1.0, %v12987_v36  ;;  %v21014_v35 = vpop.permute.xlu0 %8219  ;;  %12683 = vmatprep.mubr.msk.f32.mxu1 %vm787_vm11, %v9811_v25  ;;  %v10715_v62 = vadd.f32 %v20483_v16, %v12640_v49  ;;  %v23273_v36 = vld [vmem:[#allocation290_spill] sm:$0xff]  ;;  %v23277_v25 = vld [vmem:[#allocation228_spill] sm:$0xff] }
 0x81b   : > { %13000 = vrcp.f32 %v11334_v19  ;;  %v11336_v45 = vadd.f32 1.0, %v12989_v7  ;;  %v9377_v29 = vsel %vm745_vm7, %v9249_v2, %v21014_v35  ;;  %v10709_v13 = vpop.f32.mrb[43].mxu1  ;;  %v23274_v2 = vld [vmem:[#allocation200_spill] sm:$0xff]  ;;  %v23275_v7 = vld [vmem:[#allocation293_spill] sm:$0xff] }
 0x81c   : > { %13002 = vrcp.f32 %v11337_v50  ;;  %v9505_v37 = vsel %vm754_vm8, %v9377_v29, %v20861_v57  ;;  %v12991_v52 = vpop.eup %12990  ;;  %v10710_v1 = vadd.f32 %v20483_v16, %v10709_v13  ;;  %v21029_v20 = vpop.permute.xlu1 %8852  ;;  %v12155_v57 = vmul.f32 -1.442695, %v10715_v62  ;;  %v23276_v50 = vld [vmem:[#allocation402_spill] sm:$0xff] }
 0x81d   : > { %13004 = vrcp.f32 %v11336_v45  ;;  %v9633_v33 = vsel %vm763_vm9, %v9505_v37, %v20888_v8  ;;  %v12993_v46 = vpop.eup %12992  ;;  %v11387_v32 = vadd.f32 1.0, %v12991_v52  ;;  %v9812_v34 = vsel %vm772_vm10, %v9684_v10, %v21029_v20  ;;  %v23279_v10 = vld [vmem:[#allocation292_spill] sm:$0xff] }
 0x81e   : > { %v21035_v4 = vpop.permute.xlu0 %8221  ;;  %v9761_v54 = vsel %vm772_vm10, %v9633_v33, %v20914_v26  ;;  %v12995_v21 = vpop.eup %12994  ;;  %v8961_v43 = vsel %vm715_vm3, %v23274_v2, %v23273_v36  ;;  %11718 = vst.msk [vmem:[%s19954_s12 + $0xf8] sm:$0xff] %vm11686_vm0, %v12993_v46  ;;  %v12154_v8 = vmul.f32 -1.442695, %v10710_v1  ;;  %12684 = vmatmul.mubr.msk.f32.gmra.mrb[72].mxu1 %vm787_vm11, %v9812_v34  ;;  %v8984_v48 = vsel %vm715_vm3, %v23277_v25, %v23276_v50  ;;  %v23280_v1 = vld [vmem:[#allocation186_spill] sm:$0xff]  ;;  %v23282_v34 = vld [vmem:[#allocation149_spill] sm:$0xff]  ;;  %v23285_v2 = vld [vmem:[#allocation87_spill] sm:$0xff] }
 0x81f   : > { %v9378_v19 = vsel %vm745_vm7, %v9250_v17, %v21035_v4  ;;  %12608 = vmatprep.mubr.msk.f32.mxu0 %vm787_vm11, %v9761_v54  ;;  %v12997_v59 = vpop.eup %12996  ;;  %v21050_v40 = vsel %vm721_vm4, %v8961_v43, %v23275_v7  ;;  %11717 = vst.msk [vmem:[%s19954_s12 + $0xf0] sm:$0xff] %vm11686_vm0, %v12995_v21  ;;  %13006 = vrcp.f32 %v11387_v32  ;;  %v21065_v37 = vsel %vm721_vm4, %v8984_v48, %v23278_v3  ;;  %v23284_v36 = vld [vmem:[#allocation298_spill] sm:$0xff]  ;;  %v23287_v7 = vld [vmem:[#allocation156_spill] sm:$0xff] }
 0x820   : > { %v9506_v26 = vsel %vm754_vm8, %v9378_v19, %v20876_v31  ;;  %v11386_v17 = vadd.f32 1.0, %v12997_v59  ;;  %13008 = vpow2.f32 %v12155_v57  ;;  %v21059_v45 = vpop.permute.xlu1 %8467  ;;  %v12643_v29 = vpop.f32.mrb[44].mxu1  ;;  %v8958_v33 = vsel %vm715_vm3, %v23280_v1, %v23279_v10  ;;  %v23281_v57 = vld [vmem:[#allocation294_spill] sm:$0xff]  ;;  %v23286_v19 = vld [vmem:[#allocation301_spill] sm:$0xff] }
 0x821   : > { %v9634_v49 = vsel %vm763_vm9, %v9506_v26, %v20908_v61  ;;  %13010 = vpow2.f32 %v12154_v8  ;;  %v10725_v62 = vadd.f32 %v20483_v16, %v12643_v29  ;;  %v10719_v31 = vpop.f32.mrb[45].mxu1  ;;  %v9126_v61 = vsel %vm727_vm5, %v21050_v40, %v23269_v39  ;;  %v23288_v26 = vld [vmem:[#allocation337_spill] sm:$0xff] }
 0x822   : > { %v21068_v13 = vpop.permute.xlu0 %8469  ;;  %v9762_v52 = vsel %vm772_vm10, %v9634_v49, %v20931_v23  ;;  %13012 = vrcp.f32 %v11386_v17  ;;  %v10720_v46 = vadd.f32 %v20483_v16, %v10719_v31  ;;  %v8960_v54 = vsel %vm715_vm3, %v23282_v34, %v23281_v57  ;;  %v23283_v23 = vld [vmem:[#allocation297_spill] sm:$0xff]  ;;  %v23289_v49 = vld [vmem:[#allocation302_spill] sm:$0xff] }
 0x823   : > { %12609 = vmatmul.mubr.msk.f32.gmra.mrb[74].mxu0 %vm787_vm11, %v9762_v52  ;;  %v9023_v21 = vsel %vm721_vm4, %v8958_v33, %v23283_v23  ;;  %v8959_v43 = vsel %vm715_vm3, %v23285_v2, %v23284_v36  ;;  %v12157_v8 = vmul.f32 -1.442695, %v10725_v62  ;;  %v21090_v59 = vsel %vm721_vm4, %v8960_v54, %v23286_v19  ;;  %v23290_v62 = vld [vmem:[#allocation399_spill] sm:$0xff]  ;;  %v23294_v2 = vld [vmem:[#allocation32_spill] sm:$0xff]  ;;  %v23295_v19 = vld [vmem:[#allocation38_spill] sm:$0xff] }
 0x824   : > { %v12999_v32 = vpop.eup %12998  ;;  %v8985_v50 = vsel %vm715_vm3, %v23288_v26, %v23287_v7  ;;  %v9173_v25 = vsel %vm727_vm5, %v21065_v37, %v23248_v30  ;;  %v12156_v48 = vmul.f32 -1.442695, %v10720_v46  ;;  %v21100_v17 = vpop.permute.xlu1 %8659  ;;  %v21104_v3 = vsel %vm721_vm4, %v8959_v43, %v23289_v49 }
 0x825   : > { %v13001_v39 = vpop.eup %13000  ;;  %11720 = vst.msk [vmem:[%s19954_s12 + $0x108] sm:$0xff] %vm11686_vm0, %v12999_v32  ;;  %v21108_v31 = vsel %vm721_vm4, %v8985_v50, %v23290_v62  ;;  %v9301_v52 = vsel %vm736_vm6, %v9173_v25, %v23249_v44  ;;  %13014 = vpow2.f32 %v12157_v8  ;;  %v21118_v1 = vsel %vm736_vm6, %v9126_v61, %v23271_v28  ;;  %v23291_v44 = vld [vmem:[#allocation289_spill] sm:$0xff]  ;;  %v23292_v61 = vld [vmem:[#allocation158_spill] sm:$0xff] }
 0x826   : > { %v13003_v29 = vpop.eup %13002  ;;  %11719 = vst.msk [vmem:[%s19954_s12 + $0x100] sm:$0xff] %vm11686_vm0, %v13001_v39  ;;  %v21114_v30 = vpop.permute.xlu0 %8661  ;;  %v9429_v33 = vsel %vm745_vm7, %v9301_v52, %v20820_v56  ;;  %13016 = vpow2.f32 %v12156_v48  ;;  %v9123_v46 = vsel %vm727_vm5, %v9023_v21, %v23258_v12  ;;  %v21128_v32 = vsel %vm727_vm5, %v9023_v21, %v23291_v44  ;;  %v23293_v21 = vld [vmem:[#allocation407_spill] sm:$0xff] }
 0x827   : > { %v13005_v10 = vpop.eup %13004  ;;  %11722 = vst.msk [vmem:[%s19954_s12 + $0x118] sm:$0xff] %vm11686_vm0, %v13003_v29  ;;  %v9125_v57 = vsel %vm727_vm5, %v21090_v59, %v23270_v53  ;;  %v9557_v28 = vsel %vm754_vm8, %v9429_v33, %v21059_v45  ;;  %v9124_v56 = vsel %vm727_vm5, %v21104_v3, %v23259_v63  ;;  %v9174_v12 = vsel %vm727_vm5, %v21108_v31, %v23250_v6 }
 0x828   : > { %11721 = vst.msk [vmem:[%s19954_s12 + $0x110] sm:$0xff] %vm11686_vm0, %v13005_v10  ;;  %v9175_v34 = vsel %vm727_vm5, %v20962_v47, %v23292_v61  ;;  %v9685_v53 = vsel %vm763_vm9, %v9557_v28, %v21100_v17  ;;  %v21148_v54 = vpop.permute.xlu1 %8854  ;;  %v9176_v36 = vsel %vm727_vm5, %v20979_v22, %v23293_v21  ;;  %v9302_v63 = vsel %vm736_vm6, %v9174_v12, %v23253_v27  ;;  %v12565_v26 = vpop.f32.mrb[44].mxu0  ;;  %v21184_v10 = vld [vmem:[%s21692_s6] ss:$0 sm:$0xff] }
 0x829   : > { %v13007_v23 = vpop.eup %13006  ;;  %v9303_v6 = vsel %vm736_vm6, %v9175_v34, %v23294_v2  ;;  %v9813_v43 = vsel %vm772_vm10, %v9685_v53, %v21148_v54  ;;  %v21163_v39 = vsel %vm736_vm6, %v9123_v46, %v23260_v9  ;;  %v9304_v7 = vsel %vm736_vm6, %v9176_v36, %v23295_v19  ;;  %v23296_v34 = vld [vmem:[#allocation306_spill] sm:$0xff] }
 0x82a   : > { %v21159_v47 = vpop.permute.xlu0 %8271  ;;  %v13009_v8 = vpop.eup %13008  ;;  %v9430_v22 = vsel %vm745_vm7, %v9302_v63, %v20847_v42  ;;  %11772 = vst.msk [vmem:[%s19954_s12 + $0x2a8] sm:$0xff] %vm11686_vm0, %v13007_v23  ;;  %12686 = vmatprep.mubr.msk.f32.mxu1 %vm787_vm11, %v9813_v43  ;;  %v10465_v29 = vadd.f32 %v20483_v16, %v12565_v26  ;;  %v9130_v53 = vsel %vm727_vm5, %v21050_v40, %v23296_v34  ;;  %v23297_v43 = vld [vmem:[#allocation313_spill] sm:$0xff]  ;;  %v23306_v34 = vld [vmem:[#allocation22_spill] sm:$0xff] }
 0x82b   : > { %v9431_v27 = vsel %vm745_vm7, %v9303_v6, %v21159_v47  ;;  %v13011_v50 = vpop.eup %13010  ;;  %v11389_v25 = vadd.f32 1.0, %v13009_v8  ;;  %v9558_v9 = vsel %vm754_vm8, %v9430_v22, %v21068_v13  ;;  %v10459_v42 = vpop.f32.mrb[45].mxu0  ;;  %v21207_v63 = vsel %vm736_vm6, %v9125_v57, %v23272_v11 }
 0x82c   : > { %v9559_v48 = vsel %vm754_vm8, %v9431_v27, %v20956_v41  ;;  %v13013_v49 = vpop.eup %13012  ;;  %v11388_v62 = vadd.f32 1.0, %v13011_v50  ;;  %v9686_v52 = vsel %vm763_vm9, %v9558_v9, %v21114_v30  ;;  %v10460_v33 = vadd.f32 %v21184_v10, %v10459_v42  ;;  %v21187_v46 = vpop.permute.xlu1 %8856  ;;  %v23300_v9 = vld [vmem:[#allocation334_spill] sm:$0xff] }
 0x82d   : > { %v9687_v41 = vsel %vm763_vm9, %v9559_v48, %v20975_v58  ;;  %11771 = vst.msk [vmem:[%s19954_s12 + $0x2a0] sm:$0xff] %vm11686_vm0, %v13013_v49  ;;  %13018 = vrcp.f32 %v11389_v25  ;;  %v12105_v16 = vmul.f32 -1.442695, %v10465_v29  ;;  %v9814_v44 = vsel %vm772_vm10, %v9686_v52, %v21187_v46  ;;  %v23302_v42 = vld [vmem:[#allocation14_spill] sm:$0xff] }
 0x82e   : > { %v21195_v28 = vpop.permute.xlu0 %8273  ;;  %v9815_v12 = vsel %vm772_vm10, %v9687_v41, %v21008_v60  ;;  %13020 = vrcp.f32 %v11388_v62  ;;  %v12104_v23 = vmul.f32 -1.442695, %v10460_v33  ;;  %12687 = vmatmul.mubr.msk.f32.gmra.mrb[74].mxu1 %vm787_vm11, %v9814_v44  ;;  %v9252_v6 = vsel %vm736_vm6, %v9124_v56, %v23261_v5  ;;  %v23298_v5 = vld [vmem:[#allocation314_spill] sm:$0xff]  ;;  %v23303_v33 = vld [vmem:[#allocation9_spill] sm:$0xff] }
 0x82f   : > { %v9432_v58 = vsel %vm745_vm7, %v9304_v7, %v21195_v28  ;;  %v13015_v36 = vpop.eup %13014  ;;  %13022 = vpow2.f32 %v12105_v16  ;;  %12689 = vmatprep.mubr.msk.f32.mxu1 %vm787_vm11, %v9815_v12  ;;  %v9129_v8 = vsel %vm727_vm5, %v21090_v59, %v23297_v43  ;;  %v9128_v56 = vsel %vm727_vm5, %v21104_v3, %v23298_v5  ;;  %v23304_v41 = vld [vmem:[#allocation29_spill] sm:$0xff] }
 0x830   : > { %v9560_v60 = vsel %vm754_vm8, %v9432_v58, %v20964_v18  ;;  %v13017_v40 = vpop.eup %13016  ;;  %v11391_v7 = vadd.f32 1.0, %v13015_v36  ;;  %13024 = vpow2.f32 %v12104_v23  ;;  %v21217_v22 = vpop.permute.xlu1 %8415  ;;  %v23299_v18 = vld [vmem:[#allocation323_spill] sm:$0xff]  ;;  %v21234_v48 = vsel %vm736_vm6, %v21128_v32, %v23300_v9  ;;  %v23308_v58 = vld [vmem:[#allocation24_spill] sm:$0xff] }
 0x831   : > { %v12646_v11 = vpop.f32.mrb[46].mxu1  ;;  %v9688_v57 = vsel %vm763_vm9, %v9560_v60, %v20985_v14  ;;  %v21226_v27 = vsel %vm736_vm6, %v9130_v53, %v23299_v18  ;;  %v11390_v26 = vadd.f32 1.0, %v13017_v40  ;;  %v23301_v14 = vld [vmem:[#allocation408_spill] sm:$0xff]  ;;  %v8986_v49 = vsel %vm715_vm3, %v23168_v55, %v23302_v42  ;;  %v23309_v60 = vld [vmem:[#allocation338_spill] sm:$0xff]  ;;  %v23310_v40 = vld [vmem:[#allocation339_spill] sm:$0xff] }
 0x832   : > { %v10735_v50 = vadd.f32 %v21184_v10, %v12646_v11  ;;  %v10729_v59 = vpop.f32.mrb[47].mxu1  ;;  %v21229_v25 = vpop.permute.xlu0 %8417  ;;  %v8989_v29 = vsel %vm715_vm3, %v23181_v38, %v23301_v14  ;;  %13026 = vrcp.f32 %v11391_v7  ;;  %v9816_v52 = vsel %vm772_vm10, %v9688_v57, %v21029_v20  ;;  %v23305_v38 = vld [vmem:[#allocation409_spill] sm:$0xff]  ;;  %v23307_v20 = vld [vmem:[#allocation410_spill] sm:$0xff]  ;;  %v23312_v18 = vld [vmem:[#allocation23_spill] sm:$0xff] }
 0x833   : > { %v10730_v3 = vadd.f32 %v21184_v10, %v10729_v59  ;;  %13028 = vrcp.f32 %v11390_v26  ;;  %v9054_v32 = vsel %vm721_vm4, %v8989_v29, %v23303_v33  ;;  %v8988_v16 = vsel %vm715_vm3, %v23180_v24, %v23304_v41  ;;  %12690 = vmatmul.mubr.msk.f32.gmra.mrb[76].mxu1 %vm787_vm11, %v9816_v52  ;;  %v23311_v57 = vld [vmem:[#allocation405_spill] sm:$0xff]  ;;  %v23313_v29 = vld [vmem:[#allocation35_spill] sm:$0xff] }
 0x834   : > { %v12159_v62 = vmul.f32 -1.442695, %v10735_v50  ;;  %v8987_v44 = vsel %vm715_vm3, %v23170_v0, %v23305_v38  ;;  %v21254_v55 = vpop.permute.xlu1 %8607  ;;  %v9051_v53 = vsel %vm721_vm4, %v8986_v49, %v23306_v34  ;;  %v9053_v36 = vsel %vm721_vm4, %v8988_v16, %v23308_v58 }
 0x835   : > { %v12158_v12 = vmul.f32 -1.442695, %v10730_v3  ;;  %v9052_v23 = vsel %vm721_vm4, %v8987_v44, %v23307_v20  ;;  %v21266_v0 = vsel %vm736_vm6, %v9129_v8, %v23309_v60  ;;  %v21270_v43 = vsel %vm736_vm6, %v9128_v56, %v23310_v40  ;;  %v23314_v44 = vld [vmem:[#allocation415_spill] sm:$0xff] }
 0x836   : > { %13030 = vpow2.f32 %v12159_v62  ;;  %v21262_v24 = vpop.permute.xlu0 %8609  ;;  %v9379_v7 = vsel %vm745_vm7, %v21163_v39, %v23262_v51  ;;  %v9178_v5 = vsel %vm727_vm5, %v21108_v31, %v23311_v57  ;;  %v9177_v8 = vsel %vm727_vm5, %v21065_v37, %v23312_v18 }
 0x837   : > { %13032 = vpow2.f32 %v12158_v12  ;;  %v13019_v11 = vpop.eup %13018  ;;  %v21283_v26 = vsel %vm727_vm5, %v9054_v32, %v23311_v57  ;;  %v9507_v56 = vsel %vm754_vm8, %v9379_v7, %v21217_v22  ;;  %v9179_v51 = vsel %vm727_vm5, %v9051_v53, %v23292_v61  ;;  %v23315_v7 = vld [vmem:[#allocation11_spill] sm:$0xff] }
 0x838   : > { %v13021_v50 = vpop.eup %13020  ;;  %v9180_v39 = vsel %vm727_vm5, %v9052_v23, %v23293_v21  ;;  %v9181_v31 = vsel %vm727_vm5, %v9053_v36, %v23312_v18  ;;  %11774 = vst.msk [vmem:[%s19954_s12 + $0x2b8] sm:$0xff] %vm11686_vm0, %v13019_v11  ;;  %v9635_v37 = vsel %vm763_vm9, %v9507_v56, %v21254_v55  ;;  %v21297_v59 = vpop.permute.xlu1 %8802  ;;  %v9307_v14 = vsel %vm736_vm6, %v9179_v51, %v23294_v2 }
 0x839   : > { %v13023_v9 = vpop.eup %13022  ;;  %v9305_v61 = vsel %vm736_vm6, %v9177_v8, %v23313_v29  ;;  %v9380_v21 = vsel %vm745_vm7, %v9252_v6, %v20937_v15  ;;  %11773 = vst.msk [vmem:[%s19954_s12 + $0x2b0] sm:$0xff] %vm11686_vm0, %v13021_v50  ;;  %v9763_v3 = vsel %vm772_vm10, %v9635_v37, %v21297_v59  ;;  %v12568_v42 = vpop.f32.mrb[46].mxu0  ;;  %v9435_v52 = vsel %vm745_vm7, %v9307_v14, %v21159_v47 }
 0x83a   : > { %v21309_v49 = vpop.permute.xlu0 %8275  ;;  %v13025_v62 = vpop.eup %13024  ;;  %v11339_v33 = vadd.f32 1.0, %v13023_v9  ;;  %v10475_v2 = vadd.f32 %v21184_v10, %v12568_v42  ;;  %12611 = vmatprep.mubr.msk.f32.mxu0 %vm787_vm11, %v9763_v3  ;;  %v9508_v41 = vsel %vm754_vm8, %v9380_v21, %v21229_v25  ;;  %v9306_v12 = vsel %vm736_vm6, %v9178_v5, %v23314_v44 }
 0x83b   : > { %v9433_v32 = vsel %vm745_vm7, %v9305_v61, %v21309_v49  ;;  %v10469_v15 = vpop.f32.mrb[47].mxu0  ;;  %v11338_v6 = vadd.f32 1.0, %v13025_v62  ;;  %v9636_v34 = vsel %vm763_vm9, %v9508_v41, %v21262_v24  ;;  %v9563_v11 = vsel %vm754_vm8, %v9435_v52, %v23315_v7  ;;  %v23316_v62 = vld [vmem:[#allocation10_spill] sm:$0xff] }
 0x83c   : > { %v9561_v16 = vsel %vm754_vm8, %v9433_v32, %v21059_v45  ;;  %v10470_v47 = vadd.f32 %v21184_v10, %v10469_v15  ;;  %v13027_v38 = vpop.eup %13026  ;;  %13034 = vrcp.f32 %v11339_v33  ;;  %v12107_v53 = vmul.f32 -1.442695, %v10475_v2  ;;  %v21326_v20 = vpop.permute.xlu1 %8804  ;;  %v23318_v2 = vld [vmem:[#allocation17_spill] sm:$0xff]  ;;  %v23319_v32 = vld [vmem:[#allocation58_spill] sm:$0xff] }
 0x83d   : > { %v13029_v23 = vpop.eup %13028  ;;  %11776 = vst.msk [vmem:[%s19954_s12 + $0x2c8] sm:$0xff] %vm11686_vm0, %v13027_v38  ;;  %13036 = vrcp.f32 %v11338_v6  ;;  %v9764_v45 = vsel %vm772_vm10, %v9636_v34, %v21326_v20  ;;  %v12571_v36 = vpop.f32.mrb[48].mxu0  ;;  %v9689_v40 = vsel %vm763_vm9, %v9561_v16, %v21100_v17  ;;  %v9308_v56 = vsel %vm736_vm6, %v9180_v39, %v23295_v19  ;;  %v23320_v16 = vld [vmem:[#allocation25_spill] sm:$0xff] }
 0x83e   : > { %v12106_v58 = vmul.f32 -1.442695, %v10470_v47  ;;  %v21332_v60 = vpop.permute.xlu0 %8277  ;;  %11775 = vst.msk [vmem:[%s19954_s12 + $0x2c0] sm:$0xff] %vm11686_vm0, %v13029_v23  ;;  %13038 = vpow2.f32 %v12107_v53  ;;  %v10485_v57 = vadd.f32 %v21184_v10, %v12571_v36  ;;  %v10479_v18 = vpop.f32.mrb[49].mxu0  ;;  %12612 = vmatmul.mubr.msk.f32.gmra.mrb[76].mxu0 %vm787_vm11, %v9764_v45  ;;  %v9817_v14 = vsel %vm772_vm10, %v9689_v40, %v21148_v54  ;;  %v23321_v47 = vld [vmem:[#allocation12_spill] sm:$0xff] }
 0x83f   : > { %v9434_v5 = vsel %vm745_vm7, %v9306_v12, %v21332_v60  ;;  %v10480_v50 = vadd.f32 %v21184_v10, %v10479_v18  ;;  %v9309_v19 = vsel %vm736_vm6, %v9181_v31, %v23313_v29  ;;  %12692 = vmatprep.mubr.msk.f32.mxu1 %vm787_vm11, %v9817_v14  ;;  %v23317_v52 = vunpack.i.h.bf16 %v23316_v62 }
 0x840   : > { %v13031_v8 = vpop.eup %13030  ;;  %13040 = vpow2.f32 %v12106_v58  ;;  %v9562_v17 = vsel %vm754_vm8, %v9434_v5, %v21068_v13  ;;  %v12109_v9 = vmul.f32 -1.442695, %v10485_v57  ;;  %v21351_v61 = vpop.permute.xlu1 %8419  ;;  %v9310_v54 = vsel %vm736_vm6, %v21283_v26, %v23314_v44 }
 0x841   : > { %v13033_v51 = vpop.eup %13032  ;;  %v11393_v37 = vadd.f32 1.0, %v13031_v8  ;;  %v9690_v21 = vsel %vm763_vm9, %v9562_v17, %v21114_v30  ;;  %v12108_v3 = vmul.f32 -1.442695, %v10480_v50  ;;  %v12574_v13 = vpop.f32.mrb[50].mxu0  ;;  %v9691_v33 = vsel %vm763_vm9, %v9563_v11, %v23317_v52 }
 0x842   : > { %v11392_v39 = vadd.f32 1.0, %v13033_v51  ;;  %v21358_v42 = vpop.permute.xlu0 %8421  ;;  %v9383_v30 = vsel %vm745_vm7, %v21234_v48, %v23318_v2  ;;  %v10495_v31 = vadd.f32 %v21184_v10, %v12574_v13  ;;  %v10489_v29 = vpop.f32.mrb[51].mxu0  ;;  %v9384_v15 = vsel %vm745_vm7, %v21270_v43, %v23319_v32 }
 0x843   : > { %13042 = vrcp.f32 %v11393_v37  ;;  %v10490_v6 = vadd.f32 %v21184_v10, %v10489_v29  ;;  %v9818_v41 = vsel %vm772_vm10, %v9690_v21, %v21187_v46  ;;  %v9385_v26 = vsel %vm745_vm7, %v21266_v0, %v23320_v16  ;;  %v23323_v21 = vld [vmem:[#allocation21_spill] sm:$0xff]  ;;  %v23325_v16 = vld [vmem:[#allocation18_spill] sm:$0xff] }
 0x844   : > { %13044 = vrcp.f32 %v11392_v39  ;;  %v12111_v48 = vmul.f32 -1.442695, %v10495_v31  ;;  %12693 = vmatmul.mubr.msk.f32.gmra.mrb[78].mxu1 %vm787_vm11, %v9818_v41  ;;  %v23322_v38 = vunpack.i.h.bf16 %v23321_v47  ;;  %v8612_v43 = vpop.permute.xlu1 %8611  ;;  %v9381_v12 = vsel %vm745_vm7, %v21207_v63, %v21014_v35 }
 0x845   : > { %13046 = vpow2.f32 %v12109_v9  ;;  %v9382_v46 = vsel %vm745_vm7, %v21118_v1, %v21035_v4  ;;  %v12110_v0 = vmul.f32 -1.442695, %v10490_v6  ;;  %v12649_v34 = vpop.f32.mrb[48].mxu1  ;;  %v9436_v58 = vsel %vm745_vm7, %v9308_v56, %v21195_v28 }
 0x846   : > { %v9819_v44 = vsel %vm772_vm10, %v9691_v33, %v23322_v38  ;;  %13048 = vpow2.f32 %v12108_v3  ;;  %v21390_v53 = vpop.permute.xlu0 %8613  ;;  %v13035_v23 = vpop.eup %13034  ;;  %v9511_v45 = vsel %vm754_vm8, %v9383_v30, %v21217_v22  ;;  %v10745_v35 = vadd.f32 %v21184_v10, %v12649_v34 }
 0x847   : > { %12695 = vmatprep.mubr.msk.f32.mxu1 %vm787_vm11, %v9819_v44  ;;  %13050 = vpow2.f32 %v12111_v48  ;;  %v10739_v63 = vpop.f32.mrb[49].mxu1  ;;  %v13037_v4 = vpop.eup %13036  ;;  %11724 = vst.msk [vmem:[%s19954_s12 + $0x128] sm:$0xff] %vm11686_vm0, %v13035_v23  ;;  %v9437_v1 = vsel %vm745_vm7, %v9309_v19, %v21309_v49  ;;  %v9509_v36 = vsel %vm754_vm8, %v9381_v12, %v21351_v61  ;;  %v9438_v22 = vsel %vm745_vm7, %v9310_v54, %v21332_v60 }
 0x848   : > { %13052 = vpow2.f32 %v12110_v0  ;;  %v10740_v40 = vadd.f32 %v21184_v10, %v10739_v63  ;;  %v13039_v28 = vpop.eup %13038  ;;  %11723 = vst.msk [vmem:[%s19954_s12 + $0x120] sm:$0xff] %vm11686_vm0, %v13037_v4  ;;  %v9510_v7 = vsel %vm754_vm8, %v9382_v46, %v21358_v42  ;;  %v9637_v11 = vsel %vm763_vm9, %v9509_v36, %v8612_v43  ;;  %v8807_v5 = vpop.permute.xlu1 %8806  ;;  %v23326_v0 = vld [vmem:[#allocation19_spill] sm:$0xff] }
 0x849   : > { %v12161_v57 = vmul.f32 -1.442695, %v10745_v35  ;;  %v11341_v18 = vadd.f32 1.0, %v13039_v28  ;;  %v9638_v8 = vsel %vm763_vm9, %v9510_v7, %v21390_v53  ;;  %v9765_v17 = vsel %vm772_vm10, %v9637_v11, %v8807_v5 }
 0x84a   : > { %v13041_v49 = vpop.eup %13040  ;;  %v12160_v56 = vmul.f32 -1.442695, %v10740_v40  ;;  %v8809_v50 = vpop.permute.xlu0 %8808  ;;  %v9639_v51 = vsel %vm763_vm9, %v9511_v45, %v21254_v55  ;;  %12614 = vmatprep.mubr.msk.f32.mxu0 %vm787_vm11, %v9765_v17  ;;  %v9512_v9 = vsel %vm754_vm8, %v9384_v15, %v21229_v25  ;;  %v9564_v19 = vsel %vm754_vm8, %v9436_v58, %v23323_v21 }
 0x84b   : > { %v11340_v60 = vadd.f32 1.0, %v13041_v49  ;;  %13054 = vpow2.f32 %v12161_v57  ;;  %v9766_v37 = vsel %vm772_vm10, %v9638_v8, %v8809_v50  ;;  %v9767_v14 = vsel %vm772_vm10, %v9639_v51, %v21297_v59 }
 0x84c   : > { %13056 = vrcp.f32 %v11341_v18  ;;  %12615 = vmatmul.mubr.msk.f32.gmra.mrb[78].mxu0 %vm787_vm11, %v9766_v37  ;;  %v9640_v39 = vsel %vm763_vm9, %v9512_v9, %v21262_v24  ;;  %v9566_v3 = vsel %vm754_vm8, %v9438_v22, %v23323_v21  ;;  %v8664_v13 = vpop.permute.xlu1 %8663  ;;  %v9565_v25 = vsel %vm754_vm8, %v9437_v1, %v23323_v21 }
 0x84d   : > { %v13043_v55 = vpop.eup %13042  ;;  %13058 = vrcp.f32 %v11340_v60  ;;  %12617 = vmatprep.mubr.msk.f32.mxu0 %vm787_vm11, %v9767_v14  ;;  %v9513_v62 = vsel %vm754_vm8, %v9385_v26, %v21351_v61  ;;  %v9692_v52 = vsel %vm763_vm9, %v9564_v19, %v8664_v13  ;;  %v9693_v24 = vsel %vm763_vm9, %v9565_v25, %v8664_v13  ;;  %v23324_v61 = vld [vmem:[#allocation5_spill] sm:$0xff] }
 0x84e   : > { %v13045_v59 = vpop.eup %13044  ;;  %11778 = vst.msk [vmem:[%s19954_s12 + $0x2d8] sm:$0xff] %vm11686_vm0, %v13043_v55  ;;  %13060 = vpow2.f32 %v12160_v56  ;;  %v8859_v33 = vpop.permute.xlu0 %8858  ;;  %v9768_v2 = vsel %vm772_vm10, %v9640_v39, %v21326_v20  ;;  %v9641_v30 = vsel %vm763_vm9, %v9513_v62, %v8612_v43  ;;  %v9386_v15 = vsel %vm745_vm7, %v21226_v27, %v23324_v61 }
 0x84f   : > { %v13047_v54 = vpop.eup %13046  ;;  %11777 = vst.msk [vmem:[%s19954_s12 + $0x2d0] sm:$0xff] %vm11686_vm0, %v13045_v59  ;;  %v9820_v31 = vsel %vm772_vm10, %v9692_v52, %v8859_v33  ;;  %v9821_v29 = vsel %vm772_vm10, %v9693_v24, %v8859_v33  ;;  %v9769_v41 = vsel %vm772_vm10, %v9641_v30, %v8807_v5  ;;  %v9694_v20 = vsel %vm763_vm9, %v9566_v3, %v23325_v16 }
 0x850   : > { %v13049_v32 = vpop.eup %13048  ;;  %v11343_v6 = vadd.f32 1.0, %v13047_v54  ;;  %12618 = vmatmul.mubr.msk.f32.gmra.mrb[80].mxu0 %vm787_vm11, %v9768_v2  ;;  %12696 = vmatmul.mubr.msk.f32.gmra.mrb[80].mxu1 %vm787_vm11, %v9820_v31  ;;  %v9514_v47 = vsel %vm754_vm8, %v9386_v15, %v21358_v42  ;;  %v12652_v46 = vpop.f32.mrb[50].mxu1  ;;  %v9822_v34 = vsel %vm772_vm10, %v9694_v20, %v23326_v0 }
 0x851   : > { %v13051_v26 = vpop.eup %13050  ;;  %v11342_v48 = vadd.f32 1.0, %v13049_v32  ;;  %12620 = vmatprep.mubr.msk.f32.mxu0 %vm787_vm11, %v9769_v41  ;;  %12698 = vmatprep.mubr.msk.f32.mxu1 %vm787_vm11, %v9821_v29  ;;  %v9642_v44 = vsel %vm763_vm9, %v9514_v47, %v21390_v53  ;;  %v10755_v42 = vadd.f32 %v21184_v10, %v12652_v46  ;;  %v10749_v23 = vpop.f32.mrb[51].mxu1 }
 0x852   : > { %v13053_v27 = vpop.eup %13052  ;;  %13062 = vrcp.f32 %v11343_v6  ;;  %v11345_v38 = vadd.f32 1.0, %v13051_v26  ;;  %v9770_v12 = vsel %vm772_vm10, %v9642_v44, %v8809_v50  ;;  %v10750_v53 = vadd.f32 %v21184_v10, %v10749_v23 }
 0x853   : > { %13064 = vrcp.f32 %v11342_v48  ;;  %v11344_v43 = vadd.f32 1.0, %v13053_v27  ;;  %v12163_v63 = vmul.f32 -1.442695, %v10755_v42 }
 0x854   : > { %13066 = vrcp.f32 %v11345_v38  ;;  %12621 = vmatmul.mubr.msk.f32.gmra.mrb[82].mxu0 %vm787_vm11, %v9770_v12  ;;  %12699 = vmatmul.mubr.msk.f32.gmra.mrb[82].mxu1 %vm787_vm11, %v9822_v34  ;;  %v12162_v1 = vmul.f32 -1.442695, %v10750_v53 }
 0x855   : > { %v13055_v58 = vpop.eup %13054  ;;  %13068 = vrcp.f32 %v11344_v43 }
 0x856   : > { %v13057_v45 = vpop.eup %13056  ;;  %v11395_v35 = vadd.f32 1.0, %v13055_v58 }
 0x857   : > { %v13059_v4 = vpop.eup %13058  ;;  %11726 = vst.msk [vmem:[%s19954_s12 + $0x138] sm:$0xff] %vm11686_vm0, %v13057_v45 }
 0x858   : > { %v13061_v36 = vpop.eup %13060  ;;  %11725 = vst.msk [vmem:[%s19954_s12 + $0x130] sm:$0xff] %vm11686_vm0, %v13059_v4  ;;  %13070 = vrcp.f32 %v11395_v35  ;;  %v12655_v28 = vpop.f32.mrb[52].mxu1 }
 0x859   : > { %v11394_v40 = vadd.f32 1.0, %v13061_v36  ;;  %13072 = vpow2.f32 %v12163_v63  ;;  %v10765_v22 = vadd.f32 %v21184_v10, %v12655_v28  ;;  %v10759_v7 = vpop.f32.mrb[53].mxu1 }
 0x85a   : > { %13074 = vpow2.f32 %v12162_v1  ;;  %v10760_v11 = vadd.f32 %v21184_v10, %v10759_v7 }
 0x85b   : > { %13076 = vrcp.f32 %v11394_v40  ;;  %v12165_v5 = vmul.f32 -1.442695, %v10765_v22 }
 0x85c   : > { %v13063_v57 = vpop.eup %13062  ;;  %v12164_v18 = vmul.f32 -1.442695, %v10760_v11 }
 0x85d   : > { %v13065_v49 = vpop.eup %13064  ;;  %11728 = vst.msk [vmem:[%s19954_s12 + $0x148] sm:$0xff] %vm11686_vm0, %v13063_v57  ;;  %13078 = vpow2.f32 %v12165_v5 }
 0x85e   : > { %v13067_v8 = vpop.eup %13066  ;;  %11727 = vst.msk [vmem:[%s19954_s12 + $0x140] sm:$0xff] %vm11686_vm0, %v13065_v49  ;;  %13080 = vpow2.f32 %v12164_v18 }
 0x85f   : > { %v13069_v56 = vpop.eup %13068  ;;  %11730 = vst.msk [vmem:[%s19954_s12 + $0x158] sm:$0xff] %vm11686_vm0, %v13067_v8 }
 0x860   : > { %11729 = vst.msk [vmem:[%s19954_s12 + $0x150] sm:$0xff] %vm11686_vm0, %v13069_v56  ;;  %v12577_v51 = vpop.f32.mrb[52].mxu0 }
 0x861   : > { %v10505_v9 = vadd.f32 %v21184_v10, %v12577_v51  ;;  %v10499_v14 = vpop.f32.mrb[53].mxu0 }
 0x862   : > { %v13071_v17 = vpop.eup %13070  ;;  %v10500_v55 = vadd.f32 %v21184_v10, %v10499_v14 }
 0x863   : > { %v13073_v50 = vpop.eup %13072  ;;  %11780 = vst.msk [vmem:[%s19954_s12 + $0x2e8] sm:$0xff] %vm11686_vm0, %v13071_v17  ;;  %v12113_v39 = vmul.f32 -1.442695, %v10505_v9 }
 0x864   : > { %v13075_v60 = vpop.eup %13074  ;;  %v11397_v37 = vadd.f32 1.0, %v13073_v50  ;;  %v12112_v3 = vmul.f32 -1.442695, %v10500_v55 }
 0x865   : > { %v13077_v21 = vpop.eup %13076  ;;  %v11396_v19 = vadd.f32 1.0, %v13075_v60 }
 0x866   : > { %11779 = vst.msk [vmem:[%s19954_s12 + $0x2e0] sm:$0xff] %vm11686_vm0, %v13077_v21  ;;  %13082 = vrcp.f32 %v11397_v37 }
 0x867   : > { %13084 = vrcp.f32 %v11396_v19  ;;  %v13079_v13 = vpop.eup %13078 }
 0x868   : > { %13086 = vpow2.f32 %v12113_v39  ;;  %v13081_v25 = vpop.eup %13080  ;;  %v11399_v59 = vadd.f32 1.0, %v13079_v13  ;;  %v12658_v62 = vpop.f32.mrb[54].mxu1 }
 0x869   : > { %13088 = vpow2.f32 %v12112_v3  ;;  %v11398_v52 = vadd.f32 1.0, %v13081_v25  ;;  %v10775_v24 = vadd.f32 %v21184_v10, %v12658_v62  ;;  %v10769_v33 = vpop.f32.mrb[55].mxu1 }
 0x86a   : > { %13090 = vrcp.f32 %v11399_v59  ;;  %v10770_v54 = vadd.f32 %v21184_v10, %v10769_v33 }
 0x86b   : > { %13092 = vrcp.f32 %v11398_v52  ;;  %v12167_v2 = vmul.f32 -1.442695, %v10775_v24 }
 0x86c   : > { %v12166_v30 = vmul.f32 -1.442695, %v10770_v54 }
 0x86d   : > { %13094 = vpow2.f32 %v12167_v2 }
 0x86e   : > { %13096 = vpow2.f32 %v12166_v30 }
 0x870   : > { %v13083_v31 = vpop.eup %13082 }
 0x871   : > { %v13085_v29 = vpop.eup %13084  ;;  %11782 = vst.msk [vmem:[%s19954_s12 + $0x2f8] sm:$0xff] %vm11686_vm0, %v13083_v31  ;;  %v12580_v61 = vpop.f32.mrb[54].mxu0 }
 0x872   : > { %v13087_v32 = vpop.eup %13086  ;;  %11781 = vst.msk [vmem:[%s19954_s12 + $0x2f0] sm:$0xff] %vm11686_vm0, %v13085_v29  ;;  %v10515_v41 = vadd.f32 %v21184_v10, %v12580_v61  ;;  %v10509_v16 = vpop.f32.mrb[55].mxu0 }
 0x873   : > { %v13089_v15 = vpop.eup %13088  ;;  %v11347_v6 = vadd.f32 1.0, %v13087_v32  ;;  %v10510_v26 = vadd.f32 %v21184_v10, %v10509_v16 }
 0x874   : > { %v11346_v20 = vadd.f32 1.0, %v13089_v15  ;;  %v13091_v48 = vpop.eup %13090  ;;  %v12115_v47 = vmul.f32 -1.442695, %v10515_v41 }
 0x875   : > { %13098 = vrcp.f32 %v11347_v6  ;;  %v13093_v27 = vpop.eup %13092  ;;  %11784 = vst.msk [vmem:[%s19954_s12 + $0x308] sm:$0xff] %vm11686_vm0, %v13091_v48  ;;  %v12114_v38 = vmul.f32 -1.442695, %v10510_v26  ;;  %v12583_v44 = vpop.f32.mrb[56].mxu0 }
 0x876   : > { %13100 = vrcp.f32 %v11346_v20  ;;  %11783 = vst.msk [vmem:[%s19954_s12 + $0x300] sm:$0xff] %vm11686_vm0, %v13093_v27  ;;  %v10525_v43 = vadd.f32 %v21184_v10, %v12583_v44  ;;  %v10519_v12 = vpop.f32.mrb[57].mxu0 }
 0x877   : > { %13102 = vpow2.f32 %v12115_v47  ;;  %v13095_v46 = vpop.eup %13094  ;;  %v10520_v0 = vadd.f32 %v21184_v10, %v10519_v12 }
 0x878   : > { %13104 = vpow2.f32 %v12114_v38  ;;  %v13097_v34 = vpop.eup %13096  ;;  %v11401_v42 = vadd.f32 1.0, %v13095_v46  ;;  %v12117_v23 = vmul.f32 -1.442695, %v10525_v43 }
 0x879   : > { %v11400_v58 = vadd.f32 1.0, %v13097_v34  ;;  %v12116_v53 = vmul.f32 -1.442695, %v10520_v0  ;;  %v12586_v45 = vpop.f32.mrb[58].mxu0 }
 0x87a   : > { %13106 = vrcp.f32 %v11401_v42  ;;  %v10535_v35 = vadd.f32 %v21184_v10, %v12586_v45  ;;  %v10529_v63 = vpop.f32.mrb[59].mxu0 }
 0x87b   : > { %13108 = vrcp.f32 %v11400_v58  ;;  %v10530_v4 = vadd.f32 %v21184_v10, %v10529_v63 }
 0x87c   : > { %13110 = vpow2.f32 %v12117_v23  ;;  %v12119_v1 = vmul.f32 -1.442695, %v10535_v35 }
 0x87d   : > { %13112 = vpow2.f32 %v12116_v53  ;;  %v12118_v36 = vmul.f32 -1.442695, %v10530_v4  ;;  %v12661_v40 = vpop.f32.mrb[56].mxu1 }
 0x87e   : > { %13114 = vpow2.f32 %v12119_v1  ;;  %v10785_v22 = vadd.f32 %v21184_v10, %v12661_v40  ;;  %v10779_v7 = vpop.f32.mrb[57].mxu1 }
 0x87f   : > { %v13099_v28 = vpop.eup %13098  ;;  %13116 = vpow2.f32 %v12118_v36  ;;  %v10780_v57 = vadd.f32 %v21184_v10, %v10779_v7 }
 0x880   : > { %v13101_v11 = vpop.eup %13100  ;;  %11732 = vst.msk [vmem:[%s19954_s12 + $0x168] sm:$0xff] %vm11686_vm0, %v13099_v28  ;;  %v12169_v49 = vmul.f32 -1.442695, %v10785_v22 }
 0x881   : > { %v13103_v5 = vpop.eup %13102  ;;  %11731 = vst.msk [vmem:[%s19954_s12 + $0x160] sm:$0xff] %vm11686_vm0, %v13101_v11  ;;  %v12168_v56 = vmul.f32 -1.442695, %v10780_v57 }
 0x882   : > { %v13105_v18 = vpop.eup %13104  ;;  %v11349_v8 = vadd.f32 1.0, %v13103_v5  ;;  %13118 = vpow2.f32 %v12169_v49 }
 0x883   : > { %v11348_v17 = vadd.f32 1.0, %v13105_v18 }
 0x884   : > { %13120 = vrcp.f32 %v11349_v8  ;;  %v13107_v50 = vpop.eup %13106 }
 0x885   : > { %13122 = vrcp.f32 %v11348_v17  ;;  %v13109_v51 = vpop.eup %13108  ;;  %11786 = vst.msk [vmem:[%s19954_s12 + $0x318] sm:$0xff] %vm11686_vm0, %v13107_v50 }
 0x886   : > { %13124 = vpow2.f32 %v12168_v56  ;;  %v13111_v60 = vpop.eup %13110  ;;  %11785 = vst.msk [vmem:[%s19954_s12 + $0x310] sm:$0xff] %vm11686_vm0, %v13109_v51 }
 0x887   : > { %v13113_v37 = vpop.eup %13112  ;;  %v11351_v9 = vadd.f32 1.0, %v13111_v60 }
 0x888   : > { %v13115_v14 = vpop.eup %13114  ;;  %v11350_v21 = vadd.f32 1.0, %v13113_v37  ;;  %v12664_v3 = vpop.f32.mrb[58].mxu1 }
 0x889   : > { %v13117_v19 = vpop.eup %13116  ;;  %13126 = vrcp.f32 %v11351_v9  ;;  %v11353_v55 = vadd.f32 1.0, %v13115_v14  ;;  %v10795_v13 = vadd.f32 %v21184_v10, %v12664_v3  ;;  %v10789_v25 = vpop.f32.mrb[59].mxu1 }
 0x88a   : > { %13128 = vrcp.f32 %v11350_v21  ;;  %v11352_v39 = vadd.f32 1.0, %v13117_v19  ;;  %v10790_v62 = vadd.f32 %v21184_v10, %v10789_v25 }
 0x88b   : > { %13130 = vrcp.f32 %v11353_v55  ;;  %v12171_v33 = vmul.f32 -1.442695, %v10795_v13 }
 0x88c   : > { %v13119_v59 = vpop.eup %13118  ;;  %13132 = vrcp.f32 %v11352_v39  ;;  %v12170_v2 = vmul.f32 -1.442695, %v10790_v62 }
 0x88d   : > { %v11403_v24 = vadd.f32 1.0, %v13119_v59 }
 0x88e   : > { %v13121_v52 = vpop.eup %13120 }
 0x88f   : > { %v13123_v54 = vpop.eup %13122  ;;  %11734 = vst.msk [vmem:[%s19954_s12 + $0x178] sm:$0xff] %vm11686_vm0, %v13121_v52  ;;  %13134 = vrcp.f32 %v11403_v24 }
 0x890   : > { %v13125_v30 = vpop.eup %13124  ;;  %11733 = vst.msk [vmem:[%s19954_s12 + $0x170] sm:$0xff] %vm11686_vm0, %v13123_v54  ;;  %13136 = vpow2.f32 %v12171_v33  ;;  %v12667_v29 = vpop.f32.mrb[60].mxu1 }
 0x891   : > { %v11402_v31 = vadd.f32 1.0, %v13125_v30  ;;  %13138 = vpow2.f32 %v12170_v2  ;;  %v10805_v32 = vadd.f32 %v21184_v10, %v12667_v29  ;;  %v10799_v61 = vpop.f32.mrb[61].mxu1 }
 0x892   : > { %v10800_v15 = vadd.f32 %v21184_v10, %v10799_v61 }
 0x893   : > { %13140 = vrcp.f32 %v11402_v31  ;;  %v13127_v6 = vpop.eup %13126  ;;  %v12173_v41 = vmul.f32 -1.442695, %v10805_v32 }
 0x894   : > { %v13129_v16 = vpop.eup %13128  ;;  %11736 = vst.msk [vmem:[%s19954_s12 + $0x188] sm:$0xff] %vm11686_vm0, %v13127_v6  ;;  %v12172_v20 = vmul.f32 -1.442695, %v10800_v15 }
 0x895   : > { %v13131_v26 = vpop.eup %13130  ;;  %11735 = vst.msk [vmem:[%s19954_s12 + $0x180] sm:$0xff] %vm11686_vm0, %v13129_v16  ;;  %13142 = vpow2.f32 %v12173_v41 }
 0x896   : > { %v13133_v48 = vpop.eup %13132  ;;  %11738 = vst.msk [vmem:[%s19954_s12 + $0x198] sm:$0xff] %vm11686_vm0, %v13131_v26  ;;  %13144 = vpow2.f32 %v12172_v20 }
 0x897   : > { %11737 = vst.msk [vmem:[%s19954_s12 + $0x190] sm:$0xff] %vm11686_vm0, %v13133_v48 }
 0x898   : > { %v12589_v38 = vpop.f32.mrb[60].mxu0 }
 0x899   : > { %v13135_v47 = vpop.eup %13134  ;;  %v10545_v12 = vadd.f32 %v21184_v10, %v12589_v38  ;;  %v10539_v46 = vpop.f32.mrb[61].mxu0 }
 0x89a   : > { %v13137_v27 = vpop.eup %13136  ;;  %11788 = vst.msk [vmem:[%s19954_s12 + $0x328] sm:$0xff] %vm11686_vm0, %v13135_v47  ;;  %v10540_v42 = vadd.f32 %v21184_v10, %v10539_v46 }
 0x89b   : > { %v13139_v44 = vpop.eup %13138  ;;  %v11405_v43 = vadd.f32 1.0, %v13137_v27  ;;  %v12121_v23 = vmul.f32 -1.442695, %v10545_v12 }
 0x89c   : > { %v11404_v34 = vadd.f32 1.0, %v13139_v44  ;;  %v12120_v58 = vmul.f32 -1.442695, %v10540_v42 }
 0x89d   : > { %v13141_v0 = vpop.eup %13140  ;;  %13146 = vrcp.f32 %v11405_v43 }
 0x89e   : > { %11787 = vst.msk [vmem:[%s19954_s12 + $0x320] sm:$0xff] %vm11686_vm0, %v13141_v0  ;;  %13148 = vrcp.f32 %v11404_v34 }
 0x89f   : > { %v13143_v53 = vpop.eup %13142  ;;  %13150 = vpow2.f32 %v12121_v23 }
 0x8a0   : > { %v13145_v45 = vpop.eup %13144  ;;  %v11407_v35 = vadd.f32 1.0, %v13143_v53  ;;  %13152 = vpow2.f32 %v12120_v58  ;;  %v21563_v58 = vld [vmem:[%s21692_s6] ss:$0 sm:$0xff] }
 0x8a1   : > { %v11406_v63 = vadd.f32 1.0, %v13145_v45 }
 0x8a2   : > { %13154 = vrcp.f32 %v11407_v35  ;;  %v12670_v4 = vpop.f32.mrb[62].mxu1 }
 0x8a3   : > { %13156 = vrcp.f32 %v11406_v63  ;;  %v10815_v1 = vadd.f32 %v21184_v10, %v12670_v4  ;;  %v10809_v36 = vpop.f32.mrb[63].mxu1 }
 0x8a4   : > { %v10810_v40 = vadd.f32 %v21184_v10, %v10809_v36 }
 0x8a5   : > { %v12175_v28 = vmul.f32 -1.442695, %v10815_v1 }
 0x8a6   : > { %v12174_v22 = vmul.f32 -1.442695, %v10810_v40 }
 0x8a7   : > { %v13147_v7 = vpop.eup %13146  ;;  %13158 = vpow2.f32 %v12175_v28 }
 0x8a8   : > { %v13149_v11 = vpop.eup %13148  ;;  %11790 = vst.msk [vmem:[%s19954_s12 + $0x338] sm:$0xff] %vm11686_vm0, %v13147_v7  ;;  %13160 = vpow2.f32 %v12174_v22 }
 0x8a9   : > { %v13151_v57 = vpop.eup %13150  ;;  %11789 = vst.msk [vmem:[%s19954_s12 + $0x330] sm:$0xff] %vm11686_vm0, %v13149_v11  ;;  %v12592_v5 = vpop.f32.mrb[62].mxu0 }
 0x8aa   : > { %v13153_v49 = vpop.eup %13152  ;;  %v11355_v18 = vadd.f32 1.0, %v13151_v57  ;;  %v10555_v8 = vadd.f32 %v21184_v10, %v12592_v5  ;;  %v10549_v56 = vpop.f32.mrb[63].mxu0 }
 0x8ab   : > { %v11354_v17 = vadd.f32 1.0, %v13153_v49  ;;  %v10550_v50 = vadd.f32 %v21184_v10, %v10549_v56 }
 0x8ac   : > { %v13155_v51 = vpop.eup %13154  ;;  %13162 = vrcp.f32 %v11355_v18  ;;  %v12123_v60 = vmul.f32 -1.442695, %v10555_v8 }
 0x8ad   : > { %v13157_v37 = vpop.eup %13156  ;;  %11792 = vst.msk [vmem:[%s19954_s12 + $0x348] sm:$0xff] %vm11686_vm0, %v13155_v51  ;;  %13164 = vrcp.f32 %v11354_v17  ;;  %v12122_v9 = vmul.f32 -1.442695, %v10550_v50  ;;  %v12595_v14 = vpop.f32.mrb[64].mxu0 }
 0x8ae   : > { %11791 = vst.msk [vmem:[%s19954_s12 + $0x340] sm:$0xff] %vm11686_vm0, %v13157_v37  ;;  %13166 = vpow2.f32 %v12123_v60  ;;  %v10565_v21 = vadd.f32 %v21184_v10, %v12595_v14  ;;  %v10559_v19 = vpop.f32.mrb[65].mxu0 }
 0x8af   : > { %13168 = vpow2.f32 %v12122_v9  ;;  %v10560_v55 = vadd.f32 %v21184_v10, %v10559_v19 }
 0x8b0   : > { %v12125_v39 = vmul.f32 -1.442695, %v10565_v21 }
 0x8b1   : > { %v13159_v3 = vpop.eup %13158  ;;  %v12124_v13 = vmul.f32 -1.442695, %v10560_v55  ;;  %v12598_v25 = vpop.f32.mrb[66].mxu0 }
 0x8b2   : > { %v13161_v59 = vpop.eup %13160  ;;  %v11409_v62 = vadd.f32 1.0, %v13159_v3  ;;  %13170 = vpow2.f32 %v12125_v39  ;;  %v10575_v52 = vadd.f32 %v21184_v10, %v12598_v25  ;;  %v10569_v24 = vpop.f32.mrb[67].mxu0 }
 0x8b3   : > { %v11408_v33 = vadd.f32 1.0, %v13161_v59  ;;  %13172 = vpow2.f32 %v12124_v13  ;;  %v10570_v54 = vadd.f32 %v21184_v10, %v10569_v24 }
 0x8b4   : > { %13174 = vrcp.f32 %v11409_v62  ;;  %v12127_v2 = vmul.f32 -1.442695, %v10575_v52 }
 0x8b5   : > { %13176 = vrcp.f32 %v11408_v33  ;;  %v12126_v30 = vmul.f32 -1.442695, %v10570_v54  ;;  %v12673_v31 = vpop.f32.mrb[64].mxu1 }
 0x8b6   : > { %v13163_v29 = vpop.eup %13162  ;;  %13178 = vpow2.f32 %v12127_v2  ;;  %v10825_v32 = vadd.f32 %v21184_v10, %v12673_v31  ;;  %v10819_v61 = vpop.f32.mrb[65].mxu1 }
 0x8b7   : > { %v13165_v15 = vpop.eup %13164  ;;  %11740 = vst.msk [vmem:[%s19954_s12 + $0x1a8] sm:$0xff] %vm11686_vm0, %v13163_v29  ;;  %13180 = vpow2.f32 %v12126_v30  ;;  %v10820_v6 = vadd.f32 %v21184_v10, %v10819_v61 }
 0x8b8   : > { %v13167_v41 = vpop.eup %13166  ;;  %11739 = vst.msk [vmem:[%s19954_s12 + $0x1a0] sm:$0xff] %vm11686_vm0, %v13165_v15  ;;  %v12177_v16 = vmul.f32 -1.442695, %v10825_v32 }
 0x8b9   : > { %v13169_v20 = vpop.eup %13168  ;;  %v11357_v26 = vadd.f32 1.0, %v13167_v41  ;;  %v12176_v48 = vmul.f32 -1.442695, %v10820_v6 }
 0x8ba   : > { %v11356_v47 = vadd.f32 1.0, %v13169_v20  ;;  %13182 = vpow2.f32 %v12177_v16 }
 0x8bb   : > { %13184 = vrcp.f32 %v11357_v26 }
 0x8bc   : > { %v13171_v27 = vpop.eup %13170  ;;  %13186 = vrcp.f32 %v11356_v47 }
 0x8bd   : > { %v13173_v38 = vpop.eup %13172  ;;  %v11359_v44 = vadd.f32 1.0, %v13171_v27  ;;  %13188 = vpow2.f32 %v12176_v48 }
 0x8be   : > { %v13175_v43 = vpop.eup %13174  ;;  %v11358_v12 = vadd.f32 1.0, %v13173_v38 }
 0x8bf   : > { %v13177_v10 = vpop.eup %13176  ;;  %11794 = vst.msk [vmem:[%s19954_s12 + $0x358] sm:$0xff] %vm11686_vm0, %v13175_v43  ;;  %13190 = vrcp.f32 %v11359_v44 }
 0x8c0   : > { %v13179_v46 = vpop.eup %13178  ;;  %11793 = vst.msk [vmem:[%s19954_s12 + $0x350] sm:$0xff] %vm11686_vm0, %v13177_v10  ;;  %13192 = vrcp.f32 %v11358_v12 }
 0x8c1   : > { %v13181_v0 = vpop.eup %13180  ;;  %v11361_v34 = vadd.f32 1.0, %v13179_v46 }
 0x8c2   : > { %v11360_v42 = vadd.f32 1.0, %v13181_v0  ;;  %v12676_v23 = vpop.f32.mrb[66].mxu1 }
 0x8c3   : > { %13194 = vrcp.f32 %v11361_v34  ;;  %v10835_v53 = vadd.f32 %v21563_v58, %v12676_v23  ;;  %v10829_v45 = vpop.f32.mrb[67].mxu1 }
 0x8c4   : > { %v13183_v35 = vpop.eup %13182  ;;  %13196 = vrcp.f32 %v11360_v42  ;;  %v10830_v63 = vadd.f32 %v21563_v58, %v10829_v45 }
 0x8c5   : > { %v13185_v4 = vpop.eup %13184  ;;  %v11411_v1 = vadd.f32 1.0, %v13183_v35  ;;  %v12179_v36 = vmul.f32 -1.442695, %v10835_v53 }
 0x8c6   : > { %v13187_v40 = vpop.eup %13186  ;;  %11742 = vst.msk [vmem:[%s19954_s12 + $0x1b8] sm:$0xff] %vm11686_vm0, %v13185_v4  ;;  %v12178_v28 = vmul.f32 -1.442695, %v10830_v63 }
 0x8c7   : > { %v13189_v22 = vpop.eup %13188  ;;  %11741 = vst.msk [vmem:[%s19954_s12 + $0x1b0] sm:$0xff] %vm11686_vm0, %v13187_v40  ;;  %13198 = vrcp.f32 %v11411_v1 }
 0x8c8   : > { %v11410_v7 = vadd.f32 1.0, %v13189_v22  ;;  %13200 = vpow2.f32 %v12179_v36  ;;  %v12679_v11 = vpop.f32.mrb[68].mxu1 }
 0x8c9   : > { %v13191_v57 = vpop.eup %13190  ;;  %13202 = vpow2.f32 %v12178_v28  ;;  %v10845_v5 = vadd.f32 %v21563_v58, %v12679_v11  ;;  %v10839_v49 = vpop.f32.mrb[69].mxu1 }
 0x8ca   : > { %v13193_v18 = vpop.eup %13192  ;;  %11744 = vst.msk [vmem:[%s19954_s12 + $0x1c8] sm:$0xff] %vm11686_vm0, %v13191_v57  ;;  %13204 = vrcp.f32 %v11410_v7  ;;  %v10840_v8 = vadd.f32 %v21563_v58, %v10839_v49 }
 0x8cb   : > { %11743 = vst.msk [vmem:[%s19954_s12 + $0x1c0] sm:$0xff] %vm11686_vm0, %v13193_v18  ;;  %v12181_v56 = vmul.f32 -1.442695, %v10845_v5 }
 0x8cc   : > { %v12180_v17 = vmul.f32 -1.442695, %v10840_v8 }
 0x8cd   : > { %v13195_v50 = vpop.eup %13194  ;;  %13206 = vpow2.f32 %v12181_v56 }
 0x8ce   : > { %v13197_v51 = vpop.eup %13196  ;;  %11746 = vst.msk [vmem:[%s19954_s12 + $0x1d8] sm:$0xff] %vm11686_vm0, %v13195_v50  ;;  %13208 = vpow2.f32 %v12180_v17 }
 0x8cf   : > { %11745 = vst.msk [vmem:[%s19954_s12 + $0x1d0] sm:$0xff] %vm11686_vm0, %v13197_v51 }
 0x8d1   : > { %v13199_v60 = vpop.eup %13198 }
 0x8d2   : > { %v13201_v37 = vpop.eup %13200  ;;  %11796 = vst.msk [vmem:[%s19954_s12 + $0x368] sm:$0xff] %vm11686_vm0, %v13199_v60  ;;  %v12601_v9 = vpop.f32.mrb[68].mxu0 }
 0x8d3   : > { %v13203_v14 = vpop.eup %13202  ;;  %v11413_v21 = vadd.f32 1.0, %v13201_v37  ;;  %v10585_v19 = vadd.f32 %v21563_v58, %v12601_v9  ;;  %v10579_v55 = vpop.f32.mrb[69].mxu0 }
 0x8d4   : > { %v13205_v39 = vpop.eup %13204  ;;  %v11412_v3 = vadd.f32 1.0, %v13203_v14  ;;  %v10580_v13 = vadd.f32 %v21563_v58, %v10579_v55 }
 0x8d5   : > { %11795 = vst.msk [vmem:[%s19954_s12 + $0x360] sm:$0xff] %vm11686_vm0, %v13205_v39  ;;  %13210 = vrcp.f32 %v11413_v21  ;;  %v12129_v25 = vmul.f32 -1.442695, %v10585_v19 }
 0x8d6   : > { %13212 = vrcp.f32 %v11412_v3  ;;  %v12128_v59 = vmul.f32 -1.442695, %v10580_v13 }
 0x8d7   : > { %v13207_v62 = vpop.eup %13206  ;;  %13214 = vpow2.f32 %v12129_v25 }
 0x8d8   : > { %v13209_v52 = vpop.eup %13208  ;;  %v11415_v24 = vadd.f32 1.0, %v13207_v62  ;;  %13216 = vpow2.f32 %v12128_v59  ;;  %v12682_v33 = vpop.f32.mrb[70].mxu1 }
 0x8d9   : > { %v11414_v54 = vadd.f32 1.0, %v13209_v52  ;;  %v10855_v2 = vadd.f32 %v21563_v58, %v12682_v33  ;;  %v10849_v30 = vpop.f32.mrb[71].mxu1 }
 0x8da   : > { %13218 = vrcp.f32 %v11415_v24  ;;  %v10850_v31 = vadd.f32 %v21563_v58, %v10849_v30 }
 0x8db   : > { %13220 = vrcp.f32 %v11414_v54  ;;  %v12183_v29 = vmul.f32 -1.442695, %v10855_v2 }
 0x8dc   : > { %v12182_v32 = vmul.f32 -1.442695, %v10850_v31 }
 0x8dd   : > { %13222 = vpow2.f32 %v12183_v29 }
 0x8de   : > { %13224 = vpow2.f32 %v12182_v32 }
 0x8df   : > { %v13211_v61 = vpop.eup %13210 }
 0x8e0   : > { %v13213_v15 = vpop.eup %13212  ;;  %11798 = vst.msk [vmem:[%s19954_s12 + $0x378] sm:$0xff] %vm11686_vm0, %v13211_v61 }
 0x8e1   : > { %v13215_v6 = vpop.eup %13214  ;;  %11797 = vst.msk [vmem:[%s19954_s12 + $0x370] sm:$0xff] %vm11686_vm0, %v13213_v15  ;;  %v12604_v41 = vpop.f32.mrb[70].mxu0 }
 0x8e2   : > { %v13217_v16 = vpop.eup %13216  ;;  %v11363_v20 = vadd.f32 1.0, %v13215_v6  ;;  %v10595_v26 = vadd.f32 %v21563_v58, %v12604_v41  ;;  %v10589_v48 = vpop.f32.mrb[71].mxu0 }
 0x8e3   : > { %v11362_v47 = vadd.f32 1.0, %v13217_v16  ;;  %v10590_v27 = vadd.f32 %v21563_v58, %v10589_v48 }
 0x8e4   : > { %v13219_v38 = vpop.eup %13218  ;;  %13226 = vrcp.f32 %v11363_v20  ;;  %v12131_v44 = vmul.f32 -1.442695, %v10595_v26 }
 0x8e5   : > { %v13221_v43 = vpop.eup %13220  ;;  %11800 = vst.msk [vmem:[%s19954_s12 + $0x388] sm:$0xff] %vm11686_vm0, %v13219_v38  ;;  %13228 = vrcp.f32 %v11362_v47  ;;  %v12130_v12 = vmul.f32 -1.442695, %v10590_v27 }
 0x8e6   : > { %v12607_v10 = vpop.f32.mrb[72].mxu0  ;;  %11799 = vst.msk [vmem:[%s19954_s12 + $0x380] sm:$0xff] %vm11686_vm0, %v13221_v43  ;;  %13230 = vpow2.f32 %v12131_v44 }
 0x8e7   : > { %v10605_v46 = vadd.f32 %v21563_v58, %v12607_v10  ;;  %v10599_v0 = vpop.f32.mrb[73].mxu0  ;;  %v13223_v34 = vpop.eup %13222  ;;  %13232 = vpow2.f32 %v12130_v12 }
 0x8e8   : > { %v10600_v42 = vadd.f32 %v21563_v58, %v10599_v0  ;;  %v13225_v23 = vpop.eup %13224  ;;  %v11417_v53 = vadd.f32 1.0, %v13223_v34 }
 0x8e9   : > { %v12133_v45 = vmul.f32 -1.442695, %v10605_v46  ;;  %v11416_v35 = vadd.f32 1.0, %v13225_v23 }
 0x8ea   : > { %v12132_v63 = vmul.f32 -1.442695, %v10600_v42  ;;  %13234 = vrcp.f32 %v11417_v53 }
 0x8eb   : > { %13236 = vrcp.f32 %v11416_v35 }
 0x8ec   : > { %13238 = vpow2.f32 %v12133_v45 }
 0x8ed   : > { %13240 = vpow2.f32 %v12132_v63 }
 0x8ee   : > { %v13227_v4 = vpop.eup %13226 }
 0x8ef   : > { %v13229_v1 = vpop.eup %13228  ;;  %11748 = vst.msk [vmem:[%s19954_s12 + $0x1e8] sm:$0xff] %vm11686_vm0, %v13227_v4 }
 0x8f0   : > { %v13231_v36 = vpop.eup %13230  ;;  %11747 = vst.msk [vmem:[%s19954_s12 + $0x1e0] sm:$0xff] %vm11686_vm0, %v13229_v1 }
 0x8f1   : > { %v13233_v40 = vpop.eup %13232  ;;  %v11365_v28 = vadd.f32 1.0, %v13231_v36  ;;  %v12685_v22 = vpop.f32.mrb[72].mxu1 }
 0x8f2   : > { %v11364_v7 = vadd.f32 1.0, %v13233_v40  ;;  %v10865_v11 = vadd.f32 %v21563_v58, %v12685_v22  ;;  %v10859_v57 = vpop.f32.mrb[73].mxu1 }
 0x8f3   : > { %13242 = vrcp.f32 %v11365_v28  ;;  %v10860_v5 = vadd.f32 %v21563_v58, %v10859_v57 }
 0x8f4   : > { %v13235_v49 = vpop.eup %13234  ;;  %13244 = vrcp.f32 %v11364_v7  ;;  %v12185_v18 = vmul.f32 -1.442695, %v10865_v11 }
 0x8f5   : > { %v13237_v8 = vpop.eup %13236  ;;  %11802 = vst.msk [vmem:[%s19954_s12 + $0x398] sm:$0xff] %vm11686_vm0, %v13235_v49  ;;  %v12184_v56 = vmul.f32 -1.442695, %v10860_v5 }
 0x8f6   : > { %v12610_v17 = vpop.f32.mrb[74].mxu0  ;;  %v13239_v50 = vpop.eup %13238  ;;  %11801 = vst.msk [vmem:[%s19954_s12 + $0x390] sm:$0xff] %vm11686_vm0, %v13237_v8  ;;  %13246 = vpow2.f32 %v12185_v18 }
 0x8f7   : > { %v10615_v51 = vadd.f32 %v21563_v58, %v12610_v17  ;;  %v10609_v60 = vpop.f32.mrb[75].mxu0  ;;  %v13241_v37 = vpop.eup %13240  ;;  %v11367_v9 = vadd.f32 1.0, %v13239_v50  ;;  %13248 = vpow2.f32 %v12184_v56 }
 0x8f8   : > { %v10610_v14 = vadd.f32 %v21563_v58, %v10609_v60  ;;  %v11366_v21 = vadd.f32 1.0, %v13241_v37 }
 0x8f9   : > { %v12135_v19 = vmul.f32 -1.442695, %v10615_v51  ;;  %13250 = vrcp.f32 %v11367_v9 }
 0x8fa   : > { %v12134_v55 = vmul.f32 -1.442695, %v10610_v14  ;;  %13252 = vrcp.f32 %v11366_v21 }
 0x8fb   : > { %13254 = vpow2.f32 %v12135_v19 }
 0x8fc   : > { %13256 = vpow2.f32 %v12134_v55 }
 0x8fd   : > { %v13243_v39 = vpop.eup %13242 }
 0x8fe   : > { %v13245_v3 = vpop.eup %13244  ;;  %11750 = vst.msk [vmem:[%s19954_s12 + $0x1f8] sm:$0xff] %vm11686_vm0, %v13243_v39 }
 0x8ff   : > { %11749 = vst.msk [vmem:[%s19954_s12 + $0x1f0] sm:$0xff] %vm11686_vm0, %v13245_v3 }
 0x900   : > { %v13247_v13 = vpop.eup %13246 }
 0x901   : > { %v13249_v25 = vpop.eup %13248  ;;  %v11419_v59 = vadd.f32 1.0, %v13247_v13  ;;  %v12688_v62 = vpop.f32.mrb[74].mxu1 }
 0x902   : > { %v11418_v52 = vadd.f32 1.0, %v13249_v25  ;;  %v10875_v24 = vadd.f32 %v21563_v58, %v12688_v62  ;;  %v10869_v33 = vpop.f32.mrb[75].mxu1 }
 0x903   : > { %v13251_v54 = vpop.eup %13250  ;;  %13258 = vrcp.f32 %v11419_v59  ;;  %v10870_v2 = vadd.f32 %v21563_v58, %v10869_v33 }
 0x904   : > { %v13253_v30 = vpop.eup %13252  ;;  %11752 = vst.msk [vmem:[%s19954_s12 + $0x208] sm:$0xff] %vm11686_vm0, %v13251_v54  ;;  %13260 = vrcp.f32 %v11418_v52  ;;  %v12187_v31 = vmul.f32 -1.442695, %v10875_v24 }
 0x905   : > { %v13255_v29 = vpop.eup %13254  ;;  %11751 = vst.msk [vmem:[%s19954_s12 + $0x200] sm:$0xff] %vm11686_vm0, %v13253_v30  ;;  %v12186_v32 = vmul.f32 -1.442695, %v10870_v2 }
 0x906   : > { %v13257_v61 = vpop.eup %13256  ;;  %v11369_v15 = vadd.f32 1.0, %v13255_v29  ;;  %13262 = vpow2.f32 %v12187_v31  ;;  %v12691_v41 = vpop.f32.mrb[76].mxu1 }
 0x907   : > { %v11368_v6 = vadd.f32 1.0, %v13257_v61  ;;  %13264 = vpow2.f32 %v12186_v32  ;;  %v10885_v16 = vadd.f32 %v21563_v58, %v12691_v41  ;;  %v10879_v20 = vpop.f32.mrb[77].mxu1 }
 0x908   : > { %13266 = vrcp.f32 %v11369_v15  ;;  %v10880_v26 = vadd.f32 %v21563_v58, %v10879_v20 }
 0x909   : > { %13268 = vrcp.f32 %v11368_v6  ;;  %v12189_v48 = vmul.f32 -1.442695, %v10885_v16 }
 0x90a   : > { %v12188_v47 = vmul.f32 -1.442695, %v10880_v26 }
 0x90b   : > { %13270 = vpow2.f32 %v12189_v48 }
 0x90c   : > { %13272 = vpow2.f32 %v12188_v47 }
 0x90d   : > { %v13259_v27 = vpop.eup %13258 }
 0x90e   : > { %v13261_v38 = vpop.eup %13260  ;;  %11804 = vst.msk [vmem:[%s19954_s12 + $0x3a8] sm:$0xff] %vm11686_vm0, %v13259_v27 }
 0x90f   : > { %11803 = vst.msk [vmem:[%s19954_s12 + $0x3a0] sm:$0xff] %vm11686_vm0, %v13261_v38 }
 0x910   : > { %v13263_v44 = vpop.eup %13262 }
 0x911   : > { %v13265_v43 = vpop.eup %13264  ;;  %v11421_v12 = vadd.f32 1.0, %v13263_v44  ;;  %v12613_v10 = vpop.f32.mrb[76].mxu0 }
 0x912   : > { %v13267_v46 = vpop.eup %13266  ;;  %v11420_v0 = vadd.f32 1.0, %v13265_v43  ;;  %v10625_v34 = vadd.f32 %v21563_v58, %v12613_v10  ;;  %v10619_v42 = vpop.f32.mrb[77].mxu0 }
 0x913   : > { %v13269_v23 = vpop.eup %13268  ;;  %11754 = vst.msk [vmem:[%s19954_s12 + $0x218] sm:$0xff] %vm11686_vm0, %v13267_v46  ;;  %13274 = vrcp.f32 %v11421_v12  ;;  %v10620_v53 = vadd.f32 %v21563_v58, %v10619_v42 }
 0x914   : > { %11753 = vst.msk [vmem:[%s19954_s12 + $0x210] sm:$0xff] %vm11686_vm0, %v13269_v23  ;;  %13276 = vrcp.f32 %v11420_v0  ;;  %v12137_v45 = vmul.f32 -1.442695, %v10625_v34 }
 0x915   : > { %v12136_v35 = vmul.f32 -1.442695, %v10620_v53  ;;  %v13271_v63 = vpop.eup %13270 }
 0x916   : > { %13278 = vpow2.f32 %v12137_v45  ;;  %v13273_v4 = vpop.eup %13272  ;;  %v11423_v1 = vadd.f32 1.0, %v13271_v63 }
 0x917   : > { %13280 = vpow2.f32 %v12136_v35  ;;  %v12694_v36 = vpop.f32.mrb[78].mxu1  ;;  %v11422_v40 = vadd.f32 1.0, %v13273_v4 }
 0x918   : > { %v10895_v28 = vadd.f32 %v21563_v58, %v12694_v36  ;;  %v10889_v22 = vpop.f32.mrb[79].mxu1  ;;  %13282 = vrcp.f32 %v11423_v1 }
 0x919   : > { %v10890_v7 = vadd.f32 %v21563_v58, %v10889_v22  ;;  %13284 = vrcp.f32 %v11422_v40 }
 0x91a   : > { %v12191_v11 = vmul.f32 -1.442695, %v10895_v28 }
 0x91b   : > { %v12190_v57 = vmul.f32 -1.442695, %v10890_v7 }
 0x91c   : > { %13286 = vpow2.f32 %v12191_v11 }
 0x91d   : > { %v13275_v5 = vpop.eup %13274  ;;  %13288 = vpow2.f32 %v12190_v57 }
 0x91e   : > { %v13277_v49 = vpop.eup %13276  ;;  %11806 = vst.msk [vmem:[%s19954_s12 + $0x3b8] sm:$0xff] %vm11686_vm0, %v13275_v5 }
 0x91f   : > { %v12616_v18 = vpop.f32.mrb[78].mxu0  ;;  %11805 = vst.msk [vmem:[%s19954_s12 + $0x3b0] sm:$0xff] %vm11686_vm0, %v13277_v49 }
 0x920   : > { %v10635_v8 = vadd.f32 %v21563_v58, %v12616_v18  ;;  %v10629_v56 = vpop.f32.mrb[79].mxu0  ;;  %v13279_v17 = vpop.eup %13278 }
 0x921   : > { %v10630_v50 = vadd.f32 %v21563_v58, %v10629_v56  ;;  %v13281_v51 = vpop.eup %13280  ;;  %v11371_v60 = vadd.f32 1.0, %v13279_v17 }
 0x922   : > { %v12139_v37 = vmul.f32 -1.442695, %v10635_v8  ;;  %v11370_v9 = vadd.f32 1.0, %v13281_v51  ;;  %v13283_v55 = vpop.eup %13282 }
 0x923   : > { %v12138_v14 = vmul.f32 -1.442695, %v10630_v50  ;;  %v12619_v21 = vpop.f32.mrb[80].mxu0  ;;  %v12697_v19 = vpop.f32.mrb[80].mxu1  ;;  %13290 = vrcp.f32 %v11371_v60  ;;  %11808 = vst.msk [vmem:[%s19954_s12 + $0x3c8] sm:$0xff] %vm11686_vm0, %v13283_v55 }
 0x924   : > { %v10645_v39 = vadd.f32 %v21563_v58, %v12619_v21  ;;  %v10905_v3 = vadd.f32 %v21563_v58, %v12697_v19  ;;  %v10639_v13 = vpop.f32.mrb[81].mxu0  ;;  %v10899_v25 = vpop.f32.mrb[81].mxu1  ;;  %13292 = vrcp.f32 %v11370_v9 }
 0x925   : > { %v13285_v59 = vpop.eup %13284  ;;  %v10640_v62 = vadd.f32 %v21563_v58, %v10639_v13  ;;  %v10900_v52 = vadd.f32 %v21563_v58, %v10899_v25  ;;  %13294 = vpow2.f32 %v12139_v37 }
 0x926   : > { %11807 = vst.msk [vmem:[%s19954_s12 + $0x3c0] sm:$0xff] %vm11686_vm0, %v13285_v59  ;;  %v12141_v24 = vmul.f32 -1.442695, %v10645_v39  ;;  %v12193_v33 = vmul.f32 -1.442695, %v10905_v3  ;;  %v13287_v54 = vpop.eup %13286  ;;  %13296 = vpow2.f32 %v12138_v14 }
 0x927   : > { %v12140_v2 = vmul.f32 -1.442695, %v10640_v62  ;;  %v12192_v30 = vmul.f32 -1.442695, %v10900_v52  ;;  %v12622_v31 = vpop.f32.mrb[82].mxu0  ;;  %v12700_v29 = vpop.f32.mrb[82].mxu1 }
 0x928   : > { %v13289_v32 = vpop.eup %13288  ;;  %v11425_v61 = vadd.f32 1.0, %v13287_v54  ;;  %13298 = vpow2.f32 %v12141_v24  ;;  %v10655_v15 = vadd.f32 %v21563_v58, %v12622_v31  ;;  %v10915_v6 = vadd.f32 %v21563_v58, %v12700_v29  ;;  %v10649_v41 = vpop.f32.mrb[83].mxu0 }
 0x929   : > { %v10909_v16 = vpop.f32.mrb[83].mxu1  ;;  %v11424_v20 = vadd.f32 1.0, %v13289_v32  ;;  %13300 = vpow2.f32 %v12193_v33  ;;  %v10650_v26 = vadd.f32 %v21563_v58, %v10649_v41 }
 0x92a   : > { %v10910_v48 = vadd.f32 %v21563_v58, %v10909_v16  ;;  %13302 = vrcp.f32 %v11425_v61  ;;  %v12143_v47 = vmul.f32 -1.442695, %v10655_v15  ;;  %v12195_v27 = vmul.f32 -1.442695, %v10915_v6 }
 0x92b   : > { %13304 = vrcp.f32 %v11424_v20  ;;  %v12142_v38 = vmul.f32 -1.442695, %v10650_v26 }
 0x92c   : > { %13306 = vpow2.f32 %v12140_v2  ;;  %v12194_v44 = vmul.f32 -1.442695, %v10910_v48 }
 0x92d   : > { %13308 = vpow2.f32 %v12192_v30  ;;  %v13291_v43 = vpop.eup %13290 }
 0x92e   : > { %13310 = vpow2.f32 %v12143_v47  ;;  %v13293_v12 = vpop.eup %13292  ;;  %11756 = vst.msk [vmem:[%s19954_s12 + $0x228] sm:$0xff] %vm11686_vm0, %v13291_v43 }
 0x92f   : > { %13312 = vpow2.f32 %v12195_v27  ;;  %v13295_v10 = vpop.eup %13294  ;;  %11755 = vst.msk [vmem:[%s19954_s12 + $0x220] sm:$0xff] %vm11686_vm0, %v13293_v12 }
 0x930   : > { %13314 = vpow2.f32 %v12142_v38  ;;  %v13297_v58 = vpop.eup %13296  ;;  %v11373_v46 = vadd.f32 1.0, %v13295_v10 }
 0x931   : > { %13316 = vpow2.f32 %v12194_v44  ;;  %v11372_v34 = vadd.f32 1.0, %v13297_v58 }
 0x932   : > { %v13299_v0 = vpop.eup %13298  ;;  %13318 = vrcp.f32 %v11373_v46 }
 0x933   : > { %v13301_v42 = vpop.eup %13300  ;;  %v11375_v23 = vadd.f32 1.0, %v13299_v0  ;;  %13320 = vrcp.f32 %v11372_v34 }
 0x934   : > { %v13303_v53 = vpop.eup %13302  ;;  %v11427_v45 = vadd.f32 1.0, %v13301_v42 }
 0x935   : > { %v13305_v35 = vpop.eup %13304  ;;  %11810 = vst.msk [vmem:[%s19954_s12 + $0x3d8] sm:$0xff] %vm11686_vm0, %v13303_v53  ;;  %13322 = vrcp.f32 %v11375_v23 }
 0x936   : > { %v13307_v63 = vpop.eup %13306  ;;  %11809 = vst.msk [vmem:[%s19954_s12 + $0x3d0] sm:$0xff] %vm11686_vm0, %v13305_v35  ;;  %13324 = vrcp.f32 %v11427_v45 }
 0x937   : > { %v13309_v4 = vpop.eup %13308  ;;  %v11374_v1 = vadd.f32 1.0, %v13307_v63 }
 0x938   : > { %v13311_v36 = vpop.eup %13310  ;;  %v11426_v40 = vadd.f32 1.0, %v13309_v4 }
 0x939   : > { %v13313_v28 = vpop.eup %13312  ;;  %13326 = vrcp.f32 %v11374_v1  ;;  %v11377_v22 = vadd.f32 1.0, %v13311_v36 }
 0x93a   : > { %v13315_v7 = vpop.eup %13314  ;;  %13328 = vrcp.f32 %v11426_v40  ;;  %v11429_v11 = vadd.f32 1.0, %v13313_v28 }
 0x93b   : > { %v13317_v57 = vpop.eup %13316  ;;  %13330 = vrcp.f32 %v11377_v22  ;;  %v11376_v5 = vadd.f32 1.0, %v13315_v7 }
 0x93c   : > { %13332 = vrcp.f32 %v11429_v11  ;;  %v11428_v49 = vadd.f32 1.0, %v13317_v57  ;;  %v13319_v18 = vpop.eup %13318 }
 0x93d   : > { %13334 = vrcp.f32 %v11376_v5  ;;  %v13321_v8 = vpop.eup %13320  ;;  %11758 = vst.msk [vmem:[%s19954_s12 + $0x238] sm:$0xff] %vm11686_vm0, %v13319_v18 }
 0x93e   : > { %13336 = vrcp.f32 %v11428_v49  ;;  %11757 = vst.msk [vmem:[%s19954_s12 + $0x230] sm:$0xff] %vm11686_vm0, %v13321_v8 }
 0x93f   : > { %v13323_v56 = vpop.eup %13322 }
 0x940   : > { %v13325_v17 = vpop.eup %13324  ;;  %11760 = vst.msk [vmem:[%s19954_s12 + $0x248] sm:$0xff] %vm11686_vm0, %v13323_v56 }
 0x941   : > { %11812 = vst.msk [vmem:[%s19954_s12 + $0x3e8] sm:$0xff] %vm11686_vm0, %v13325_v17 }
 0x943   : > { %v13327_v50 = vpop.eup %13326 }
 0x944   : > { %v13329_v51 = vpop.eup %13328  ;;  %11759 = vst.msk [vmem:[%s19954_s12 + $0x240] sm:$0xff] %vm11686_vm0, %v13327_v50 }
 0x945   : > { %v13331_v60 = vpop.eup %13330  ;;  %11811 = vst.msk [vmem:[%s19954_s12 + $0x3e0] sm:$0xff] %vm11686_vm0, %v13329_v51 }
 0x946   : > { %v13333_v37 = vpop.eup %13332  ;;  %11762 = vst.msk [vmem:[%s19954_s12 + $0x258] sm:$0xff] %vm11686_vm0, %v13331_v60 }
 0x947   : > { %v13335_v9 = vpop.eup %13334  ;;  %11814 = vst.msk [vmem:[%s19954_s12 + $0x3f8] sm:$0xff] %vm11686_vm0, %v13333_v37 }
 0x948   : > { %v13337_v14 = vpop.eup %13336  ;;  %11761 = vst.msk [vmem:[%s19954_s12 + $0x250] sm:$0xff] %vm11686_vm0, %v13335_v9 }
 0x949   : > { %11813 = vst.msk [vmem:[%s19954_s12 + $0x3f0] sm:$0xff] %vm11686_vm0, %v13337_v14 }
 0x94a PF: > { %s18_s24 = sadd.s32 1, %s13381_s24  }
 0x94b   : > { %p15_p3 = scmp.ge.s32.totalorder %s18_s24, 4  }
 0x94d   :  { %17 = sbr.rel (!%p15_p3) target bundleno = 1 (0x1), region = 83 }
 0x954   :  { %11836 = vsyncpa [#allocation3], 1 }
 0x955   :  { %11838 = vsyncpa [#allocation3 + $0x1], 1 }

</bundles_post_ra>
